<compile_context>
chip_gen: v7x
topology: tpu7x:2x2x1
jax: 0.10.0
libtpu: 0.0.40
codegen_flags: <defaults>
</compile_context>

<pallas_src>
import jax
import jax.numpy as jnp
from jax import lax
from jax.experimental import pallas as pl
from jax.experimental.pallas import tpu as pltpu


def _round_up(x, m):
    return (x + m - 1) // m * m


# Gate layout used inside the kernel: [i, f, o, g]  (PyTorch source order is i, f, g, o).
# This lets cell_update do one sigmoid over the first 3*Hp lanes and one tanh over the
# last Hp lanes.
_GATE_ORDER = (0, 1, 3, 2)


# ---------------------------------------------------------------------------
# Kernel factory (closes over static T, TS, tail-guard flag, unroll factor)
# ---------------------------------------------------------------------------
def _make_lstm_stack_kernel(t_total, ts, guard_tail, unroll):
    def kernel(xg0_ref,              # (TS, Bp, 4*Hp) bf16  precomputed x@Wih0 + b0
               whh0_ref,             # (Hp, 4*Hp)   bf16
               w1_ref, b1_ref,       # (2*Hp, 4*Hp) bf16, (1, 4*Hp) f32   fused ih|hh
               w2_ref, b2_ref,       # (2*Hp, 4*Hp) bf16, (1, 4*Hp) f32   fused ih|hh
               h_out_ref,            # (Bp, Hp) f32  last-timestep h of layer 3
               state_ref):           # VMEM (6, Bp, Hp) f32: h1,c1,h2,c2,h3,c3
        B, Hp = h_out_ref.shape
        s = pl.program_id(0)

        @pl.when(s == 0)
        def _init():
            state_ref[...] = jnp.zeros_like(state_ref)

        h1 = state_ref[0]
        c1 = state_ref[1]
        h2 = state_ref[2]
        c2 = state_ref[3]
        h3 = state_ref[4]
        c3 = state_ref[5]

        whh0 = whh0_ref[...]          # bf16 RHS
        w1 = w1_ref[...]              # bf16 RHS
        w2 = w2_ref[...]              # bf16 RHS
        # Hoist bias broadcasts out of the per-timestep loop (JAX doesn't CSE broadcasts).
        b1 = jnp.broadcast_to(b1_ref[...], (B, 4 * Hp))
        b2 = jnp.broadcast_to(b2_ref[...], (B, 4 * Hp))

        def cell_update(gates, c):
            # Gate layout [i, f, o, g]; all slices are Hp(=128)-lane aligned -> free.
            sig = jax.nn.sigmoid(gates[:, :3 * Hp])     # one EUP region: i, f, o
            g_g = jnp.tanh(gates[:, 3 * Hp:])           # one EUP region: g
            i_g = sig[:, 0 * Hp:1 * Hp]
            f_g = sig[:, 1 * Hp:2 * Hp]
            o_g = sig[:, 2 * Hp:3 * Hp]
            c_new = f_g * c + i_g * g_g
            h_new = o_g * jnp.tanh(c_new)
            return h_new, c_new

        def step(t, carry):
            h1, c1, h2, c2, h3, c3 = carry
            # Layer 0: input projection precomputed; only the recurrent matmul remains.
            g0 = xg0_ref[t].astype(jnp.float32) + jnp.dot(
                h1.astype(jnp.bfloat16), whh0, preferred_element_type=jnp.float32)
            h1n, c1n = cell_update(g0, c1)
            # Layer 1: single fused matmul on the lane-aligned concat [h1 | h2].
            g1 = jnp.dot(jnp.concatenate([h1n, h2], axis=-1).astype(jnp.bfloat16), w1,
                         preferred_element_type=jnp.float32) + b1
            h2n, c2n = cell_update(g1, c2)
            # Layer 2.
            g2 = jnp.dot(jnp.concatenate([h2n, h3], axis=-1).astype(jnp.bfloat16), w2,
                         preferred_element_type=jnp.float32) + b2
            h3n, c3n = cell_update(g2, c3)
            new = (h1n, c1n, h2n, c2n, h3n, c3n)
            if guard_tail:
                # Padded tail timesteps (beyond the true sequence length) must not
                # update the carried state.
                valid = (s * ts + t) < t_total
                new = tuple(jnp.where(valid, n, o) for n, o in zip(new, carry))
            return new

        carry = lax.fori_loop(0, ts, step, (h1, c1, h2, c2, h3, c3), unroll=unroll)
        h1, c1, h2, c2, h3, c3 = carry

        state_ref[0] = h1
        state_ref[1] = c1
        state_ref[2] = h2
        state_ref[3] = c2
        state_ref[4] = h3
        state_ref[5] = c3

        @pl.when(s == pl.num_programs(0) - 1)
        def _finalize():
            h_out_ref[...] = h3

    return kernel


# ---------------------------------------------------------------------------
# Parameter prep: PyTorch layout -> padded / reordered / fused kernel layout
# ---------------------------------------------------------------------------
def _pad_gate_cols(w_t, H, Hp, rows_p=None):
    """w_t: (rows, 4H) in PyTorch gate order i,f,g,o.
    Returns (rows_p, 4*Hp) f32 with kernel gate order i,f,o,g, gate k at cols
    [k*Hp, k*Hp+H); padded rows/cols are zero."""
    rows = w_t.shape[0]
    rows_p = rows if rows_p is None else rows_p
    out = jnp.zeros((rows_p, 4 * Hp), jnp.float32)
    for k_dst, k_src in enumerate(_GATE_ORDER):
        out = out.at[:rows, k_dst * Hp:k_dst * Hp + H].set(
            w_t[:, k_src * H:(k_src + 1) * H])
    return out


def _prepare_kernel_params(params, H, Hp):
    (wih0, whh0, bih0, bhh0,
     wih1, whh1, bih1, bhh1,
     wih2, whh2, bih2, bhh2,
     _wfc, _bfc) = params

    wih0_p = _pad_gate_cols(wih0.T, H, Hp)                               # (F, 4Hp) f32
    b0_p = _pad_gate_cols((bih0 + bhh0).reshape(1, -1), H, Hp)           # (1, 4Hp) f32
    whh0_p = _pad_gate_cols(whh0.T, H, Hp, rows_p=Hp)                    # (Hp, 4Hp)

    def fuse(wih, whh):
        top = _pad_gate_cols(wih.T, H, Hp, rows_p=Hp)   # multiplies prev-layer h
        bot = _pad_gate_cols(whh.T, H, Hp, rows_p=Hp)   # multiplies own h
        return jnp.concatenate([top, bot], axis=0)      # (2Hp, 4Hp)

    w1c = fuse(wih1, whh1)
    b1_p = _pad_gate_cols((bih1 + bhh1).reshape(1, -1), H, Hp)
    w2c = fuse(wih2, whh2)
    b2_p = _pad_gate_cols((bih2 + bhh2).reshape(1, -1), H, Hp)

    # bf16 MXU operands for the recurrent matmuls (biases stay f32; they are added to
    # the f32 dot result outside the MXU).
    return (wih0_p, b0_p,
            whh0_p.astype(jnp.bfloat16),
            w1c.astype(jnp.bfloat16), b1_p,
            w2c.astype(jnp.bfloat16), b2_p)


# ---------------------------------------------------------------------------
# Forward wrapper (matches LSTM_Regression.forward with int LSTM_size -> 3 layers)
# ---------------------------------------------------------------------------
def lstm_regression_forward(x, params, *, hidden_size, output_dim, time_chunk=None):
    """x: (B, T, F) float32 batch-first (like PyTorch). Returns (B, output_dim)."""
    B, T, F = x.shape
    H = hidden_size
    Hp = _round_up(H, 128)     # lane-align each gate block
    Bp = _round_up(B, 8)       # full sublane tile

    (wih0_p, b0_p, whh0_bf, w1_bf, b1_p, w2_bf, b2_p) = _prepare_kernel_params(
        params, H, Hp)
    wfc, bfc = params[-2], params[-1]            # PyTorch layout: (OUT, H), (OUT,)

    # Pad batch up to a full sublane tile.
    x_f32 = x.astype(jnp.float32)
    if Bp != B:
        x_f32 = jnp.pad(x_f32, ((0, Bp - B), (0, 0), (0, 0)))

    # Precompute the layer-0 input projection for ALL timesteps as one XLA matmul,
    # with the combined layer-0 bias folded in. Time-major so the kernel chunks on T.
    x_tm = jnp.transpose(x_f32, (1, 0, 2))                               # (T, Bp, F)
    xg0 = (x_tm.reshape(T * Bp, F) @ wih0_p + b0_p).reshape(T, Bp, 4 * Hp)

    # Time chunking: pad T up to a multiple of TS (tail timesteps masked in-kernel).
    if time_chunk is None:
        time_chunk = min(T, 32)
    TS = int(time_chunk)
    T_pad = _round_up(T, TS)
    n_chunks = T_pad // TS
    if T_pad != T:
        xg0 = jnp.pad(xg0, ((0, T_pad - T), (0, 0), (0, 0)))
    xg0 = xg0.astype(jnp.bfloat16)               # halve the streamed HBM traffic
    guard_tail = (T_pad != T)

    kernel = _make_lstm_stack_kernel(T, TS, guard_tail, unroll=min(8, TS))

    # Constant operands: block index never changes -> single-buffer them.
    def const2d(shape):
        return pl.BlockSpec(shape, lambda s: (0, 0), pipeline_mode=pl.Buffered(1))

    grid_spec = pltpu.PrefetchScalarGridSpec(
        num_scalar_prefetch=0,
        grid=(n_chunks,),
        in_specs=[
            pl.BlockSpec((TS, Bp, 4 * Hp), lambda s: (s, 0, 0)),         # xg0 chunk
            const2d((Hp, 4 * Hp)),                                       # whh0 (bf16)
            const2d((2 * Hp, 4 * Hp)), const2d((1, 4 * Hp)),             # layer 1 fused
            const2d((2 * Hp, 4 * Hp)), const2d((1, 4 * Hp)),             # layer 2 fused
        ],
        out_specs=pl.BlockSpec((Bp, Hp), lambda s: (0, 0)),
        scratch_shapes=[pltpu.VMEM((6, Bp, Hp), jnp.float32)],           # h/c carry
    )

    h3 = pl.pallas_call(
        kernel,
        out_shape=jax.ShapeDtypeStruct((Bp, Hp), jnp.float32),
        grid_spec=grid_spec,
        compiler_params=pltpu.CompilerParams(dimension_semantics=("arbitrary",)),
    )(xg0, whh0_bf, w1_bf, b1_p, w2_bf, b2_p)

    # Final Linear on the last timestep: output_dim is lane-sparse, so do it in XLA
    # on the kernel's dense (Bp, Hp) hidden-state output; slice padding back off.
    return h3[:B, :H] @ wfc.T + bfc


# ---------------------------------------------------------------------------
# Init (PyTorch-style uniform) and pure-JAX reference
# ---------------------------------------------------------------------------
def init_params(key, num_input_features, hidden_size, output_dim):
    F, H = num_input_features, hidden_size
    stdv = 1.0 / float(H) ** 0.5
    keys = jax.random.split(key, 14)

    def u(k, shape):
        return jax.random.uniform(k, shape, jnp.float32, -stdv, stdv)

    params = []
    in_sizes = [F, H, H]
    ki = 0
    for layer in range(3):
        params.append(u(keys[ki], (4 * H, in_sizes[layer]))); ki += 1    # w_ih
        params.append(u(keys[ki], (4 * H, H))); ki += 1                  # w_hh
        params.append(u(keys[ki], (4 * H,))); ki += 1                    # b_ih
        params.append(u(keys[ki], (4 * H,))); ki += 1                    # b_hh
    params.append(u(keys[ki], (output_dim, H))); ki += 1                 # w_fc
    params.append(u(keys[ki], (output_dim,))); ki += 1                   # b_fc
    return tuple(params)


def lstm_regression_ref(x, params, *, hidden_size):
    """Pure-JAX f32 replica of nn.LSTM(3 layers, batch_first) + Linear on out[:, -1, :]."""
    H = hidden_size
    (wih0, whh0, bih0, bhh0,
     wih1, whh1, bih1, bhh1,
     wih2, whh2, bih2, bhh2, wfc, bfc) = params
    B, T, F = x.shape

    def cell(x_t, h, c, wih, whh, b):
        gates = x_t @ wih.T + h @ whh.T + b
        i = jax.nn.sigmoid(gates[:, :H])
        f = jax.nn.sigmoid(gates[:, H:2 * H])
        g = jnp.tanh(gates[:, 2 * H:3 * H])
        o = jax.nn.sigmoid(gates[:, 3 * H:])
        c = f * c + i * g
        h = o * jnp.tanh(c)
        return h, c

    h1 = c1 = h2 = c2 = h3 = c3 = jnp.zeros((B, H), jnp.float32)
    for t in range(T):
        h1, c1 = cell(x[:, t], h1, c1, wih0, whh0, bih0 + bhh0)
        h2, c2 = cell(h1, h2, c2, wih1, whh1, bih1 + bhh1)
        h3, c3 = cell(h2, h3, c3, wih2, whh2, bih2 + bhh2)
    return h3 @ wfc.T + bfc


if __name__ == "__main__":
    B, T, F = 2, 8, 4          # batch, seq, num_input_features
    H, OUT = 32, 3             # LSTM_size (int path -> 3 stacked layers), output_dim

    key = jax.random.PRNGKey(0)
    kx, kp = jax.random.split(key)
    x = jax.random.normal(kx, (B, T, F), jnp.float32)
    params = init_params(kp, F, H, OUT)

    out = lstm_regression_forward(x, params, hidden_size=H, output_dim=OUT)
    out = jax.block_until_ready(out)

    ref = lstm_regression_ref(x, params, hidden_size=H)
    assert out.shape == (B, OUT)
    # bf16 MXU operands (weights + streamed xg0) with f32 accumulate / f32 gate math:
    # loosened tolerance vs the all-f32 reference.
    assert jnp.allclose(out, ref, atol=3e-2, rtol=3e-2), (out, ref)

    print("KERNEL_OK")
</pallas_src>

<mosaic_0001>
module attributes {stable_mosaic.version = 11 : i64} {
  func.func @kernel(%arg0: i32, %arg1: memref<8x8x512xbf16, #tpu.memory_space<vmem>>, %arg2: memref<128x512xbf16, #tpu.memory_space<vmem>>, %arg3: memref<256x512xbf16, #tpu.memory_space<vmem>>, %arg4: memref<1x512xf32, #tpu.memory_space<vmem>>, %arg5: memref<256x512xbf16, #tpu.memory_space<vmem>>, %arg6: memref<1x512xf32, #tpu.memory_space<vmem>>, %arg7: memref<8x128xf32, #tpu.memory_space<vmem>>, %arg8: memref<6x8x128xf32, #tpu.memory_space<vmem>>) attributes {dimension_semantics = [#tpu.dimension_semantics<arbitrary>], iteration_bounds = array<i64: 1>, scalar_prefetch = 0 : i64, scratch_operands = 1 : i64, tpu.core_type = #tpu.core_type<tc>, window_params = [{transform_indices = @transform_0, window_bounds = array<i64: 8, 8, 512>}, {pipeline_mode = #tpu.pipeline_mode<synchronous>, transform_indices = @transform_1, window_bounds = array<i64: 128, 512>}, {pipeline_mode = #tpu.pipeline_mode<synchronous>, transform_indices = @transform_2, window_bounds = array<i64: 256, 512>}, {pipeline_mode = #tpu.pipeline_mode<synchronous>, transform_indices = @transform_3, window_bounds = array<i64: 1, 512>}, {pipeline_mode = #tpu.pipeline_mode<synchronous>, transform_indices = @transform_4, window_bounds = array<i64: 256, 512>}, {pipeline_mode = #tpu.pipeline_mode<synchronous>, transform_indices = @transform_5, window_bounds = array<i64: 1, 512>}, {pipeline_mode = #tpu.pipeline_mode<synchronous>, transform_indices = @transform_6, window_bounds = array<i64: 8, 128>}]} {
    %c0_i32 = arith.constant 0 : i32
    %0 = arith.cmpi eq, %arg0, %c0_i32 : i32
    %1 = arith.extui %0 : i1 to i32
    %c0_i32_0 = arith.constant 0 : i32
    %2 = arith.cmpi ne, %1, %c0_i32_0 : i32
    scf.if %2 {
      %cst_107 = arith.constant 0.000000e+00 : f32
      %549 = vector.broadcast %cst_107 : f32 to vector<6x8x128xf32>
      %c0_108 = arith.constant 0 : index
      %c0_109 = arith.constant 0 : index
      %c0_110 = arith.constant 0 : index
      %550 = vector.load %arg8[%c0_108, %c0_109, %c0_110] : memref<6x8x128xf32, #tpu.memory_space<vmem>>, vector<6x8x128xf32>
      tpu.vector_store %arg8[%c0_108, %c0_109, %c0_110], %549 {strides = array<i32>} : memref<6x8x128xf32, #tpu.memory_space<vmem>>, vector<6x8x128xf32>,
    } else {
    }
    %c0 = arith.constant 0 : index
    %c0_1 = arith.constant 0 : index
    %c0_2 = arith.constant 0 : index
    %3 = vector.load %arg8[%c0, %c0_1, %c0_2] : memref<6x8x128xf32, #tpu.memory_space<vmem>>, vector<1x8x128xf32>
    %4 = vector.shape_cast %3 : vector<1x8x128xf32> to vector<8x128xf32>
    %c1 = arith.constant 1 : index
    %c0_3 = arith.constant 0 : index
    %c0_4 = arith.constant 0 : index
    %5 = vector.load %arg8[%c1, %c0_3, %c0_4] : memref<6x8x128xf32, #tpu.memory_space<vmem>>, vector<1x8x128xf32>
    %6 = vector.shape_cast %5 : vector<1x8x128xf32> to vector<8x128xf32>
    %c2 = arith.constant 2 : index
    %c0_5 = arith.constant 0 : index
    %c0_6 = arith.constant 0 : index
    %7 = vector.load %arg8[%c2, %c0_5, %c0_6] : memref<6x8x128xf32, #tpu.memory_space<vmem>>, vector<1x8x128xf32>
    %8 = vector.shape_cast %7 : vector<1x8x128xf32> to vector<8x128xf32>
    %c3 = arith.constant 3 : index
    %c0_7 = arith.constant 0 : index
    %c0_8 = arith.constant 0 : index
    %9 = vector.load %arg8[%c3, %c0_7, %c0_8] : memref<6x8x128xf32, #tpu.memory_space<vmem>>, vector<1x8x128xf32>
    %10 = vector.shape_cast %9 : vector<1x8x128xf32> to vector<8x128xf32>
    %c4 = arith.constant 4 : index
    %c0_9 = arith.constant 0 : index
    %c0_10 = arith.constant 0 : index
    %11 = vector.load %arg8[%c4, %c0_9, %c0_10] : memref<6x8x128xf32, #tpu.memory_space<vmem>>, vector<1x8x128xf32>
    %12 = vector.shape_cast %11 : vector<1x8x128xf32> to vector<8x128xf32>
    %c5 = arith.constant 5 : index
    %c0_11 = arith.constant 0 : index
    %c0_12 = arith.constant 0 : index
    %13 = vector.load %arg8[%c5, %c0_11, %c0_12] : memref<6x8x128xf32, #tpu.memory_space<vmem>>, vector<1x8x128xf32>
    %14 = vector.shape_cast %13 : vector<1x8x128xf32> to vector<8x128xf32>
    %c0_13 = arith.constant 0 : index
    %c0_14 = arith.constant 0 : index
    %15 = vector.load %arg2[%c0_13, %c0_14] : memref<128x512xbf16, #tpu.memory_space<vmem>>, vector<128x512xbf16>
    %c0_15 = arith.constant 0 : index
    %c0_16 = arith.constant 0 : index
    %16 = vector.load %arg3[%c0_15, %c0_16] : memref<256x512xbf16, #tpu.memory_space<vmem>>, vector<256x512xbf16>
    %c0_17 = arith.constant 0 : index
    %c0_18 = arith.constant 0 : index
    %17 = vector.load %arg5[%c0_17, %c0_18] : memref<256x512xbf16, #tpu.memory_space<vmem>>, vector<256x512xbf16>
    %c0_19 = arith.constant 0 : index
    %c0_20 = arith.constant 0 : index
    %18 = vector.load %arg4[%c0_19, %c0_20] : memref<1x512xf32, #tpu.memory_space<vmem>>, vector<1x512xf32>
    %19 = vector.shape_cast %18 : vector<1x512xf32> to vector<1x512xf32>
    %20 = vector.broadcast %19 : vector<1x512xf32> to vector<8x512xf32>
    %c0_21 = arith.constant 0 : index
    %c0_22 = arith.constant 0 : index
    %21 = vector.load %arg6[%c0_21, %c0_22] : memref<1x512xf32, #tpu.memory_space<vmem>>, vector<1x512xf32>
    %22 = vector.shape_cast %21 : vector<1x512xf32> to vector<1x512xf32>
    %23 = vector.broadcast %22 : vector<1x512xf32> to vector<8x512xf32>
    %c0_i32_23 = arith.constant 0 : i32
    %24 = arith.index_cast %c0_i32_23 : i32 to index
    %c0_24 = arith.constant 0 : index
    %c0_25 = arith.constant 0 : index
    %25 = vector.load %arg1[%24, %c0_24, %c0_25] : memref<8x8x512xbf16, #tpu.memory_space<vmem>>, vector<1x8x512xbf16>
    %26 = vector.shape_cast %25 : vector<1x8x512xbf16> to vector<8x512xbf16>
    %27 = arith.extf %26 : vector<8x512xbf16> to vector<8x512xf32>
    %28 = arith.truncf %4 : vector<8x128xf32> to vector<8x128xbf16>
    %cst = arith.constant dense<0.000000e+00> : vector<8x512xf32>
    %29 = tpu.matmul %28, %15, %cst {dimension_numbers = #tpu.dot_dimension_numbers<[1], [0], [0], [1], [0, 0, 1, 1], [], []>} : vector<8x128xbf16>, vector<128x512xbf16>, vector<8x512xf32> -> vector<8x512xf32>
    %30 = arith.addf %27, %29 : vector<8x512xf32>
    %31 = vector.extract_strided_slice %30 {offsets = [0, 0], sizes = [8, 384], strides = [1, 1]} : vector<8x512xf32> to vector<8x384xf32>
    %32 = arith.negf %31 : vector<8x384xf32>
    %33 = math.exp %32 : vector<8x384xf32>
    %cst_26 = arith.constant 1.000000e+00 : f32
    %34 = vector.broadcast %cst_26 : f32 to vector<8x384xf32>
    %35 = arith.addf %34, %33 : vector<8x384xf32>
    %36 = arith.divf %34, %35 : vector<8x384xf32>
    %37 = vector.extract_strided_slice %30 {offsets = [0, 384], sizes = [8, 128], strides = [1, 1]} : vector<8x512xf32> to vector<8x128xf32>
    %38 = math.tanh %37 : vector<8x128xf32>
    %39 = vector.extract_strided_slice %36 {offsets = [0, 0], sizes = [8, 128], strides = [1, 1]} : vector<8x384xf32> to vector<8x128xf32>
    %40 = vector.extract_strided_slice %36 {offsets = [0, 128], sizes = [8, 128], strides = [1, 1]} : vector<8x384xf32> to vector<8x128xf32>
    %41 = vector.extract_strided_slice %36 {offsets = [0, 256], sizes = [8, 128], strides = [1, 1]} : vector<8x384xf32> to vector<8x128xf32>
    %42 = arith.mulf %40, %6 : vector<8x128xf32>
    %43 = arith.mulf %39, %38 : vector<8x128xf32>
    %44 = arith.addf %42, %43 : vector<8x128xf32>
    %45 = math.tanh %44 : vector<8x128xf32>
    %46 = arith.mulf %41, %45 : vector<8x128xf32>
    %47 = tpu.concatenate %46, %8 in 1 : vector<8x128xf32>, vector<8x128xf32> -> vector<8x256xf32>
    %48 = arith.truncf %47 : vector<8x256xf32> to vector<8x256xbf16>
    %cst_27 = arith.constant dense<0.000000e+00> : vector<8x512xf32>
    %49 = tpu.matmul %48, %16, %cst_27 {dimension_numbers = #tpu.dot_dimension_numbers<[1], [0], [0], [1], [0, 0, 1, 1], [], []>} : vector<8x256xbf16>, vector<256x512xbf16>, vector<8x512xf32> -> vector<8x512xf32>
    %50 = arith.addf %49, %20 : vector<8x512xf32>
    %51 = vector.extract_strided_slice %50 {offsets = [0, 0], sizes = [8, 384], strides = [1, 1]} : vector<8x512xf32> to vector<8x384xf32>
    %52 = arith.negf %51 : vector<8x384xf32>
    %53 = math.exp %52 : vector<8x384xf32>
    %cst_28 = arith.constant 1.000000e+00 : f32
    %54 = vector.broadcast %cst_28 : f32 to vector<8x384xf32>
    %55 = arith.addf %54, %53 : vector<8x384xf32>
    %56 = arith.divf %54, %55 : vector<8x384xf32>
    %57 = vector.extract_strided_slice %50 {offsets = [0, 384], sizes = [8, 128], strides = [1, 1]} : vector<8x512xf32> to vector<8x128xf32>
    %58 = math.tanh %57 : vector<8x128xf32>
    %59 = vector.extract_strided_slice %56 {offsets = [0, 0], sizes = [8, 128], strides = [1, 1]} : vector<8x384xf32> to vector<8x128xf32>
    %60 = vector.extract_strided_slice %56 {offsets = [0, 128], sizes = [8, 128], strides = [1, 1]} : vector<8x384xf32> to vector<8x128xf32>
    %61 = vector.extract_strided_slice %56 {offsets = [0, 256], sizes = [8, 128], strides = [1, 1]} : vector<8x384xf32> to vector<8x128xf32>
    %62 = arith.mulf %60, %10 : vector<8x128xf32>
    %63 = arith.mulf %59, %58 : vector<8x128xf32>
    %64 = arith.addf %62, %63 : vector<8x128xf32>
    %65 = math.tanh %64 : vector<8x128xf32>
    %66 = arith.mulf %61, %65 : vector<8x128xf32>
    %67 = tpu.concatenate %66, %12 in 1 : vector<8x128xf32>, vector<8x128xf32> -> vector<8x256xf32>
    %68 = arith.truncf %67 : vector<8x256xf32> to vector<8x256xbf16>
    %cst_29 = arith.constant dense<0.000000e+00> : vector<8x512xf32>
    %69 = tpu.matmul %68, %17, %cst_29 {dimension_numbers = #tpu.dot_dimension_numbers<[1], [0], [0], [1], [0, 0, 1, 1], [], []>} : vector<8x256xbf16>, vector<256x512xbf16>, vector<8x512xf32> -> vector<8x512xf32>
    %70 = arith.addf %69, %23 : vector<8x512xf32>
    %71 = vector.extract_strided_slice %70 {offsets = [0, 0], sizes = [8, 384], strides = [1, 1]} : vector<8x512xf32> to vector<8x384xf32>
    %72 = arith.negf %71 : vector<8x384xf32>
    %73 = math.exp %72 : vector<8x384xf32>
    %cst_30 = arith.constant 1.000000e+00 : f32
    %74 = vector.broadcast %cst_30 : f32 to vector<8x384xf32>
    %75 = arith.addf %74, %73 : vector<8x384xf32>
    %76 = arith.divf %74, %75 : vector<8x384xf32>
    %77 = vector.extract_strided_slice %70 {offsets = [0, 384], sizes = [8, 128], strides = [1, 1]} : vector<8x512xf32> to vector<8x128xf32>
    %78 = math.tanh %77 : vector<8x128xf32>
    %79 = vector.extract_strided_slice %76 {offsets = [0, 0], sizes = [8, 128], strides = [1, 1]} : vector<8x384xf32> to vector<8x128xf32>
    %80 = vector.extract_strided_slice %76 {offsets = [0, 128], sizes = [8, 128], strides = [1, 1]} : vector<8x384xf32> to vector<8x128xf32>
    %81 = vector.extract_strided_slice %76 {offsets = [0, 256], sizes = [8, 128], strides = [1, 1]} : vector<8x384xf32> to vector<8x128xf32>
    %82 = arith.mulf %80, %14 : vector<8x128xf32>
    %83 = arith.mulf %79, %78 : vector<8x128xf32>
    %84 = arith.addf %82, %83 : vector<8x128xf32>
    %85 = math.tanh %84 : vector<8x128xf32>
    %86 = arith.mulf %81, %85 : vector<8x128xf32>
    %c1_i32 = arith.constant 1 : i32
    %87 = arith.index_cast %c1_i32 : i32 to index
    %c0_31 = arith.constant 0 : index
    %c0_32 = arith.constant 0 : index
    %88 = vector.load %arg1[%87, %c0_31, %c0_32] : memref<8x8x512xbf16, #tpu.memory_space<vmem>>, vector<1x8x512xbf16>
    %89 = vector.shape_cast %88 : vector<1x8x512xbf16> to vector<8x512xbf16>
    %90 = arith.extf %89 : vector<8x512xbf16> to vector<8x512xf32>
    %91 = arith.truncf %46 : vector<8x128xf32> to vector<8x128xbf16>
    %cst_33 = arith.constant dense<0.000000e+00> : vector<8x512xf32>
    %92 = tpu.matmul %91, %15, %cst_33 {dimension_numbers = #tpu.dot_dimension_numbers<[1], [0], [0], [1], [0, 0, 1, 1], [], []>} : vector<8x128xbf16>, vector<128x512xbf16>, vector<8x512xf32> -> vector<8x512xf32>
    %93 = arith.addf %90, %92 : vector<8x512xf32>
    %94 = vector.extract_strided_slice %93 {offsets = [0, 0], sizes = [8, 384], strides = [1, 1]} : vector<8x512xf32> to vector<8x384xf32>
    %95 = arith.negf %94 : vector<8x384xf32>
    %96 = math.exp %95 : vector<8x384xf32>
    %cst_34 = arith.constant 1.000000e+00 : f32
    %97 = vector.broadcast %cst_34 : f32 to vector<8x384xf32>
    %98 = arith.addf %97, %96 : vector<8x384xf32>
    %99 = arith.divf %97, %98 : vector<8x384xf32>
    %100 = vector.extract_strided_slice %93 {offsets = [0, 384], sizes = [8, 128], strides = [1, 1]} : vector<8x512xf32> to vector<8x128xf32>
    %101 = math.tanh %100 : vector<8x128xf32>
    %102 = vector.extract_strided_slice %99 {offsets = [0, 0], sizes = [8, 128], strides = [1, 1]} : vector<8x384xf32> to vector<8x128xf32>
    %103 = vector.extract_strided_slice %99 {offsets = [0, 128], sizes = [8, 128], strides = [1, 1]} : vector<8x384xf32> to vector<8x128xf32>
    %104 = vector.extract_strided_slice %99 {offsets = [0, 256], sizes = [8, 128], strides = [1, 1]} : vector<8x384xf32> to vector<8x128xf32>
    %105 = arith.mulf %103, %44 : vector<8x128xf32>
    %106 = arith.mulf %102, %101 : vector<8x128xf32>
    %107 = arith.addf %105, %106 : vector<8x128xf32>
    %108 = math.tanh %107 : vector<8x128xf32>
    %109 = arith.mulf %104, %108 : vector<8x128xf32>
    %110 = tpu.concatenate %109, %66 in 1 : vector<8x128xf32>, vector<8x128xf32> -> vector<8x256xf32>
    %111 = arith.truncf %110 : vector<8x256xf32> to vector<8x256xbf16>
    %cst_35 = arith.constant dense<0.000000e+00> : vector<8x512xf32>
    %112 = tpu.matmul %111, %16, %cst_35 {dimension_numbers = #tpu.dot_dimension_numbers<[1], [0], [0], [1], [0, 0, 1, 1], [], []>} : vector<8x256xbf16>, vector<256x512xbf16>, vector<8x512xf32> -> vector<8x512xf32>
    %113 = arith.addf %112, %20 : vector<8x512xf32>
    %114 = vector.extract_strided_slice %113 {offsets = [0, 0], sizes = [8, 384], strides = [1, 1]} : vector<8x512xf32> to vector<8x384xf32>
    %115 = arith.negf %114 : vector<8x384xf32>
    %116 = math.exp %115 : vector<8x384xf32>
    %cst_36 = arith.constant 1.000000e+00 : f32
    %117 = vector.broadcast %cst_36 : f32 to vector<8x384xf32>
    %118 = arith.addf %117, %116 : vector<8x384xf32>
    %119 = arith.divf %117, %118 : vector<8x384xf32>
    %120 = vector.extract_strided_slice %113 {offsets = [0, 384], sizes = [8, 128], strides = [1, 1]} : vector<8x512xf32> to vector<8x128xf32>
    %121 = math.tanh %120 : vector<8x128xf32>
    %122 = vector.extract_strided_slice %119 {offsets = [0, 0], sizes = [8, 128], strides = [1, 1]} : vector<8x384xf32> to vector<8x128xf32>
    %123 = vector.extract_strided_slice %119 {offsets = [0, 128], sizes = [8, 128], strides = [1, 1]} : vector<8x384xf32> to vector<8x128xf32>
    %124 = vector.extract_strided_slice %119 {offsets = [0, 256], sizes = [8, 128], strides = [1, 1]} : vector<8x384xf32> to vector<8x128xf32>
    %125 = arith.mulf %123, %64 : vector<8x128xf32>
    %126 = arith.mulf %122, %121 : vector<8x128xf32>
    %127 = arith.addf %125, %126 : vector<8x128xf32>
    %128 = math.tanh %127 : vector<8x128xf32>
    %129 = arith.mulf %124, %128 : vector<8x128xf32>
    %130 = tpu.concatenate %129, %86 in 1 : vector<8x128xf32>, vector<8x128xf32> -> vector<8x256xf32>
    %131 = arith.truncf %130 : vector<8x256xf32> to vector<8x256xbf16>
    %cst_37 = arith.constant dense<0.000000e+00> : vector<8x512xf32>
    %132 = tpu.matmul %131, %17, %cst_37 {dimension_numbers = #tpu.dot_dimension_numbers<[1], [0], [0], [1], [0, 0, 1, 1], [], []>} : vector<8x256xbf16>, vector<256x512xbf16>, vector<8x512xf32> -> vector<8x512xf32>
    %133 = arith.addf %132, %23 : vector<8x512xf32>
    %134 = vector.extract_strided_slice %133 {offsets = [0, 0], sizes = [8, 384], strides = [1, 1]} : vector<8x512xf32> to vector<8x384xf32>
    %135 = arith.negf %134 : vector<8x384xf32>
    %136 = math.exp %135 : vector<8x384xf32>
    %cst_38 = arith.constant 1.000000e+00 : f32
    %137 = vector.broadcast %cst_38 : f32 to vector<8x384xf32>
    %138 = arith.addf %137, %136 : vector<8x384xf32>
    %139 = arith.divf %137, %138 : vector<8x384xf32>
    %140 = vector.extract_strided_slice %133 {offsets = [0, 384], sizes = [8, 128], strides = [1, 1]} : vector<8x512xf32> to vector<8x128xf32>
    %141 = math.tanh %140 : vector<8x128xf32>
    %142 = vector.extract_strided_slice %139 {offsets = [0, 0], sizes = [8, 128], strides = [1, 1]} : vector<8x384xf32> to vector<8x128xf32>
    %143 = vector.extract_strided_slice %139 {offsets = [0, 128], sizes = [8, 128], strides = [1, 1]} : vector<8x384xf32> to vector<8x128xf32>
    %144 = vector.extract_strided_slice %139 {offsets = [0, 256], sizes = [8, 128], strides = [1, 1]} : vector<8x384xf32> to vector<8x128xf32>
    %145 = arith.mulf %143, %84 : vector<8x128xf32>
    %146 = arith.mulf %142, %141 : vector<8x128xf32>
    %147 = arith.addf %145, %146 : vector<8x128xf32>
    %148 = math.tanh %147 : vector<8x128xf32>
    %149 = arith.mulf %144, %148 : vector<8x128xf32>
    %c2_i32 = arith.constant 2 : i32
    %150 = arith.index_cast %c2_i32 : i32 to index
    %c0_39 = arith.constant 0 : index
    %c0_40 = arith.constant 0 : index
    %151 = vector.load %arg1[%150, %c0_39, %c0_40] : memref<8x8x512xbf16, #tpu.memory_space<vmem>>, vector<1x8x512xbf16>
    %152 = vector.shape_cast %151 : vector<1x8x512xbf16> to vector<8x512xbf16>
    %153 = arith.extf %152 : vector<8x512xbf16> to vector<8x512xf32>
    %154 = arith.truncf %109 : vector<8x128xf32> to vector<8x128xbf16>
    %cst_41 = arith.constant dense<0.000000e+00> : vector<8x512xf32>
    %155 = tpu.matmul %154, %15, %cst_41 {dimension_numbers = #tpu.dot_dimension_numbers<[1], [0], [0], [1], [0, 0, 1, 1], [], []>} : vector<8x128xbf16>, vector<128x512xbf16>, vector<8x512xf32> -> vector<8x512xf32>
    %156 = arith.addf %153, %155 : vector<8x512xf32>
    %157 = vector.extract_strided_slice %156 {offsets = [0, 0], sizes = [8, 384], strides = [1, 1]} : vector<8x512xf32> to vector<8x384xf32>
    %158 = arith.negf %157 : vector<8x384xf32>
    %159 = math.exp %158 : vector<8x384xf32>
    %cst_42 = arith.constant 1.000000e+00 : f32
    %160 = vector.broadcast %cst_42 : f32 to vector<8x384xf32>
    %161 = arith.addf %160, %159 : vector<8x384xf32>
    %162 = arith.divf %160, %161 : vector<8x384xf32>
    %163 = vector.extract_strided_slice %156 {offsets = [0, 384], sizes = [8, 128], strides = [1, 1]} : vector<8x512xf32> to vector<8x128xf32>
    %164 = math.tanh %163 : vector<8x128xf32>
    %165 = vector.extract_strided_slice %162 {offsets = [0, 0], sizes = [8, 128], strides = [1, 1]} : vector<8x384xf32> to vector<8x128xf32>
    %166 = vector.extract_strided_slice %162 {offsets = [0, 128], sizes = [8, 128], strides = [1, 1]} : vector<8x384xf32> to vector<8x128xf32>
    %167 = vector.extract_strided_slice %162 {offsets = [0, 256], sizes = [8, 128], strides = [1, 1]} : vector<8x384xf32> to vector<8x128xf32>
    %168 = arith.mulf %166, %107 : vector<8x128xf32>
    %169 = arith.mulf %165, %164 : vector<8x128xf32>
    %170 = arith.addf %168, %169 : vector<8x128xf32>
    %171 = math.tanh %170 : vector<8x128xf32>
    %172 = arith.mulf %167, %171 : vector<8x128xf32>
    %173 = tpu.concatenate %172, %129 in 1 : vector<8x128xf32>, vector<8x128xf32> -> vector<8x256xf32>
    %174 = arith.truncf %173 : vector<8x256xf32> to vector<8x256xbf16>
    %cst_43 = arith.constant dense<0.000000e+00> : vector<8x512xf32>
    %175 = tpu.matmul %174, %16, %cst_43 {dimension_numbers = #tpu.dot_dimension_numbers<[1], [0], [0], [1], [0, 0, 1, 1], [], []>} : vector<8x256xbf16>, vector<256x512xbf16>, vector<8x512xf32> -> vector<8x512xf32>
    %176 = arith.addf %175, %20 : vector<8x512xf32>
    %177 = vector.extract_strided_slice %176 {offsets = [0, 0], sizes = [8, 384], strides = [1, 1]} : vector<8x512xf32> to vector<8x384xf32>
    %178 = arith.negf %177 : vector<8x384xf32>
    %179 = math.exp %178 : vector<8x384xf32>
    %cst_44 = arith.constant 1.000000e+00 : f32
    %180 = vector.broadcast %cst_44 : f32 to vector<8x384xf32>
    %181 = arith.addf %180, %179 : vector<8x384xf32>
    %182 = arith.divf %180, %181 : vector<8x384xf32>
    %183 = vector.extract_strided_slice %176 {offsets = [0, 384], sizes = [8, 128], strides = [1, 1]} : vector<8x512xf32> to vector<8x128xf32>
    %184 = math.tanh %183 : vector<8x128xf32>
    %185 = vector.extract_strided_slice %182 {offsets = [0, 0], sizes = [8, 128], strides = [1, 1]} : vector<8x384xf32> to vector<8x128xf32>
    %186 = vector.extract_strided_slice %182 {offsets = [0, 128], sizes = [8, 128], strides = [1, 1]} : vector<8x384xf32> to vector<8x128xf32>
    %187 = vector.extract_strided_slice %182 {offsets = [0, 256], sizes = [8, 128], strides = [1, 1]} : vector<8x384xf32> to vector<8x128xf32>
    %188 = arith.mulf %186, %127 : vector<8x128xf32>
    %189 = arith.mulf %185, %184 : vector<8x128xf32>
    %190 = arith.addf %188, %189 : vector<8x128xf32>
    %191 = math.tanh %190 : vector<8x128xf32>
    %192 = arith.mulf %187, %191 : vector<8x128xf32>
    %193 = tpu.concatenate %192, %149 in 1 : vector<8x128xf32>, vector<8x128xf32> -> vector<8x256xf32>
    %194 = arith.truncf %193 : vector<8x256xf32> to vector<8x256xbf16>
    %cst_45 = arith.constant dense<0.000000e+00> : vector<8x512xf32>
    %195 = tpu.matmul %194, %17, %cst_45 {dimension_numbers = #tpu.dot_dimension_numbers<[1], [0], [0], [1], [0, 0, 1, 1], [], []>} : vector<8x256xbf16>, vector<256x512xbf16>, vector<8x512xf32> -> vector<8x512xf32>
    %196 = arith.addf %195, %23 : vector<8x512xf32>
    %197 = vector.extract_strided_slice %196 {offsets = [0, 0], sizes = [8, 384], strides = [1, 1]} : vector<8x512xf32> to vector<8x384xf32>
    %198 = arith.negf %197 : vector<8x384xf32>
    %199 = math.exp %198 : vector<8x384xf32>
    %cst_46 = arith.constant 1.000000e+00 : f32
    %200 = vector.broadcast %cst_46 : f32 to vector<8x384xf32>
    %201 = arith.addf %200, %199 : vector<8x384xf32>
    %202 = arith.divf %200, %201 : vector<8x384xf32>
    %203 = vector.extract_strided_slice %196 {offsets = [0, 384], sizes = [8, 128], strides = [1, 1]} : vector<8x512xf32> to vector<8x128xf32>
    %204 = math.tanh %203 : vector<8x128xf32>
    %205 = vector.extract_strided_slice %202 {offsets = [0, 0], sizes = [8, 128], strides = [1, 1]} : vector<8x384xf32> to vector<8x128xf32>
    %206 = vector.extract_strided_slice %202 {offsets = [0, 128], sizes = [8, 128], strides = [1, 1]} : vector<8x384xf32> to vector<8x128xf32>
    %207 = vector.extract_strided_slice %202 {offsets = [0, 256], sizes = [8, 128], strides = [1, 1]} : vector<8x384xf32> to vector<8x128xf32>
    %208 = arith.mulf %206, %147 : vector<8x128xf32>
    %209 = arith.mulf %205, %204 : vector<8x128xf32>
    %210 = arith.addf %208, %209 : vector<8x128xf32>
    %211 = math.tanh %210 : vector<8x128xf32>
    %212 = arith.mulf %207, %211 : vector<8x128xf32>
    %c3_i32 = arith.constant 3 : i32
    %213 = arith.index_cast %c3_i32 : i32 to index
    %c0_47 = arith.constant 0 : index
    %c0_48 = arith.constant 0 : index
    %214 = vector.load %arg1[%213, %c0_47, %c0_48] : memref<8x8x512xbf16, #tpu.memory_space<vmem>>, vector<1x8x512xbf16>
    %215 = vector.shape_cast %214 : vector<1x8x512xbf16> to vector<8x512xbf16>
    %216 = arith.extf %215 : vector<8x512xbf16> to vector<8x512xf32>
    %217 = arith.truncf %172 : vector<8x128xf32> to vector<8x128xbf16>
    %cst_49 = arith.constant dense<0.000000e+00> : vector<8x512xf32>
    %218 = tpu.matmul %217, %15, %cst_49 {dimension_numbers = #tpu.dot_dimension_numbers<[1], [0], [0], [1], [0, 0, 1, 1], [], []>} : vector<8x128xbf16>, vector<128x512xbf16>, vector<8x512xf32> -> vector<8x512xf32>
    %219 = arith.addf %216, %218 : vector<8x512xf32>
    %220 = vector.extract_strided_slice %219 {offsets = [0, 0], sizes = [8, 384], strides = [1, 1]} : vector<8x512xf32> to vector<8x384xf32>
    %221 = arith.negf %220 : vector<8x384xf32>
    %222 = math.exp %221 : vector<8x384xf32>
    %cst_50 = arith.constant 1.000000e+00 : f32
    %223 = vector.broadcast %cst_50 : f32 to vector<8x384xf32>
    %224 = arith.addf %223, %222 : vector<8x384xf32>
    %225 = arith.divf %223, %224 : vector<8x384xf32>
    %226 = vector.extract_strided_slice %219 {offsets = [0, 384], sizes = [8, 128], strides = [1, 1]} : vector<8x512xf32> to vector<8x128xf32>
    %227 = math.tanh %226 : vector<8x128xf32>
    %228 = vector.extract_strided_slice %225 {offsets = [0, 0], sizes = [8, 128], strides = [1, 1]} : vector<8x384xf32> to vector<8x128xf32>
    %229 = vector.extract_strided_slice %225 {offsets = [0, 128], sizes = [8, 128], strides = [1, 1]} : vector<8x384xf32> to vector<8x128xf32>
    %230 = vector.extract_strided_slice %225 {offsets = [0, 256], sizes = [8, 128], strides = [1, 1]} : vector<8x384xf32> to vector<8x128xf32>
    %231 = arith.mulf %229, %170 : vector<8x128xf32>
    %232 = arith.mulf %228, %227 : vector<8x128xf32>
    %233 = arith.addf %231, %232 : vector<8x128xf32>
    %234 = math.tanh %233 : vector<8x128xf32>
    %235 = arith.mulf %230, %234 : vector<8x128xf32>
    %236 = tpu.concatenate %235, %192 in 1 : vector<8x128xf32>, vector<8x128xf32> -> vector<8x256xf32>
    %237 = arith.truncf %236 : vector<8x256xf32> to vector<8x256xbf16>
    %cst_51 = arith.constant dense<0.000000e+00> : vector<8x512xf32>
    %238 = tpu.matmul %237, %16, %cst_51 {dimension_numbers = #tpu.dot_dimension_numbers<[1], [0], [0], [1], [0, 0, 1, 1], [], []>} : vector<8x256xbf16>, vector<256x512xbf16>, vector<8x512xf32> -> vector<8x512xf32>
    %239 = arith.addf %238, %20 : vector<8x512xf32>
    %240 = vector.extract_strided_slice %239 {offsets = [0, 0], sizes = [8, 384], strides = [1, 1]} : vector<8x512xf32> to vector<8x384xf32>
    %241 = arith.negf %240 : vector<8x384xf32>
    %242 = math.exp %241 : vector<8x384xf32>
    %cst_52 = arith.constant 1.000000e+00 : f32
    %243 = vector.broadcast %cst_52 : f32 to vector<8x384xf32>
    %244 = arith.addf %243, %242 : vector<8x384xf32>
    %245 = arith.divf %243, %244 : vector<8x384xf32>
    %246 = vector.extract_strided_slice %239 {offsets = [0, 384], sizes = [8, 128], strides = [1, 1]} : vector<8x512xf32> to vector<8x128xf32>
    %247 = math.tanh %246 : vector<8x128xf32>
    %248 = vector.extract_strided_slice %245 {offsets = [0, 0], sizes = [8, 128], strides = [1, 1]} : vector<8x384xf32> to vector<8x128xf32>
    %249 = vector.extract_strided_slice %245 {offsets = [0, 128], sizes = [8, 128], strides = [1, 1]} : vector<8x384xf32> to vector<8x128xf32>
    %250 = vector.extract_strided_slice %245 {offsets = [0, 256], sizes = [8, 128], strides = [1, 1]} : vector<8x384xf32> to vector<8x128xf32>
    %251 = arith.mulf %249, %190 : vector<8x128xf32>
    %252 = arith.mulf %248, %247 : vector<8x128xf32>
    %253 = arith.addf %251, %252 : vector<8x128xf32>
    %254 = math.tanh %253 : vector<8x128xf32>
    %255 = arith.mulf %250, %254 : vector<8x128xf32>
    %256 = tpu.concatenate %255, %212 in 1 : vector<8x128xf32>, vector<8x128xf32> -> vector<8x256xf32>
    %257 = arith.truncf %256 : vector<8x256xf32> to vector<8x256xbf16>
    %cst_53 = arith.constant dense<0.000000e+00> : vector<8x512xf32>
    %258 = tpu.matmul %257, %17, %cst_53 {dimension_numbers = #tpu.dot_dimension_numbers<[1], [0], [0], [1], [0, 0, 1, 1], [], []>} : vector<8x256xbf16>, vector<256x512xbf16>, vector<8x512xf32> -> vector<8x512xf32>
    %259 = arith.addf %258, %23 : vector<8x512xf32>
    %260 = vector.extract_strided_slice %259 {offsets = [0, 0], sizes = [8, 384], strides = [1, 1]} : vector<8x512xf32> to vector<8x384xf32>
    %261 = arith.negf %260 : vector<8x384xf32>
    %262 = math.exp %261 : vector<8x384xf32>
    %cst_54 = arith.constant 1.000000e+00 : f32
    %263 = vector.broadcast %cst_54 : f32 to vector<8x384xf32>
    %264 = arith.addf %263, %262 : vector<8x384xf32>
    %265 = arith.divf %263, %264 : vector<8x384xf32>
    %266 = vector.extract_strided_slice %259 {offsets = [0, 384], sizes = [8, 128], strides = [1, 1]} : vector<8x512xf32> to vector<8x128xf32>
    %267 = math.tanh %266 : vector<8x128xf32>
    %268 = vector.extract_strided_slice %265 {offsets = [0, 0], sizes = [8, 128], strides = [1, 1]} : vector<8x384xf32> to vector<8x128xf32>
    %269 = vector.extract_strided_slice %265 {offsets = [0, 128], sizes = [8, 128], strides = [1, 1]} : vector<8x384xf32> to vector<8x128xf32>
    %270 = vector.extract_strided_slice %265 {offsets = [0, 256], sizes = [8, 128], strides = [1, 1]} : vector<8x384xf32> to vector<8x128xf32>
    %271 = arith.mulf %269, %210 : vector<8x128xf32>
    %272 = arith.mulf %268, %267 : vector<8x128xf32>
    %273 = arith.addf %271, %272 : vector<8x128xf32>
    %274 = math.tanh %273 : vector<8x128xf32>
    %275 = arith.mulf %270, %274 : vector<8x128xf32>
    %c4_i32 = arith.constant 4 : i32
    %276 = arith.index_cast %c4_i32 : i32 to index
    %c0_55 = arith.constant 0 : index
    %c0_56 = arith.constant 0 : index
    %277 = vector.load %arg1[%276, %c0_55, %c0_56] : memref<8x8x512xbf16, #tpu.memory_space<vmem>>, vector<1x8x512xbf16>
    %278 = vector.shape_cast %277 : vector<1x8x512xbf16> to vector<8x512xbf16>
    %279 = arith.extf %278 : vector<8x512xbf16> to vector<8x512xf32>
    %280 = arith.truncf %235 : vector<8x128xf32> to vector<8x128xbf16>
    %cst_57 = arith.constant dense<0.000000e+00> : vector<8x512xf32>
    %281 = tpu.matmul %280, %15, %cst_57 {dimension_numbers = #tpu.dot_dimension_numbers<[1], [0], [0], [1], [0, 0, 1, 1], [], []>} : vector<8x128xbf16>, vector<128x512xbf16>, vector<8x512xf32> -> vector<8x512xf32>
    %282 = arith.addf %279, %281 : vector<8x512xf32>
    %283 = vector.extract_strided_slice %282 {offsets = [0, 0], sizes = [8, 384], strides = [1, 1]} : vector<8x512xf32> to vector<8x384xf32>
    %284 = arith.negf %283 : vector<8x384xf32>
    %285 = math.exp %284 : vector<8x384xf32>
    %cst_58 = arith.constant 1.000000e+00 : f32
    %286 = vector.broadcast %cst_58 : f32 to vector<8x384xf32>
    %287 = arith.addf %286, %285 : vector<8x384xf32>
    %288 = arith.divf %286, %287 : vector<8x384xf32>
    %289 = vector.extract_strided_slice %282 {offsets = [0, 384], sizes = [8, 128], strides = [1, 1]} : vector<8x512xf32> to vector<8x128xf32>
    %290 = math.tanh %289 : vector<8x128xf32>
    %291 = vector.extract_strided_slice %288 {offsets = [0, 0], sizes = [8, 128], strides = [1, 1]} : vector<8x384xf32> to vector<8x128xf32>
    %292 = vector.extract_strided_slice %288 {offsets = [0, 128], sizes = [8, 128], strides = [1, 1]} : vector<8x384xf32> to vector<8x128xf32>
    %293 = vector.extract_strided_slice %288 {offsets = [0, 256], sizes = [8, 128], strides = [1, 1]} : vector<8x384xf32> to vector<8x128xf32>
    %294 = arith.mulf %292, %233 : vector<8x128xf32>
    %295 = arith.mulf %291, %290 : vector<8x128xf32>
    %296 = arith.addf %294, %295 : vector<8x128xf32>
    %297 = math.tanh %296 : vector<8x128xf32>
    %298 = arith.mulf %293, %297 : vector<8x128xf32>
    %299 = tpu.concatenate %298, %255 in 1 : vector<8x128xf32>, vector<8x128xf32> -> vector<8x256xf32>
    %300 = arith.truncf %299 : vector<8x256xf32> to vector<8x256xbf16>
    %cst_59 = arith.constant dense<0.000000e+00> : vector<8x512xf32>
    %301 = tpu.matmul %300, %16, %cst_59 {dimension_numbers = #tpu.dot_dimension_numbers<[1], [0], [0], [1], [0, 0, 1, 1], [], []>} : vector<8x256xbf16>, vector<256x512xbf16>, vector<8x512xf32> -> vector<8x512xf32>
    %302 = arith.addf %301, %20 : vector<8x512xf32>
    %303 = vector.extract_strided_slice %302 {offsets = [0, 0], sizes = [8, 384], strides = [1, 1]} : vector<8x512xf32> to vector<8x384xf32>
    %304 = arith.negf %303 : vector<8x384xf32>
    %305 = math.exp %304 : vector<8x384xf32>
    %cst_60 = arith.constant 1.000000e+00 : f32
    %306 = vector.broadcast %cst_60 : f32 to vector<8x384xf32>
    %307 = arith.addf %306, %305 : vector<8x384xf32>
    %308 = arith.divf %306, %307 : vector<8x384xf32>
    %309 = vector.extract_strided_slice %302 {offsets = [0, 384], sizes = [8, 128], strides = [1, 1]} : vector<8x512xf32> to vector<8x128xf32>
    %310 = math.tanh %309 : vector<8x128xf32>
    %311 = vector.extract_strided_slice %308 {offsets = [0, 0], sizes = [8, 128], strides = [1, 1]} : vector<8x384xf32> to vector<8x128xf32>
    %312 = vector.extract_strided_slice %308 {offsets = [0, 128], sizes = [8, 128], strides = [1, 1]} : vector<8x384xf32> to vector<8x128xf32>
    %313 = vector.extract_strided_slice %308 {offsets = [0, 256], sizes = [8, 128], strides = [1, 1]} : vector<8x384xf32> to vector<8x128xf32>
    %314 = arith.mulf %312, %253 : vector<8x128xf32>
    %315 = arith.mulf %311, %310 : vector<8x128xf32>
    %316 = arith.addf %314, %315 : vector<8x128xf32>
    %317 = math.tanh %316 : vector<8x128xf32>
    %318 = arith.mulf %313, %317 : vector<8x128xf32>
    %319 = tpu.concatenate %318, %275 in 1 : vector<8x128xf32>, vector<8x128xf32> -> vector<8x256xf32>
    %320 = arith.truncf %319 : vector<8x256xf32> to vector<8x256xbf16>
    %cst_61 = arith.constant dense<0.000000e+00> : vector<8x512xf32>
    %321 = tpu.matmul %320, %17, %cst_61 {dimension_numbers = #tpu.dot_dimension_numbers<[1], [0], [0], [1], [0, 0, 1, 1], [], []>} : vector<8x256xbf16>, vector<256x512xbf16>, vector<8x512xf32> -> vector<8x512xf32>
    %322 = arith.addf %321, %23 : vector<8x512xf32>
    %323 = vector.extract_strided_slice %322 {offsets = [0, 0], sizes = [8, 384], strides = [1, 1]} : vector<8x512xf32> to vector<8x384xf32>
    %324 = arith.negf %323 : vector<8x384xf32>
    %325 = math.exp %324 : vector<8x384xf32>
    %cst_62 = arith.constant 1.000000e+00 : f32
    %326 = vector.broadcast %cst_62 : f32 to vector<8x384xf32>
    %327 = arith.addf %326, %325 : vector<8x384xf32>
    %328 = arith.divf %326, %327 : vector<8x384xf32>
    %329 = vector.extract_strided_slice %322 {offsets = [0, 384], sizes = [8, 128], strides = [1, 1]} : vector<8x512xf32> to vector<8x128xf32>
    %330 = math.tanh %329 : vector<8x128xf32>
    %331 = vector.extract_strided_slice %328 {offsets = [0, 0], sizes = [8, 128], strides = [1, 1]} : vector<8x384xf32> to vector<8x128xf32>
    %332 = vector.extract_strided_slice %328 {offsets = [0, 128], sizes = [8, 128], strides = [1, 1]} : vector<8x384xf32> to vector<8x128xf32>
    %333 = vector.extract_strided_slice %328 {offsets = [0, 256], sizes = [8, 128], strides = [1, 1]} : vector<8x384xf32> to vector<8x128xf32>
    %334 = arith.mulf %332, %273 : vector<8x128xf32>
    %335 = arith.mulf %331, %330 : vector<8x128xf32>
    %336 = arith.addf %334, %335 : vector<8x128xf32>
    %337 = math.tanh %336 : vector<8x128xf32>
    %338 = arith.mulf %333, %337 : vector<8x128xf32>
    %c5_i32 = arith.constant 5 : i32
    %339 = arith.index_cast %c5_i32 : i32 to index
    %c0_63 = arith.constant 0 : index
    %c0_64 = arith.constant 0 : index
    %340 = vector.load %arg1[%339, %c0_63, %c0_64] : memref<8x8x512xbf16, #tpu.memory_space<vmem>>, vector<1x8x512xbf16>
    %341 = vector.shape_cast %340 : vector<1x8x512xbf16> to vector<8x512xbf16>
    %342 = arith.extf %341 : vector<8x512xbf16> to vector<8x512xf32>
    %343 = arith.truncf %298 : vector<8x128xf32> to vector<8x128xbf16>
    %cst_65 = arith.constant dense<0.000000e+00> : vector<8x512xf32>
    %344 = tpu.matmul %343, %15, %cst_65 {dimension_numbers = #tpu.dot_dimension_numbers<[1], [0], [0], [1], [0, 0, 1, 1], [], []>} : vector<8x128xbf16>, vector<128x512xbf16>, vector<8x512xf32> -> vector<8x512xf32>
    %345 = arith.addf %342, %344 : vector<8x512xf32>
    %346 = vector.extract_strided_slice %345 {offsets = [0, 0], sizes = [8, 384], strides = [1, 1]} : vector<8x512xf32> to vector<8x384xf32>
    %347 = arith.negf %346 : vector<8x384xf32>
    %348 = math.exp %347 : vector<8x384xf32>
    %cst_66 = arith.constant 1.000000e+00 : f32
    %349 = vector.broadcast %cst_66 : f32 to vector<8x384xf32>
    %350 = arith.addf %349, %348 : vector<8x384xf32>
    %351 = arith.divf %349, %350 : vector<8x384xf32>
    %352 = vector.extract_strided_slice %345 {offsets = [0, 384], sizes = [8, 128], strides = [1, 1]} : vector<8x512xf32> to vector<8x128xf32>
    %353 = math.tanh %352 : vector<8x128xf32>
    %354 = vector.extract_strided_slice %351 {offsets = [0, 0], sizes = [8, 128], strides = [1, 1]} : vector<8x384xf32> to vector<8x128xf32>
    %355 = vector.extract_strided_slice %351 {offsets = [0, 128], sizes = [8, 128], strides = [1, 1]} : vector<8x384xf32> to vector<8x128xf32>
    %356 = vector.extract_strided_slice %351 {offsets = [0, 256], sizes = [8, 128], strides = [1, 1]} : vector<8x384xf32> to vector<8x128xf32>
    %357 = arith.mulf %355, %296 : vector<8x128xf32>
    %358 = arith.mulf %354, %353 : vector<8x128xf32>
    %359 = arith.addf %357, %358 : vector<8x128xf32>
    %360 = math.tanh %359 : vector<8x128xf32>
    %361 = arith.mulf %356, %360 : vector<8x128xf32>
    %362 = tpu.concatenate %361, %318 in 1 : vector<8x128xf32>, vector<8x128xf32> -> vector<8x256xf32>
    %363 = arith.truncf %362 : vector<8x256xf32> to vector<8x256xbf16>
    %cst_67 = arith.constant dense<0.000000e+00> : vector<8x512xf32>
    %364 = tpu.matmul %363, %16, %cst_67 {dimension_numbers = #tpu.dot_dimension_numbers<[1], [0], [0], [1], [0, 0, 1, 1], [], []>} : vector<8x256xbf16>, vector<256x512xbf16>, vector<8x512xf32> -> vector<8x512xf32>
    %365 = arith.addf %364, %20 : vector<8x512xf32>
    %366 = vector.extract_strided_slice %365 {offsets = [0, 0], sizes = [8, 384], strides = [1, 1]} : vector<8x512xf32> to vector<8x384xf32>
    %367 = arith.negf %366 : vector<8x384xf32>
    %368 = math.exp %367 : vector<8x384xf32>
    %cst_68 = arith.constant 1.000000e+00 : f32
    %369 = vector.broadcast %cst_68 : f32 to vector<8x384xf32>
    %370 = arith.addf %369, %368 : vector<8x384xf32>
    %371 = arith.divf %369, %370 : vector<8x384xf32>
    %372 = vector.extract_strided_slice %365 {offsets = [0, 384], sizes = [8, 128], strides = [1, 1]} : vector<8x512xf32> to vector<8x128xf32>
    %373 = math.tanh %372 : vector<8x128xf32>
    %374 = vector.extract_strided_slice %371 {offsets = [0, 0], sizes = [8, 128], strides = [1, 1]} : vector<8x384xf32> to vector<8x128xf32>
    %375 = vector.extract_strided_slice %371 {offsets = [0, 128], sizes = [8, 128], strides = [1, 1]} : vector<8x384xf32> to vector<8x128xf32>
    %376 = vector.extract_strided_slice %371 {offsets = [0, 256], sizes = [8, 128], strides = [1, 1]} : vector<8x384xf32> to vector<8x128xf32>
    %377 = arith.mulf %375, %316 : vector<8x128xf32>
    %378 = arith.mulf %374, %373 : vector<8x128xf32>
    %379 = arith.addf %377, %378 : vector<8x128xf32>
    %380 = math.tanh %379 : vector<8x128xf32>
    %381 = arith.mulf %376, %380 : vector<8x128xf32>
    %382 = tpu.concatenate %381, %338 in 1 : vector<8x128xf32>, vector<8x128xf32> -> vector<8x256xf32>
    %383 = arith.truncf %382 : vector<8x256xf32> to vector<8x256xbf16>
    %cst_69 = arith.constant dense<0.000000e+00> : vector<8x512xf32>
    %384 = tpu.matmul %383, %17, %cst_69 {dimension_numbers = #tpu.dot_dimension_numbers<[1], [0], [0], [1], [0, 0, 1, 1], [], []>} : vector<8x256xbf16>, vector<256x512xbf16>, vector<8x512xf32> -> vector<8x512xf32>
    %385 = arith.addf %384, %23 : vector<8x512xf32>
    %386 = vector.extract_strided_slice %385 {offsets = [0, 0], sizes = [8, 384], strides = [1, 1]} : vector<8x512xf32> to vector<8x384xf32>
    %387 = arith.negf %386 : vector<8x384xf32>
    %388 = math.exp %387 : vector<8x384xf32>
    %cst_70 = arith.constant 1.000000e+00 : f32
    %389 = vector.broadcast %cst_70 : f32 to vector<8x384xf32>
    %390 = arith.addf %389, %388 : vector<8x384xf32>
    %391 = arith.divf %389, %390 : vector<8x384xf32>
    %392 = vector.extract_strided_slice %385 {offsets = [0, 384], sizes = [8, 128], strides = [1, 1]} : vector<8x512xf32> to vector<8x128xf32>
    %393 = math.tanh %392 : vector<8x128xf32>
    %394 = vector.extract_strided_slice %391 {offsets = [0, 0], sizes = [8, 128], strides = [1, 1]} : vector<8x384xf32> to vector<8x128xf32>
    %395 = vector.extract_strided_slice %391 {offsets = [0, 128], sizes = [8, 128], strides = [1, 1]} : vector<8x384xf32> to vector<8x128xf32>
    %396 = vector.extract_strided_slice %391 {offsets = [0, 256], sizes = [8, 128], strides = [1, 1]} : vector<8x384xf32> to vector<8x128xf32>
    %397 = arith.mulf %395, %336 : vector<8x128xf32>
    %398 = arith.mulf %394, %393 : vector<8x128xf32>
    %399 = arith.addf %397, %398 : vector<8x128xf32>
    %400 = math.tanh %399 : vector<8x128xf32>
    %401 = arith.mulf %396, %400 : vector<8x128xf32>
    %c6_i32 = arith.constant 6 : i32
    %402 = arith.index_cast %c6_i32 : i32 to index
    %c0_71 = arith.constant 0 : index
    %c0_72 = arith.constant 0 : index
    %403 = vector.load %arg1[%402, %c0_71, %c0_72] : memref<8x8x512xbf16, #tpu.memory_space<vmem>>, vector<1x8x512xbf16>
    %404 = vector.shape_cast %403 : vector<1x8x512xbf16> to vector<8x512xbf16>
    %405 = arith.extf %404 : vector<8x512xbf16> to vector<8x512xf32>
    %406 = arith.truncf %361 : vector<8x128xf32> to vector<8x128xbf16>
    %cst_73 = arith.constant dense<0.000000e+00> : vector<8x512xf32>
    %407 = tpu.matmul %406, %15, %cst_73 {dimension_numbers = #tpu.dot_dimension_numbers<[1], [0], [0], [1], [0, 0, 1, 1], [], []>} : vector<8x128xbf16>, vector<128x512xbf16>, vector<8x512xf32> -> vector<8x512xf32>
    %408 = arith.addf %405, %407 : vector<8x512xf32>
    %409 = vector.extract_strided_slice %408 {offsets = [0, 0], sizes = [8, 384], strides = [1, 1]} : vector<8x512xf32> to vector<8x384xf32>
    %410 = arith.negf %409 : vector<8x384xf32>
    %411 = math.exp %410 : vector<8x384xf32>
    %cst_74 = arith.constant 1.000000e+00 : f32
    %412 = vector.broadcast %cst_74 : f32 to vector<8x384xf32>
    %413 = arith.addf %412, %411 : vector<8x384xf32>
    %414 = arith.divf %412, %413 : vector<8x384xf32>
    %415 = vector.extract_strided_slice %408 {offsets = [0, 384], sizes = [8, 128], strides = [1, 1]} : vector<8x512xf32> to vector<8x128xf32>
    %416 = math.tanh %415 : vector<8x128xf32>
    %417 = vector.extract_strided_slice %414 {offsets = [0, 0], sizes = [8, 128], strides = [1, 1]} : vector<8x384xf32> to vector<8x128xf32>
    %418 = vector.extract_strided_slice %414 {offsets = [0, 128], sizes = [8, 128], strides = [1, 1]} : vector<8x384xf32> to vector<8x128xf32>
    %419 = vector.extract_strided_slice %414 {offsets = [0, 256], sizes = [8, 128], strides = [1, 1]} : vector<8x384xf32> to vector<8x128xf32>
    %420 = arith.mulf %418, %359 : vector<8x128xf32>
    %421 = arith.mulf %417, %416 : vector<8x128xf32>
    %422 = arith.addf %420, %421 : vector<8x128xf32>
    %423 = math.tanh %422 : vector<8x128xf32>
    %424 = arith.mulf %419, %423 : vector<8x128xf32>
    %425 = tpu.concatenate %424, %381 in 1 : vector<8x128xf32>, vector<8x128xf32> -> vector<8x256xf32>
    %426 = arith.truncf %425 : vector<8x256xf32> to vector<8x256xbf16>
    %cst_75 = arith.constant dense<0.000000e+00> : vector<8x512xf32>
    %427 = tpu.matmul %426, %16, %cst_75 {dimension_numbers = #tpu.dot_dimension_numbers<[1], [0], [0], [1], [0, 0, 1, 1], [], []>} : vector<8x256xbf16>, vector<256x512xbf16>, vector<8x512xf32> -> vector<8x512xf32>
    %428 = arith.addf %427, %20 : vector<8x512xf32>
    %429 = vector.extract_strided_slice %428 {offsets = [0, 0], sizes = [8, 384], strides = [1, 1]} : vector<8x512xf32> to vector<8x384xf32>
    %430 = arith.negf %429 : vector<8x384xf32>
    %431 = math.exp %430 : vector<8x384xf32>
    %cst_76 = arith.constant 1.000000e+00 : f32
    %432 = vector.broadcast %cst_76 : f32 to vector<8x384xf32>
    %433 = arith.addf %432, %431 : vector<8x384xf32>
    %434 = arith.divf %432, %433 : vector<8x384xf32>
    %435 = vector.extract_strided_slice %428 {offsets = [0, 384], sizes = [8, 128], strides = [1, 1]} : vector<8x512xf32> to vector<8x128xf32>
    %436 = math.tanh %435 : vector<8x128xf32>
    %437 = vector.extract_strided_slice %434 {offsets = [0, 0], sizes = [8, 128], strides = [1, 1]} : vector<8x384xf32> to vector<8x128xf32>
    %438 = vector.extract_strided_slice %434 {offsets = [0, 128], sizes = [8, 128], strides = [1, 1]} : vector<8x384xf32> to vector<8x128xf32>
    %439 = vector.extract_strided_slice %434 {offsets = [0, 256], sizes = [8, 128], strides = [1, 1]} : vector<8x384xf32> to vector<8x128xf32>
    %440 = arith.mulf %438, %379 : vector<8x128xf32>
    %441 = arith.mulf %437, %436 : vector<8x128xf32>
    %442 = arith.addf %440, %441 : vector<8x128xf32>
    %443 = math.tanh %442 : vector<8x128xf32>
    %444 = arith.mulf %439, %443 : vector<8x128xf32>
    %445 = tpu.concatenate %444, %401 in 1 : vector<8x128xf32>, vector<8x128xf32> -> vector<8x256xf32>
    %446 = arith.truncf %445 : vector<8x256xf32> to vector<8x256xbf16>
    %cst_77 = arith.constant dense<0.000000e+00> : vector<8x512xf32>
    %447 = tpu.matmul %446, %17, %cst_77 {dimension_numbers = #tpu.dot_dimension_numbers<[1], [0], [0], [1], [0, 0, 1, 1], [], []>} : vector<8x256xbf16>, vector<256x512xbf16>, vector<8x512xf32> -> vector<8x512xf32>
    %448 = arith.addf %447, %23 : vector<8x512xf32>
    %449 = vector.extract_strided_slice %448 {offsets = [0, 0], sizes = [8, 384], strides = [1, 1]} : vector<8x512xf32> to vector<8x384xf32>
    %450 = arith.negf %449 : vector<8x384xf32>
    %451 = math.exp %450 : vector<8x384xf32>
    %cst_78 = arith.constant 1.000000e+00 : f32
    %452 = vector.broadcast %cst_78 : f32 to vector<8x384xf32>
    %453 = arith.addf %452, %451 : vector<8x384xf32>
    %454 = arith.divf %452, %453 : vector<8x384xf32>
    %455 = vector.extract_strided_slice %448 {offsets = [0, 384], sizes = [8, 128], strides = [1, 1]} : vector<8x512xf32> to vector<8x128xf32>
    %456 = math.tanh %455 : vector<8x128xf32>
    %457 = vector.extract_strided_slice %454 {offsets = [0, 0], sizes = [8, 128], strides = [1, 1]} : vector<8x384xf32> to vector<8x128xf32>
    %458 = vector.extract_strided_slice %454 {offsets = [0, 128], sizes = [8, 128], strides = [1, 1]} : vector<8x384xf32> to vector<8x128xf32>
    %459 = vector.extract_strided_slice %454 {offsets = [0, 256], sizes = [8, 128], strides = [1, 1]} : vector<8x384xf32> to vector<8x128xf32>
    %460 = arith.mulf %458, %399 : vector<8x128xf32>
    %461 = arith.mulf %457, %456 : vector<8x128xf32>
    %462 = arith.addf %460, %461 : vector<8x128xf32>
    %463 = math.tanh %462 : vector<8x128xf32>
    %464 = arith.mulf %459, %463 : vector<8x128xf32>
    %c7_i32 = arith.constant 7 : i32
    %465 = arith.index_cast %c7_i32 : i32 to index
    %c0_79 = arith.constant 0 : index
    %c0_80 = arith.constant 0 : index
    %466 = vector.load %arg1[%465, %c0_79, %c0_80] : memref<8x8x512xbf16, #tpu.memory_space<vmem>>, vector<1x8x512xbf16>
    %467 = vector.shape_cast %466 : vector<1x8x512xbf16> to vector<8x512xbf16>
    %468 = arith.extf %467 : vector<8x512xbf16> to vector<8x512xf32>
    %469 = arith.truncf %424 : vector<8x128xf32> to vector<8x128xbf16>
    %cst_81 = arith.constant dense<0.000000e+00> : vector<8x512xf32>
    %470 = tpu.matmul %469, %15, %cst_81 {dimension_numbers = #tpu.dot_dimension_numbers<[1], [0], [0], [1], [0, 0, 1, 1], [], []>} : vector<8x128xbf16>, vector<128x512xbf16>, vector<8x512xf32> -> vector<8x512xf32>
    %471 = arith.addf %468, %470 : vector<8x512xf32>
    %472 = vector.extract_strided_slice %471 {offsets = [0, 0], sizes = [8, 384], strides = [1, 1]} : vector<8x512xf32> to vector<8x384xf32>
    %473 = arith.negf %472 : vector<8x384xf32>
    %474 = math.exp %473 : vector<8x384xf32>
    %cst_82 = arith.constant 1.000000e+00 : f32
    %475 = vector.broadcast %cst_82 : f32 to vector<8x384xf32>
    %476 = arith.addf %475, %474 : vector<8x384xf32>
    %477 = arith.divf %475, %476 : vector<8x384xf32>
    %478 = vector.extract_strided_slice %471 {offsets = [0, 384], sizes = [8, 128], strides = [1, 1]} : vector<8x512xf32> to vector<8x128xf32>
    %479 = math.tanh %478 : vector<8x128xf32>
    %480 = vector.extract_strided_slice %477 {offsets = [0, 0], sizes = [8, 128], strides = [1, 1]} : vector<8x384xf32> to vector<8x128xf32>
    %481 = vector.extract_strided_slice %477 {offsets = [0, 128], sizes = [8, 128], strides = [1, 1]} : vector<8x384xf32> to vector<8x128xf32>
    %482 = vector.extract_strided_slice %477 {offsets = [0, 256], sizes = [8, 128], strides = [1, 1]} : vector<8x384xf32> to vector<8x128xf32>
    %483 = arith.mulf %481, %422 : vector<8x128xf32>
    %484 = arith.mulf %480, %479 : vector<8x128xf32>
    %485 = arith.addf %483, %484 : vector<8x128xf32>
    %486 = math.tanh %485 : vector<8x128xf32>
    %487 = arith.mulf %482, %486 : vector<8x128xf32>
    %488 = tpu.concatenate %487, %444 in 1 : vector<8x128xf32>, vector<8x128xf32> -> vector<8x256xf32>
    %489 = arith.truncf %488 : vector<8x256xf32> to vector<8x256xbf16>
    %cst_83 = arith.constant dense<0.000000e+00> : vector<8x512xf32>
    %490 = tpu.matmul %489, %16, %cst_83 {dimension_numbers = #tpu.dot_dimension_numbers<[1], [0], [0], [1], [0, 0, 1, 1], [], []>} : vector<8x256xbf16>, vector<256x512xbf16>, vector<8x512xf32> -> vector<8x512xf32>
    %491 = arith.addf %490, %20 : vector<8x512xf32>
    %492 = vector.extract_strided_slice %491 {offsets = [0, 0], sizes = [8, 384], strides = [1, 1]} : vector<8x512xf32> to vector<8x384xf32>
    %493 = arith.negf %492 : vector<8x384xf32>
    %494 = math.exp %493 : vector<8x384xf32>
    %cst_84 = arith.constant 1.000000e+00 : f32
    %495 = vector.broadcast %cst_84 : f32 to vector<8x384xf32>
    %496 = arith.addf %495, %494 : vector<8x384xf32>
    %497 = arith.divf %495, %496 : vector<8x384xf32>
    %498 = vector.extract_strided_slice %491 {offsets = [0, 384], sizes = [8, 128], strides = [1, 1]} : vector<8x512xf32> to vector<8x128xf32>
    %499 = math.tanh %498 : vector<8x128xf32>
    %500 = vector.extract_strided_slice %497 {offsets = [0, 0], sizes = [8, 128], strides = [1, 1]} : vector<8x384xf32> to vector<8x128xf32>
    %501 = vector.extract_strided_slice %497 {offsets = [0, 128], sizes = [8, 128], strides = [1, 1]} : vector<8x384xf32> to vector<8x128xf32>
    %502 = vector.extract_strided_slice %497 {offsets = [0, 256], sizes = [8, 128], strides = [1, 1]} : vector<8x384xf32> to vector<8x128xf32>
    %503 = arith.mulf %501, %442 : vector<8x128xf32>
    %504 = arith.mulf %500, %499 : vector<8x128xf32>
    %505 = arith.addf %503, %504 : vector<8x128xf32>
    %506 = math.tanh %505 : vector<8x128xf32>
    %507 = arith.mulf %502, %506 : vector<8x128xf32>
    %508 = tpu.concatenate %507, %464 in 1 : vector<8x128xf32>, vector<8x128xf32> -> vector<8x256xf32>
    %509 = arith.truncf %508 : vector<8x256xf32> to vector<8x256xbf16>
    %cst_85 = arith.constant dense<0.000000e+00> : vector<8x512xf32>
    %510 = tpu.matmul %509, %17, %cst_85 {dimension_numbers = #tpu.dot_dimension_numbers<[1], [0], [0], [1], [0, 0, 1, 1], [], []>} : vector<8x256xbf16>, vector<256x512xbf16>, vector<8x512xf32> -> vector<8x512xf32>
    %511 = arith.addf %510, %23 : vector<8x512xf32>
    %512 = vector.extract_strided_slice %511 {offsets = [0, 0], sizes = [8, 384], strides = [1, 1]} : vector<8x512xf32> to vector<8x384xf32>
    %513 = arith.negf %512 : vector<8x384xf32>
    %514 = math.exp %513 : vector<8x384xf32>
    %cst_86 = arith.constant 1.000000e+00 : f32
    %515 = vector.broadcast %cst_86 : f32 to vector<8x384xf32>
    %516 = arith.addf %515, %514 : vector<8x384xf32>
    %517 = arith.divf %515, %516 : vector<8x384xf32>
    %518 = vector.extract_strided_slice %511 {offsets = [0, 384], sizes = [8, 128], strides = [1, 1]} : vector<8x512xf32> to vector<8x128xf32>
    %519 = math.tanh %518 : vector<8x128xf32>
    %520 = vector.extract_strided_slice %517 {offsets = [0, 0], sizes = [8, 128], strides = [1, 1]} : vector<8x384xf32> to vector<8x128xf32>
    %521 = vector.extract_strided_slice %517 {offsets = [0, 128], sizes = [8, 128], strides = [1, 1]} : vector<8x384xf32> to vector<8x128xf32>
    %522 = vector.extract_strided_slice %517 {offsets = [0, 256], sizes = [8, 128], strides = [1, 1]} : vector<8x384xf32> to vector<8x128xf32>
    %523 = arith.mulf %521, %462 : vector<8x128xf32>
    %524 = arith.mulf %520, %519 : vector<8x128xf32>
    %525 = arith.addf %523, %524 : vector<8x128xf32>
    %526 = math.tanh %525 : vector<8x128xf32>
    %527 = arith.mulf %522, %526 : vector<8x128xf32>
    %c8_i32 = arith.constant 8 : i32
    %c0_87 = arith.constant 0 : index
    %c0_88 = arith.constant 0 : index
    %c0_89 = arith.constant 0 : index
    %528 = vector.load %arg8[%c0_87, %c0_88, %c0_89] : memref<6x8x128xf32, #tpu.memory_space<vmem>>, vector<1x8x128xf32>
    %529 = vector.shape_cast %528 : vector<1x8x128xf32> to vector<8x128xf32>
    %530 = vector.shape_cast %487 : vector<8x128xf32> to vector<1x8x128xf32>
    tpu.vector_store %arg8[%c0_87, %c0_88, %c0_89], %530 {strides = array<i32>} : memref<6x8x128xf32, #tpu.memory_space<vmem>>, vector<1x8x128xf32>,
    %c1_90 = arith.constant 1 : index
    %c0_91 = arith.constant 0 : index
    %c0_92 = arith.constant 0 : index
    %531 = vector.load %arg8[%c1_90, %c0_91, %c0_92] : memref<6x8x128xf32, #tpu.memory_space<vmem>>, vector<1x8x128xf32>
    %532 = vector.shape_cast %531 : vector<1x8x128xf32> to vector<8x128xf32>
    %533 = vector.shape_cast %485 : vector<8x128xf32> to vector<1x8x128xf32>
    tpu.vector_store %arg8[%c1_90, %c0_91, %c0_92], %533 {strides = array<i32>} : memref<6x8x128xf32, #tpu.memory_space<vmem>>, vector<1x8x128xf32>,
    %c2_93 = arith.constant 2 : index
    %c0_94 = arith.constant 0 : index
    %c0_95 = arith.constant 0 : index
    %534 = vector.load %arg8[%c2_93, %c0_94, %c0_95] : memref<6x8x128xf32, #tpu.memory_space<vmem>>, vector<1x8x128xf32>
    %535 = vector.shape_cast %534 : vector<1x8x128xf32> to vector<8x128xf32>
    %536 = vector.shape_cast %507 : vector<8x128xf32> to vector<1x8x128xf32>
    tpu.vector_store %arg8[%c2_93, %c0_94, %c0_95], %536 {strides = array<i32>} : memref<6x8x128xf32, #tpu.memory_space<vmem>>, vector<1x8x128xf32>,
    %c3_96 = arith.constant 3 : index
    %c0_97 = arith.constant 0 : index
    %c0_98 = arith.constant 0 : index
    %537 = vector.load %arg8[%c3_96, %c0_97, %c0_98] : memref<6x8x128xf32, #tpu.memory_space<vmem>>, vector<1x8x128xf32>
    %538 = vector.shape_cast %537 : vector<1x8x128xf32> to vector<8x128xf32>
    %539 = vector.shape_cast %505 : vector<8x128xf32> to vector<1x8x128xf32>
    tpu.vector_store %arg8[%c3_96, %c0_97, %c0_98], %539 {strides = array<i32>} : memref<6x8x128xf32, #tpu.memory_space<vmem>>, vector<1x8x128xf32>,
    %c4_99 = arith.constant 4 : index
    %c0_100 = arith.constant 0 : index
    %c0_101 = arith.constant 0 : index
    %540 = vector.load %arg8[%c4_99, %c0_100, %c0_101] : memref<6x8x128xf32, #tpu.memory_space<vmem>>, vector<1x8x128xf32>
    %541 = vector.shape_cast %540 : vector<1x8x128xf32> to vector<8x128xf32>
    %542 = vector.shape_cast %527 : vector<8x128xf32> to vector<1x8x128xf32>
    tpu.vector_store %arg8[%c4_99, %c0_100, %c0_101], %542 {strides = array<i32>} : memref<6x8x128xf32, #tpu.memory_space<vmem>>, vector<1x8x128xf32>,
    %c5_102 = arith.constant 5 : index
    %c0_103 = arith.constant 0 : index
    %c0_104 = arith.constant 0 : index
    %543 = vector.load %arg8[%c5_102, %c0_103, %c0_104] : memref<6x8x128xf32, #tpu.memory_space<vmem>>, vector<1x8x128xf32>
    %544 = vector.shape_cast %543 : vector<1x8x128xf32> to vector<8x128xf32>
    %545 = vector.shape_cast %525 : vector<8x128xf32> to vector<1x8x128xf32>
    tpu.vector_store %arg8[%c5_102, %c0_103, %c0_104], %545 {strides = array<i32>} : memref<6x8x128xf32, #tpu.memory_space<vmem>>, vector<1x8x128xf32>,
    %c0_i32_105 = arith.constant 0 : i32
    %546 = arith.cmpi eq, %arg0, %c0_i32_105 : i32
    %547 = arith.extui %546 : i1 to i32
    %c0_i32_106 = arith.constant 0 : i32
    %548 = arith.cmpi ne, %547, %c0_i32_106 : i32
    scf.if %548 {
      %c0_107 = arith.constant 0 : index
      %c0_108 = arith.constant 0 : index
      %549 = vector.load %arg7[%c0_107, %c0_108] : memref<8x128xf32, #tpu.memory_space<vmem>>, vector<8x128xf32>
      tpu.vector_store %arg7[%c0_107, %c0_108], %527 {strides = array<i32>} : memref<8x128xf32, #tpu.memory_space<vmem>>, vector<8x128xf32>,
    } else {
    }
    return
  }
  func.func @transform_0(%arg0: i32) -> (i32, i32, i32) {
    %c0_i32 = arith.constant 0 : i32
    %c0_i32_0 = arith.constant 0 : i32
    %c0_i32_1 = arith.constant 0 : i32
    return %arg0, %c0_i32, %c0_i32_0 : i32, i32, i32
  }
  func.func @transform_1(%arg0: i32) -> (i32, i32) {
    %c0_i32 = arith.constant 0 : i32
    %c0_i32_0 = arith.constant 0 : i32
    %c0_i32_1 = arith.constant 0 : i32
    return %c0_i32, %c0_i32_0 : i32, i32
  }
  func.func @transform_2(%arg0: i32) -> (i32, i32) {
    %c0_i32 = arith.constant 0 : i32
    %c0_i32_0 = arith.constant 0 : i32
    %c0_i32_1 = arith.constant 0 : i32
    return %c0_i32, %c0_i32_0 : i32, i32
  }
  func.func @transform_3(%arg0: i32) -> (i32, i32) {
    %c0_i32 = arith.constant 0 : i32
    %c0_i32_0 = arith.constant 0 : i32
    %c0_i32_1 = arith.constant 0 : i32
    return %c0_i32, %c0_i32_0 : i32, i32
  }
  func.func @transform_4(%arg0: i32) -> (i32, i32) {
    %c0_i32 = arith.constant 0 : i32
    %c0_i32_0 = arith.constant 0 : i32
    %c0_i32_1 = arith.constant 0 : i32
    return %c0_i32, %c0_i32_0 : i32, i32
  }
  func.func @transform_5(%arg0: i32) -> (i32, i32) {
    %c0_i32 = arith.constant 0 : i32
    %c0_i32_0 = arith.constant 0 : i32
    %c0_i32_1 = arith.constant 0 : i32
    return %c0_i32, %c0_i32_0 : i32, i32
  }
  func.func @transform_6(%arg0: i32) -> (i32, i32) {
    %c0_i32 = arith.constant 0 : i32
    %c0_i32_0 = arith.constant 0 : i32
    %c0_i32_1 = arith.constant 0 : i32
    return %c0_i32, %c0_i32_0 : i32, i32
  }
}

</mosaic_0001>

<bundles_post_ra>
// kernel: tpu_custom_call.1
= control target key start
LH: loop header
LB: loop body
LE: loop exit
PB: predicated region body
PF: predicated region fallthrough
CT: control target
= control target key end

     0   :  { %11 = vsyncpa [#allocation4], 0  ;;  %s8120_s0 = inlined_call_operand.hbm [shape: bf16[8,8,512], index: 0, kind: input, shape index: {}]   ;;  %s8121_s1 = inlined_call_operand.hbm [shape: bf16[128,512], index: 1, kind: input, shape index: {}]   ;;  %s8122_s2 = inlined_call_operand.hbm [shape: bf16[256,512], index: 2, kind: input, shape index: {}]   ;;  %s8123_s3 = inlined_call_operand.vmem [shape: f32[1,512], index: 3, kind: input, shape index: {}]   ;;  %s8124_s4 = inlined_call_operand.hbm [shape: bf16[256,512], index: 4, kind: input, shape index: {}]   ;;  %s8125_s5 = inlined_call_operand.vmem [shape: f32[1,512], index: 5, kind: input, shape index: {}]   ;;  %s8126_s6 = inlined_call_operand.hbm [shape: f32[8,128], index: 6, kind: output, shape index: {}]  }
   0x1   :  { %12 = vsyncpa [#allocation7], 0 }
   0x2   :  { %13 = vsyncpa [#allocation10], 0 }
   0x3   :  { %14 = vsyncpa [#allocation5], 0  ;;  %s5286_s21 = smov [#allocation6]   ;;  %s5287_s23 = smov [#allocation3]  }
   0x4   :  { %s32_s22 = sshll.u32 %s5286_s21, 4  ;;  %s20_s24 = sshll.u32 %s5287_s23, 4  ;;  %s33_s22 = int_to_ptr.vmem [resolvable:$true] %s32_s22  ;;  %s5330_s24 = int_to_ptr.vmem [resolvable:$true] %s20_s24 }
   0x5   :  { %s5168_s27 = scalar_lea.hbm %s8121_s1, 4096 }
   0x6   :  { %p5169_p0 = scmp.ne.s32.totalorder %s8121_s1, %s5168_s27  ;;  %p5172_p1 = scmp.lt.u32.totalorder %s5168_s27, %s8121_s1 }
   0x8   :  { %p5174_p2 = pnand %p5172_p1, %p5169_p0 }
   0xa   :  { %5177 = shalt.err (!%p5174_p2)
}
   0xb   :  { %s5178_s8 = scalar_lea.vmem %s33_s22, 4096  ;;  %p5183_p4 = scmp.lt.s32.totalorder %s33_s22, %s33_s22 }
   0xc   :  { %p5179_p3 = scmp.ne.s32.totalorder %s33_s22, %s5178_s8  ;;  %p5184_p5 = scmp.lt.s32.totalorder %s5178_s8, %s5178_s8 }
   0xe   :  { %p5185_p6 = por %p5184_p5, %p5183_p4 }
  0x10   :  { %p5186_p7 = pnand %p5185_p6, %p5179_p3 }
  0x12   :  { %5189 = shalt.err (!%p5186_p7)
}
  0x13   :  { %s5288_s9 = smov 256   ;;  %s5289_s10 = smov 16  }
  0x14   :  { %38 = dma.hbm_to_vmem [thread:$0]  %s8121_s1, 4096, %s33_s22, [#allocation7], %s5288_s9, %s5288_s9, %s5289_s10  }
  0x15   :  { %s5190_s15 = scalar_lea.hbm %s8120_s0, 2048 }
  0x16   :  { %p5191_p8 = scmp.ne.s32.totalorder %s8120_s0, %s5190_s15  ;;  %p5194_p9 = scmp.lt.u32.totalorder %s5190_s15, %s8120_s0 }
  0x18   :  { %p5196_p10 = pnand %p5194_p9, %p5191_p8 }
  0x1a   :  { %5199 = shalt.err (!%p5196_p10)
}
  0x1b   :  { %s5200_s20 = scalar_lea.vmem %s5330_s24, 2048  ;;  %p5205_p12 = scmp.lt.s32.totalorder %s5330_s24, %s5330_s24 }
  0x1c   :  { %p5201_p11 = scmp.ne.s32.totalorder %s5330_s24, %s5200_s20  ;;  %p5206_p13 = scmp.lt.s32.totalorder %s5200_s20, %s5200_s20 }
  0x1e   :  { %p5207_p0 = por %p5206_p13, %p5205_p12 }
  0x20   :  { %p5208_p1 = pnand %p5207_p0, %p5201_p11 }
  0x22   :  { %5211 = shalt.err (!%p5208_p1)
}
  0x23   :  { %26 = dma.hbm_to_vmem [thread:$0]  %s8120_s0, 2048, %s5330_s24, [#allocation4], %s5288_s9, %s5288_s9, %s5289_s10  }
  0x24   :  { %s5290_s22 = smov [#allocation8]   ;;  %s5291_s25 = smov [#allocation9]  }
  0x25   :  { %s44_s23 = sshll.u32 %s5290_s22, 4  ;;  %s58_s26 = sshll.u32 %s5291_s25, 4  ;;  %s45_s23 = int_to_ptr.vmem [resolvable:$true] %s44_s23  ;;  %s5367_s26 = int_to_ptr.vmem [resolvable:$true] %s58_s26 }
  0x26   :  { %s5212_s29 = scalar_lea.hbm %s8122_s2, 8192 }
  0x27   :  { %p5213_p2 = scmp.ne.s32.totalorder %s8122_s2, %s5212_s29  ;;  %p5216_p3 = scmp.lt.u32.totalorder %s5212_s29, %s8122_s2 }
  0x29   :  { %p5218_p4 = pnand %p5216_p3, %p5213_p2 }
  0x2b   :  { %5221 = shalt.err (!%p5218_p4)
}
  0x2c   :  { %s5222_s0 = scalar_lea.vmem %s45_s23, 8192  ;;  %p5227_p6 = scmp.lt.s32.totalorder %s45_s23, %s45_s23 }
  0x2d   :  { %p5223_p5 = scmp.ne.s32.totalorder %s45_s23, %s5222_s0  ;;  %p5228_p7 = scmp.lt.s32.totalorder %s5222_s0, %s5222_s0 }
  0x2f   :  { %p5229_p8 = por %p5228_p7, %p5227_p6 }
  0x31   :  { %p5230_p9 = pnand %p5229_p8, %p5223_p5 }
  0x33   :  { %5233 = shalt.err (!%p5230_p9)
}
  0x34   :  { %50 = dma.hbm_to_vmem [thread:$0]  %s8122_s2, 8192, %s45_s23, [#allocation7], %s5288_s9, %s5288_s9, %s5289_s10  }
  0x35   :  { %s5234_s15 = scalar_lea.hbm %s8124_s4, 8192 }
  0x36   :  { %p5235_p10 = scmp.ne.s32.totalorder %s8124_s4, %s5234_s15  ;;  %p5238_p11 = scmp.lt.u32.totalorder %s5234_s15, %s8124_s4 }
  0x38   :  { %p5240_p12 = pnand %p5238_p11, %p5235_p10 }
  0x3a   :  { %5243 = shalt.err (!%p5240_p12)
}
  0x3b   :  { %s5244_s20 = scalar_lea.vmem %s5367_s26, 8192  ;;  %p5249_p0 = scmp.lt.s32.totalorder %s5367_s26, %s5367_s26 }
  0x3c   :  { %p5245_p13 = scmp.ne.s32.totalorder %s5367_s26, %s5244_s20  ;;  %p5250_p1 = scmp.lt.s32.totalorder %s5244_s20, %s5244_s20 }
  0x3e   :  { %p5251_p2 = por %p5250_p1, %p5249_p0 }
  0x40   :  { %p5252_p3 = pnand %p5251_p2, %p5245_p13 }
  0x42   :  { %5255 = shalt.err (!%p5252_p3)
}
  0x43   :  { %64 = dma.hbm_to_vmem [thread:$0]  %s8124_s4, 8192, %s5367_s26, [#allocation10], %s5288_s9, %s5288_s9, %s5289_s10  }
  0x44   :  { %5278 = dma.done.wait [#allocation4], 2048  }
  0x45   :  { %5279 = vsyncadd [#allocation4], 4294965248 }
  0x46   :  { %5280 = dma.done.wait [#allocation7], 12288  }
  0x47   :  { %5281 = vsyncadd [#allocation7], 4294955008 }
  0x48   :  { %5282 = dma.done.wait [#allocation10], 8192  }
  0x49   :  { %5283 = vsyncadd [#allocation10], 4294959104  ;;  %v8127_v0 = vmov 0   ;;  %v4030_v1 = vld [vmem:[#allocation6 + $0x4] ss:$16 sps:$4 sm:$0xff]   ;;  %v8129_v38 = vmov 0.0|0.0  }
  0x4a   :  { %504 = vmatprep.mubr.bf16.mxu0 %v8127_v0  ;;  %545 = vmatprep.mubr.bf16.mxu1 %v8127_v0  ;;  %v4032_v2 = vld [vmem:[#allocation6] ss:$16 sps:$4 sm:$0xff]   ;;  %v4033_v3 = vld [vmem:[#allocation6 + $0x24] ss:$16 sps:$4 sm:$0xff]   ;;  %v4041_v6 = vld [vmem:[#allocation6 + $0xc] ss:$16 sps:$4 sm:$0xff]  }
  0x4b   :  { %472 = vmatprep.subr.bf16.mxu0 %v4030_v1  ;;  %v4035_v4 = vld [vmem:[#allocation6 + $0x20] ss:$16 sps:$4 sm:$0xff]   ;;  %v4036_v5 = vld [vmem:[#allocation6 + $0x44] ss:$16 sps:$4 sm:$0xff]   ;;  %v4044_v7 = vld [vmem:[#allocation6 + $0x8] ss:$16 sps:$4 sm:$0xff]   ;;  %513 = vmatprep.subr.bf16.mxu1 %v4041_v6 }
  0x4c   :  { %473 = vmatpush1.bf16.msra.mxu0 %v4032_v2  ;;  %v4038_v8 = vld [vmem:[#allocation6 + $0x40] ss:$16 sps:$4 sm:$0xff]   ;;  %v4039_v9 = vld [vmem:[#allocation6 + $0x64] ss:$16 sps:$4 sm:$0xff]   ;;  %514 = vmatpush1.bf16.msra.mxu1 %v4044_v7  ;;  %v4047_v10 = vld [vmem:[#allocation6 + $0x2c] ss:$16 sps:$4 sm:$0xff]  }
  0x4d   :  { %474 = vmatprep.subr.bf16.mxu0 %v4033_v3  ;;  %v4050_v11 = vld [vmem:[#allocation6 + $0x28] ss:$16 sps:$4 sm:$0xff]   ;;  %515 = vmatprep.subr.bf16.mxu1 %v4047_v10  ;;  %v4043_v12 = vld [vmem:[#allocation6 + $0x60] ss:$16 sps:$4 sm:$0xff]   ;;  %v4045_v13 = vld [vmem:[#allocation6 + $0x84] ss:$16 sps:$4 sm:$0xff]  }
  0x4e   :  { %v4053_v14 = vld [vmem:[#allocation6 + $0x4c] ss:$16 sps:$4 sm:$0xff]   ;;  %v4056_v15 = vld [vmem:[#allocation6 + $0x48] ss:$16 sps:$4 sm:$0xff]   ;;  %v4049_v17 = vld [vmem:[#allocation6 + $0x80] ss:$16 sps:$4 sm:$0xff]  }
  0x4f   :  { %v4059_v16 = vld [vmem:[#allocation6 + $0x6c] ss:$16 sps:$4 sm:$0xff]   ;;  %v4051_v18 = vld [vmem:[#allocation6 + $0xa4] ss:$16 sps:$4 sm:$0xff]   ;;  %v4062_v19 = vld [vmem:[#allocation6 + $0x68] ss:$16 sps:$4 sm:$0xff]  }
  0x50   :  { %475 = vmatpush1.bf16.msra.mxu0 %v4035_v4  ;;  %516 = vmatpush1.bf16.msra.mxu1 %v4050_v11  ;;  %v4065_v20 = vld [vmem:[#allocation6 + $0x8c] ss:$16 sps:$4 sm:$0xff]   ;;  %v4055_v21 = vld [vmem:[#allocation6 + $0xa0] ss:$16 sps:$4 sm:$0xff]   ;;  %v4057_v22 = vld [vmem:[#allocation6 + $0xc4] ss:$16 sps:$4 sm:$0xff]  }
  0x51   :  { %476 = vmatprep.subr.bf16.mxu0 %v4036_v5  ;;  %517 = vmatprep.subr.bf16.mxu1 %v4053_v14  ;;  %v4068_v23 = vld [vmem:[#allocation6 + $0x88] ss:$16 sps:$4 sm:$0xff]   ;;  %v4069_v24 = vld [vmem:[#allocation6 + $0xac] ss:$16 sps:$4 sm:$0xff]   ;;  %v4061_v25 = vld [vmem:[#allocation6 + $0xc0] ss:$16 sps:$4 sm:$0xff]  }
  0x52   :  { %v4063_v26 = vld [vmem:[#allocation6 + $0xe4] ss:$16 sps:$4 sm:$0xff]   ;;  %v4071_v27 = vld [vmem:[#allocation6 + $0xa8] ss:$16 sps:$4 sm:$0xff]   ;;  %v4072_v28 = vld [vmem:[#allocation6 + $0xcc] ss:$16 sps:$4 sm:$0xff]  }
  0x53   :  { %v4067_v29 = vld [vmem:[#allocation6 + $0xe0] ss:$16 sps:$4 sm:$0xff]   ;;  %v4074_v30 = vld [vmem:[#allocation6 + $0xc8] ss:$16 sps:$4 sm:$0xff]   ;;  %v4078_v31 = vld [vmem:[#allocation8 + $0x4] ss:$16 sps:$4 sm:$0xff]  }
  0x54   :  { %477 = vmatpush1.bf16.msra.mxu0 %v4038_v8  ;;  %518 = vmatpush1.bf16.msra.mxu1 %v4056_v15  ;;  %v4075_v32 = vld [vmem:[#allocation6 + $0xec] ss:$16 sps:$4 sm:$0xff]   ;;  %v5406_v33 = vld [vmem:[#allocation6 + $0xe8] ss:$16 sps:$4 sm:$0xff]   ;;  %v4082_v35 = vld [vmem:[#allocation8] ss:$16 sps:$4 sm:$0xff]  }
  0x55   :  { %478 = vmatprep.subr.bf16.mxu0 %v4039_v9  ;;  %519 = vmatprep.subr.bf16.mxu1 %v4059_v16  ;;  %v5408_v34 = vld [vmem:[#allocation8 + $0xc] ss:$16 sps:$4 sm:$0xff]   ;;  %v4084_v36 = vld [vmem:[#allocation8 + $0x24] ss:$16 sps:$4 sm:$0xff]   ;;  %v5410_v37 = vld [vmem:[#allocation8 + $0x20] ss:$16 sps:$4 sm:$0xff]  }
  0x56   :  { %v5413_v39 = vld [vmem:[#allocation8 + $0x8] ss:$16 sps:$4 sm:$0xff]   ;;  %v5415_v40 = vld [vmem:[#allocation8 + $0x44] ss:$16 sps:$4 sm:$0xff]   ;;  %v5417_v41 = vld [vmem:[#allocation8 + $0x2c] ss:$16 sps:$4 sm:$0xff]  }
  0x57   :  { %v5422_v42 = vld [vmem:[#allocation8 + $0x40] ss:$16 sps:$4 sm:$0xff]   ;;  %v5424_v43 = vld [vmem:[#allocation8 + $0x28] ss:$16 sps:$4 sm:$0xff]   ;;  %v5426_v44 = vld [vmem:[#allocation8 + $0x64] ss:$16 sps:$4 sm:$0xff]  }
  0x58   :  { %479 = vmatpush1.bf16.msra.mxu0 %v4043_v12  ;;  %520 = vmatpush1.bf16.msra.mxu1 %v4062_v19  ;;  %v5430_v45 = vld [vmem:[#allocation8 + $0x4c] ss:$16 sps:$4 sm:$0xff]   ;;  %v5435_v46 = vld [vmem:[#allocation8 + $0x60] ss:$16 sps:$4 sm:$0xff]   ;;  %v5438_v47 = vld [vmem:[#allocation8 + $0x48] ss:$16 sps:$4 sm:$0xff]  }
  0x59   :  { %480 = vmatprep.subr.bf16.mxu0 %v4045_v13  ;;  %521 = vmatprep.subr.bf16.mxu1 %v4065_v20  ;;  %v5441_v48 = vld [vmem:[#allocation8 + $0x6c] ss:$16 sps:$4 sm:$0xff]   ;;  %v5446_v49 = vld [vmem:[#allocation8 + $0x68] ss:$16 sps:$4 sm:$0xff]   ;;  %v5452_v50 = vld [vmem:[#allocation8 + $0x84] ss:$16 sps:$4 sm:$0xff]  }
  0x5a   :  { %v5454_v51 = vld [vmem:[#allocation8 + $0x8c] ss:$16 sps:$4 sm:$0xff]   ;;  %v5456_v52 = vld [vmem:[#allocation8 + $0x80] ss:$16 sps:$4 sm:$0xff]   ;;  %v5458_v53 = vld [vmem:[#allocation8 + $0x88] ss:$16 sps:$4 sm:$0xff]  }
  0x5b   :  { %v5464_v54 = vld [vmem:[#allocation8 + $0xa4] ss:$16 sps:$4 sm:$0xff]   ;;  %v5466_v55 = vld [vmem:[#allocation8 + $0xac] ss:$16 sps:$4 sm:$0xff]   ;;  %v5468_v56 = vld [vmem:[#allocation8 + $0xa0] ss:$16 sps:$4 sm:$0xff]  }
  0x5c   :  { %481 = vmatpush1.bf16.msra.mxu0 %v4049_v17  ;;  %522 = vmatpush1.bf16.msra.mxu1 %v4068_v23  ;;  %v5470_v57 = vld [vmem:[#allocation8 + $0xa8] ss:$16 sps:$4 sm:$0xff]   ;;  %v5476_v58 = vld [vmem:[#allocation8 + $0xc4] ss:$16 sps:$4 sm:$0xff]   ;;  %v5478_v59 = vld [vmem:[#allocation8 + $0xcc] ss:$16 sps:$4 sm:$0xff]  }
  0x5d   :  { %482 = vmatprep.subr.bf16.mxu0 %v4051_v18  ;;  %523 = vmatprep.subr.bf16.mxu1 %v4069_v24  ;;  %v5480_v60 = vld [vmem:[#allocation8 + $0xc0] ss:$16 sps:$4 sm:$0xff]   ;;  %v5482_v61 = vld [vmem:[#allocation8 + $0xc8] ss:$16 sps:$4 sm:$0xff]   ;;  %v5488_v62 = vld [vmem:[#allocation8 + $0xe4] ss:$16 sps:$4 sm:$0xff]  }
  0x5e   :  { %v5490_v63 = vld [vmem:[#allocation8 + $0xec] ss:$16 sps:$4 sm:$0xff]   ;;  %v5492_v1 = vld [vmem:[#allocation8 + $0xe0] ss:$16 sps:$4 sm:$0xff]   ;;  %v5494_v2 = vld [vmem:[#allocation8 + $0xe8] ss:$16 sps:$4 sm:$0xff]  }
  0x5f   :  { %v5500_v3 = vld [vmem:[#allocation8 + $0x104] ss:$16 sps:$4 sm:$0xff]   ;;  %v5502_v4 = vld [vmem:[#allocation8 + $0x10c] ss:$16 sps:$4 sm:$0xff]   ;;  %v5504_v5 = vld [vmem:[#allocation8 + $0x100] ss:$16 sps:$4 sm:$0xff]  }
  0x60   :  { %483 = vmatpush1.bf16.msra.mxu0 %v4055_v21  ;;  %524 = vmatpush1.bf16.msra.mxu1 %v4071_v27  ;;  %v5506_v6 = vld [vmem:[#allocation8 + $0x108] ss:$16 sps:$4 sm:$0xff]   ;;  %v5512_v7 = vld [vmem:[#allocation8 + $0x124] ss:$16 sps:$4 sm:$0xff]   ;;  %v5514_v8 = vld [vmem:[#allocation8 + $0x12c] ss:$16 sps:$4 sm:$0xff]  }
  0x61   :  { %484 = vmatprep.subr.bf16.mxu0 %v4057_v22  ;;  %525 = vmatprep.subr.bf16.mxu1 %v4072_v28  ;;  %v5516_v9 = vld [vmem:[#allocation8 + $0x120] ss:$16 sps:$4 sm:$0xff]   ;;  %v5518_v10 = vld [vmem:[#allocation8 + $0x128] ss:$16 sps:$4 sm:$0xff]   ;;  %v5524_v11 = vld [vmem:[#allocation8 + $0x144] ss:$16 sps:$4 sm:$0xff]  }
  0x62   :  { %v5526_v12 = vld [vmem:[#allocation8 + $0x14c] ss:$16 sps:$4 sm:$0xff]   ;;  %v5528_v13 = vld [vmem:[#allocation8 + $0x140] ss:$16 sps:$4 sm:$0xff]   ;;  %v5530_v14 = vld [vmem:[#allocation8 + $0x148] ss:$16 sps:$4 sm:$0xff]  }
  0x63   :  { %v5536_v15 = vld [vmem:[#allocation8 + $0x164] ss:$16 sps:$4 sm:$0xff]   ;;  %v5538_v16 = vld [vmem:[#allocation8 + $0x16c] ss:$16 sps:$4 sm:$0xff]   ;;  %v5540_v17 = vld [vmem:[#allocation8 + $0x160] ss:$16 sps:$4 sm:$0xff]  }
  0x64   :  { %485 = vmatpush1.bf16.msra.mxu0 %v4061_v25  ;;  %526 = vmatpush1.bf16.msra.mxu1 %v4074_v30  ;;  %8555 = vst [vmem:[#allocation16_spill] sm:$0xff] %v5538_v16  ;;  %8556 = vst [vmem:[#allocation17_spill] sm:$0xff] %v5540_v17  ;;  %v5542_v18 = vld [vmem:[#allocation8 + $0x168] ss:$16 sps:$4 sm:$0xff]   ;;  %v5548_v19 = vld [vmem:[#allocation8 + $0x184] ss:$16 sps:$4 sm:$0xff]  }
  0x65   :  { %486 = vmatprep.subr.bf16.mxu0 %v4063_v26  ;;  %527 = vmatprep.subr.bf16.mxu1 %v4075_v32  ;;  %8557 = vst [vmem:[#allocation18_spill] sm:$0xff] %v5542_v18  ;;  %8558 = vst [vmem:[#allocation19_spill] sm:$0xff] %v5548_v19  ;;  %v5550_v20 = vld [vmem:[#allocation8 + $0x18c] ss:$16 sps:$4 sm:$0xff]   ;;  %v5552_v21 = vld [vmem:[#allocation8 + $0x180] ss:$16 sps:$4 sm:$0xff]  }
  0x66   :  { %8559 = vst [vmem:[#allocation20_spill] sm:$0xff] %v5550_v20  ;;  %8560 = vst [vmem:[#allocation21_spill] sm:$0xff] %v5552_v21  ;;  %v5554_v22 = vld [vmem:[#allocation8 + $0x188] ss:$16 sps:$4 sm:$0xff]   ;;  %v5560_v23 = vld [vmem:[#allocation8 + $0x1a4] ss:$16 sps:$4 sm:$0xff]  }
  0x67   :  { %8561 = vst [vmem:[#allocation22_spill] sm:$0xff] %v5554_v22  ;;  %8562 = vst [vmem:[#allocation23_spill] sm:$0xff] %v5560_v23  ;;  %v5562_v24 = vld [vmem:[#allocation8 + $0x1ac] ss:$16 sps:$4 sm:$0xff]   ;;  %v5564_v25 = vld [vmem:[#allocation8 + $0x1a0] ss:$16 sps:$4 sm:$0xff]  }
  0x68   :  { %487 = vmatpush1.bf16.msra.mxu0 %v4067_v29  ;;  %528 = vmatpush1.bf16.msra.mxu1 %v5406_v33  ;;  %8563 = vst [vmem:[#allocation24_spill] sm:$0xff] %v5562_v24  ;;  %8564 = vst [vmem:[#allocation25_spill] sm:$0xff] %v5564_v25  ;;  %v5566_v26 = vld [vmem:[#allocation8 + $0x1a8] ss:$16 sps:$4 sm:$0xff]   ;;  %v5568_v27 = vld [vmem:[#allocation8 + $0x1c4] ss:$16 sps:$4 sm:$0xff]  }
  0x69   :  { %904 = vmatprep.subr.bf16.mxu0 %v4078_v31  ;;  %945 = vmatprep.subr.bf16.mxu1 %v5408_v34  ;;  %8565 = vst [vmem:[#allocation26_spill] sm:$0xff] %v5566_v26  ;;  %8566 = vst [vmem:[#allocation27_spill] sm:$0xff] %v5568_v27  ;;  %v5570_v28 = vld [vmem:[#allocation8 + $0x1cc] ss:$16 sps:$4 sm:$0xff]   ;;  %v5576_v29 = vld [vmem:[#allocation8 + $0x1c0] ss:$16 sps:$4 sm:$0xff]  }
  0x6a   :  { %8567 = vst [vmem:[#allocation28_spill] sm:$0xff] %v5570_v28  ;;  %8568 = vst [vmem:[#allocation29_spill] sm:$0xff] %v5576_v29  ;;  %v5578_v30 = vld [vmem:[#allocation8 + $0x1c8] ss:$16 sps:$4 sm:$0xff]   ;;  %v5582_v31 = vld [vmem:[#allocation8 + $0x1e4] ss:$16 sps:$4 sm:$0xff]  }
  0x6b   :  { %505 = vmatmul.mubr.bf16.vlgmr.msra.gmra.mrb[0].mxu0 %v8129_v38  ;;  %546 = vmatmul.mubr.bf16.vlgmr.msra.gmra.mrb[0].mxu1 %v8129_v38  ;;  %8569 = vst [vmem:[#allocation30_spill] sm:$0xff] %v5578_v30  ;;  %8570 = vst [vmem:[#allocation31_spill] sm:$0xff] %v5582_v31  ;;  %v5584_v32 = vld [vmem:[#allocation8 + $0x1ec] ss:$16 sps:$4 sm:$0xff]   ;;  %v5596_v0 = vld [vmem:[#allocation9 + $0x4] ss:$16 sps:$4 sm:$0xff]  }
  0x6c   :  { %905 = vmatpush1.bf16.msra.mxu0 %v4082_v35  ;;  %936 = vmatprep.mubr.bf16.mxu0 %v8129_v38  ;;  %8571 = vst [vmem:[#allocation32_spill] sm:$0xff] %v5584_v32  ;;  %v5588_v35 = vld [vmem:[#allocation8 + $0x1e0] ss:$16 sps:$4 sm:$0xff]   ;;  %8574 = vst [vmem:[#allocation35_spill] sm:$0xff] %v5596_v0 }
  0x6d   :  { %906 = vmatprep.subr.bf16.mxu0 %v4084_v36  ;;  %946 = vmatpush1.bf16.msra.mxu1 %v5413_v39  ;;  %8572 = vst [vmem:[#allocation33_spill] sm:$0xff] %v5588_v35  ;;  %v5590_v36 = vld [vmem:[#allocation8 + $0x1e8] ss:$16 sps:$4 sm:$0xff]  }
  0x6e   :  { %947 = vmatprep.subr.bf16.mxu1 %v5417_v41  ;;  %977 = vmatprep.mubr.bf16.mxu1 %v8129_v38  ;;  %8573 = vst [vmem:[#allocation34_spill] sm:$0xff] %v5590_v36  ;;  %v5598_v38 = vld [vmem:[#allocation9 + $0xc] ss:$16 sps:$4 sm:$0xff]  }
  0x6f   :  { %8575 = vst [vmem:[#allocation36_spill] sm:$0xff] %v5598_v38 }
  0x70   :  { %907 = vmatpush1.bf16.msra.mxu0 %v5410_v37 }
  0x71   :  { %908 = vmatprep.subr.bf16.mxu0 %v5415_v40  ;;  %948 = vmatpush1.bf16.msra.mxu1 %v5424_v43 }
  0x72   :  { %949 = vmatprep.subr.bf16.mxu1 %v5430_v45 }
  0x74   :  { %909 = vmatpush1.bf16.msra.mxu0 %v5422_v42 }
  0x75   :  { %910 = vmatprep.subr.bf16.mxu0 %v5426_v44  ;;  %950 = vmatpush1.bf16.msra.mxu1 %v5438_v47 }
  0x76   :  { %951 = vmatprep.subr.bf16.mxu1 %v5441_v48 }
  0x78   :  { %911 = vmatpush1.bf16.msra.mxu0 %v5435_v46 }
  0x79   :  { %952 = vmatpush1.bf16.msra.mxu1 %v5446_v49  ;;  %912 = vmatprep.subr.bf16.mxu0 %v5452_v50 }
  0x7a   :  { %953 = vmatprep.subr.bf16.mxu1 %v5454_v51 }
  0x7c   :  { %913 = vmatpush1.bf16.msra.mxu0 %v5456_v52 }
  0x7d   :  { %954 = vmatpush1.bf16.msra.mxu1 %v5458_v53  ;;  %914 = vmatprep.subr.bf16.mxu0 %v5464_v54 }
  0x7e   :  { %955 = vmatprep.subr.bf16.mxu1 %v5466_v55 }
  0x80   :  { %915 = vmatpush1.bf16.msra.mxu0 %v5468_v56 }
  0x81   :  { %956 = vmatpush1.bf16.msra.mxu1 %v5470_v57  ;;  %916 = vmatprep.subr.bf16.mxu0 %v5476_v58 }
  0x82   :  { %957 = vmatprep.subr.bf16.mxu1 %v5478_v59 }
  0x84   :  { %917 = vmatpush1.bf16.msra.mxu0 %v5480_v60 }
  0x85   :  { %958 = vmatpush1.bf16.msra.mxu1 %v5482_v61  ;;  %918 = vmatprep.subr.bf16.mxu0 %v5488_v62 }
  0x86   :  { %959 = vmatprep.subr.bf16.mxu1 %v5490_v63 }
  0x88   :  { %919 = vmatpush1.bf16.msra.mxu0 %v5492_v1 }
  0x89   :  { %960 = vmatpush1.bf16.msra.mxu1 %v5494_v2  ;;  %920 = vmatprep.subr.bf16.mxu0 %v5500_v3 }
  0x8a   :  { %961 = vmatprep.subr.bf16.mxu1 %v5502_v4 }
  0x8c   :  { %921 = vmatpush1.bf16.msra.mxu0 %v5504_v5 }
  0x8d   :  { %962 = vmatpush1.bf16.msra.mxu1 %v5506_v6  ;;  %922 = vmatprep.subr.bf16.mxu0 %v5512_v7 }
  0x8e   :  { %963 = vmatprep.subr.bf16.mxu1 %v5514_v8 }
  0x90   :  { %923 = vmatpush1.bf16.msra.mxu0 %v5516_v9 }
  0x91   :  { %964 = vmatpush1.bf16.msra.mxu1 %v5518_v10  ;;  %924 = vmatprep.subr.bf16.mxu0 %v5524_v11 }
  0x92   :  { %965 = vmatprep.subr.bf16.mxu1 %v5526_v12 }
  0x94   :  { %925 = vmatpush1.bf16.msra.mxu0 %v5528_v13 }
  0x95   :  { %966 = vmatpush1.bf16.msra.mxu1 %v5530_v14  ;;  %926 = vmatprep.subr.bf16.mxu0 %v5536_v15 }
  0x96   :  { %967 = vmatprep.subr.bf16.mxu1 %v5538_v16 }
  0x98   :  { %927 = vmatpush1.bf16.msra.mxu0 %v5540_v17 }
  0x99   :  { %968 = vmatpush1.bf16.msra.mxu1 %v5542_v18  ;;  %928 = vmatprep.subr.bf16.mxu0 %v5548_v19 }
  0x9a   :  { %969 = vmatprep.subr.bf16.mxu1 %v5550_v20 }
  0x9c   :  { %929 = vmatpush1.bf16.msra.mxu0 %v5552_v21 }
  0x9d   :  { %970 = vmatpush1.bf16.msra.mxu1 %v5554_v22  ;;  %930 = vmatprep.subr.bf16.mxu0 %v5560_v23 }
  0x9e   :  { %971 = vmatprep.subr.bf16.mxu1 %v5562_v24 }
  0xa0   :  { %931 = vmatpush1.bf16.msra.mxu0 %v5564_v25 }
  0xa1   :  { %972 = vmatpush1.bf16.msra.mxu1 %v5566_v26  ;;  %932 = vmatprep.subr.bf16.mxu0 %v5568_v27  ;;  %v306_v26 = vld [vmem:[#allocation3 + $0x8] sm:$0xff] }
  0xa2   :  { %973 = vmatprep.subr.bf16.mxu1 %v5570_v28 }
  0xa4   :  { %933 = vmatpush1.bf16.msra.mxu0 %v5576_v29 }
  0xa5   :  { %974 = vmatpush1.bf16.msra.mxu1 %v5578_v30  ;;  %934 = vmatprep.subr.bf16.mxu0 %v5582_v31  ;;  %v305_v30 = vld [vmem:[#allocation3] sm:$0xff] }
  0xa6   :  { %975 = vmatprep.subr.bf16.mxu1 %v5584_v32  ;;  %v307_v29 = vunpack.c.l.bf16 %v305_v30  ;;  %v308_v28 = vunpack.c.h.bf16 %v305_v30 }
  0xa8   :  { %935 = vmatpush1.bf16.msra.mxu0 %v5588_v35 }
  0xa9   :  { %976 = vmatpush1.bf16.msra.mxu1 %v5590_v36  ;;  %1332 = vmatprep.subr.bf16.mxu0 %v5596_v0  ;;  %v309_v36 = vunpack.c.l.bf16 %v306_v26 }
  0xaa   :  { %1373 = vmatprep.subr.bf16.mxu1 %v5598_v38  ;;  %v310_v38 = vunpack.c.h.bf16 %v306_v26  ;;  %v5611_v26 = vld [vmem:[#allocation9 + $0x24] ss:$16 sps:$4 sm:$0xff]  }
  0xab   :  { %8579 = vst [vmem:[#allocation40_spill] sm:$0xff] %v5611_v26 }
 0x13e   :  { %v506_v27 = vpop.f32.mrb[0].mxu0  ;;  %v547_v21 = vpop.f32.mrb[0].mxu1 }
 0x13f   :  { %v554_v31 = vadd.f32 %v506_v27, %v307_v29  ;;  %v508_v25 = vpop.f32.mrb[1].mxu0  ;;  %v549_v20 = vpop.f32.mrb[1].mxu1  ;;  %v556_v0 = vadd.f32 %v547_v21, %v309_v36  ;;  %v5619_v36 = vld [vmem:[#allocation9 + $0x20] ss:$16 sps:$4 sm:$0xff]  }
 0x140   :  { %v555_v32 = vadd.f32 %v508_v25, %v308_v28  ;;  %v510_v24 = vpop.f32.mrb[2].mxu0  ;;  %v551_v19 = vpop.f32.mrb[2].mxu1  ;;  %v557_v30 = vadd.f32 %v549_v20, %v310_v38  ;;  %8581 = vst [vmem:[#allocation42_spill] sm:$0xff] %v5619_v36 }
 0x141   :  { %v3821_v35 = vmul.f32 -1.442695, %v554_v31  ;;  %v511_v23 = vpop.f32.mrb[3].mxu0  ;;  %v552_v18 = vpop.f32.mrb[3].mxu1  ;;  %v3823_v17 = vmul.f32 -1.442695, %v556_v0 }
 0x142   :  { %v3822_v22 = vmul.f32 -1.442695, %v555_v32  ;;  %v5607_v18 = vld [vmem:[#allocation9 + $0x8] ss:$16 sps:$4 sm:$0xff]  }
 0x143   :  { %4270 = vpow2.f32 %v3821_v35  ;;  %8578 = vst [vmem:[#allocation39_spill] sm:$0xff] %v5607_v18  ;;  %v5613_v35 = vld [vmem:[#allocation9 + $0x2c] ss:$16 sps:$4 sm:$0xff]  }
 0x144   :  { %4272 = vpow2.f32 %v3822_v22  ;;  %8580 = vst [vmem:[#allocation41_spill] sm:$0xff] %v5613_v35 }
 0x145   :  { %4274 = vpow2.f32 %v3823_v17 }
 0x146   :  { %4276 = vtanh.f32 %v557_v30  ;;  %v5621_v30 = vld [vmem:[#allocation9 + $0x28] ss:$16 sps:$4 sm:$0xff]  }
 0x147   :  { %8582 = vst [vmem:[#allocation43_spill] sm:$0xff] %v5621_v30 }
 0x14d   :  { %v4271_v16 = vpop.eup %4270 }
 0x14e   :  { %v4273_v27 = vpop.eup %4272  ;;  %v567_v29 = vadd.f32 1.0, %v4271_v16  ;;  %v5605_v16 = vld [vmem:[#allocation9] ss:$16 sps:$4 sm:$0xff]  }
 0x14f   :  { %v568_v24 = vadd.f32 1.0, %v4273_v27  ;;  %v4275_v23 = vpop.eup %4274  ;;  %8577 = vst [vmem:[#allocation38_spill] sm:$0xff] %v5605_v16  ;;  %v5625_v27 = vld [vmem:[#allocation9 + $0x44] ss:$16 sps:$4 sm:$0xff]  }
 0x150   :  { %4278 = vrcp.f32 %v567_v29  ;;  %v4277_v25 = vpop.eup %4276  ;;  %v569_v31 = vadd.f32 1.0, %v4275_v23  ;;  %8583 = vst [vmem:[#allocation44_spill] sm:$0xff] %v5625_v27  ;;  %v5627_v29 = vld [vmem:[#allocation9 + $0x4c] ss:$16 sps:$4 sm:$0xff]   ;;  %v5633_v23 = vld [vmem:[#allocation9 + $0x40] ss:$16 sps:$4 sm:$0xff]  }
 0x151   :  { %4280 = vrcp.f32 %v568_v24  ;;  %8584 = vst [vmem:[#allocation45_spill] sm:$0xff] %v5627_v29  ;;  %v8585_v24 = vmov 0.0|0.0   ;;  %8586 = vst [vmem:[#allocation46_spill] sm:$0xff] %v5633_v23 }
 0x152   :  { %4282 = vrcp.f32 %v569_v31  ;;  %v5641_v31 = vld [vmem:[#allocation9 + $0x6c] ss:$16 sps:$4 sm:$0xff]  }
 0x153   :  { %8589 = vst [vmem:[#allocation49_spill] sm:$0xff] %v5641_v31 }
 0x15a   :  { %v4279_v28 = vpop.eup %4278 }
 0x15b   :  { %v4281_v22 = vpop.eup %4280  ;;  %v578_v32 = vmul.f32 %v4279_v28, %v4277_v25  ;;  %v5635_v25 = vld [vmem:[#allocation9 + $0x48] ss:$16 sps:$4 sm:$0xff]   ;;  %v5639_v28 = vld [vmem:[#allocation9 + $0x64] ss:$16 sps:$4 sm:$0xff]  }
 0x15c   :  { %v577_v21 = vmul.f32 0.0, %v4281_v22  ;;  %v4283_v0 = vpop.eup %4282  ;;  %8587 = vst [vmem:[#allocation47_spill] sm:$0xff] %v5635_v25  ;;  %8588 = vst [vmem:[#allocation48_spill] sm:$0xff] %v5639_v28  ;;  %v5645_v22 = vld [vmem:[#allocation9 + $0x60] ss:$16 sps:$4 sm:$0xff]  }
 0x15d   :  { %8590 = vst [vmem:[#allocation50_spill] sm:$0xff] %v5645_v22 }
 0x15e   :  { %v5602_v19 = vadd.f32 %v578_v32, %v577_v21  ;;  %v5647_v32 = vld [vmem:[#allocation9 + $0x68] ss:$16 sps:$4 sm:$0xff]   ;;  %v5653_v21 = vld [vmem:[#allocation9 + $0x84] ss:$16 sps:$4 sm:$0xff]  }
 0x15f   :  { %8591 = vst [vmem:[#allocation51_spill] sm:$0xff] %v5647_v32  ;;  %8592 = vst [vmem:[#allocation52_spill] sm:$0xff] %v5653_v21 }
 0x160   :  { %8576 = vst [vmem:[#allocation37_spill] sm:$0xff] %v5602_v19  ;;  %4284 = vtanh.f32 %v5602_v19 }
 0x16a   :  { %v4285_v38 = vpop.eup %4284 }
 0x16b   :  { %v581_v17 = vmul.f32 %v4285_v38, %v4283_v0  ;;  %v5655_v0 = vld [vmem:[#allocation9 + $0x8c] ss:$16 sps:$4 sm:$0xff]   ;;  %v5657_v38 = vld [vmem:[#allocation9 + $0x80] ss:$16 sps:$4 sm:$0xff]  }
 0x16c   :  { %8593 = vst [vmem:[#allocation53_spill] sm:$0xff] %v5655_v0  ;;  %8594 = vst [vmem:[#allocation54_spill] sm:$0xff] %v5657_v38 }
 0x16d   :  { %v5609_v20 = vpack.c.bf16 %v581_v17, %v581_v17  ;;  %v5659_v17 = vld [vmem:[#allocation9 + $0x88] ss:$16 sps:$4 sm:$0xff]  }
 0x16e   :  { %8595 = vst [vmem:[#allocation55_spill] sm:$0xff] %v5659_v17 }
 0x16f   :  { %937 = vmatmul.mubr.bf16.vlgmr.msra.gmra.mrb[4].mxu0 %v5609_v20  ;;  %978 = vmatmul.mubr.bf16.vlgmr.msra.gmra.mrb[4].mxu1 %v5609_v20 }
 0x170   :  { %1333 = vmatpush1.bf16.msra.mxu0 %v5605_v16  ;;  %1374 = vmatpush1.bf16.msra.mxu1 %v5607_v18 }
 0x171   :  { %1334 = vmatprep.subr.bf16.mxu0 %v5611_v26  ;;  %1375 = vmatprep.subr.bf16.mxu1 %v5613_v35 }
 0x172   :  { %1364 = vmatprep.mubr.bf16.mxu0 %v8585_v24  ;;  %1405 = vmatprep.mubr.bf16.mxu1 %v8585_v24  ;;  %v5665_v24 = vld [vmem:[#allocation9 + $0xa4] ss:$16 sps:$4 sm:$0xff]  }
 0x173   :  { %8596 = vst [vmem:[#allocation56_spill] sm:$0xff] %v5665_v24 }
 0x174   :  { %1335 = vmatpush1.bf16.msra.mxu0 %v5619_v36  ;;  %1376 = vmatpush1.bf16.msra.mxu1 %v5621_v30 }
 0x175   :  { %1336 = vmatprep.subr.bf16.mxu0 %v5625_v27  ;;  %1377 = vmatprep.subr.bf16.mxu1 %v5627_v29 }
 0x178   :  { %1337 = vmatpush1.bf16.msra.mxu0 %v5633_v23  ;;  %1378 = vmatpush1.bf16.msra.mxu1 %v5635_v25  ;;  %v5771_v25 = vld [vmem:[#allocation9 + $0x1cc] ss:$16 sps:$4 sm:$0xff]  }
 0x179   :  { %1338 = vmatprep.subr.bf16.mxu0 %v5639_v28  ;;  %1379 = vmatprep.subr.bf16.mxu1 %v5641_v31  ;;  %v5671_v31 = vld [vmem:[#allocation9 + $0xa8] ss:$16 sps:$4 sm:$0xff]   ;;  %v5769_v28 = vld [vmem:[#allocation9 + $0x1c4] ss:$16 sps:$4 sm:$0xff]   ;;  %8633 = vst [vmem:[#allocation93_spill] sm:$0xff] %v5771_v25 }
 0x17a   :  { %8599 = vst [vmem:[#allocation59_spill] sm:$0xff] %v5671_v31  ;;  %8632 = vst [vmem:[#allocation92_spill] sm:$0xff] %v5769_v28 }
 0x17c   :  { %1339 = vmatpush1.bf16.msra.mxu0 %v5645_v22  ;;  %1380 = vmatpush1.bf16.msra.mxu1 %v5647_v32  ;;  %v5667_v22 = vld [vmem:[#allocation9 + $0xac] ss:$16 sps:$4 sm:$0xff]   ;;  %v5669_v32 = vld [vmem:[#allocation9 + $0xa0] ss:$16 sps:$4 sm:$0xff]  }
 0x17d   :  { %1340 = vmatprep.subr.bf16.mxu0 %v5653_v21  ;;  %1381 = vmatprep.subr.bf16.mxu1 %v5655_v0  ;;  %8597 = vst [vmem:[#allocation57_spill] sm:$0xff] %v5667_v22  ;;  %8598 = vst [vmem:[#allocation58_spill] sm:$0xff] %v5669_v32  ;;  %v5677_v0 = vld [vmem:[#allocation9 + $0xc4] ss:$16 sps:$4 sm:$0xff]   ;;  %v5683_v21 = vld [vmem:[#allocation9 + $0xc8] ss:$16 sps:$4 sm:$0xff]  }
 0x17e   :  { %8600 = vst [vmem:[#allocation60_spill] sm:$0xff] %v5677_v0  ;;  %8603 = vst [vmem:[#allocation63_spill] sm:$0xff] %v5683_v21 }
 0x180   :  { %1341 = vmatpush1.bf16.msra.mxu0 %v5657_v38  ;;  %1382 = vmatpush1.bf16.msra.mxu1 %v5659_v17  ;;  %v5679_v38 = vld [vmem:[#allocation9 + $0xcc] ss:$16 sps:$4 sm:$0xff]   ;;  %v5681_v17 = vld [vmem:[#allocation9 + $0xc0] ss:$16 sps:$4 sm:$0xff]  }
 0x181   :  { %1342 = vmatprep.subr.bf16.mxu0 %v5665_v24  ;;  %1383 = vmatprep.subr.bf16.mxu1 %v5667_v22  ;;  %8601 = vst [vmem:[#allocation61_spill] sm:$0xff] %v5679_v38  ;;  %8602 = vst [vmem:[#allocation62_spill] sm:$0xff] %v5681_v17  ;;  %v5689_v22 = vld [vmem:[#allocation9 + $0xe4] ss:$16 sps:$4 sm:$0xff]   ;;  %v5695_v24 = vld [vmem:[#allocation9 + $0xe8] ss:$16 sps:$4 sm:$0xff]  }
 0x182   :  { %8604 = vst [vmem:[#allocation64_spill] sm:$0xff] %v5689_v22  ;;  %8607 = vst [vmem:[#allocation67_spill] sm:$0xff] %v5695_v24 }
 0x184   :  { %1343 = vmatpush1.bf16.msra.mxu0 %v5669_v32  ;;  %1384 = vmatpush1.bf16.msra.mxu1 %v5671_v31  ;;  %v5691_v32 = vld [vmem:[#allocation9 + $0xec] ss:$16 sps:$4 sm:$0xff]   ;;  %v5693_v31 = vld [vmem:[#allocation9 + $0xe0] ss:$16 sps:$4 sm:$0xff]  }
 0x185   :  { %1344 = vmatprep.subr.bf16.mxu0 %v5677_v0  ;;  %1385 = vmatprep.subr.bf16.mxu1 %v5679_v38  ;;  %8605 = vst [vmem:[#allocation65_spill] sm:$0xff] %v5691_v32  ;;  %8606 = vst [vmem:[#allocation66_spill] sm:$0xff] %v5693_v31  ;;  %v5701_v38 = vld [vmem:[#allocation9 + $0x104] ss:$16 sps:$4 sm:$0xff]   ;;  %v5707_v0 = vld [vmem:[#allocation9 + $0x108] ss:$16 sps:$4 sm:$0xff]  }
 0x186   :  { %8608 = vst [vmem:[#allocation68_spill] sm:$0xff] %v5701_v38  ;;  %8611 = vst [vmem:[#allocation71_spill] sm:$0xff] %v5707_v0 }
 0x188   :  { %1345 = vmatpush1.bf16.msra.mxu0 %v5681_v17  ;;  %1386 = vmatpush1.bf16.msra.mxu1 %v5683_v21  ;;  %v5703_v17 = vld [vmem:[#allocation9 + $0x10c] ss:$16 sps:$4 sm:$0xff]   ;;  %v5705_v21 = vld [vmem:[#allocation9 + $0x100] ss:$16 sps:$4 sm:$0xff]  }
 0x189   :  { %1346 = vmatprep.subr.bf16.mxu0 %v5689_v22  ;;  %1387 = vmatprep.subr.bf16.mxu1 %v5691_v32  ;;  %8609 = vst [vmem:[#allocation69_spill] sm:$0xff] %v5703_v17  ;;  %8610 = vst [vmem:[#allocation70_spill] sm:$0xff] %v5705_v21  ;;  %v5713_v32 = vld [vmem:[#allocation9 + $0x124] ss:$16 sps:$4 sm:$0xff]   ;;  %v5719_v22 = vld [vmem:[#allocation9 + $0x128] ss:$16 sps:$4 sm:$0xff]  }
 0x18a   :  { %8612 = vst [vmem:[#allocation72_spill] sm:$0xff] %v5713_v32  ;;  %8615 = vst [vmem:[#allocation75_spill] sm:$0xff] %v5719_v22 }
 0x18c   :  { %1347 = vmatpush1.bf16.msra.mxu0 %v5693_v31  ;;  %1388 = vmatpush1.bf16.msra.mxu1 %v5695_v24  ;;  %v5715_v31 = vld [vmem:[#allocation9 + $0x12c] ss:$16 sps:$4 sm:$0xff]   ;;  %v5717_v24 = vld [vmem:[#allocation9 + $0x120] ss:$16 sps:$4 sm:$0xff]  }
 0x18d   :  { %1348 = vmatprep.subr.bf16.mxu0 %v5701_v38  ;;  %1389 = vmatprep.subr.bf16.mxu1 %v5703_v17  ;;  %8613 = vst [vmem:[#allocation73_spill] sm:$0xff] %v5715_v31  ;;  %8614 = vst [vmem:[#allocation74_spill] sm:$0xff] %v5717_v24  ;;  %v5725_v17 = vld [vmem:[#allocation9 + $0x144] ss:$16 sps:$4 sm:$0xff]   ;;  %v5731_v38 = vld [vmem:[#allocation9 + $0x148] ss:$16 sps:$4 sm:$0xff]  }
 0x18e   :  { %8616 = vst [vmem:[#allocation76_spill] sm:$0xff] %v5725_v17  ;;  %8619 = vst [vmem:[#allocation79_spill] sm:$0xff] %v5731_v38 }
 0x190   :  { %1349 = vmatpush1.bf16.msra.mxu0 %v5705_v21  ;;  %1390 = vmatpush1.bf16.msra.mxu1 %v5707_v0  ;;  %v5727_v21 = vld [vmem:[#allocation9 + $0x14c] ss:$16 sps:$4 sm:$0xff]   ;;  %v5729_v0 = vld [vmem:[#allocation9 + $0x140] ss:$16 sps:$4 sm:$0xff]  }
 0x191   :  { %1350 = vmatprep.subr.bf16.mxu0 %v5713_v32  ;;  %1391 = vmatprep.subr.bf16.mxu1 %v5715_v31  ;;  %8617 = vst [vmem:[#allocation77_spill] sm:$0xff] %v5727_v21  ;;  %8618 = vst [vmem:[#allocation78_spill] sm:$0xff] %v5729_v0  ;;  %v5737_v31 = vld [vmem:[#allocation9 + $0x164] ss:$16 sps:$4 sm:$0xff]   ;;  %v5743_v32 = vld [vmem:[#allocation9 + $0x168] ss:$16 sps:$4 sm:$0xff]  }
 0x192   :  { %8620 = vst [vmem:[#allocation80_spill] sm:$0xff] %v5737_v31  ;;  %8623 = vst [vmem:[#allocation83_spill] sm:$0xff] %v5743_v32 }
 0x194   :  { %1351 = vmatpush1.bf16.msra.mxu0 %v5717_v24  ;;  %1392 = vmatpush1.bf16.msra.mxu1 %v5719_v22  ;;  %v5739_v24 = vld [vmem:[#allocation9 + $0x16c] ss:$16 sps:$4 sm:$0xff]   ;;  %v5741_v22 = vld [vmem:[#allocation9 + $0x160] ss:$16 sps:$4 sm:$0xff]  }
 0x195   :  { %1352 = vmatprep.subr.bf16.mxu0 %v5725_v17  ;;  %1393 = vmatprep.subr.bf16.mxu1 %v5727_v21  ;;  %8621 = vst [vmem:[#allocation81_spill] sm:$0xff] %v5739_v24  ;;  %8622 = vst [vmem:[#allocation82_spill] sm:$0xff] %v5741_v22  ;;  %v5749_v21 = vld [vmem:[#allocation9 + $0x184] ss:$16 sps:$4 sm:$0xff]   ;;  %v5755_v17 = vld [vmem:[#allocation9 + $0x188] ss:$16 sps:$4 sm:$0xff]  }
 0x196   :  { %8624 = vst [vmem:[#allocation84_spill] sm:$0xff] %v5749_v21  ;;  %8627 = vst [vmem:[#allocation87_spill] sm:$0xff] %v5755_v17 }
 0x198   :  { %1353 = vmatpush1.bf16.msra.mxu0 %v5729_v0  ;;  %1394 = vmatpush1.bf16.msra.mxu1 %v5731_v38  ;;  %v5751_v0 = vld [vmem:[#allocation9 + $0x18c] ss:$16 sps:$4 sm:$0xff]   ;;  %v5753_v38 = vld [vmem:[#allocation9 + $0x180] ss:$16 sps:$4 sm:$0xff]  }
 0x199   :  { %1354 = vmatprep.subr.bf16.mxu0 %v5737_v31  ;;  %1395 = vmatprep.subr.bf16.mxu1 %v5739_v24  ;;  %8625 = vst [vmem:[#allocation85_spill] sm:$0xff] %v5751_v0  ;;  %8626 = vst [vmem:[#allocation86_spill] sm:$0xff] %v5753_v38  ;;  %v5761_v24 = vld [vmem:[#allocation9 + $0x1a4] ss:$16 sps:$4 sm:$0xff]   ;;  %v5767_v31 = vld [vmem:[#allocation9 + $0x1a8] ss:$16 sps:$4 sm:$0xff]  }
 0x19a   :  { %8628 = vst [vmem:[#allocation88_spill] sm:$0xff] %v5761_v24  ;;  %8631 = vst [vmem:[#allocation91_spill] sm:$0xff] %v5767_v31 }
 0x19c   :  { %1355 = vmatpush1.bf16.msra.mxu0 %v5741_v22  ;;  %1396 = vmatpush1.bf16.msra.mxu1 %v5743_v32  ;;  %v5763_v22 = vld [vmem:[#allocation9 + $0x1ac] ss:$16 sps:$4 sm:$0xff]   ;;  %v5765_v32 = vld [vmem:[#allocation9 + $0x1a0] ss:$16 sps:$4 sm:$0xff]  }
 0x19d   :  { %1356 = vmatprep.subr.bf16.mxu0 %v5749_v21  ;;  %1397 = vmatprep.subr.bf16.mxu1 %v5751_v0  ;;  %8629 = vst [vmem:[#allocation89_spill] sm:$0xff] %v5763_v22  ;;  %8630 = vst [vmem:[#allocation90_spill] sm:$0xff] %v5765_v32  ;;  %v5783_v0 = vld [vmem:[#allocation9 + $0x1e4] ss:$16 sps:$4 sm:$0xff]   ;;  %v5785_v21 = vld [vmem:[#allocation9 + $0x1ec] ss:$16 sps:$4 sm:$0xff]  }
 0x19e   :  { %8636 = vst [vmem:[#allocation96_spill] sm:$0xff] %v5783_v0  ;;  %8637 = vst [vmem:[#allocation97_spill] sm:$0xff] %v5785_v21 }
 0x1a0   :  { %1357 = vmatpush1.bf16.msra.mxu0 %v5753_v38  ;;  %1398 = vmatpush1.bf16.msra.mxu1 %v5755_v17  ;;  %v5777_v17 = vld [vmem:[#allocation9 + $0x1c0] ss:$16 sps:$4 sm:$0xff]   ;;  %v5779_v38 = vld [vmem:[#allocation9 + $0x1c8] ss:$16 sps:$4 sm:$0xff]  }
 0x1a1   :  { %1358 = vmatprep.subr.bf16.mxu0 %v5761_v24  ;;  %1399 = vmatprep.subr.bf16.mxu1 %v5763_v22  ;;  %8634 = vst [vmem:[#allocation94_spill] sm:$0xff] %v5777_v17  ;;  %8635 = vst [vmem:[#allocation95_spill] sm:$0xff] %v5779_v38  ;;  %v5789_v22 = vld [vmem:[#allocation9 + $0x1e0] ss:$16 sps:$4 sm:$0xff]  }
 0x1a2   :  { %8638 = vst [vmem:[#allocation98_spill] sm:$0xff] %v5789_v22 }
 0x1a4   :  { %1359 = vmatpush1.bf16.msra.mxu0 %v5765_v32  ;;  %1400 = vmatpush1.bf16.msra.mxu1 %v5767_v31  ;;  %v5791_v32 = vld [vmem:[#allocation9 + $0x1e8] ss:$16 sps:$4 sm:$0xff]  }
 0x1a5   :  { %1360 = vmatprep.subr.bf16.mxu0 %v5769_v28  ;;  %1401 = vmatprep.subr.bf16.mxu1 %v5771_v25  ;;  %8639 = vst [vmem:[#allocation99_spill] sm:$0xff] %v5791_v32  ;;  %v5797_v25 = vld [vmem:[#allocation6 + $0x4] ss:$16 sps:$4 sm:$0xff]   ;;  %v5800_v28 = vld [vmem:[#allocation6 + $0xc] ss:$16 sps:$4 sm:$0xff]  }
 0x1a6   :  { %8640 = vst [vmem:[#allocation100_spill] sm:$0xff] %v5797_v25  ;;  %8641 = vst [vmem:[#allocation101_spill] sm:$0xff] %v5800_v28 }
 0x1a8   :  { %1361 = vmatpush1.bf16.msra.mxu0 %v5777_v17  ;;  %1402 = vmatpush1.bf16.msra.mxu1 %v5779_v38  ;;  %v263_v38 = vlaneseq }
 0x1a9   :  { %1362 = vmatprep.subr.bf16.mxu0 %v5783_v0  ;;  %1403 = vmatprep.subr.bf16.mxu1 %v5785_v21  ;;  %v261_v21 = vld [vmem:[%s8123_s3] sm:$0xf] }
 0x1aa   :  { %v5803_v17 = vshrl.u32 %v263_v38, 7 }
 0x1ac   :  { %1363 = vmatpush1.bf16.msra.mxu0 %v5789_v22  ;;  %1404 = vmatpush1.bf16.msra.mxu1 %v5791_v32  ;;  %v8214_v31 = vsub.s32 0, %v5803_v17  ;;  %v8217_v22 = vsub.s32 1, %v5803_v17  ;;  %v8218_v24 = vsub.s32 2, %v5803_v17  ;;  %v8223_v16 = vsub.s32 3, %v5803_v17 }
 0x1ad   :  { %1445 = vmatprep.subr.bf16.mxu0 %v5797_v25  ;;  %1486 = vmatprep.subr.bf16.mxu1 %v5800_v28 }
 0x1ae   :  { %v5812_v32 = vrot.slane %v261_v21, %v8214_v31  ;;  %v5816_v25 = vrot.slane %v261_v21, %v8217_v22  ;;  %v5824_v22 = vrot.slane %v261_v21, %v8218_v24 }
 0x1b0   :  { %8642 = vst [vmem:[#allocation102_spill] sm:$0xff] %v5812_v32  ;;  %8643 = vst [vmem:[#allocation103_spill] sm:$0xff] %v5816_v25 }
 0x242   :  { %v938_v28 = vpop.f32.mrb[4].mxu0  ;;  %v979_v0 = vpop.f32.mrb[4].mxu1 }
 0x243   :  { %v939_v38 = vadd.f32 %v938_v28, %v5812_v32  ;;  %v940_v23 = vpop.f32.mrb[5].mxu0  ;;  %v981_v29 = vpop.f32.mrb[5].mxu1  ;;  %v5828_v28 = vrot.slane %v261_v21, %v8223_v16 }
 0x244   :  { %v941_v27 = vadd.f32 %v940_v23, %v5816_v25  ;;  %v942_v30 = vpop.f32.mrb[6].mxu0  ;;  %v983_v36 = vpop.f32.mrb[6].mxu1  ;;  %v980_v23 = vadd.f32 %v979_v0, %v5824_v22 }
 0x245   :  { %v3888_v35 = vmul.f32 -1.442695, %v939_v38  ;;  %v943_v26 = vpop.f32.mrb[7].mxu0  ;;  %v984_v31 = vpop.f32.mrb[7].mxu1  ;;  %v982_v36 = vadd.f32 %v981_v29, %v5828_v28 }
 0x246   :  { %v3889_v18 = vmul.f32 -1.442695, %v941_v27  ;;  %v3890_v30 = vmul.f32 -1.442695, %v980_v23 }
 0x247   :  { %4286 = vpow2.f32 %v3888_v35 }
 0x248   :  { %4288 = vpow2.f32 %v3889_v18 }
 0x249   :  { %4290 = vtanh.f32 %v982_v36 }
 0x24a   :  { %4292 = vpow2.f32 %v3890_v30  ;;  %v5839_v30 = vld [vmem:[#allocation6] ss:$16 sps:$4 sm:$0xff]  }
 0x251   :  { %v4287_v26 = vpop.eup %4286 }
 0x252   :  { %v995_v31 = vadd.f32 1.0, %v4287_v26  ;;  %v4289_v27 = vpop.eup %4288  ;;  %v5853_v26 = vld [vmem:[#allocation6 + $0x20] ss:$16 sps:$4 sm:$0xff]  }
 0x253   :  { %v996_v35 = vadd.f32 1.0, %v4289_v27  ;;  %v4291_v38 = vpop.eup %4290  ;;  %v5859_v27 = vld [vmem:[#allocation6 + $0x44] ss:$16 sps:$4 sm:$0xff]  }
 0x254   :  { %4294 = vrcp.f32 %v995_v31  ;;  %v4293_v24 = vpop.eup %4292  ;;  %v5856_v31 = vld [vmem:[#allocation6 + $0x28] ss:$16 sps:$4 sm:$0xff]  }
 0x255   :  { %4296 = vrcp.f32 %v996_v35  ;;  %v997_v21 = vadd.f32 1.0, %v4293_v24  ;;  %v5842_v24 = vld [vmem:[#allocation6 + $0x8] ss:$16 sps:$4 sm:$0xff]   ;;  %v5862_v35 = vld [vmem:[#allocation6 + $0x4c] ss:$16 sps:$4 sm:$0xff]  }
 0x257   :  { %4298 = vrcp.f32 %v997_v21  ;;  %v5871_v21 = vld [vmem:[#allocation6 + $0x64] ss:$16 sps:$4 sm:$0xff]  }
 0x258   :  { %8647 = vst [vmem:[#allocation106_spill] sm:$0xff] %v5871_v21 }
 0x25e   :  { %v4295_v18 = vpop.eup %4294 }
 0x25f   :  { %v1006_v25 = vmul.f32 %v4295_v18, %v4291_v38  ;;  %v4297_v32 = vpop.eup %4296  ;;  %v5865_v38 = vld [vmem:[#allocation6 + $0x40] ss:$16 sps:$4 sm:$0xff]   ;;  %v5868_v18 = vld [vmem:[#allocation6 + $0x48] ss:$16 sps:$4 sm:$0xff]  }
 0x260   :  { %v1005_v16 = vmul.f32 0.0, %v4297_v32  ;;  %v8644_v32 = vmov 0   ;;  %8645 = vst [vmem:[#allocation104_spill] sm:$0xff] %v5865_v38  ;;  %8646 = vst [vmem:[#allocation105_spill] sm:$0xff] %v5868_v18 }
 0x261   :  { %v4299_v29 = vpop.eup %4298 }
 0x262   :  { %v5832_v19 = vadd.f32 %v1006_v25, %v1005_v16  ;;  %v5845_v16 = vld [vmem:[#allocation6 + $0x24] ss:$16 sps:$4 sm:$0xff]   ;;  %v5848_v25 = vld [vmem:[#allocation6 + $0x2c] ss:$16 sps:$4 sm:$0xff]  }
 0x264   :  { %4300 = vtanh.f32 %v5832_v19 }
 0x26e   :  { %v4301_v0 = vpop.eup %4300 }
 0x26f   :  { %v1009_v23 = vmul.f32 %v4301_v0, %v4299_v29  ;;  %v5874_v29 = vld [vmem:[#allocation6 + $0x6c] ss:$16 sps:$4 sm:$0xff]   ;;  %v5877_v0 = vld [vmem:[#allocation6 + $0x60] ss:$16 sps:$4 sm:$0xff]  }
 0x270   :  { %8648 = vst [vmem:[#allocation107_spill] sm:$0xff] %v5874_v29  ;;  %8649 = vst [vmem:[#allocation108_spill] sm:$0xff] %v5877_v0 }
 0x271   :  { %v5835_v36 = vpack.c.bf16 %v1009_v23, %v1009_v23  ;;  %v5880_v23 = vld [vmem:[#allocation6 + $0x68] ss:$16 sps:$4 sm:$0xff]  }
 0x272   :  { %8650 = vst [vmem:[#allocation109_spill] sm:$0xff] %v5880_v23 }
 0x273   :  { %1365 = vmatmul.mubr.bf16.vlgmr.msra.gmra.mrb[8].mxu0 %v5835_v36  ;;  %1406 = vmatmul.mubr.bf16.vlgmr.msra.gmra.mrb[8].mxu1 %v5835_v36 }
 0x274   :  { %1446 = vmatpush1.bf16.msra.mxu0 %v5839_v30  ;;  %1487 = vmatpush1.bf16.msra.mxu1 %v5842_v24 }
 0x275   :  { %1447 = vmatprep.subr.bf16.mxu0 %v5845_v16  ;;  %1488 = vmatprep.subr.bf16.mxu1 %v5848_v25 }
 0x276   :  { %1477 = vmatprep.mubr.bf16.mxu0 %v8644_v32  ;;  %1518 = vmatprep.mubr.bf16.mxu1 %v8644_v32 }
 0x278   :  { %1448 = vmatpush1.bf16.msra.mxu0 %v5853_v26  ;;  %1489 = vmatpush1.bf16.msra.mxu1 %v5856_v31 }
 0x279   :  { %1449 = vmatprep.subr.bf16.mxu0 %v5859_v27  ;;  %1490 = vmatprep.subr.bf16.mxu1 %v5862_v35 }
 0x27c   :  { %1450 = vmatpush1.bf16.msra.mxu0 %v5865_v38  ;;  %1491 = vmatpush1.bf16.msra.mxu1 %v5868_v18  ;;  %v5883_v38 = vld [vmem:[#allocation6 + $0x84] ss:$16 sps:$4 sm:$0xff]   ;;  %v5886_v18 = vld [vmem:[#allocation6 + $0x8c] ss:$16 sps:$4 sm:$0xff]  }
 0x27d   :  { %1451 = vmatprep.subr.bf16.mxu0 %v5871_v21  ;;  %1492 = vmatprep.subr.bf16.mxu1 %v5874_v29  ;;  %8651 = vst [vmem:[#allocation110_spill] sm:$0xff] %v5883_v38  ;;  %8652 = vst [vmem:[#allocation111_spill] sm:$0xff] %v5886_v18  ;;  %v5889_v21 = vld [vmem:[#allocation6 + $0x80] ss:$16 sps:$4 sm:$0xff]   ;;  %v5892_v29 = vld [vmem:[#allocation6 + $0x88] ss:$16 sps:$4 sm:$0xff]  }
 0x27e   :  { %8653 = vst [vmem:[#allocation112_spill] sm:$0xff] %v5889_v21  ;;  %8654 = vst [vmem:[#allocation113_spill] sm:$0xff] %v5892_v29 }
 0x280   :  { %1452 = vmatpush1.bf16.msra.mxu0 %v5877_v0  ;;  %1493 = vmatpush1.bf16.msra.mxu1 %v5880_v23  ;;  %v5895_v0 = vld [vmem:[#allocation6 + $0xa4] ss:$16 sps:$4 sm:$0xff]   ;;  %v5898_v23 = vld [vmem:[#allocation6 + $0xac] ss:$16 sps:$4 sm:$0xff]  }
 0x281   :  { %1453 = vmatprep.subr.bf16.mxu0 %v5883_v38  ;;  %1494 = vmatprep.subr.bf16.mxu1 %v5886_v18  ;;  %8655 = vst [vmem:[#allocation114_spill] sm:$0xff] %v5895_v0  ;;  %8656 = vst [vmem:[#allocation115_spill] sm:$0xff] %v5898_v23  ;;  %v5901_v38 = vld [vmem:[#allocation6 + $0xa0] ss:$16 sps:$4 sm:$0xff]   ;;  %v5904_v18 = vld [vmem:[#allocation6 + $0xa8] ss:$16 sps:$4 sm:$0xff]  }
 0x282   :  { %8657 = vst [vmem:[#allocation116_spill] sm:$0xff] %v5901_v38  ;;  %8658 = vst [vmem:[#allocation117_spill] sm:$0xff] %v5904_v18 }
 0x284   :  { %1454 = vmatpush1.bf16.msra.mxu0 %v5889_v21  ;;  %1495 = vmatpush1.bf16.msra.mxu1 %v5892_v29  ;;  %v5907_v21 = vld [vmem:[#allocation6 + $0xc4] ss:$16 sps:$4 sm:$0xff]   ;;  %v5910_v29 = vld [vmem:[#allocation6 + $0xcc] ss:$16 sps:$4 sm:$0xff]  }
 0x285   :  { %1455 = vmatprep.subr.bf16.mxu0 %v5895_v0  ;;  %1496 = vmatprep.subr.bf16.mxu1 %v5898_v23  ;;  %8659 = vst [vmem:[#allocation118_spill] sm:$0xff] %v5907_v21  ;;  %8660 = vst [vmem:[#allocation119_spill] sm:$0xff] %v5910_v29  ;;  %v5913_v0 = vld [vmem:[#allocation6 + $0xc0] ss:$16 sps:$4 sm:$0xff]   ;;  %v5916_v23 = vld [vmem:[#allocation6 + $0xc8] ss:$16 sps:$4 sm:$0xff]  }
 0x288   :  { %1456 = vmatpush1.bf16.msra.mxu0 %v5901_v38  ;;  %1497 = vmatpush1.bf16.msra.mxu1 %v5904_v18  ;;  %v5919_v38 = vld [vmem:[#allocation6 + $0xe4] ss:$16 sps:$4 sm:$0xff]   ;;  %v5922_v18 = vld [vmem:[#allocation6 + $0xec] ss:$16 sps:$4 sm:$0xff]  }
 0x289   :  { %1457 = vmatprep.subr.bf16.mxu0 %v5907_v21  ;;  %1498 = vmatprep.subr.bf16.mxu1 %v5910_v29  ;;  %8661 = vst [vmem:[#allocation120_spill] sm:$0xff] %v5922_v18  ;;  %v5925_v21 = vld [vmem:[#allocation6 + $0xe0] ss:$16 sps:$4 sm:$0xff]   ;;  %v5929_v29 = vld [vmem:[#allocation8 + $0x4] ss:$16 sps:$4 sm:$0xff]  }
 0x28c   :  { %1458 = vmatpush1.bf16.msra.mxu0 %v5913_v0  ;;  %1499 = vmatpush1.bf16.msra.mxu1 %v5916_v23 }
 0x28d   :  { %1459 = vmatprep.subr.bf16.mxu0 %v5919_v38  ;;  %1500 = vmatprep.subr.bf16.mxu1 %v5922_v18  ;;  %v5937_v18 = vld [vmem:[#allocation8] ss:$16 sps:$4 sm:$0xff]  }
 0x290   :  { %1460 = vmatpush1.bf16.msra.mxu0 %v5925_v21  ;;  %1501 = vmatpush1.bf16.msra.mxu1 %v5406_v33  ;;  %v5941_v33 = vld [vmem:[#allocation8 + $0x24] ss:$16 sps:$4 sm:$0xff]  }
 0x291   :  { %1556 = vmatprep.subr.bf16.mxu0 %v5929_v29  ;;  %1597 = vmatprep.subr.bf16.mxu1 %v5408_v34  ;;  %v8662_v34 = vld [vmem:[#allocation16_spill] sm:$0xff] }
 0x293   :  { %1478 = vmatmul.mubr.bf16.vlgmr.msra.gmra.mrb[12].mxu0 %v5609_v20  ;;  %1519 = vmatmul.mubr.bf16.vlgmr.msra.gmra.mrb[12].mxu1 %v5609_v20 }
 0x294   :  { %1588 = vmatprep.mubr.bf16.mxu0 %v5835_v36  ;;  %1629 = vmatprep.mubr.bf16.mxu1 %v5835_v36 }
 0x295   :  { %1557 = vmatpush1.bf16.msra.mxu0 %v5937_v18  ;;  %1598 = vmatpush1.bf16.msra.mxu1 %v5413_v39  ;;  %v8664_v39 = vld [vmem:[#allocation18_spill] sm:$0xff] }
 0x296   :  { %1558 = vmatprep.subr.bf16.mxu0 %v5941_v33  ;;  %1599 = vmatprep.subr.bf16.mxu1 %v5417_v41  ;;  %v8666_v41 = vld [vmem:[#allocation20_spill] sm:$0xff] }
 0x299   :  { %1559 = vmatpush1.bf16.msra.mxu0 %v5410_v37  ;;  %1600 = vmatpush1.bf16.msra.mxu1 %v5424_v43  ;;  %v8663_v37 = vld [vmem:[#allocation17_spill] sm:$0xff]  ;;  %v8668_v43 = vld [vmem:[#allocation22_spill] sm:$0xff] }
 0x29a   :  { %1560 = vmatprep.subr.bf16.mxu0 %v5415_v40  ;;  %1601 = vmatprep.subr.bf16.mxu1 %v5430_v45  ;;  %v8665_v40 = vld [vmem:[#allocation19_spill] sm:$0xff]  ;;  %v8670_v45 = vld [vmem:[#allocation24_spill] sm:$0xff] }
 0x29d   :  { %1561 = vmatpush1.bf16.msra.mxu0 %v5422_v42  ;;  %1602 = vmatpush1.bf16.msra.mxu1 %v5438_v47  ;;  %v8667_v42 = vld [vmem:[#allocation21_spill] sm:$0xff]  ;;  %v8672_v47 = vld [vmem:[#allocation26_spill] sm:$0xff] }
 0x29e   :  { %1562 = vmatprep.subr.bf16.mxu0 %v5426_v44  ;;  %1603 = vmatprep.subr.bf16.mxu1 %v5441_v48  ;;  %v8669_v44 = vld [vmem:[#allocation23_spill] sm:$0xff] }
 0x29f   :  { %v8673_v48 = vld [vmem:[#allocation27_spill] sm:$0xff] }
 0x2a1   :  { %1563 = vmatpush1.bf16.msra.mxu0 %v5435_v46  ;;  %1604 = vmatpush1.bf16.msra.mxu1 %v5446_v49  ;;  %v8671_v46 = vld [vmem:[#allocation25_spill] sm:$0xff]  ;;  %v8674_v49 = vld [vmem:[#allocation28_spill] sm:$0xff] }
 0x2a2   :  { %1564 = vmatprep.subr.bf16.mxu0 %v5452_v50  ;;  %1605 = vmatprep.subr.bf16.mxu1 %v5454_v51  ;;  %v8675_v50 = vld [vmem:[#allocation29_spill] sm:$0xff]  ;;  %v8676_v51 = vld [vmem:[#allocation30_spill] sm:$0xff] }
 0x2a5   :  { %1565 = vmatpush1.bf16.msra.mxu0 %v5456_v52  ;;  %1606 = vmatpush1.bf16.msra.mxu1 %v5458_v53  ;;  %v8677_v52 = vld [vmem:[#allocation31_spill] sm:$0xff]  ;;  %v8678_v53 = vld [vmem:[#allocation32_spill] sm:$0xff] }
 0x2a6   :  { %1566 = vmatprep.subr.bf16.mxu0 %v5464_v54  ;;  %1607 = vmatprep.subr.bf16.mxu1 %v5466_v55  ;;  %v8679_v54 = vld [vmem:[#allocation33_spill] sm:$0xff]  ;;  %v8680_v55 = vld [vmem:[#allocation34_spill] sm:$0xff] }
 0x2a9   :  { %1567 = vmatpush1.bf16.msra.mxu0 %v5468_v56  ;;  %1608 = vmatpush1.bf16.msra.mxu1 %v5470_v57  ;;  %v8681_v56 = vld [vmem:[#allocation35_spill] sm:$0xff]  ;;  %v8682_v57 = vld [vmem:[#allocation36_spill] sm:$0xff] }
 0x2aa   :  { %1568 = vmatprep.subr.bf16.mxu0 %v5476_v58  ;;  %1609 = vmatprep.subr.bf16.mxu1 %v5478_v59  ;;  %v283_v58 = vld [vmem:[%s8125_s5] sm:$0xf]  ;;  %v8683_v59 = vsub.s32 0, %v5803_v17  ;;  %s5294_s5 = smov [#allocation11]  }
 0x2ab   :  { %s3778_s21 = sshll.u32 %s5294_s5, 4  ;;  %s3779_s21 = int_to_ptr.vmem [resolvable:$true] %s3778_s21 }
 0x2ac   :  { %s5256_s22 = scalar_lea.vmem %s3779_s21, 128  ;;  %p5261_p5 = scmp.lt.s32.totalorder %s3779_s21, %s3779_s21 }
 0x2ad   :  { %1569 = vmatpush1.bf16.msra.mxu0 %v5480_v60  ;;  %1610 = vmatpush1.bf16.msra.mxu1 %v5482_v61  ;;  %v6010_v60 = vrot.slane %v283_v58, %v8683_v59  ;;  %v8685_v61 = vsub.s32 1, %v5803_v17  ;;  %p5257_p4 = scmp.ne.s32.totalorder %s3779_s21, %s5256_s22  ;;  %p5262_p6 = scmp.lt.s32.totalorder %s5256_s22, %s5256_s22 }
 0x2ae   :  { %1570 = vmatprep.subr.bf16.mxu0 %v5488_v62  ;;  %1611 = vmatprep.subr.bf16.mxu1 %v5490_v63 }
 0x2af   :  { %8684 = vst [vmem:[#allocation16_spill] sm:$0xff] %v6010_v60  ;;  %v6014_v62 = vrot.slane %v283_v58, %v8685_v61  ;;  %p5263_p7 = por %p5262_p6, %p5261_p5 }
 0x2b1   :  { %1571 = vmatpush1.bf16.msra.mxu0 %v5492_v1  ;;  %1612 = vmatpush1.bf16.msra.mxu1 %v5494_v2  ;;  %8686 = vst [vmem:[#allocation17_spill] sm:$0xff] %v6014_v62  ;;  %p5264_p8 = pnand %p5263_p7, %p5257_p4 }
 0x2b2   :  { %1572 = vmatprep.subr.bf16.mxu0 %v5500_v3  ;;  %1613 = vmatprep.subr.bf16.mxu1 %v5502_v4 }
 0x2b5   :  { %1573 = vmatpush1.bf16.msra.mxu0 %v5504_v5  ;;  %1614 = vmatpush1.bf16.msra.mxu1 %v5506_v6 }
 0x2b6   :  { %1574 = vmatprep.subr.bf16.mxu0 %v5512_v7  ;;  %1615 = vmatprep.subr.bf16.mxu1 %v5514_v8 }
 0x2b9   :  { %1575 = vmatpush1.bf16.msra.mxu0 %v5516_v9  ;;  %1616 = vmatpush1.bf16.msra.mxu1 %v5518_v10 }
 0x2ba   :  { %1576 = vmatprep.subr.bf16.mxu0 %v5524_v11  ;;  %1617 = vmatprep.subr.bf16.mxu1 %v5526_v12  ;;  %v8687_v12 = vsub.s32 3, %v5803_v17 }
 0x2bd   :  { %1577 = vmatpush1.bf16.msra.mxu0 %v5528_v13  ;;  %1618 = vmatpush1.bf16.msra.mxu1 %v5530_v14  ;;  %v6020_v13 = vrot.slane %v283_v58, %v8687_v12 }
 0x2be   :  { %1578 = vmatprep.subr.bf16.mxu0 %v5536_v15  ;;  %1619 = vmatprep.subr.bf16.mxu1 %v8662_v34 }
 0x2bf   :  { %8688 = vst [vmem:[#allocation18_spill] sm:$0xff] %v6020_v13 }
 0x2c1   :  { %1579 = vmatpush1.bf16.msra.mxu0 %v8663_v37  ;;  %1620 = vmatpush1.bf16.msra.mxu1 %v8664_v39  ;;  %v1439_v37 = vld [vmem:[#allocation3 + $0x10] sm:$0xff] }
 0x2c2   :  { %1580 = vmatprep.subr.bf16.mxu0 %v8665_v40  ;;  %1621 = vmatprep.subr.bf16.mxu1 %v8666_v41 }
 0x2c5   :  { %1581 = vmatpush1.bf16.msra.mxu0 %v8667_v42  ;;  %1622 = vmatpush1.bf16.msra.mxu1 %v8668_v43  ;;  %v1441_v42 = vunpack.c.l.bf16 %v1439_v37 }
 0x2c6   :  { %1582 = vmatprep.subr.bf16.mxu0 %v8669_v44  ;;  %1623 = vmatprep.subr.bf16.mxu1 %v8670_v45  ;;  %v1442_v44 = vunpack.c.h.bf16 %v1439_v37 }
 0x2c9   :  { %1583 = vmatpush1.bf16.msra.mxu0 %v8671_v46  ;;  %1624 = vmatpush1.bf16.msra.mxu1 %v8672_v47 }
 0x2ca   :  { %1584 = vmatprep.subr.bf16.mxu0 %v8673_v48  ;;  %1625 = vmatprep.subr.bf16.mxu1 %v8674_v49 }
 0x2cd   :  { %1585 = vmatpush1.bf16.msra.mxu0 %v8675_v50  ;;  %1626 = vmatpush1.bf16.msra.mxu1 %v8676_v51 }
 0x2ce   :  { %1586 = vmatprep.subr.bf16.mxu0 %v8677_v52  ;;  %1627 = vmatprep.subr.bf16.mxu1 %v8678_v53  ;;  %v1440_v52 = vld [vmem:[#allocation3 + $0x18] sm:$0xff] }
 0x2d1   :  { %1587 = vmatpush1.bf16.msra.mxu0 %v8679_v54  ;;  %1628 = vmatpush1.bf16.msra.mxu1 %v8680_v55 }
 0x2d2   :  { %1664 = vmatprep.subr.bf16.mxu0 %v8681_v56  ;;  %1705 = vmatprep.subr.bf16.mxu1 %v8682_v57  ;;  %v8689_v56 = vsub.s32 2, %v5803_v17 }
 0x2d4   :  { %v6027_v57 = vrot.slane %v283_v58, %v8689_v56  ;;  %v8696_v56 = vld [vmem:[#allocation43_spill] sm:$0xff] }
 0x346   :  { %v1366_v63 = vpop.f32.mrb[8].mxu0  ;;  %v1407_v1 = vpop.f32.mrb[8].mxu1 }
 0x347   :  { %v1367_v2 = vadd.f32 %v1366_v63, %v6010_v60  ;;  %v1368_v3 = vpop.f32.mrb[9].mxu0  ;;  %v1409_v4 = vpop.f32.mrb[9].mxu1 }
 0x348   :  { %v1369_v5 = vadd.f32 %v1368_v3, %v6014_v62  ;;  %v1370_v6 = vpop.f32.mrb[10].mxu0  ;;  %v1411_v7 = vpop.f32.mrb[10].mxu1  ;;  %v1410_v14 = vadd.f32 %v1409_v4, %v6020_v13  ;;  %v1443_v3 = vunpack.c.l.bf16 %v1440_v52  ;;  %v1408_v4 = vadd.f32 %v1407_v1, %v6027_v57 }
 0x349   :  { %v3955_v8 = vmul.f32 -1.442695, %v1367_v2  ;;  %v1371_v9 = vpop.f32.mrb[11].mxu0  ;;  %v1412_v10 = vpop.f32.mrb[11].mxu1 }
 0x34a   :  { %v3956_v11 = vmul.f32 -1.442695, %v1369_v5  ;;  %v1444_v5 = vunpack.c.h.bf16 %v1440_v52  ;;  %v3957_v7 = vmul.f32 -1.442695, %v1408_v4  ;;  %v8692_v52 = vld [vmem:[#allocation39_spill] sm:$0xff]  ;;  %v8702_v4 = vld [vmem:[#allocation49_spill] sm:$0xff] }
 0x34b   :  { %4302 = vpow2.f32 %v3955_v8 }
 0x34c   :  { %4304 = vpow2.f32 %v3956_v11 }
 0x34d   :  { %4306 = vtanh.f32 %v1410_v14 }
 0x355   :  { %v4303_v15 = vpop.eup %4302 }
 0x356   :  { %v1423_v20 = vadd.f32 1.0, %v4303_v15  ;;  %v4305_v36 = vpop.eup %4304 }
 0x357   :  { %v1424_v34 = vadd.f32 1.0, %v4305_v36  ;;  %v4307_v39 = vpop.eup %4306 }
 0x358   :  { %4308 = vrcp.f32 %v1423_v20 }
 0x359   :  { %4310 = vrcp.f32 %v1424_v34 }
 0x362   :  { %v4309_v40 = vpop.eup %4308 }
 0x363   :  { %v1434_v41 = vmul.f32 %v4309_v40, %v4307_v39  ;;  %v4311_v43 = vpop.eup %4310  ;;  %v8690_v39 = vld [vmem:[#allocation37_spill] sm:$0xff] }
 0x364   :  { %v1433_v45 = vmul.f32 0.0, %v4311_v43 }
 0x366   :  { %v1479_v46 = vpop.f32.mrb[12].mxu0  ;;  %v1520_v47 = vpop.f32.mrb[12].mxu1  ;;  %v6023_v48 = vadd.f32 %v1434_v41, %v1433_v45 }
 0x367   :  { %v1527_v49 = vadd.f32 %v1479_v46, %v1441_v42  ;;  %v1481_v50 = vpop.f32.mrb[13].mxu0  ;;  %v1522_v51 = vpop.f32.mrb[13].mxu1  ;;  %v1529_v6 = vadd.f32 %v1520_v47, %v1443_v3  ;;  %v8701_v3 = vld [vmem:[#allocation48_spill] sm:$0xff] }
 0x368   :  { %v1528_v53 = vadd.f32 %v1481_v50, %v1442_v44  ;;  %v1483_v54 = vpop.f32.mrb[14].mxu0  ;;  %v1524_v55 = vpop.f32.mrb[14].mxu1  ;;  %v1530_v8 = vadd.f32 %v1522_v51, %v1444_v5  ;;  %v8691_v51 = vld [vmem:[#allocation38_spill] sm:$0xff] }
 0x369   :  { %v3958_v59 = vmul.f32 -1.442695, %v1527_v49  ;;  %v1484_v61 = vpop.f32.mrb[15].mxu0  ;;  %v1525_v63 = vpop.f32.mrb[15].mxu1  ;;  %v3960_v9 = vmul.f32 -1.442695, %v1529_v6 }
 0x36a   :  { %v3959_v2 = vmul.f32 -1.442695, %v1528_v53  ;;  %v8693_v53 = vld [vmem:[#allocation40_spill] sm:$0xff]  ;;  %v8694_v54 = vld [vmem:[#allocation41_spill] sm:$0xff]  ;;  %v8695_v55 = vld [vmem:[#allocation42_spill] sm:$0xff] }
 0x36b   :  { %4312 = vpow2.f32 %v3958_v59  ;;  %v8697_v59 = vld [vmem:[#allocation44_spill] sm:$0xff]  ;;  %v8698_v61 = vld [vmem:[#allocation45_spill] sm:$0xff]  ;;  %v8699_v63 = vld [vmem:[#allocation46_spill] sm:$0xff] }
 0x36c   :  { %4314 = vpow2.f32 %v3959_v2  ;;  %v8700_v2 = vld [vmem:[#allocation47_spill] sm:$0xff]  ;;  %v8703_v5 = vld [vmem:[#allocation50_spill] sm:$0xff] }
 0x36d   :  { %4316 = vpow2.f32 %v3957_v7  ;;  %v8704_v6 = vld [vmem:[#allocation51_spill] sm:$0xff]  ;;  %v8705_v7 = vld [vmem:[#allocation52_spill] sm:$0xff] }
 0x36e   :  { %4318 = vtanh.f32 %v1530_v8  ;;  %v8706_v8 = vld [vmem:[#allocation53_spill] sm:$0xff] }
 0x36f   :  { %4320 = vpow2.f32 %v3960_v9  ;;  %v8707_v9 = vld [vmem:[#allocation54_spill] sm:$0xff] }
 0x375   :  { %v4313_v10 = vpop.eup %4312 }
 0x376   :  { %v1540_v11 = vadd.f32 1.0, %v4313_v10  ;;  %v4315_v17 = vpop.eup %4314  ;;  %v8708_v10 = vld [vmem:[#allocation55_spill] sm:$0xff] }
 0x377   :  { %v1541_v58 = vadd.f32 1.0, %v4315_v17  ;;  %v4317_v12 = vpop.eup %4316  ;;  %v8710_v17 = vld [vmem:[#allocation57_spill] sm:$0xff] }
 0x378   :  { %4322 = vrcp.f32 %v1540_v11  ;;  %v4319_v14 = vpop.eup %4318  ;;  %v1425_v1 = vadd.f32 1.0, %v4317_v12  ;;  %v8709_v11 = vld [vmem:[#allocation56_spill] sm:$0xff]  ;;  %v8712_v12 = vld [vmem:[#allocation59_spill] sm:$0xff] }
 0x379   :  { %4324 = vrcp.f32 %v1541_v58  ;;  %v4321_v15 = vpop.eup %4320  ;;  %v8711_v58 = vld [vmem:[#allocation58_spill] sm:$0xff] }
 0x37a   :  { %v1542_v37 = vadd.f32 1.0, %v4321_v15  ;;  %4326 = vtanh.f32 %v6023_v48  ;;  %v8714_v15 = vld [vmem:[#allocation61_spill] sm:$0xff] }
 0x37b   :  { %4328 = vrcp.f32 %v1425_v1  ;;  %v8716_v1 = vld [vmem:[#allocation63_spill] sm:$0xff] }
 0x37c   :  { %4330 = vrcp.f32 %v1542_v37  ;;  %v8719_v37 = vld [vmem:[#allocation66_spill] sm:$0xff] }
 0x382   :  { %v4323_v20 = vpop.eup %4322 }
 0x383   :  { %v1551_v36 = vmul.f32 %v4323_v20, %v4319_v14  ;;  %v4325_v34 = vpop.eup %4324  ;;  %v8713_v14 = vld [vmem:[#allocation60_spill] sm:$0xff]  ;;  %v8715_v20 = vld [vmem:[#allocation62_spill] sm:$0xff] }
 0x384   :  { %v1550_v40 = vmul.f32 %v4325_v34, %v8690_v39  ;;  %v4327_v42 = vpop.eup %4326  ;;  %v8718_v34 = vld [vmem:[#allocation65_spill] sm:$0xff]  ;;  %v8720_v39 = vld [vmem:[#allocation67_spill] sm:$0xff] }
 0x385   :  { %v4329_v43 = vpop.eup %4328 }
 0x386   :  { %v6032_v41 = vadd.f32 %v1551_v36, %v1550_v40  ;;  %v4331_v44 = vpop.eup %4330  ;;  %v1437_v46 = vmul.f32 %v4329_v43, %v4327_v42  ;;  %v8717_v36 = vld [vmem:[#allocation64_spill] sm:$0xff]  ;;  %v8722_v42 = vld [vmem:[#allocation69_spill] sm:$0xff]  ;;  %v8723_v43 = vld [vmem:[#allocation70_spill] sm:$0xff] }
 0x387   :  { %v8721_v40 = vld [vmem:[#allocation68_spill] sm:$0xff] }
 0x388   :  { %4332 = vtanh.f32 %v6032_v41  ;;  %v1663_v50 = vpack.c.bf16 %v1437_v46, %v1437_v46  ;;  %v8726_v46 = vld [vmem:[#allocation73_spill] sm:$0xff] }
 0x392   :  { %v4333_v45 = vpop.eup %4332 }
 0x393   :  { %v1554_v47 = vmul.f32 %v4333_v45, %v4331_v44  ;;  %v8724_v44 = vld [vmem:[#allocation71_spill] sm:$0xff]  ;;  %v8725_v45 = vld [vmem:[#allocation72_spill] sm:$0xff] }
 0x395   :  { %v6035_v49 = vpack.c.bf16 %v1554_v47, %v1554_v47  ;;  %v8727_v47 = vld [vmem:[#allocation74_spill] sm:$0xff] }
 0x397   :  { %1589 = vmatmul.mubr.bf16.vlgmr.msra.gmra.mrb[16].mxu0 %v6035_v49  ;;  %1630 = vmatmul.mubr.bf16.vlgmr.msra.gmra.mrb[16].mxu1 %v6035_v49 }
 0x398   :  { %1696 = vmatprep.mubr.bf16.mxu0 %v1663_v50  ;;  %1737 = vmatprep.mubr.bf16.mxu1 %v1663_v50  ;;  %v8728_v50 = vld [vmem:[#allocation75_spill] sm:$0xff] }
 0x399   :  { %1665 = vmatpush1.bf16.msra.mxu0 %v8691_v51  ;;  %1706 = vmatpush1.bf16.msra.mxu1 %v8692_v52  ;;  %v8729_v51 = vld [vmem:[#allocation76_spill] sm:$0xff]  ;;  %v8730_v52 = vld [vmem:[#allocation77_spill] sm:$0xff] }
 0x39a   :  { %1666 = vmatprep.subr.bf16.mxu0 %v8693_v53  ;;  %1707 = vmatprep.subr.bf16.mxu1 %v8694_v54  ;;  %v8731_v53 = vld [vmem:[#allocation78_spill] sm:$0xff]  ;;  %v8732_v54 = vld [vmem:[#allocation79_spill] sm:$0xff] }
 0x39d   :  { %1667 = vmatpush1.bf16.msra.mxu0 %v8695_v55  ;;  %1708 = vmatpush1.bf16.msra.mxu1 %v8696_v56  ;;  %v8733_v55 = vld [vmem:[#allocation80_spill] sm:$0xff]  ;;  %v8734_v56 = vld [vmem:[#allocation81_spill] sm:$0xff] }
 0x39e   :  { %1668 = vmatprep.subr.bf16.mxu0 %v8697_v59  ;;  %1709 = vmatprep.subr.bf16.mxu1 %v8698_v61  ;;  %v8735_v59 = vld [vmem:[#allocation82_spill] sm:$0xff]  ;;  %v8736_v61 = vld [vmem:[#allocation83_spill] sm:$0xff] }
 0x3a1   :  { %1669 = vmatpush1.bf16.msra.mxu0 %v8699_v63  ;;  %1710 = vmatpush1.bf16.msra.mxu1 %v8700_v2  ;;  %v8737_v63 = vld [vmem:[#allocation84_spill] sm:$0xff]  ;;  %v8738_v2 = vld [vmem:[#allocation85_spill] sm:$0xff] }
 0x3a2   :  { %1670 = vmatprep.subr.bf16.mxu0 %v8701_v3  ;;  %1711 = vmatprep.subr.bf16.mxu1 %v8702_v4  ;;  %v8739_v3 = vld [vmem:[#allocation86_spill] sm:$0xff]  ;;  %v8740_v4 = vld [vmem:[#allocation87_spill] sm:$0xff] }
 0x3a5   :  { %1671 = vmatpush1.bf16.msra.mxu0 %v8703_v5  ;;  %1712 = vmatpush1.bf16.msra.mxu1 %v8704_v6  ;;  %v8741_v5 = vld [vmem:[#allocation88_spill] sm:$0xff]  ;;  %v8742_v6 = vld [vmem:[#allocation89_spill] sm:$0xff] }
 0x3a6   :  { %1672 = vmatprep.subr.bf16.mxu0 %v8705_v7  ;;  %1713 = vmatprep.subr.bf16.mxu1 %v8706_v8  ;;  %v8743_v7 = vld [vmem:[#allocation90_spill] sm:$0xff]  ;;  %v8744_v8 = vld [vmem:[#allocation91_spill] sm:$0xff] }
 0x3a9   :  { %1673 = vmatpush1.bf16.msra.mxu0 %v8707_v9  ;;  %1714 = vmatpush1.bf16.msra.mxu1 %v8708_v10  ;;  %v8745_v9 = vld [vmem:[#allocation92_spill] sm:$0xff]  ;;  %v8746_v10 = vld [vmem:[#allocation93_spill] sm:$0xff] }
 0x3aa   :  { %1674 = vmatprep.subr.bf16.mxu0 %v8709_v11  ;;  %1715 = vmatprep.subr.bf16.mxu1 %v8710_v17  ;;  %v8747_v11 = vld [vmem:[#allocation94_spill] sm:$0xff]  ;;  %v8748_v17 = vld [vmem:[#allocation95_spill] sm:$0xff] }
 0x3ad   :  { %1675 = vmatpush1.bf16.msra.mxu0 %v8711_v58  ;;  %1716 = vmatpush1.bf16.msra.mxu1 %v8712_v12  ;;  %v8749_v58 = vld [vmem:[#allocation96_spill] sm:$0xff]  ;;  %v8750_v12 = vld [vmem:[#allocation97_spill] sm:$0xff] }
 0x3ae   :  { %1676 = vmatprep.subr.bf16.mxu0 %v8713_v14  ;;  %1717 = vmatprep.subr.bf16.mxu1 %v8714_v15  ;;  %v8751_v14 = vld [vmem:[#allocation98_spill] sm:$0xff]  ;;  %v8752_v15 = vld [vmem:[#allocation99_spill] sm:$0xff] }
 0x3b1   :  { %1677 = vmatpush1.bf16.msra.mxu0 %v8715_v20  ;;  %1718 = vmatpush1.bf16.msra.mxu1 %v8716_v1  ;;  %v8753_v20 = vld [vmem:[#allocation100_spill] sm:$0xff]  ;;  %v8754_v1 = vld [vmem:[#allocation101_spill] sm:$0xff] }
 0x3b2   :  { %1678 = vmatprep.subr.bf16.mxu0 %v8717_v36  ;;  %1719 = vmatprep.subr.bf16.mxu1 %v8718_v34 }
 0x3b5   :  { %1679 = vmatpush1.bf16.msra.mxu0 %v8719_v37  ;;  %1720 = vmatpush1.bf16.msra.mxu1 %v8720_v39  ;;  %v8755_v37 = vld [vmem:[#allocation102_spill] sm:$0xff] }
 0x3b6   :  { %1680 = vmatprep.subr.bf16.mxu0 %v8721_v40  ;;  %1721 = vmatprep.subr.bf16.mxu1 %v8722_v42 }
 0x3b9   :  { %1681 = vmatpush1.bf16.msra.mxu0 %v8723_v43  ;;  %1722 = vmatpush1.bf16.msra.mxu1 %v8724_v44  ;;  %v8756_v43 = vld [vmem:[#allocation103_spill] sm:$0xff] }
 0x3ba   :  { %1682 = vmatprep.subr.bf16.mxu0 %v8725_v45  ;;  %1723 = vmatprep.subr.bf16.mxu1 %v8726_v46 }
 0x3bd   :  { %1683 = vmatpush1.bf16.msra.mxu0 %v8727_v47  ;;  %1724 = vmatpush1.bf16.msra.mxu1 %v8728_v50 }
 0x3be   :  { %1684 = vmatprep.subr.bf16.mxu0 %v8729_v51  ;;  %1725 = vmatprep.subr.bf16.mxu1 %v8730_v52 }
 0x3c1   :  { %1685 = vmatpush1.bf16.msra.mxu0 %v8731_v53  ;;  %1726 = vmatpush1.bf16.msra.mxu1 %v8732_v54 }
 0x3c2   :  { %1686 = vmatprep.subr.bf16.mxu0 %v8733_v55  ;;  %1727 = vmatprep.subr.bf16.mxu1 %v8734_v56 }
 0x3c5   :  { %1687 = vmatpush1.bf16.msra.mxu0 %v8735_v59  ;;  %1728 = vmatpush1.bf16.msra.mxu1 %v8736_v61 }
 0x3c6   :  { %1688 = vmatprep.subr.bf16.mxu0 %v8737_v63  ;;  %1729 = vmatprep.subr.bf16.mxu1 %v8738_v2 }
 0x3c9   :  { %1689 = vmatpush1.bf16.msra.mxu0 %v8739_v3  ;;  %1730 = vmatpush1.bf16.msra.mxu1 %v8740_v4 }
 0x3ca   :  { %1690 = vmatprep.subr.bf16.mxu0 %v8741_v5  ;;  %1731 = vmatprep.subr.bf16.mxu1 %v8742_v6 }
 0x3cd   :  { %1691 = vmatpush1.bf16.msra.mxu0 %v8743_v7  ;;  %1732 = vmatpush1.bf16.msra.mxu1 %v8744_v8 }
 0x3ce   :  { %1692 = vmatprep.subr.bf16.mxu0 %v8745_v9  ;;  %1733 = vmatprep.subr.bf16.mxu1 %v8746_v10 }
 0x3d1   :  { %1693 = vmatpush1.bf16.msra.mxu0 %v8747_v11  ;;  %1734 = vmatpush1.bf16.msra.mxu1 %v8748_v17 }
 0x3d2   :  { %1694 = vmatprep.subr.bf16.mxu0 %v8749_v58  ;;  %1735 = vmatprep.subr.bf16.mxu1 %v8750_v12  ;;  %v8762_v12 = vld [vmem:[#allocation109_spill] sm:$0xff] }
 0x3d5   :  { %1695 = vmatpush1.bf16.msra.mxu0 %v8751_v14  ;;  %1736 = vmatpush1.bf16.msra.mxu1 %v8752_v15  ;;  %v8763_v14 = vld [vmem:[#allocation110_spill] sm:$0xff]  ;;  %v8768_v15 = vld [vmem:[#allocation115_spill] sm:$0xff] }
 0x3d6   :  { %1777 = vmatprep.subr.bf16.mxu0 %v8753_v20  ;;  %1818 = vmatprep.subr.bf16.mxu1 %v8754_v1  ;;  %v8769_v20 = vld [vmem:[#allocation116_spill] sm:$0xff]  ;;  %v8770_v1 = vld [vmem:[#allocation117_spill] sm:$0xff] }
 0x46a   :  { %v1590_v36 = vpop.f32.mrb[16].mxu0  ;;  %v1631_v34 = vpop.f32.mrb[16].mxu1 }
 0x46b   :  { %v1591_v39 = vadd.f32 %v1590_v36, %v8755_v37  ;;  %v1592_v40 = vpop.f32.mrb[17].mxu0  ;;  %v1633_v42 = vpop.f32.mrb[17].mxu1  ;;  %v1632_v53 = vadd.f32 %v1631_v34, %v5824_v22  ;;  %v8771_v36 = vld [vmem:[#allocation118_spill] sm:$0xff]  ;;  %v8772_v34 = vld [vmem:[#allocation119_spill] sm:$0xff] }
 0x46c   :  { %v1593_v44 = vadd.f32 %v1592_v40, %v8756_v43  ;;  %v1594_v45 = vpop.f32.mrb[18].mxu0  ;;  %v1635_v46 = vpop.f32.mrb[18].mxu1  ;;  %v1634_v54 = vadd.f32 %v1633_v42, %v5828_v28  ;;  %v6142_v40 = vld [vmem:[#allocation6 + $0xe8] ss:$16 sps:$4 sm:$0xff]   ;;  %v6146_v42 = vld [vmem:[#allocation8 + $0xc] ss:$16 sps:$4 sm:$0xff]  }
 0x46d   :  { %v3961_v47 = vmul.f32 -1.442695, %v1591_v39  ;;  %v1595_v50 = vpop.f32.mrb[19].mxu0  ;;  %v1636_v51 = vpop.f32.mrb[19].mxu1  ;;  %v3963_v55 = vmul.f32 -1.442695, %v1632_v53 }
 0x46e   :  { %v3962_v52 = vmul.f32 -1.442695, %v1593_v44  ;;  %v8773_v39 = vld [vmem:[#allocation120_spill] sm:$0xff]  ;;  %v6177_v44 = vld [vmem:[#allocation8 + $0x64] ss:$16 sps:$4 sm:$0xff]  }
 0x46f   :  { %4334 = vpow2.f32 %v3961_v47  ;;  %v6180_v45 = vld [vmem:[#allocation8 + $0x6c] ss:$16 sps:$4 sm:$0xff]   ;;  %v6183_v46 = vld [vmem:[#allocation8 + $0x60] ss:$16 sps:$4 sm:$0xff]   ;;  %v6186_v47 = vld [vmem:[#allocation8 + $0x68] ss:$16 sps:$4 sm:$0xff]  }
 0x470   :  { %4336 = vpow2.f32 %v3962_v52  ;;  %v6189_v50 = vld [vmem:[#allocation8 + $0x84] ss:$16 sps:$4 sm:$0xff]   ;;  %v6192_v51 = vld [vmem:[#allocation8 + $0x8c] ss:$16 sps:$4 sm:$0xff]   ;;  %v6195_v52 = vld [vmem:[#allocation8 + $0x80] ss:$16 sps:$4 sm:$0xff]  }
 0x471   :  { %4338 = vtanh.f32 %v1634_v54  ;;  %v6198_v53 = vld [vmem:[#allocation8 + $0x88] ss:$16 sps:$4 sm:$0xff]   ;;  %v6201_v54 = vld [vmem:[#allocation8 + $0xa4] ss:$16 sps:$4 sm:$0xff]  }
 0x472   :  { %4340 = vpow2.f32 %v3963_v55  ;;  %v6204_v55 = vld [vmem:[#allocation8 + $0xac] ss:$16 sps:$4 sm:$0xff]  }
 0x479   :  { %v4335_v56 = vpop.eup %4334 }
 0x47a   :  { %v1647_v59 = vadd.f32 1.0, %v4335_v56  ;;  %v4337_v61 = vpop.eup %4336  ;;  %v6207_v56 = vld [vmem:[#allocation8 + $0xa0] ss:$16 sps:$4 sm:$0xff]  }
 0x47b   :  { %v1648_v63 = vadd.f32 1.0, %v4337_v61  ;;  %v4339_v2 = vpop.eup %4338  ;;  %v6213_v61 = vld [vmem:[#allocation8 + $0xc4] ss:$16 sps:$4 sm:$0xff]  }
 0x47c   :  { %4342 = vrcp.f32 %v1647_v59  ;;  %v4341_v3 = vpop.eup %4340  ;;  %v6210_v59 = vld [vmem:[#allocation8 + $0xa8] ss:$16 sps:$4 sm:$0xff]  }
 0x47d   :  { %4344 = vrcp.f32 %v1648_v63  ;;  %v1649_v7 = vadd.f32 1.0, %v4341_v3  ;;  %v6216_v63 = vld [vmem:[#allocation8 + $0xcc] ss:$16 sps:$4 sm:$0xff]   ;;  %v6222_v3 = vld [vmem:[#allocation8 + $0xc8] ss:$16 sps:$4 sm:$0xff]  }
 0x47f   :  { %4346 = vrcp.f32 %v1649_v7  ;;  %v6234_v7 = vld [vmem:[#allocation8 + $0xe8] ss:$16 sps:$4 sm:$0xff]  }
 0x486   :  { %v4343_v4 = vpop.eup %4342 }
 0x487   :  { %v1658_v5 = vmul.f32 %v4343_v4, %v4339_v2  ;;  %v4345_v6 = vpop.eup %4344  ;;  %v6219_v2 = vld [vmem:[#allocation8 + $0xc0] ss:$16 sps:$4 sm:$0xff]   ;;  %v6225_v4 = vld [vmem:[#allocation8 + $0xe4] ss:$16 sps:$4 sm:$0xff]  }
 0x488   :  { %v1657_v8 = vmul.f32 %v4345_v6, %v5832_v19  ;;  %v8757_v19 = vld [vmem:[#allocation104_spill] sm:$0xff]  ;;  %v6231_v6 = vld [vmem:[#allocation8 + $0xe0] ss:$16 sps:$4 sm:$0xff]  }
 0x489   :  { %v4347_v10 = vpop.eup %4346 }
 0x48a   :  { %v6108_v9 = vadd.f32 %v1658_v5, %v1657_v8  ;;  %v6228_v5 = vld [vmem:[#allocation8 + $0xec] ss:$16 sps:$4 sm:$0xff]   ;;  %v6237_v8 = vld [vmem:[#allocation8 + $0x104] ss:$16 sps:$4 sm:$0xff]  }
 0x48c   :  { %4348 = vtanh.f32 %v6108_v9 }
 0x496   :  { %v4349_v11 = vpop.eup %4348 }
 0x497   :  { %v1661_v17 = vmul.f32 %v4349_v11, %v4347_v10  ;;  %v6240_v10 = vld [vmem:[#allocation8 + $0x10c] ss:$16 sps:$4 sm:$0xff]   ;;  %v6243_v11 = vld [vmem:[#allocation8 + $0x100] ss:$16 sps:$4 sm:$0xff]  }
 0x498   :  { %8774 = vst [vmem:[#allocation19_spill] sm:$0xff] %v6243_v11 }
 0x499   :  { %v1662_v58 = vpack.c.bf16 %v1661_v17, %v1661_v17  ;;  %v6246_v17 = vld [vmem:[#allocation8 + $0x108] ss:$16 sps:$4 sm:$0xff]  }
 0x49a   :  { %8775 = vst [vmem:[#allocation20_spill] sm:$0xff] %v6246_v17 }
 0x49b   :  { %1697 = vmatmul.mubr.bf16.vlgmr.msra.gmra.mrb[20].mxu0 %v1662_v58  ;;  %1738 = vmatmul.mubr.bf16.vlgmr.msra.gmra.mrb[20].mxu1 %v1662_v58 }
 0x49c   :  { %1778 = vmatpush1.bf16.msra.mxu0 %v5839_v30  ;;  %1819 = vmatpush1.bf16.msra.mxu1 %v5842_v24  ;;  %v8758_v30 = vld [vmem:[#allocation105_spill] sm:$0xff]  ;;  %v8759_v24 = vld [vmem:[#allocation106_spill] sm:$0xff] }
 0x49d   :  { %1779 = vmatprep.subr.bf16.mxu0 %v5845_v16  ;;  %1820 = vmatprep.subr.bf16.mxu1 %v5848_v25  ;;  %v8760_v16 = vld [vmem:[#allocation107_spill] sm:$0xff]  ;;  %v8761_v25 = vld [vmem:[#allocation108_spill] sm:$0xff] }
 0x49e   :  { %1809 = vmatprep.mubr.bf16.mxu0 %v8644_v32  ;;  %1850 = vmatprep.mubr.bf16.mxu1 %v8644_v32 }
 0x4a0   :  { %1780 = vmatpush1.bf16.msra.mxu0 %v5853_v26  ;;  %1821 = vmatpush1.bf16.msra.mxu1 %v5856_v31  ;;  %v8764_v26 = vld [vmem:[#allocation111_spill] sm:$0xff]  ;;  %v8765_v31 = vld [vmem:[#allocation112_spill] sm:$0xff] }
 0x4a1   :  { %1781 = vmatprep.subr.bf16.mxu0 %v5859_v27  ;;  %1822 = vmatprep.subr.bf16.mxu1 %v5862_v35  ;;  %v8766_v27 = vld [vmem:[#allocation113_spill] sm:$0xff]  ;;  %v8767_v35 = vld [vmem:[#allocation114_spill] sm:$0xff] }
 0x4a4   :  { %1782 = vmatpush1.bf16.msra.mxu0 %v8757_v19  ;;  %1823 = vmatpush1.bf16.msra.mxu1 %v8758_v30  ;;  %v6252_v19 = vld [vmem:[#allocation8 + $0x12c] ss:$16 sps:$4 sm:$0xff]   ;;  %v6255_v30 = vld [vmem:[#allocation8 + $0x120] ss:$16 sps:$4 sm:$0xff]  }
 0x4a5   :  { %1783 = vmatprep.subr.bf16.mxu0 %v8759_v24  ;;  %1824 = vmatprep.subr.bf16.mxu1 %v8760_v16  ;;  %8777 = vst [vmem:[#allocation22_spill] sm:$0xff] %v6252_v19  ;;  %8778 = vst [vmem:[#allocation23_spill] sm:$0xff] %v6255_v30  ;;  %v6258_v24 = vld [vmem:[#allocation8 + $0x128] ss:$16 sps:$4 sm:$0xff]   ;;  %v6261_v16 = vld [vmem:[#allocation8 + $0x144] ss:$16 sps:$4 sm:$0xff]  }
 0x4a6   :  { %8779 = vst [vmem:[#allocation24_spill] sm:$0xff] %v6258_v24  ;;  %8780 = vst [vmem:[#allocation25_spill] sm:$0xff] %v6261_v16 }
 0x4a8   :  { %1784 = vmatpush1.bf16.msra.mxu0 %v8761_v25  ;;  %1825 = vmatpush1.bf16.msra.mxu1 %v8762_v12  ;;  %v6264_v25 = vld [vmem:[#allocation8 + $0x14c] ss:$16 sps:$4 sm:$0xff]   ;;  %v6267_v12 = vld [vmem:[#allocation8 + $0x140] ss:$16 sps:$4 sm:$0xff]  }
 0x4a9   :  { %1785 = vmatprep.subr.bf16.mxu0 %v8763_v14  ;;  %1826 = vmatprep.subr.bf16.mxu1 %v8764_v26  ;;  %8781 = vst [vmem:[#allocation26_spill] sm:$0xff] %v6264_v25  ;;  %8782 = vst [vmem:[#allocation27_spill] sm:$0xff] %v6267_v12  ;;  %v6270_v14 = vld [vmem:[#allocation8 + $0x148] ss:$16 sps:$4 sm:$0xff]   ;;  %v6273_v26 = vld [vmem:[#allocation8 + $0x164] ss:$16 sps:$4 sm:$0xff]  }
 0x4aa   :  { %8783 = vst [vmem:[#allocation28_spill] sm:$0xff] %v6270_v14  ;;  %8784 = vst [vmem:[#allocation29_spill] sm:$0xff] %v6273_v26 }
 0x4ac   :  { %1786 = vmatpush1.bf16.msra.mxu0 %v8765_v31  ;;  %1827 = vmatpush1.bf16.msra.mxu1 %v8766_v27  ;;  %v6276_v31 = vld [vmem:[#allocation8 + $0x16c] ss:$16 sps:$4 sm:$0xff]   ;;  %v6279_v27 = vld [vmem:[#allocation8 + $0x160] ss:$16 sps:$4 sm:$0xff]  }
 0x4ad   :  { %1787 = vmatprep.subr.bf16.mxu0 %v8767_v35  ;;  %1828 = vmatprep.subr.bf16.mxu1 %v8768_v15  ;;  %8785 = vst [vmem:[#allocation30_spill] sm:$0xff] %v6276_v31  ;;  %8786 = vst [vmem:[#allocation31_spill] sm:$0xff] %v6279_v27  ;;  %v6282_v35 = vld [vmem:[#allocation8 + $0x168] ss:$16 sps:$4 sm:$0xff]   ;;  %v6285_v15 = vld [vmem:[#allocation8 + $0x184] ss:$16 sps:$4 sm:$0xff]  }
 0x4ae   :  { %8787 = vst [vmem:[#allocation32_spill] sm:$0xff] %v6282_v35  ;;  %8788 = vst [vmem:[#allocation33_spill] sm:$0xff] %v6285_v15 }
 0x4b0   :  { %1788 = vmatpush1.bf16.msra.mxu0 %v8769_v20  ;;  %1829 = vmatpush1.bf16.msra.mxu1 %v8770_v1  ;;  %v6288_v20 = vld [vmem:[#allocation8 + $0x18c] ss:$16 sps:$4 sm:$0xff]   ;;  %v6291_v1 = vld [vmem:[#allocation8 + $0x180] ss:$16 sps:$4 sm:$0xff]  }
 0x4b1   :  { %1789 = vmatprep.subr.bf16.mxu0 %v8771_v36  ;;  %1830 = vmatprep.subr.bf16.mxu1 %v8772_v34  ;;  %8789 = vst [vmem:[#allocation34_spill] sm:$0xff] %v6288_v20  ;;  %8790 = vst [vmem:[#allocation35_spill] sm:$0xff] %v6291_v1  ;;  %v6294_v36 = vld [vmem:[#allocation8 + $0x188] ss:$16 sps:$4 sm:$0xff]   ;;  %v6297_v34 = vld [vmem:[#allocation8 + $0x1a4] ss:$16 sps:$4 sm:$0xff]  }
 0x4b2   :  { %8791 = vst [vmem:[#allocation36_spill] sm:$0xff] %v6294_v36  ;;  %8792 = vst [vmem:[#allocation37_spill] sm:$0xff] %v6297_v34 }
 0x4b4   :  { %1790 = vmatpush1.bf16.msra.mxu0 %v5913_v0  ;;  %1831 = vmatpush1.bf16.msra.mxu1 %v5916_v23  ;;  %v6162_v0 = vld [vmem:[#allocation8 + $0x28] ss:$16 sps:$4 sm:$0xff]   ;;  %v6165_v23 = vld [vmem:[#allocation8 + $0x44] ss:$16 sps:$4 sm:$0xff]  }
 0x4b5   :  { %1791 = vmatprep.subr.bf16.mxu0 %v5919_v38  ;;  %1832 = vmatprep.subr.bf16.mxu1 %v8773_v39  ;;  %v6152_v38 = vld [vmem:[#allocation8 + $0x8] ss:$16 sps:$4 sm:$0xff]   ;;  %v6300_v39 = vld [vmem:[#allocation8 + $0x1ac] ss:$16 sps:$4 sm:$0xff]  }
 0x4b6   :  { %8793 = vst [vmem:[#allocation38_spill] sm:$0xff] %v6300_v39 }
 0x4b8   :  { %1792 = vmatpush1.bf16.msra.mxu0 %v5925_v21  ;;  %1833 = vmatpush1.bf16.msra.mxu1 %v6142_v40  ;;  %v6156_v21 = vld [vmem:[#allocation8 + $0x2c] ss:$16 sps:$4 sm:$0xff]  }
 0x4b9   :  { %1888 = vmatprep.subr.bf16.mxu0 %v5929_v29  ;;  %1929 = vmatprep.subr.bf16.mxu1 %v6146_v42  ;;  %v6159_v29 = vld [vmem:[#allocation8 + $0x20] ss:$16 sps:$4 sm:$0xff]  }
 0x4bb   :  { %1810 = vmatmul.mubr.bf16.vlgmr.msra.gmra.mrb[24].mxu0 %v6035_v49  ;;  %1851 = vmatmul.mubr.bf16.vlgmr.msra.gmra.mrb[24].mxu1 %v6035_v49  ;;  %v6174_v49 = vld [vmem:[#allocation8 + $0x48] ss:$16 sps:$4 sm:$0xff]  }
 0x4bc   :  { %1920 = vmatprep.mubr.bf16.mxu0 %v1662_v58  ;;  %1961 = vmatprep.mubr.bf16.mxu1 %v1662_v58  ;;  %v6249_v58 = vld [vmem:[#allocation8 + $0x124] ss:$16 sps:$4 sm:$0xff]  }
 0x4bd   :  { %1889 = vmatpush1.bf16.msra.mxu0 %v5937_v18  ;;  %1930 = vmatpush1.bf16.msra.mxu1 %v6152_v38  ;;  %v6168_v18 = vld [vmem:[#allocation8 + $0x4c] ss:$16 sps:$4 sm:$0xff]   ;;  %8776 = vst [vmem:[#allocation21_spill] sm:$0xff] %v6249_v58 }
 0x4be   :  { %1890 = vmatprep.subr.bf16.mxu0 %v5941_v33  ;;  %1931 = vmatprep.subr.bf16.mxu1 %v6156_v21  ;;  %v6171_v33 = vld [vmem:[#allocation8 + $0x40] ss:$16 sps:$4 sm:$0xff]  }
 0x4c1   :  { %1891 = vmatpush1.bf16.msra.mxu0 %v6159_v29  ;;  %1932 = vmatpush1.bf16.msra.mxu1 %v6162_v0 }
 0x4c2   :  { %1892 = vmatprep.subr.bf16.mxu0 %v6165_v23  ;;  %1933 = vmatprep.subr.bf16.mxu1 %v6168_v18 }
 0x4c5   :  { %1893 = vmatpush1.bf16.msra.mxu0 %v6171_v33  ;;  %1934 = vmatpush1.bf16.msra.mxu1 %v6174_v49 }
 0x4c6   :  { %1894 = vmatprep.subr.bf16.mxu0 %v6177_v44  ;;  %1935 = vmatprep.subr.bf16.mxu1 %v6180_v45 }
 0x4c9   :  { %1895 = vmatpush1.bf16.msra.mxu0 %v6183_v46  ;;  %1936 = vmatpush1.bf16.msra.mxu1 %v6186_v47 }
 0x4ca   :  { %1896 = vmatprep.subr.bf16.mxu0 %v6189_v50  ;;  %1937 = vmatprep.subr.bf16.mxu1 %v6192_v51 }
 0x4cd   :  { %1897 = vmatpush1.bf16.msra.mxu0 %v6195_v52  ;;  %1938 = vmatpush1.bf16.msra.mxu1 %v6198_v53 }
 0x4ce   :  { %1898 = vmatprep.subr.bf16.mxu0 %v6201_v54  ;;  %1939 = vmatprep.subr.bf16.mxu1 %v6204_v55 }
 0x4d1   :  { %1899 = vmatpush1.bf16.msra.mxu0 %v6207_v56  ;;  %1940 = vmatpush1.bf16.msra.mxu1 %v6210_v59 }
 0x4d2   :  { %1900 = vmatprep.subr.bf16.mxu0 %v6213_v61  ;;  %1941 = vmatprep.subr.bf16.mxu1 %v6216_v63 }
 0x4d5   :  { %1901 = vmatpush1.bf16.msra.mxu0 %v6219_v2  ;;  %1942 = vmatpush1.bf16.msra.mxu1 %v6222_v3 }
 0x4d6   :  { %1902 = vmatprep.subr.bf16.mxu0 %v6225_v4  ;;  %1943 = vmatprep.subr.bf16.mxu1 %v6228_v5 }
 0x4d9   :  { %1903 = vmatpush1.bf16.msra.mxu0 %v6231_v6  ;;  %1944 = vmatpush1.bf16.msra.mxu1 %v6234_v7 }
 0x4da   :  { %1904 = vmatprep.subr.bf16.mxu0 %v6237_v8  ;;  %1945 = vmatprep.subr.bf16.mxu1 %v6240_v10 }
 0x4dd   :  { %1905 = vmatpush1.bf16.msra.mxu0 %v6243_v11  ;;  %1946 = vmatpush1.bf16.msra.mxu1 %v6246_v17 }
 0x4de   :  { %1906 = vmatprep.subr.bf16.mxu0 %v6249_v58  ;;  %1947 = vmatprep.subr.bf16.mxu1 %v6252_v19 }
 0x4e1   :  { %1907 = vmatpush1.bf16.msra.mxu0 %v6255_v30  ;;  %1948 = vmatpush1.bf16.msra.mxu1 %v6258_v24 }
 0x4e2   :  { %1908 = vmatprep.subr.bf16.mxu0 %v6261_v16  ;;  %1949 = vmatprep.subr.bf16.mxu1 %v6264_v25 }
 0x4e5   :  { %1909 = vmatpush1.bf16.msra.mxu0 %v6267_v12  ;;  %1950 = vmatpush1.bf16.msra.mxu1 %v6270_v14 }
 0x4e6   :  { %1910 = vmatprep.subr.bf16.mxu0 %v6273_v26  ;;  %1951 = vmatprep.subr.bf16.mxu1 %v6276_v31 }
 0x4e9   :  { %1911 = vmatpush1.bf16.msra.mxu0 %v6279_v27  ;;  %1952 = vmatpush1.bf16.msra.mxu1 %v6282_v35 }
 0x4ea   :  { %1912 = vmatprep.subr.bf16.mxu0 %v6285_v15  ;;  %1953 = vmatprep.subr.bf16.mxu1 %v6288_v20  ;;  %v6303_v15 = vld [vmem:[#allocation8 + $0x1a0] ss:$16 sps:$4 sm:$0xff]   ;;  %v6306_v20 = vld [vmem:[#allocation8 + $0x1a8] ss:$16 sps:$4 sm:$0xff]  }
 0x4eb   :  { %8794 = vst [vmem:[#allocation39_spill] sm:$0xff] %v6303_v15  ;;  %8795 = vst [vmem:[#allocation40_spill] sm:$0xff] %v6306_v20 }
 0x4ed   :  { %1913 = vmatpush1.bf16.msra.mxu0 %v6291_v1  ;;  %1954 = vmatpush1.bf16.msra.mxu1 %v6294_v36  ;;  %v6309_v1 = vld [vmem:[#allocation8 + $0x1c4] ss:$16 sps:$4 sm:$0xff]   ;;  %v6312_v36 = vld [vmem:[#allocation8 + $0x1cc] ss:$16 sps:$4 sm:$0xff]  }
 0x4ee   :  { %1914 = vmatprep.subr.bf16.mxu0 %v6297_v34  ;;  %1955 = vmatprep.subr.bf16.mxu1 %v6300_v39  ;;  %8796 = vst [vmem:[#allocation41_spill] sm:$0xff] %v6309_v1  ;;  %8797 = vst [vmem:[#allocation42_spill] sm:$0xff] %v6312_v36  ;;  %v6315_v34 = vld [vmem:[#allocation8 + $0x1c0] ss:$16 sps:$4 sm:$0xff]   ;;  %v6318_v39 = vld [vmem:[#allocation8 + $0x1c8] ss:$16 sps:$4 sm:$0xff]  }
 0x4ef   :  { %8798 = vst [vmem:[#allocation43_spill] sm:$0xff] %v6315_v34  ;;  %8799 = vst [vmem:[#allocation44_spill] sm:$0xff] %v6318_v39 }
 0x4f1   :  { %1915 = vmatpush1.bf16.msra.mxu0 %v6303_v15  ;;  %1956 = vmatpush1.bf16.msra.mxu1 %v6306_v20  ;;  %v6321_v15 = vld [vmem:[#allocation8 + $0x1e4] ss:$16 sps:$4 sm:$0xff]   ;;  %v6324_v20 = vld [vmem:[#allocation8 + $0x1ec] ss:$16 sps:$4 sm:$0xff]  }
 0x4f2   :  { %1916 = vmatprep.subr.bf16.mxu0 %v6309_v1  ;;  %1957 = vmatprep.subr.bf16.mxu1 %v6312_v36  ;;  %8800 = vst [vmem:[#allocation45_spill] sm:$0xff] %v6321_v15  ;;  %8801 = vst [vmem:[#allocation46_spill] sm:$0xff] %v6324_v20  ;;  %v6327_v1 = vld [vmem:[#allocation8 + $0x1e0] ss:$16 sps:$4 sm:$0xff]   ;;  %v6330_v36 = vld [vmem:[#allocation8 + $0x1e8] ss:$16 sps:$4 sm:$0xff]  }
 0x4f3   :  { %8802 = vst [vmem:[#allocation47_spill] sm:$0xff] %v6327_v1  ;;  %8803 = vst [vmem:[#allocation48_spill] sm:$0xff] %v6330_v36 }
 0x4f5   :  { %1917 = vmatpush1.bf16.msra.mxu0 %v6315_v34  ;;  %1958 = vmatpush1.bf16.msra.mxu1 %v6318_v39  ;;  %v6333_v34 = vld [vmem:[#allocation9 + $0x4] ss:$16 sps:$4 sm:$0xff]   ;;  %v6336_v39 = vld [vmem:[#allocation9 + $0xc] ss:$16 sps:$4 sm:$0xff]  }
 0x4f6   :  { %1918 = vmatprep.subr.bf16.mxu0 %v6321_v15  ;;  %1959 = vmatprep.subr.bf16.mxu1 %v6324_v20  ;;  %8804 = vst [vmem:[#allocation49_spill] sm:$0xff] %v6333_v34  ;;  %8805 = vst [vmem:[#allocation50_spill] sm:$0xff] %v6336_v39 }
 0x4f9   :  { %1919 = vmatpush1.bf16.msra.mxu0 %v6327_v1  ;;  %1960 = vmatpush1.bf16.msra.mxu1 %v6330_v36 }
 0x4fa   :  { %1996 = vmatprep.subr.bf16.mxu0 %v6333_v34  ;;  %2037 = vmatprep.subr.bf16.mxu1 %v6336_v39 }
 0x56e   :  { %v1698_v15 = vpop.f32.mrb[20].mxu0  ;;  %v1739_v35 = vpop.f32.mrb[20].mxu1 }
 0x56f   :  { %v1699_v20 = vadd.f32 %v1698_v15, %v6010_v60  ;;  %v1700_v27 = vpop.f32.mrb[21].mxu0  ;;  %v1741_v31 = vpop.f32.mrb[21].mxu1  ;;  %v1771_v60 = vld [vmem:[#allocation3 + $0x20] sm:$0xff] }
 0x570   :  { %v1701_v1 = vadd.f32 %v1700_v27, %v6014_v62  ;;  %v1702_v26 = vpop.f32.mrb[22].mxu0  ;;  %v1743_v14 = vpop.f32.mrb[22].mxu1  ;;  %v1742_v34 = vadd.f32 %v1741_v31, %v6020_v13 }
 0x571   :  { %v3964_v12 = vmul.f32 -1.442695, %v1699_v20  ;;  %v1703_v36 = vpop.f32.mrb[23].mxu0  ;;  %v1744_v25 = vpop.f32.mrb[23].mxu1  ;;  %v1773_v14 = vunpack.c.l.bf16 %v1771_v60 }
 0x572   :  { %v3965_v16 = vmul.f32 -1.442695, %v1701_v1  ;;  %v1774_v36 = vunpack.c.h.bf16 %v1771_v60  ;;  %v1740_v60 = vadd.f32 %v1739_v35, %v6027_v57 }
 0x573   :  { %4350 = vpow2.f32 %v3964_v12 }
 0x574   :  { %4352 = vpow2.f32 %v3965_v16 }
 0x575   :  { %4354 = vtanh.f32 %v1742_v34  ;;  %v1772_v34 = vld [vmem:[#allocation3 + $0x28] sm:$0xff] }
 0x57d   :  { %v4351_v24 = vpop.eup %4350 }
 0x57e   :  { %v1755_v39 = vadd.f32 1.0, %v4351_v24  ;;  %v4353_v30 = vpop.eup %4352 }
 0x57f   :  { %v1756_v15 = vadd.f32 1.0, %v4353_v30  ;;  %v4355_v19 = vpop.eup %4354 }
 0x580   :  { %4356 = vrcp.f32 %v1755_v39 }
 0x581   :  { %4358 = vrcp.f32 %v1756_v15 }
 0x58a   :  { %v4357_v27 = vpop.eup %4356 }
 0x58b   :  { %v1766_v26 = vmul.f32 %v4357_v27, %v4355_v19  ;;  %v4359_v20 = vpop.eup %4358  ;;  %v1775_v27 = vunpack.c.l.bf16 %v1772_v34 }
 0x58c   :  { %v1765_v25 = vmul.f32 %v4359_v20, %v6023_v48  ;;  %v1776_v48 = vunpack.c.h.bf16 %v1772_v34 }
 0x58e   :  { %v1811_v12 = vpop.f32.mrb[24].mxu0  ;;  %v1852_v16 = vpop.f32.mrb[24].mxu1  ;;  %v6343_v1 = vadd.f32 %v1766_v26, %v1765_v25  ;;  %v3966_v26 = vmul.f32 -1.442695, %v1740_v60 }
 0x58f   :  { %v1859_v31 = vadd.f32 %v1811_v12, %v1773_v14  ;;  %v1813_v24 = vpop.f32.mrb[25].mxu0  ;;  %v1854_v13 = vpop.f32.mrb[25].mxu1  ;;  %v1861_v20 = vadd.f32 %v1852_v16, %v1775_v27 }
 0x590   :  { %v1860_v39 = vadd.f32 %v1813_v24, %v1774_v36  ;;  %v1815_v30 = vpop.f32.mrb[26].mxu0  ;;  %v1856_v15 = vpop.f32.mrb[26].mxu1  ;;  %v1862_v25 = vadd.f32 %v1854_v13, %v1776_v48 }
 0x591   :  { %v3967_v62 = vmul.f32 -1.442695, %v1859_v31  ;;  %v1816_v58 = vpop.f32.mrb[27].mxu0  ;;  %v1857_v17 = vpop.f32.mrb[27].mxu1  ;;  %v3969_v14 = vmul.f32 -1.442695, %v1861_v20 }
 0x592   :  { %v3968_v19 = vmul.f32 -1.442695, %v1860_v39 }
 0x593   :  { %4360 = vpow2.f32 %v3967_v62 }
 0x594   :  { %4362 = vpow2.f32 %v3968_v19 }
 0x595   :  { %4364 = vpow2.f32 %v3966_v26 }
 0x596   :  { %4366 = vtanh.f32 %v1862_v25  ;;  %v6358_v25 = vld [vmem:[#allocation9 + $0x8] ss:$16 sps:$4 sm:$0xff]  }
 0x597   :  { %4368 = vpow2.f32 %v3969_v14  ;;  %v6361_v14 = vld [vmem:[#allocation9 + $0x24] ss:$16 sps:$4 sm:$0xff]  }
 0x59d   :  { %v4361_v12 = vpop.eup %4360 }
 0x59e   :  { %v1872_v11 = vadd.f32 1.0, %v4361_v12  ;;  %v4363_v36 = vpop.eup %4362  ;;  %v6364_v12 = vld [vmem:[#allocation9 + $0x2c] ss:$16 sps:$4 sm:$0xff]  }
 0x59f   :  { %v1873_v58 = vadd.f32 1.0, %v4363_v36  ;;  %v4365_v17 = vpop.eup %4364  ;;  %v6367_v36 = vld [vmem:[#allocation9 + $0x20] ss:$16 sps:$4 sm:$0xff]  }
 0x5a0   :  { %4370 = vrcp.f32 %v1872_v11  ;;  %v4367_v62 = vpop.eup %4366  ;;  %v1757_v35 = vadd.f32 1.0, %v4365_v17  ;;  %v6373_v17 = vld [vmem:[#allocation9 + $0x44] ss:$16 sps:$4 sm:$0xff]  }
 0x5a1   :  { %4372 = vrcp.f32 %v1873_v58  ;;  %v4369_v31 = vpop.eup %4368  ;;  %v6370_v58 = vld [vmem:[#allocation9 + $0x28] ss:$16 sps:$4 sm:$0xff]   ;;  %8807 = vst [vmem:[#allocation52_spill] sm:$0xff] %v6373_v17 }
 0x5a2   :  { %v1874_v16 = vadd.f32 1.0, %v4369_v31  ;;  %4374 = vtanh.f32 %v6343_v1  ;;  %8806 = vst [vmem:[#allocation51_spill] sm:$0xff] %v6370_v58  ;;  %v6379_v31 = vld [vmem:[#allocation9 + $0x40] ss:$16 sps:$4 sm:$0xff]  }
 0x5a3   :  { %4376 = vrcp.f32 %v1757_v35  ;;  %8809 = vst [vmem:[#allocation54_spill] sm:$0xff] %v6379_v31  ;;  %v6385_v35 = vld [vmem:[#allocation9 + $0x64] ss:$16 sps:$4 sm:$0xff]  }
 0x5a4   :  { %4378 = vrcp.f32 %v1874_v16  ;;  %8811 = vst [vmem:[#allocation56_spill] sm:$0xff] %v6385_v35  ;;  %v6394_v16 = vld [vmem:[#allocation9 + $0x68] ss:$16 sps:$4 sm:$0xff]  }
 0x5a5   :  { %8814 = vst [vmem:[#allocation59_spill] sm:$0xff] %v6394_v16 }
 0x5aa   :  { %v4371_v24 = vpop.eup %4370 }
 0x5ab   :  { %v1883_v39 = vmul.f32 %v4371_v24, %v4367_v62  ;;  %v4373_v34 = vpop.eup %4372  ;;  %v6376_v62 = vld [vmem:[#allocation9 + $0x4c] ss:$16 sps:$4 sm:$0xff]   ;;  %v6382_v24 = vld [vmem:[#allocation9 + $0x48] ss:$16 sps:$4 sm:$0xff]  }
 0x5ac   :  { %v1882_v13 = vmul.f32 %v4373_v34, %v6032_v41  ;;  %v4375_v11 = vpop.eup %4374  ;;  %v6355_v41 = vld [vmem:[#allocation9] ss:$16 sps:$4 sm:$0xff]   ;;  %8808 = vst [vmem:[#allocation53_spill] sm:$0xff] %v6376_v62  ;;  %8810 = vst [vmem:[#allocation55_spill] sm:$0xff] %v6382_v24 }
 0x5ad   :  { %v4377_v15 = vpop.eup %4376  ;;  %v6391_v34 = vld [vmem:[#allocation9 + $0x60] ss:$16 sps:$4 sm:$0xff]  }
 0x5ae   :  { %v6348_v30 = vadd.f32 %v1883_v39, %v1882_v13  ;;  %v4379_v19 = vpop.eup %4378  ;;  %v1769_v60 = vmul.f32 %v4377_v15, %v4375_v11  ;;  %v6388_v39 = vld [vmem:[#allocation9 + $0x6c] ss:$16 sps:$4 sm:$0xff]   ;;  %8813 = vst [vmem:[#allocation58_spill] sm:$0xff] %v6391_v34  ;;  %v6397_v13 = vld [vmem:[#allocation9 + $0x84] ss:$16 sps:$4 sm:$0xff]  }
 0x5af   :  { %8812 = vst [vmem:[#allocation57_spill] sm:$0xff] %v6388_v39  ;;  %8815 = vst [vmem:[#allocation60_spill] sm:$0xff] %v6397_v13  ;;  %v6400_v11 = vld [vmem:[#allocation9 + $0x8c] ss:$16 sps:$4 sm:$0xff]   ;;  %v6403_v15 = vld [vmem:[#allocation9 + $0x80] ss:$16 sps:$4 sm:$0xff]  }
 0x5b0   :  { %4380 = vtanh.f32 %v6348_v30  ;;  %v1995_v26 = vpack.c.bf16 %v1769_v60, %v1769_v60  ;;  %8816 = vst [vmem:[#allocation61_spill] sm:$0xff] %v6400_v11  ;;  %8817 = vst [vmem:[#allocation62_spill] sm:$0xff] %v6403_v15  ;;  %v6412_v60 = vld [vmem:[#allocation9 + $0xac] ss:$16 sps:$4 sm:$0xff]  }
 0x5b1   :  { %8820 = vst [vmem:[#allocation65_spill] sm:$0xff] %v6412_v60 }
 0x5ba   :  { %v4381_v27 = vpop.eup %4380 }
 0x5bb   :  { %v1886_v48 = vmul.f32 %v4381_v27, %v4379_v19  ;;  %v6406_v19 = vld [vmem:[#allocation9 + $0x88] ss:$16 sps:$4 sm:$0xff]   ;;  %v6409_v27 = vld [vmem:[#allocation9 + $0xa4] ss:$16 sps:$4 sm:$0xff]  }
 0x5bc   :  { %8818 = vst [vmem:[#allocation63_spill] sm:$0xff] %v6406_v19  ;;  %8819 = vst [vmem:[#allocation64_spill] sm:$0xff] %v6409_v27 }
 0x5bd   :  { %v6351_v20 = vpack.c.bf16 %v1886_v48, %v1886_v48  ;;  %v6415_v48 = vld [vmem:[#allocation9 + $0xa0] ss:$16 sps:$4 sm:$0xff]  }
 0x5be   :  { %8821 = vst [vmem:[#allocation66_spill] sm:$0xff] %v6415_v48 }
 0x5bf   :  { %1921 = vmatmul.mubr.bf16.vlgmr.msra.gmra.mrb[28].mxu0 %v6351_v20  ;;  %1962 = vmatmul.mubr.bf16.vlgmr.msra.gmra.mrb[28].mxu1 %v6351_v20 }
 0x5c0   :  { %2028 = vmatprep.mubr.bf16.mxu0 %v1995_v26  ;;  %2069 = vmatprep.mubr.bf16.mxu1 %v1995_v26  ;;  %v6418_v26 = vld [vmem:[#allocation9 + $0xa8] ss:$16 sps:$4 sm:$0xff]  }
 0x5c1   :  { %1997 = vmatpush1.bf16.msra.mxu0 %v6355_v41  ;;  %2038 = vmatpush1.bf16.msra.mxu1 %v6358_v25  ;;  %8822 = vst [vmem:[#allocation67_spill] sm:$0xff] %v6418_v26 }
 0x5c2   :  { %1998 = vmatprep.subr.bf16.mxu0 %v6361_v14  ;;  %2039 = vmatprep.subr.bf16.mxu1 %v6364_v12 }
 0x5c5   :  { %1999 = vmatpush1.bf16.msra.mxu0 %v6367_v36  ;;  %2040 = vmatpush1.bf16.msra.mxu1 %v6370_v58 }
 0x5c6   :  { %2000 = vmatprep.subr.bf16.mxu0 %v6373_v17  ;;  %2041 = vmatprep.subr.bf16.mxu1 %v6376_v62 }
 0x5c9   :  { %2001 = vmatpush1.bf16.msra.mxu0 %v6379_v31  ;;  %2042 = vmatpush1.bf16.msra.mxu1 %v6382_v24 }
 0x5ca   :  { %2002 = vmatprep.subr.bf16.mxu0 %v6385_v35  ;;  %2043 = vmatprep.subr.bf16.mxu1 %v6388_v39 }
 0x5cd   :  { %2003 = vmatpush1.bf16.msra.mxu0 %v6391_v34  ;;  %2044 = vmatpush1.bf16.msra.mxu1 %v6394_v16 }
 0x5ce   :  { %2004 = vmatprep.subr.bf16.mxu0 %v6397_v13  ;;  %2045 = vmatprep.subr.bf16.mxu1 %v6400_v11 }
 0x5d1   :  { %2005 = vmatpush1.bf16.msra.mxu0 %v6403_v15  ;;  %2046 = vmatpush1.bf16.msra.mxu1 %v6406_v19  ;;  %v6421_v15 = vld [vmem:[#allocation9 + $0xc4] ss:$16 sps:$4 sm:$0xff]   ;;  %v6424_v19 = vld [vmem:[#allocation9 + $0xcc] ss:$16 sps:$4 sm:$0xff]  }
 0x5d2   :  { %2006 = vmatprep.subr.bf16.mxu0 %v6409_v27  ;;  %2047 = vmatprep.subr.bf16.mxu1 %v6412_v60  ;;  %8823 = vst [vmem:[#allocation68_spill] sm:$0xff] %v6421_v15  ;;  %8824 = vst [vmem:[#allocation69_spill] sm:$0xff] %v6424_v19  ;;  %v6427_v27 = vld [vmem:[#allocation9 + $0xc0] ss:$16 sps:$4 sm:$0xff]   ;;  %v6430_v60 = vld [vmem:[#allocation9 + $0xc8] ss:$16 sps:$4 sm:$0xff]  }
 0x5d3   :  { %8825 = vst [vmem:[#allocation70_spill] sm:$0xff] %v6427_v27  ;;  %8826 = vst [vmem:[#allocation71_spill] sm:$0xff] %v6430_v60 }
 0x5d5   :  { %2007 = vmatpush1.bf16.msra.mxu0 %v6415_v48  ;;  %2048 = vmatpush1.bf16.msra.mxu1 %v6418_v26  ;;  %v6433_v48 = vld [vmem:[#allocation9 + $0xe4] ss:$16 sps:$4 sm:$0xff]   ;;  %v6436_v26 = vld [vmem:[#allocation9 + $0xec] ss:$16 sps:$4 sm:$0xff]  }
 0x5d6   :  { %2008 = vmatprep.subr.bf16.mxu0 %v6421_v15  ;;  %2049 = vmatprep.subr.bf16.mxu1 %v6424_v19  ;;  %8827 = vst [vmem:[#allocation72_spill] sm:$0xff] %v6433_v48  ;;  %8828 = vst [vmem:[#allocation73_spill] sm:$0xff] %v6436_v26  ;;  %v6439_v15 = vld [vmem:[#allocation9 + $0xe0] ss:$16 sps:$4 sm:$0xff]   ;;  %v6442_v19 = vld [vmem:[#allocation9 + $0xe8] ss:$16 sps:$4 sm:$0xff]  }
 0x5d7   :  { %8829 = vst [vmem:[#allocation74_spill] sm:$0xff] %v6439_v15  ;;  %8830 = vst [vmem:[#allocation75_spill] sm:$0xff] %v6442_v19 }
 0x5d9   :  { %2009 = vmatpush1.bf16.msra.mxu0 %v6427_v27  ;;  %2050 = vmatpush1.bf16.msra.mxu1 %v6430_v60  ;;  %v6445_v27 = vld [vmem:[#allocation9 + $0x104] ss:$16 sps:$4 sm:$0xff]   ;;  %v6448_v60 = vld [vmem:[#allocation9 + $0x10c] ss:$16 sps:$4 sm:$0xff]  }
 0x5da   :  { %2010 = vmatprep.subr.bf16.mxu0 %v6433_v48  ;;  %2051 = vmatprep.subr.bf16.mxu1 %v6436_v26  ;;  %8831 = vst [vmem:[#allocation76_spill] sm:$0xff] %v6445_v27  ;;  %8832 = vst [vmem:[#allocation77_spill] sm:$0xff] %v6448_v60  ;;  %v6451_v48 = vld [vmem:[#allocation9 + $0x100] ss:$16 sps:$4 sm:$0xff]   ;;  %v6454_v26 = vld [vmem:[#allocation9 + $0x108] ss:$16 sps:$4 sm:$0xff]  }
 0x5db   :  { %8833 = vst [vmem:[#allocation78_spill] sm:$0xff] %v6451_v48  ;;  %8834 = vst [vmem:[#allocation79_spill] sm:$0xff] %v6454_v26 }
 0x5dd   :  { %2011 = vmatpush1.bf16.msra.mxu0 %v6439_v15  ;;  %2052 = vmatpush1.bf16.msra.mxu1 %v6442_v19  ;;  %v6457_v15 = vld [vmem:[#allocation9 + $0x124] ss:$16 sps:$4 sm:$0xff]   ;;  %v6460_v19 = vld [vmem:[#allocation9 + $0x12c] ss:$16 sps:$4 sm:$0xff]  }
 0x5de   :  { %2012 = vmatprep.subr.bf16.mxu0 %v6445_v27  ;;  %2053 = vmatprep.subr.bf16.mxu1 %v6448_v60  ;;  %8835 = vst [vmem:[#allocation80_spill] sm:$0xff] %v6457_v15  ;;  %8836 = vst [vmem:[#allocation81_spill] sm:$0xff] %v6460_v19  ;;  %v6463_v27 = vld [vmem:[#allocation9 + $0x120] ss:$16 sps:$4 sm:$0xff]   ;;  %v6466_v60 = vld [vmem:[#allocation9 + $0x128] ss:$16 sps:$4 sm:$0xff]  }
 0x5df   :  { %8837 = vst [vmem:[#allocation82_spill] sm:$0xff] %v6463_v27  ;;  %8838 = vst [vmem:[#allocation83_spill] sm:$0xff] %v6466_v60 }
 0x5e1   :  { %2013 = vmatpush1.bf16.msra.mxu0 %v6451_v48  ;;  %2054 = vmatpush1.bf16.msra.mxu1 %v6454_v26  ;;  %v6469_v48 = vld [vmem:[#allocation9 + $0x144] ss:$16 sps:$4 sm:$0xff]   ;;  %v6472_v26 = vld [vmem:[#allocation9 + $0x14c] ss:$16 sps:$4 sm:$0xff]  }
 0x5e2   :  { %2014 = vmatprep.subr.bf16.mxu0 %v6457_v15  ;;  %2055 = vmatprep.subr.bf16.mxu1 %v6460_v19  ;;  %8839 = vst [vmem:[#allocation84_spill] sm:$0xff] %v6469_v48  ;;  %8840 = vst [vmem:[#allocation85_spill] sm:$0xff] %v6472_v26  ;;  %v6475_v15 = vld [vmem:[#allocation9 + $0x140] ss:$16 sps:$4 sm:$0xff]   ;;  %v6478_v19 = vld [vmem:[#allocation9 + $0x148] ss:$16 sps:$4 sm:$0xff]  }
 0x5e3   :  { %8841 = vst [vmem:[#allocation86_spill] sm:$0xff] %v6475_v15  ;;  %8842 = vst [vmem:[#allocation87_spill] sm:$0xff] %v6478_v19 }
 0x5e5   :  { %2015 = vmatpush1.bf16.msra.mxu0 %v6463_v27  ;;  %2056 = vmatpush1.bf16.msra.mxu1 %v6466_v60  ;;  %v6481_v27 = vld [vmem:[#allocation9 + $0x164] ss:$16 sps:$4 sm:$0xff]   ;;  %v6484_v60 = vld [vmem:[#allocation9 + $0x16c] ss:$16 sps:$4 sm:$0xff]  }
 0x5e6   :  { %2016 = vmatprep.subr.bf16.mxu0 %v6469_v48  ;;  %2057 = vmatprep.subr.bf16.mxu1 %v6472_v26  ;;  %8843 = vst [vmem:[#allocation88_spill] sm:$0xff] %v6481_v27  ;;  %8844 = vst [vmem:[#allocation89_spill] sm:$0xff] %v6484_v60  ;;  %v6487_v48 = vld [vmem:[#allocation9 + $0x160] ss:$16 sps:$4 sm:$0xff]   ;;  %v6490_v26 = vld [vmem:[#allocation9 + $0x168] ss:$16 sps:$4 sm:$0xff]  }
 0x5e7   :  { %8845 = vst [vmem:[#allocation90_spill] sm:$0xff] %v6487_v48  ;;  %8846 = vst [vmem:[#allocation91_spill] sm:$0xff] %v6490_v26 }
 0x5e9   :  { %2017 = vmatpush1.bf16.msra.mxu0 %v6475_v15  ;;  %2058 = vmatpush1.bf16.msra.mxu1 %v6478_v19  ;;  %v6493_v15 = vld [vmem:[#allocation9 + $0x184] ss:$16 sps:$4 sm:$0xff]   ;;  %v6496_v19 = vld [vmem:[#allocation9 + $0x18c] ss:$16 sps:$4 sm:$0xff]  }
 0x5ea   :  { %2018 = vmatprep.subr.bf16.mxu0 %v6481_v27  ;;  %2059 = vmatprep.subr.bf16.mxu1 %v6484_v60  ;;  %8847 = vst [vmem:[#allocation92_spill] sm:$0xff] %v6493_v15  ;;  %8848 = vst [vmem:[#allocation93_spill] sm:$0xff] %v6496_v19  ;;  %v6499_v27 = vld [vmem:[#allocation9 + $0x180] ss:$16 sps:$4 sm:$0xff]   ;;  %v6502_v60 = vld [vmem:[#allocation9 + $0x188] ss:$16 sps:$4 sm:$0xff]  }
 0x5eb   :  { %8849 = vst [vmem:[#allocation94_spill] sm:$0xff] %v6499_v27  ;;  %8850 = vst [vmem:[#allocation95_spill] sm:$0xff] %v6502_v60 }
 0x5ed   :  { %2019 = vmatpush1.bf16.msra.mxu0 %v6487_v48  ;;  %2060 = vmatpush1.bf16.msra.mxu1 %v6490_v26  ;;  %v6505_v48 = vld [vmem:[#allocation9 + $0x1a4] ss:$16 sps:$4 sm:$0xff]   ;;  %v6508_v26 = vld [vmem:[#allocation9 + $0x1ac] ss:$16 sps:$4 sm:$0xff]  }
 0x5ee   :  { %2020 = vmatprep.subr.bf16.mxu0 %v6493_v15  ;;  %2061 = vmatprep.subr.bf16.mxu1 %v6496_v19  ;;  %8851 = vst [vmem:[#allocation96_spill] sm:$0xff] %v6505_v48  ;;  %8852 = vst [vmem:[#allocation97_spill] sm:$0xff] %v6508_v26  ;;  %v6511_v15 = vld [vmem:[#allocation9 + $0x1a0] ss:$16 sps:$4 sm:$0xff]   ;;  %v6514_v19 = vld [vmem:[#allocation9 + $0x1a8] ss:$16 sps:$4 sm:$0xff]  }
 0x5ef   :  { %8853 = vst [vmem:[#allocation98_spill] sm:$0xff] %v6511_v15  ;;  %8854 = vst [vmem:[#allocation99_spill] sm:$0xff] %v6514_v19 }
 0x5f1   :  { %2021 = vmatpush1.bf16.msra.mxu0 %v6499_v27  ;;  %2062 = vmatpush1.bf16.msra.mxu1 %v6502_v60  ;;  %v6517_v27 = vld [vmem:[#allocation9 + $0x1c4] ss:$16 sps:$4 sm:$0xff]   ;;  %v6520_v60 = vld [vmem:[#allocation9 + $0x1cc] ss:$16 sps:$4 sm:$0xff]  }
 0x5f2   :  { %2022 = vmatprep.subr.bf16.mxu0 %v6505_v48  ;;  %2063 = vmatprep.subr.bf16.mxu1 %v6508_v26  ;;  %8855 = vst [vmem:[#allocation100_spill] sm:$0xff] %v6517_v27  ;;  %8856 = vst [vmem:[#allocation101_spill] sm:$0xff] %v6520_v60  ;;  %v6523_v48 = vld [vmem:[#allocation9 + $0x1c0] ss:$16 sps:$4 sm:$0xff]   ;;  %v6526_v26 = vld [vmem:[#allocation9 + $0x1c8] ss:$16 sps:$4 sm:$0xff]  }
 0x5f3   :  { %8857 = vst [vmem:[#allocation102_spill] sm:$0xff] %v6523_v48  ;;  %8858 = vst [vmem:[#allocation103_spill] sm:$0xff] %v6526_v26 }
 0x5f5   :  { %2023 = vmatpush1.bf16.msra.mxu0 %v6511_v15  ;;  %2064 = vmatpush1.bf16.msra.mxu1 %v6514_v19  ;;  %v6529_v15 = vld [vmem:[#allocation9 + $0x1e4] ss:$16 sps:$4 sm:$0xff]   ;;  %v6532_v19 = vld [vmem:[#allocation9 + $0x1ec] ss:$16 sps:$4 sm:$0xff]  }
 0x5f6   :  { %2024 = vmatprep.subr.bf16.mxu0 %v6517_v27  ;;  %2065 = vmatprep.subr.bf16.mxu1 %v6520_v60  ;;  %8859 = vst [vmem:[#allocation104_spill] sm:$0xff] %v6529_v15  ;;  %8860 = vst [vmem:[#allocation105_spill] sm:$0xff] %v6532_v19  ;;  %v6535_v27 = vld [vmem:[#allocation9 + $0x1e0] ss:$16 sps:$4 sm:$0xff]   ;;  %v6538_v60 = vld [vmem:[#allocation9 + $0x1e8] ss:$16 sps:$4 sm:$0xff]  }
 0x5f7   :  { %8861 = vst [vmem:[#allocation106_spill] sm:$0xff] %v6535_v27  ;;  %8862 = vst [vmem:[#allocation107_spill] sm:$0xff] %v6538_v60 }
 0x5f9   :  { %2025 = vmatpush1.bf16.msra.mxu0 %v6523_v48  ;;  %2066 = vmatpush1.bf16.msra.mxu1 %v6526_v26  ;;  %v6541_v48 = vld [vmem:[#allocation6 + $0x4] ss:$16 sps:$4 sm:$0xff]   ;;  %v6544_v26 = vld [vmem:[#allocation6 + $0xc] ss:$16 sps:$4 sm:$0xff]  }
 0x5fa   :  { %2026 = vmatprep.subr.bf16.mxu0 %v6529_v15  ;;  %2067 = vmatprep.subr.bf16.mxu1 %v6532_v19  ;;  %8863 = vst [vmem:[#allocation108_spill] sm:$0xff] %v6541_v48  ;;  %8864 = vst [vmem:[#allocation109_spill] sm:$0xff] %v6544_v26 }
 0x5fd   :  { %2027 = vmatpush1.bf16.msra.mxu0 %v6535_v27  ;;  %2068 = vmatpush1.bf16.msra.mxu1 %v6538_v60 }
 0x5fe   :  { %2109 = vmatprep.subr.bf16.mxu0 %v6541_v48  ;;  %2150 = vmatprep.subr.bf16.mxu1 %v6544_v26 }
 0x692   :  { %v1922_v15 = vpop.f32.mrb[28].mxu0  ;;  %v1963_v11 = vpop.f32.mrb[28].mxu1 }
 0x693   :  { %v1923_v19 = vadd.f32 %v1922_v15, %v8755_v37  ;;  %v1924_v13 = vpop.f32.mrb[29].mxu0  ;;  %v1965_v16 = vpop.f32.mrb[29].mxu1  ;;  %v1964_v48 = vadd.f32 %v1963_v11, %v5824_v22 }
 0x694   :  { %v1925_v27 = vadd.f32 %v1924_v13, %v8756_v43  ;;  %v1926_v34 = vpop.f32.mrb[30].mxu0  ;;  %v1967_v39 = vpop.f32.mrb[30].mxu1  ;;  %v1966_v26 = vadd.f32 %v1965_v16, %v5828_v28 }
 0x695   :  { %v3970_v35 = vmul.f32 -1.442695, %v1923_v19  ;;  %v1927_v60 = vpop.f32.mrb[31].mxu0  ;;  %v1968_v24 = vpop.f32.mrb[31].mxu1  ;;  %v3972_v62 = vmul.f32 -1.442695, %v1964_v48 }
 0x696   :  { %v3971_v31 = vmul.f32 -1.442695, %v1925_v27  ;;  %v6562_v48 = vld [vmem:[#allocation6 + $0x8] ss:$16 sps:$4 sm:$0xff]  }
 0x697   :  { %4382 = vpow2.f32 %v3970_v35 }
 0x698   :  { %4384 = vpow2.f32 %v3971_v31 }
 0x699   :  { %4386 = vtanh.f32 %v1966_v26  ;;  %v6568_v26 = vld [vmem:[#allocation6 + $0x2c] ss:$16 sps:$4 sm:$0xff]  }
 0x69a   :  { %4388 = vpow2.f32 %v3972_v62 }
 0x6a1   :  { %v4383_v17 = vpop.eup %4382 }
 0x6a2   :  { %v1979_v58 = vadd.f32 1.0, %v4383_v17  ;;  %v4385_v15 = vpop.eup %4384 }
 0x6a3   :  { %v1980_v13 = vadd.f32 1.0, %v4385_v15  ;;  %v4387_v39 = vpop.eup %4386  ;;  %v6573_v15 = vld [vmem:[#allocation6 + $0x20] ss:$16 sps:$4 sm:$0xff]  }
 0x6a4   :  { %4390 = vrcp.f32 %v1979_v58  ;;  %v4389_v34 = vpop.eup %4388  ;;  %v6559_v58 = vld [vmem:[#allocation6] ss:$16 sps:$4 sm:$0xff]  }
 0x6a5   :  { %4392 = vrcp.f32 %v1980_v13  ;;  %v1981_v35 = vadd.f32 1.0, %v4389_v34  ;;  %v6576_v13 = vld [vmem:[#allocation6 + $0x28] ss:$16 sps:$4 sm:$0xff]   ;;  %v6582_v34 = vld [vmem:[#allocation6 + $0x4c] ss:$16 sps:$4 sm:$0xff]  }
 0x6a7   :  { %4394 = vrcp.f32 %v1981_v35  ;;  %v6594_v35 = vld [vmem:[#allocation6 + $0x6c] ss:$16 sps:$4 sm:$0xff]  }
 0x6a8   :  { %8866 = vst [vmem:[#allocation111_spill] sm:$0xff] %v6594_v35 }
 0x6ae   :  { %v4391_v19 = vpop.eup %4390 }
 0x6af   :  { %v1990_v24 = vmul.f32 %v4391_v19, %v4387_v39  ;;  %v4393_v27 = vpop.eup %4392  ;;  %v6579_v39 = vld [vmem:[#allocation6 + $0x44] ss:$16 sps:$4 sm:$0xff]   ;;  %v6585_v19 = vld [vmem:[#allocation6 + $0x40] ss:$16 sps:$4 sm:$0xff]  }
 0x6b0   :  { %v1989_v31 = vmul.f32 %v4393_v27, %v6108_v9  ;;  %v6565_v9 = vld [vmem:[#allocation6 + $0x24] ss:$16 sps:$4 sm:$0xff]  }
 0x6b1   :  { %v4395_v17 = vpop.eup %4394  ;;  %v6591_v27 = vld [vmem:[#allocation6 + $0x64] ss:$16 sps:$4 sm:$0xff]  }
 0x6b2   :  { %v6552_v11 = vadd.f32 %v1990_v24, %v1989_v31  ;;  %v6588_v24 = vld [vmem:[#allocation6 + $0x48] ss:$16 sps:$4 sm:$0xff]   ;;  %8865 = vst [vmem:[#allocation110_spill] sm:$0xff] %v6591_v27  ;;  %v6597_v31 = vld [vmem:[#allocation6 + $0x60] ss:$16 sps:$4 sm:$0xff]  }
 0x6b3   :  { %8867 = vst [vmem:[#allocation112_spill] sm:$0xff] %v6597_v31 }
 0x6b4   :  { %4396 = vtanh.f32 %v6552_v11 }
 0x6be   :  { %v4397_v16 = vpop.eup %4396 }
 0x6bf   :  { %v1993_v60 = vmul.f32 %v4397_v16, %v4395_v17  ;;  %v6600_v17 = vld [vmem:[#allocation6 + $0x68] ss:$16 sps:$4 sm:$0xff]   ;;  %v6603_v16 = vld [vmem:[#allocation6 + $0x84] ss:$16 sps:$4 sm:$0xff]  }
 0x6c0   :  { %8868 = vst [vmem:[#allocation113_spill] sm:$0xff] %v6600_v17  ;;  %8869 = vst [vmem:[#allocation114_spill] sm:$0xff] %v6603_v16 }
 0x6c1   :  { %v6555_v62 = vpack.c.bf16 %v1993_v60, %v1993_v60  ;;  %v6606_v60 = vld [vmem:[#allocation6 + $0x8c] ss:$16 sps:$4 sm:$0xff]  }
 0x6c2   :  { %8870 = vst [vmem:[#allocation115_spill] sm:$0xff] %v6606_v60 }
 0x6c3   :  { %2029 = vmatmul.mubr.bf16.vlgmr.msra.gmra.mrb[32].mxu0 %v6555_v62  ;;  %2070 = vmatmul.mubr.bf16.vlgmr.msra.gmra.mrb[32].mxu1 %v6555_v62 }
 0x6c4   :  { %2110 = vmatpush1.bf16.msra.mxu0 %v6559_v58  ;;  %2151 = vmatpush1.bf16.msra.mxu1 %v6562_v48 }
 0x6c5   :  { %2111 = vmatprep.subr.bf16.mxu0 %v6565_v9  ;;  %2152 = vmatprep.subr.bf16.mxu1 %v6568_v26 }
 0x6c6   :  { %2141 = vmatprep.mubr.bf16.mxu0 %v8644_v32  ;;  %2182 = vmatprep.mubr.bf16.mxu1 %v8644_v32 }
 0x6c8   :  { %2112 = vmatpush1.bf16.msra.mxu0 %v6573_v15  ;;  %2153 = vmatpush1.bf16.msra.mxu1 %v6576_v13 }
 0x6c9   :  { %2113 = vmatprep.subr.bf16.mxu0 %v6579_v39  ;;  %2154 = vmatprep.subr.bf16.mxu1 %v6582_v34 }
 0x6cc   :  { %2114 = vmatpush1.bf16.msra.mxu0 %v6585_v19  ;;  %2155 = vmatpush1.bf16.msra.mxu1 %v6588_v24 }
 0x6cd   :  { %2115 = vmatprep.subr.bf16.mxu0 %v6591_v27  ;;  %2156 = vmatprep.subr.bf16.mxu1 %v6594_v35  ;;  %v6609_v27 = vld [vmem:[#allocation6 + $0x80] ss:$16 sps:$4 sm:$0xff]   ;;  %v6612_v35 = vld [vmem:[#allocation6 + $0x88] ss:$16 sps:$4 sm:$0xff]  }
 0x6ce   :  { %8871 = vst [vmem:[#allocation116_spill] sm:$0xff] %v6609_v27  ;;  %8872 = vst [vmem:[#allocation117_spill] sm:$0xff] %v6612_v35 }
 0x6d0   :  { %2116 = vmatpush1.bf16.msra.mxu0 %v6597_v31  ;;  %2157 = vmatpush1.bf16.msra.mxu1 %v6600_v17  ;;  %v6615_v31 = vld [vmem:[#allocation6 + $0xa4] ss:$16 sps:$4 sm:$0xff]   ;;  %v6618_v17 = vld [vmem:[#allocation6 + $0xac] ss:$16 sps:$4 sm:$0xff]  }
 0x6d1   :  { %2117 = vmatprep.subr.bf16.mxu0 %v6603_v16  ;;  %2158 = vmatprep.subr.bf16.mxu1 %v6606_v60  ;;  %8873 = vst [vmem:[#allocation118_spill] sm:$0xff] %v6615_v31  ;;  %8874 = vst [vmem:[#allocation119_spill] sm:$0xff] %v6618_v17  ;;  %v6621_v16 = vld [vmem:[#allocation6 + $0xa0] ss:$16 sps:$4 sm:$0xff]   ;;  %v6624_v60 = vld [vmem:[#allocation6 + $0xa8] ss:$16 sps:$4 sm:$0xff]  }
 0x6d2   :  { %8875 = vst [vmem:[#allocation120_spill] sm:$0xff] %v6621_v16  ;;  %8876 = vst [vmem:[#allocation121_spill] sm:$0xff] %v6624_v60 }
 0x6d4   :  { %2118 = vmatpush1.bf16.msra.mxu0 %v6609_v27  ;;  %2159 = vmatpush1.bf16.msra.mxu1 %v6612_v35  ;;  %v6627_v27 = vld [vmem:[#allocation6 + $0xc4] ss:$16 sps:$4 sm:$0xff]   ;;  %v6630_v35 = vld [vmem:[#allocation6 + $0xcc] ss:$16 sps:$4 sm:$0xff]  }
 0x6d5   :  { %2119 = vmatprep.subr.bf16.mxu0 %v6615_v31  ;;  %2160 = vmatprep.subr.bf16.mxu1 %v6618_v17  ;;  %8877 = vst [vmem:[#allocation122_spill] sm:$0xff] %v6627_v27  ;;  %8878 = vst [vmem:[#allocation123_spill] sm:$0xff] %v6630_v35  ;;  %v6633_v31 = vld [vmem:[#allocation6 + $0xc0] ss:$16 sps:$4 sm:$0xff]   ;;  %v6636_v17 = vld [vmem:[#allocation6 + $0xc8] ss:$16 sps:$4 sm:$0xff]  }
 0x6d8   :  { %2120 = vmatpush1.bf16.msra.mxu0 %v6621_v16  ;;  %2161 = vmatpush1.bf16.msra.mxu1 %v6624_v60  ;;  %v6639_v16 = vld [vmem:[#allocation6 + $0xe4] ss:$16 sps:$4 sm:$0xff]   ;;  %v6642_v60 = vld [vmem:[#allocation6 + $0xec] ss:$16 sps:$4 sm:$0xff]  }
 0x6d9   :  { %2121 = vmatprep.subr.bf16.mxu0 %v6627_v27  ;;  %2162 = vmatprep.subr.bf16.mxu1 %v6630_v35  ;;  %8879 = vst [vmem:[#allocation124_spill] sm:$0xff] %v6642_v60  ;;  %v6645_v27 = vld [vmem:[#allocation6 + $0xe0] ss:$16 sps:$4 sm:$0xff]   ;;  %v6649_v35 = vld [vmem:[#allocation8 + $0x4] ss:$16 sps:$4 sm:$0xff]  }
 0x6dc   :  { %2122 = vmatpush1.bf16.msra.mxu0 %v6633_v31  ;;  %2163 = vmatpush1.bf16.msra.mxu1 %v6636_v17 }
 0x6dd   :  { %2123 = vmatprep.subr.bf16.mxu0 %v6639_v16  ;;  %2164 = vmatprep.subr.bf16.mxu1 %v6642_v60  ;;  %v6657_v60 = vld [vmem:[#allocation8] ss:$16 sps:$4 sm:$0xff]  }
 0x6e0   :  { %2124 = vmatpush1.bf16.msra.mxu0 %v6645_v27  ;;  %2165 = vmatpush1.bf16.msra.mxu1 %v6142_v40  ;;  %v6661_v40 = vld [vmem:[#allocation8 + $0x24] ss:$16 sps:$4 sm:$0xff]  }
 0x6e1   :  { %2220 = vmatprep.subr.bf16.mxu0 %v6649_v35  ;;  %2261 = vmatprep.subr.bf16.mxu1 %v6146_v42  ;;  %v8880_v42 = vld [vmem:[#allocation19_spill] sm:$0xff] }
 0x6e3   :  { %2142 = vmatmul.mubr.bf16.vlgmr.msra.gmra.mrb[36].mxu0 %v6351_v20  ;;  %2183 = vmatmul.mubr.bf16.vlgmr.msra.gmra.mrb[36].mxu1 %v6351_v20  ;;  %v8911_v20 = vld [vmem:[#allocation50_spill] sm:$0xff] }
 0x6e4   :  { %2252 = vmatprep.mubr.bf16.mxu0 %v6555_v62  ;;  %2293 = vmatprep.mubr.bf16.mxu1 %v6555_v62 }
 0x6e5   :  { %2221 = vmatpush1.bf16.msra.mxu0 %v6657_v60  ;;  %2262 = vmatpush1.bf16.msra.mxu1 %v6152_v38  ;;  %v8881_v38 = vld [vmem:[#allocation20_spill] sm:$0xff] }
 0x6e6   :  { %2222 = vmatprep.subr.bf16.mxu0 %v6661_v40  ;;  %2263 = vmatprep.subr.bf16.mxu1 %v6156_v21  ;;  %v8882_v21 = vld [vmem:[#allocation21_spill] sm:$0xff] }
 0x6e9   :  { %2223 = vmatpush1.bf16.msra.mxu0 %v6159_v29  ;;  %2264 = vmatpush1.bf16.msra.mxu1 %v6162_v0  ;;  %v8883_v29 = vld [vmem:[#allocation22_spill] sm:$0xff]  ;;  %v8884_v0 = vld [vmem:[#allocation23_spill] sm:$0xff] }
 0x6ea   :  { %2224 = vmatprep.subr.bf16.mxu0 %v6165_v23  ;;  %2265 = vmatprep.subr.bf16.mxu1 %v6168_v18  ;;  %v8885_v23 = vld [vmem:[#allocation24_spill] sm:$0xff]  ;;  %v8886_v18 = vld [vmem:[#allocation25_spill] sm:$0xff] }
 0x6ed   :  { %2225 = vmatpush1.bf16.msra.mxu0 %v6171_v33  ;;  %2266 = vmatpush1.bf16.msra.mxu1 %v6174_v49  ;;  %v8887_v33 = vld [vmem:[#allocation26_spill] sm:$0xff]  ;;  %v8888_v49 = vld [vmem:[#allocation27_spill] sm:$0xff] }
 0x6ee   :  { %2226 = vmatprep.subr.bf16.mxu0 %v6177_v44  ;;  %2267 = vmatprep.subr.bf16.mxu1 %v6180_v45  ;;  %v8889_v44 = vld [vmem:[#allocation28_spill] sm:$0xff]  ;;  %v8890_v45 = vld [vmem:[#allocation29_spill] sm:$0xff] }
 0x6f1   :  { %2227 = vmatpush1.bf16.msra.mxu0 %v6183_v46  ;;  %2268 = vmatpush1.bf16.msra.mxu1 %v6186_v47  ;;  %v8891_v46 = vld [vmem:[#allocation30_spill] sm:$0xff]  ;;  %v8892_v47 = vld [vmem:[#allocation31_spill] sm:$0xff] }
 0x6f2   :  { %2228 = vmatprep.subr.bf16.mxu0 %v6189_v50  ;;  %2269 = vmatprep.subr.bf16.mxu1 %v6192_v51  ;;  %v8893_v50 = vld [vmem:[#allocation32_spill] sm:$0xff]  ;;  %v8894_v51 = vld [vmem:[#allocation33_spill] sm:$0xff] }
 0x6f5   :  { %2229 = vmatpush1.bf16.msra.mxu0 %v6195_v52  ;;  %2270 = vmatpush1.bf16.msra.mxu1 %v6198_v53  ;;  %v8895_v52 = vld [vmem:[#allocation34_spill] sm:$0xff]  ;;  %v8896_v53 = vld [vmem:[#allocation35_spill] sm:$0xff] }
 0x6f6   :  { %2230 = vmatprep.subr.bf16.mxu0 %v6201_v54  ;;  %2271 = vmatprep.subr.bf16.mxu1 %v6204_v55  ;;  %v8897_v54 = vld [vmem:[#allocation36_spill] sm:$0xff]  ;;  %v8898_v55 = vld [vmem:[#allocation37_spill] sm:$0xff] }
 0x6f9   :  { %2231 = vmatpush1.bf16.msra.mxu0 %v6207_v56  ;;  %2272 = vmatpush1.bf16.msra.mxu1 %v6210_v59  ;;  %v8899_v56 = vld [vmem:[#allocation38_spill] sm:$0xff]  ;;  %v8900_v59 = vld [vmem:[#allocation39_spill] sm:$0xff] }
 0x6fa   :  { %2232 = vmatprep.subr.bf16.mxu0 %v6213_v61  ;;  %2273 = vmatprep.subr.bf16.mxu1 %v6216_v63  ;;  %v8901_v61 = vld [vmem:[#allocation40_spill] sm:$0xff]  ;;  %v8902_v63 = vld [vmem:[#allocation41_spill] sm:$0xff] }
 0x6fd   :  { %2233 = vmatpush1.bf16.msra.mxu0 %v6219_v2  ;;  %2274 = vmatpush1.bf16.msra.mxu1 %v6222_v3  ;;  %v8903_v2 = vld [vmem:[#allocation42_spill] sm:$0xff]  ;;  %v8904_v3 = vld [vmem:[#allocation43_spill] sm:$0xff] }
 0x6fe   :  { %2234 = vmatprep.subr.bf16.mxu0 %v6225_v4  ;;  %2275 = vmatprep.subr.bf16.mxu1 %v6228_v5  ;;  %v8905_v4 = vld [vmem:[#allocation44_spill] sm:$0xff]  ;;  %v8906_v5 = vld [vmem:[#allocation45_spill] sm:$0xff] }
 0x701   :  { %2235 = vmatpush1.bf16.msra.mxu0 %v6231_v6  ;;  %2276 = vmatpush1.bf16.msra.mxu1 %v6234_v7  ;;  %v8907_v6 = vld [vmem:[#allocation46_spill] sm:$0xff]  ;;  %v8908_v7 = vld [vmem:[#allocation47_spill] sm:$0xff] }
 0x702   :  { %2236 = vmatprep.subr.bf16.mxu0 %v6237_v8  ;;  %2277 = vmatprep.subr.bf16.mxu1 %v6240_v10  ;;  %v8909_v8 = vld [vmem:[#allocation48_spill] sm:$0xff]  ;;  %v8910_v10 = vld [vmem:[#allocation49_spill] sm:$0xff] }
 0x705   :  { %2237 = vmatpush1.bf16.msra.mxu0 %v8880_v42  ;;  %2278 = vmatpush1.bf16.msra.mxu1 %v8881_v38  ;;  %v8912_v38 = vld [vmem:[#allocation16_spill] sm:$0xff] }
 0x706   :  { %2238 = vmatprep.subr.bf16.mxu0 %v8882_v21  ;;  %2279 = vmatprep.subr.bf16.mxu1 %v8883_v29 }
 0x709   :  { %2239 = vmatpush1.bf16.msra.mxu0 %v8884_v0  ;;  %2280 = vmatpush1.bf16.msra.mxu1 %v8885_v23  ;;  %v8913_v23 = vld [vmem:[#allocation17_spill] sm:$0xff] }
 0x70a   :  { %2240 = vmatprep.subr.bf16.mxu0 %v8886_v18  ;;  %2281 = vmatprep.subr.bf16.mxu1 %v8887_v33 }
 0x70d   :  { %2241 = vmatpush1.bf16.msra.mxu0 %v8888_v49  ;;  %2282 = vmatpush1.bf16.msra.mxu1 %v8889_v44 }
 0x70e   :  { %2242 = vmatprep.subr.bf16.mxu0 %v8890_v45  ;;  %2283 = vmatprep.subr.bf16.mxu1 %v8891_v46 }
 0x711   :  { %2243 = vmatpush1.bf16.msra.mxu0 %v8892_v47  ;;  %2284 = vmatpush1.bf16.msra.mxu1 %v8893_v50  ;;  %v8914_v50 = vld [vmem:[#allocation18_spill] sm:$0xff] }
 0x712   :  { %2244 = vmatprep.subr.bf16.mxu0 %v8894_v51  ;;  %2285 = vmatprep.subr.bf16.mxu1 %v8895_v52 }
 0x715   :  { %2245 = vmatpush1.bf16.msra.mxu0 %v8896_v53  ;;  %2286 = vmatpush1.bf16.msra.mxu1 %v8897_v54 }
 0x716   :  { %2246 = vmatprep.subr.bf16.mxu0 %v8898_v55  ;;  %2287 = vmatprep.subr.bf16.mxu1 %v8899_v56  ;;  %v2103_v56 = vld [vmem:[#allocation3 + $0x30] sm:$0xff] }
 0x719   :  { %2247 = vmatpush1.bf16.msra.mxu0 %v8900_v59  ;;  %2288 = vmatpush1.bf16.msra.mxu1 %v8901_v61 }
 0x71a   :  { %2248 = vmatprep.subr.bf16.mxu0 %v8902_v63  ;;  %2289 = vmatprep.subr.bf16.mxu1 %v8903_v2  ;;  %v2105_v2 = vunpack.c.l.bf16 %v2103_v56 }
 0x71d   :  { %2249 = vmatpush1.bf16.msra.mxu0 %v8904_v3  ;;  %2290 = vmatpush1.bf16.msra.mxu1 %v8905_v4  ;;  %v2106_v4 = vunpack.c.h.bf16 %v2103_v56 }
 0x71e   :  { %2250 = vmatprep.subr.bf16.mxu0 %v8906_v5  ;;  %2291 = vmatprep.subr.bf16.mxu1 %v8907_v6 }
 0x721   :  { %2251 = vmatpush1.bf16.msra.mxu0 %v8908_v7  ;;  %2292 = vmatpush1.bf16.msra.mxu1 %v8909_v8 }
 0x722   :  { %2328 = vmatprep.subr.bf16.mxu0 %v8910_v10  ;;  %2369 = vmatprep.subr.bf16.mxu1 %v8911_v20 }
 0x796   :  { %v2030_v62 = vpop.f32.mrb[32].mxu0  ;;  %v2071_v42 = vpop.f32.mrb[32].mxu1 }
 0x797   :  { %v2031_v21 = vadd.f32 %v2030_v62, %v8912_v38  ;;  %v2032_v29 = vpop.f32.mrb[33].mxu0  ;;  %v2073_v0 = vpop.f32.mrb[33].mxu1 }
 0x798   :  { %v2033_v18 = vadd.f32 %v2032_v29, %v8913_v23  ;;  %v2034_v33 = vpop.f32.mrb[34].mxu0  ;;  %v2075_v49 = vpop.f32.mrb[34].mxu1  ;;  %v2074_v51 = vadd.f32 %v2073_v0, %v8914_v50 }
 0x799   :  { %v3973_v44 = vmul.f32 -1.442695, %v2031_v21  ;;  %v2035_v45 = vpop.f32.mrb[35].mxu0  ;;  %v2076_v46 = vpop.f32.mrb[35].mxu1  ;;  %v2104_v21 = vld [vmem:[#allocation3 + $0x38] sm:$0xff] }
 0x79a   :  { %v3974_v47 = vmul.f32 -1.442695, %v2033_v18  ;;  %v2107_v46 = vunpack.c.l.bf16 %v2104_v21 }
 0x79b   :  { %4398 = vpow2.f32 %v3973_v44 }
 0x79c   :  { %4400 = vpow2.f32 %v3974_v47  ;;  %v2072_v47 = vadd.f32 %v2071_v42, %v6027_v57 }
 0x79d   :  { %4402 = vtanh.f32 %v2074_v51 }
 0x7a5   :  { %v4399_v52 = vpop.eup %4398 }
 0x7a6   :  { %v2087_v53 = vadd.f32 1.0, %v4399_v52  ;;  %v4401_v54 = vpop.eup %4400  ;;  %v3975_v52 = vmul.f32 -1.442695, %v2072_v47  ;;  %v8918_v47 = vld [vmem:[#allocation54_spill] sm:$0xff] }
 0x7a7   :  { %v2088_v55 = vadd.f32 1.0, %v4401_v54  ;;  %v4403_v59 = vpop.eup %4402 }
 0x7a8   :  { %4404 = vrcp.f32 %v2087_v53 }
 0x7a9   :  { %4406 = vrcp.f32 %v2088_v55 }
 0x7b2   :  { %v4405_v61 = vpop.eup %4404 }
 0x7b3   :  { %v2098_v63 = vmul.f32 %v4405_v61, %v4403_v59  ;;  %v4407_v3 = vpop.eup %4406 }
 0x7b4   :  { %v2097_v5 = vmul.f32 %v4407_v3, %v6343_v1  ;;  %v2108_v1 = vunpack.c.h.bf16 %v2104_v21 }
 0x7b6   :  { %v2143_v6 = vpop.f32.mrb[36].mxu0  ;;  %v2184_v7 = vpop.f32.mrb[36].mxu1  ;;  %v6729_v8 = vadd.f32 %v2098_v63, %v2097_v5 }
 0x7b7   :  { %v2191_v10 = vadd.f32 %v2143_v6, %v2105_v2  ;;  %v2145_v20 = vpop.f32.mrb[37].mxu0  ;;  %v2186_v62 = vpop.f32.mrb[37].mxu1  ;;  %v2193_v51 = vadd.f32 %v2184_v7, %v2107_v46  ;;  %v8917_v46 = vld [vmem:[#allocation53_spill] sm:$0xff] }
 0x7b8   :  { %v2192_v29 = vadd.f32 %v2145_v20, %v2106_v4  ;;  %v2147_v0 = vpop.f32.mrb[38].mxu0  ;;  %v2188_v18 = vpop.f32.mrb[38].mxu1  ;;  %v2194_v53 = vadd.f32 %v2186_v62, %v2108_v1  ;;  %v8919_v1 = vld [vmem:[#allocation55_spill] sm:$0xff] }
 0x7b9   :  { %v3976_v33 = vmul.f32 -1.442695, %v2191_v10  ;;  %v2148_v49 = vpop.f32.mrb[39].mxu0  ;;  %v2189_v44 = vpop.f32.mrb[39].mxu1  ;;  %v3978_v54 = vmul.f32 -1.442695, %v2193_v51 }
 0x7ba   :  { %v3977_v45 = vmul.f32 -1.442695, %v2192_v29  ;;  %v8920_v51 = vld [vmem:[#allocation56_spill] sm:$0xff] }
 0x7bb   :  { %4408 = vpow2.f32 %v3976_v33 }
 0x7bc   :  { %4410 = vpow2.f32 %v3977_v45  ;;  %v8916_v45 = vld [vmem:[#allocation52_spill] sm:$0xff] }
 0x7bd   :  { %4412 = vpow2.f32 %v3975_v52  ;;  %v8926_v52 = vld [vmem:[#allocation62_spill] sm:$0xff] }
 0x7be   :  { %4414 = vtanh.f32 %v2194_v53  ;;  %v8927_v53 = vld [vmem:[#allocation63_spill] sm:$0xff] }
 0x7bf   :  { %4416 = vpow2.f32 %v3978_v54  ;;  %v8928_v54 = vld [vmem:[#allocation64_spill] sm:$0xff] }
 0x7c5   :  { %v4409_v55 = vpop.eup %4408 }
 0x7c6   :  { %v2204_v56 = vadd.f32 1.0, %v4409_v55  ;;  %v4411_v59 = vpop.eup %4410  ;;  %v8929_v55 = vld [vmem:[#allocation65_spill] sm:$0xff] }
 0x7c7   :  { %v2205_v61 = vadd.f32 1.0, %v4411_v59  ;;  %v4413_v63 = vpop.eup %4412  ;;  %v8931_v59 = vld [vmem:[#allocation67_spill] sm:$0xff] }
 0x7c8   :  { %4418 = vrcp.f32 %v2204_v56  ;;  %v4415_v2 = vpop.eup %4414  ;;  %v2089_v42 = vadd.f32 1.0, %v4413_v63  ;;  %v8930_v56 = vld [vmem:[#allocation66_spill] sm:$0xff]  ;;  %v8933_v63 = vld [vmem:[#allocation69_spill] sm:$0xff] }
 0x7c9   :  { %4420 = vrcp.f32 %v2205_v61  ;;  %v4417_v3 = vpop.eup %4416  ;;  %v8932_v61 = vld [vmem:[#allocation68_spill] sm:$0xff] }
 0x7ca   :  { %v2206_v7 = vadd.f32 1.0, %v4417_v3  ;;  %4422 = vtanh.f32 %v6729_v8  ;;  %v8935_v3 = vld [vmem:[#allocation71_spill] sm:$0xff] }
 0x7cb   :  { %4424 = vrcp.f32 %v2089_v42  ;;  %v8937_v42 = vld [vmem:[#allocation73_spill] sm:$0xff] }
 0x7cc   :  { %4426 = vrcp.f32 %v2206_v7  ;;  %v8940_v7 = vld [vmem:[#allocation76_spill] sm:$0xff] }
 0x7d2   :  { %v4419_v4 = vpop.eup %4418 }
 0x7d3   :  { %v2215_v5 = vmul.f32 %v4419_v4, %v4415_v2  ;;  %v4421_v6 = vpop.eup %4420  ;;  %v8934_v2 = vld [vmem:[#allocation70_spill] sm:$0xff]  ;;  %v8936_v4 = vld [vmem:[#allocation72_spill] sm:$0xff] }
 0x7d4   :  { %v2214_v10 = vmul.f32 %v4421_v6, %v6348_v30  ;;  %v4423_v62 = vpop.eup %4422  ;;  %v8915_v30 = vld [vmem:[#allocation51_spill] sm:$0xff] }
 0x7d5   :  { %v4425_v21 = vpop.eup %4424  ;;  %v8939_v6 = vld [vmem:[#allocation75_spill] sm:$0xff] }
 0x7d6   :  { %v6734_v20 = vadd.f32 %v2215_v5, %v2214_v10  ;;  %v4427_v29 = vpop.eup %4426  ;;  %v2101_v18 = vmul.f32 %v4425_v21, %v4423_v62  ;;  %v8938_v5 = vld [vmem:[#allocation74_spill] sm:$0xff]  ;;  %v8941_v10 = vld [vmem:[#allocation77_spill] sm:$0xff]  ;;  %v8943_v21 = vld [vmem:[#allocation79_spill] sm:$0xff] }
 0x7d7   :  { %v8942_v62 = vld [vmem:[#allocation78_spill] sm:$0xff] }
 0x7d8   :  { %4428 = vtanh.f32 %v6734_v20  ;;  %v2327_v44 = vpack.c.bf16 %v2101_v18, %v2101_v18  ;;  %v8946_v18 = vld [vmem:[#allocation82_spill] sm:$0xff] }
 0x7e2   :  { %v4429_v0 = vpop.eup %4428 }
 0x7e3   :  { %v2218_v33 = vmul.f32 %v4429_v0, %v4427_v29  ;;  %v8944_v29 = vld [vmem:[#allocation80_spill] sm:$0xff]  ;;  %v8945_v0 = vld [vmem:[#allocation81_spill] sm:$0xff] }
 0x7e5   :  { %v6737_v49 = vpack.c.bf16 %v2218_v33, %v2218_v33  ;;  %v8947_v33 = vld [vmem:[#allocation83_spill] sm:$0xff] }
 0x7e7   :  { %2253 = vmatmul.mubr.bf16.vlgmr.msra.gmra.mrb[40].mxu0 %v6737_v49  ;;  %2294 = vmatmul.mubr.bf16.vlgmr.msra.gmra.mrb[40].mxu1 %v6737_v49 }
 0x7e8   :  { %2360 = vmatprep.mubr.bf16.mxu0 %v2327_v44  ;;  %2401 = vmatprep.mubr.bf16.mxu1 %v2327_v44  ;;  %v8948_v44 = vld [vmem:[#allocation84_spill] sm:$0xff] }
 0x7e9   :  { %2329 = vmatpush1.bf16.msra.mxu0 %v6355_v41  ;;  %2370 = vmatpush1.bf16.msra.mxu1 %v6358_v25  ;;  %v8921_v41 = vld [vmem:[#allocation57_spill] sm:$0xff]  ;;  %v8922_v25 = vld [vmem:[#allocation58_spill] sm:$0xff] }
 0x7ea   :  { %2330 = vmatprep.subr.bf16.mxu0 %v6361_v14  ;;  %2371 = vmatprep.subr.bf16.mxu1 %v6364_v12  ;;  %v8923_v14 = vld [vmem:[#allocation59_spill] sm:$0xff]  ;;  %v8924_v12 = vld [vmem:[#allocation60_spill] sm:$0xff] }
 0x7ed   :  { %2331 = vmatpush1.bf16.msra.mxu0 %v6367_v36  ;;  %2372 = vmatpush1.bf16.msra.mxu1 %v8915_v30  ;;  %v8925_v36 = vld [vmem:[#allocation61_spill] sm:$0xff] }
 0x7ee   :  { %2332 = vmatprep.subr.bf16.mxu0 %v8916_v45  ;;  %2373 = vmatprep.subr.bf16.mxu1 %v8917_v46  ;;  %v8949_v30 = vld [vmem:[#allocation85_spill] sm:$0xff]  ;;  %v8950_v45 = vld [vmem:[#allocation86_spill] sm:$0xff]  ;;  %v8951_v46 = vld [vmem:[#allocation87_spill] sm:$0xff] }
 0x7f1   :  { %2333 = vmatpush1.bf16.msra.mxu0 %v8918_v47  ;;  %2374 = vmatpush1.bf16.msra.mxu1 %v8919_v1  ;;  %v8952_v47 = vld [vmem:[#allocation88_spill] sm:$0xff]  ;;  %v8953_v1 = vld [vmem:[#allocation89_spill] sm:$0xff] }
 0x7f2   :  { %2334 = vmatprep.subr.bf16.mxu0 %v8920_v51  ;;  %2375 = vmatprep.subr.bf16.mxu1 %v8921_v41  ;;  %v8954_v51 = vld [vmem:[#allocation90_spill] sm:$0xff]  ;;  %v8955_v41 = vld [vmem:[#allocation91_spill] sm:$0xff] }
 0x7f5   :  { %2335 = vmatpush1.bf16.msra.mxu0 %v8922_v25  ;;  %2376 = vmatpush1.bf16.msra.mxu1 %v8923_v14  ;;  %v8956_v25 = vld [vmem:[#allocation92_spill] sm:$0xff]  ;;  %v8957_v14 = vld [vmem:[#allocation93_spill] sm:$0xff] }
 0x7f6   :  { %2336 = vmatprep.subr.bf16.mxu0 %v8924_v12  ;;  %2377 = vmatprep.subr.bf16.mxu1 %v8925_v36  ;;  %v8958_v12 = vld [vmem:[#allocation94_spill] sm:$0xff]  ;;  %v8959_v36 = vld [vmem:[#allocation95_spill] sm:$0xff] }
 0x7f9   :  { %2337 = vmatpush1.bf16.msra.mxu0 %v8926_v52  ;;  %2378 = vmatpush1.bf16.msra.mxu1 %v8927_v53  ;;  %v8960_v52 = vld [vmem:[#allocation96_spill] sm:$0xff]  ;;  %v8961_v53 = vld [vmem:[#allocation97_spill] sm:$0xff] }
 0x7fa   :  { %2338 = vmatprep.subr.bf16.mxu0 %v8928_v54  ;;  %2379 = vmatprep.subr.bf16.mxu1 %v8929_v55  ;;  %v8962_v54 = vld [vmem:[#allocation98_spill] sm:$0xff]  ;;  %v8963_v55 = vld [vmem:[#allocation99_spill] sm:$0xff] }
 0x7fd   :  { %2339 = vmatpush1.bf16.msra.mxu0 %v8930_v56  ;;  %2380 = vmatpush1.bf16.msra.mxu1 %v8931_v59  ;;  %v8964_v56 = vld [vmem:[#allocation100_spill] sm:$0xff]  ;;  %v8965_v59 = vld [vmem:[#allocation101_spill] sm:$0xff] }
 0x7fe   :  { %2340 = vmatprep.subr.bf16.mxu0 %v8932_v61  ;;  %2381 = vmatprep.subr.bf16.mxu1 %v8933_v63  ;;  %v8966_v61 = vld [vmem:[#allocation102_spill] sm:$0xff]  ;;  %v8967_v63 = vld [vmem:[#allocation103_spill] sm:$0xff] }
 0x801   :  { %2341 = vmatpush1.bf16.msra.mxu0 %v8934_v2  ;;  %2382 = vmatpush1.bf16.msra.mxu1 %v8935_v3  ;;  %v8968_v2 = vld [vmem:[#allocation104_spill] sm:$0xff]  ;;  %v8969_v3 = vld [vmem:[#allocation105_spill] sm:$0xff] }
 0x802   :  { %2342 = vmatprep.subr.bf16.mxu0 %v8936_v4  ;;  %2383 = vmatprep.subr.bf16.mxu1 %v8937_v42  ;;  %v8970_v4 = vld [vmem:[#allocation106_spill] sm:$0xff]  ;;  %v8971_v42 = vld [vmem:[#allocation107_spill] sm:$0xff] }
 0x805   :  { %2343 = vmatpush1.bf16.msra.mxu0 %v8938_v5  ;;  %2384 = vmatpush1.bf16.msra.mxu1 %v8939_v6  ;;  %v8972_v5 = vld [vmem:[#allocation108_spill] sm:$0xff]  ;;  %v8973_v6 = vld [vmem:[#allocation109_spill] sm:$0xff] }
 0x806   :  { %2344 = vmatprep.subr.bf16.mxu0 %v8940_v7  ;;  %2385 = vmatprep.subr.bf16.mxu1 %v8941_v10 }
 0x809   :  { %2345 = vmatpush1.bf16.msra.mxu0 %v8942_v62  ;;  %2386 = vmatpush1.bf16.msra.mxu1 %v8943_v21 }
 0x80a   :  { %2346 = vmatprep.subr.bf16.mxu0 %v8944_v29  ;;  %2387 = vmatprep.subr.bf16.mxu1 %v8945_v0 }
 0x80d   :  { %2347 = vmatpush1.bf16.msra.mxu0 %v8946_v18  ;;  %2388 = vmatpush1.bf16.msra.mxu1 %v8947_v33 }
 0x80e   :  { %2348 = vmatprep.subr.bf16.mxu0 %v8948_v44  ;;  %2389 = vmatprep.subr.bf16.mxu1 %v8949_v30 }
 0x811   :  { %2349 = vmatpush1.bf16.msra.mxu0 %v8950_v45  ;;  %2390 = vmatpush1.bf16.msra.mxu1 %v8951_v46 }
 0x812   :  { %2350 = vmatprep.subr.bf16.mxu0 %v8952_v47  ;;  %2391 = vmatprep.subr.bf16.mxu1 %v8953_v1 }
 0x815   :  { %2351 = vmatpush1.bf16.msra.mxu0 %v8954_v51  ;;  %2392 = vmatpush1.bf16.msra.mxu1 %v8955_v41 }
 0x816   :  { %2352 = vmatprep.subr.bf16.mxu0 %v8956_v25  ;;  %2393 = vmatprep.subr.bf16.mxu1 %v8957_v14 }
 0x819   :  { %2353 = vmatpush1.bf16.msra.mxu0 %v8958_v12  ;;  %2394 = vmatpush1.bf16.msra.mxu1 %v8959_v36 }
 0x81a   :  { %2354 = vmatprep.subr.bf16.mxu0 %v8960_v52  ;;  %2395 = vmatprep.subr.bf16.mxu1 %v8961_v53 }
 0x81d   :  { %2355 = vmatpush1.bf16.msra.mxu0 %v8962_v54  ;;  %2396 = vmatpush1.bf16.msra.mxu1 %v8963_v55 }
 0x81e   :  { %2356 = vmatprep.subr.bf16.mxu0 %v8964_v56  ;;  %2397 = vmatprep.subr.bf16.mxu1 %v8965_v59 }
 0x821   :  { %2357 = vmatpush1.bf16.msra.mxu0 %v8966_v61  ;;  %2398 = vmatpush1.bf16.msra.mxu1 %v8967_v63 }
 0x822   :  { %2358 = vmatprep.subr.bf16.mxu0 %v8968_v2  ;;  %2399 = vmatprep.subr.bf16.mxu1 %v8969_v3 }
 0x825   :  { %2359 = vmatpush1.bf16.msra.mxu0 %v8970_v4  ;;  %2400 = vmatpush1.bf16.msra.mxu1 %v8971_v42  ;;  %v8985_v42 = vld [vmem:[#allocation121_spill] sm:$0xff] }
 0x826   :  { %2441 = vmatprep.subr.bf16.mxu0 %v8972_v5  ;;  %2482 = vmatprep.subr.bf16.mxu1 %v8973_v6  ;;  %v8986_v5 = vld [vmem:[#allocation122_spill] sm:$0xff]  ;;  %v8987_v6 = vld [vmem:[#allocation123_spill] sm:$0xff] }
 0x8ba   :  { %v2254_v7 = vpop.f32.mrb[40].mxu0  ;;  %v2295_v10 = vpop.f32.mrb[40].mxu1 }
 0x8bb   :  { %v2255_v62 = vadd.f32 %v2254_v7, %v8755_v37  ;;  %v2256_v21 = vpop.f32.mrb[41].mxu0  ;;  %v2297_v29 = vpop.f32.mrb[41].mxu1  ;;  %v2296_v47 = vadd.f32 %v2295_v10, %v5824_v22  ;;  %v8988_v7 = vld [vmem:[#allocation124_spill] sm:$0xff] }
 0x8bc   :  { %v2257_v0 = vadd.f32 %v2256_v21, %v8756_v43  ;;  %v2258_v18 = vpop.f32.mrb[42].mxu0  ;;  %v2299_v33 = vpop.f32.mrb[42].mxu1  ;;  %v2298_v1 = vadd.f32 %v2297_v29, %v5828_v28  ;;  %v6844_v10 = vld [vmem:[#allocation6 + $0xe8] ss:$16 sps:$4 sm:$0xff]   ;;  %v6879_v21 = vld [vmem:[#allocation8 + $0x64] ss:$16 sps:$4 sm:$0xff]  }
 0x8bd   :  { %v3979_v44 = vmul.f32 -1.442695, %v2255_v62  ;;  %v2259_v30 = vpop.f32.mrb[43].mxu0  ;;  %v2300_v45 = vpop.f32.mrb[43].mxu1  ;;  %v3981_v51 = vmul.f32 -1.442695, %v2296_v47 }
 0x8be   :  { %v3980_v46 = vmul.f32 -1.442695, %v2257_v0  ;;  %v6848_v62 = vld [vmem:[#allocation8 + $0xc] ss:$16 sps:$4 sm:$0xff]   ;;  %v6885_v0 = vld [vmem:[#allocation8 + $0x60] ss:$16 sps:$4 sm:$0xff]  }
 0x8bf   :  { %4430 = vpow2.f32 %v3979_v44  ;;  %v6882_v29 = vld [vmem:[#allocation8 + $0x6c] ss:$16 sps:$4 sm:$0xff]   ;;  %v6888_v18 = vld [vmem:[#allocation8 + $0x68] ss:$16 sps:$4 sm:$0xff]   ;;  %v6891_v33 = vld [vmem:[#allocation8 + $0x84] ss:$16 sps:$4 sm:$0xff]  }
 0x8c0   :  { %4432 = vpow2.f32 %v3980_v46  ;;  %v6894_v44 = vld [vmem:[#allocation8 + $0x8c] ss:$16 sps:$4 sm:$0xff]   ;;  %v6897_v30 = vld [vmem:[#allocation8 + $0x80] ss:$16 sps:$4 sm:$0xff]   ;;  %v6900_v45 = vld [vmem:[#allocation8 + $0x88] ss:$16 sps:$4 sm:$0xff]  }
 0x8c1   :  { %4434 = vtanh.f32 %v2298_v1  ;;  %v6903_v46 = vld [vmem:[#allocation8 + $0xa4] ss:$16 sps:$4 sm:$0xff]   ;;  %v6906_v47 = vld [vmem:[#allocation8 + $0xac] ss:$16 sps:$4 sm:$0xff]   ;;  %v6909_v1 = vld [vmem:[#allocation8 + $0xa0] ss:$16 sps:$4 sm:$0xff]  }
 0x8c2   :  { %4436 = vpow2.f32 %v3981_v51  ;;  %v6912_v51 = vld [vmem:[#allocation8 + $0xa8] ss:$16 sps:$4 sm:$0xff]  }
 0x8c9   :  { %v4431_v41 = vpop.eup %4430 }
 0x8ca   :  { %v2311_v25 = vadd.f32 1.0, %v4431_v41  ;;  %v4433_v14 = vpop.eup %4432  ;;  %v6915_v41 = vld [vmem:[#allocation8 + $0xc4] ss:$16 sps:$4 sm:$0xff]  }
 0x8cb   :  { %v2312_v12 = vadd.f32 1.0, %v4433_v14  ;;  %v4435_v36 = vpop.eup %4434  ;;  %v6921_v14 = vld [vmem:[#allocation8 + $0xc0] ss:$16 sps:$4 sm:$0xff]  }
 0x8cc   :  { %4438 = vrcp.f32 %v2311_v25  ;;  %v4437_v52 = vpop.eup %4436  ;;  %v6918_v25 = vld [vmem:[#allocation8 + $0xcc] ss:$16 sps:$4 sm:$0xff]  }
 0x8cd   :  { %4440 = vrcp.f32 %v2312_v12  ;;  %v2313_v56 = vadd.f32 1.0, %v4437_v52  ;;  %v6924_v12 = vld [vmem:[#allocation8 + $0xc8] ss:$16 sps:$4 sm:$0xff]   ;;  %v6930_v52 = vld [vmem:[#allocation8 + $0xec] ss:$16 sps:$4 sm:$0xff]  }
 0x8cf   :  { %4442 = vrcp.f32 %v2313_v56  ;;  %v6942_v56 = vld [vmem:[#allocation8 + $0x10c] ss:$16 sps:$4 sm:$0xff]  }
 0x8d6   :  { %v4439_v53 = vpop.eup %4438 }
 0x8d7   :  { %v2322_v54 = vmul.f32 %v4439_v53, %v4435_v36  ;;  %v4441_v55 = vpop.eup %4440  ;;  %v6927_v36 = vld [vmem:[#allocation8 + $0xe4] ss:$16 sps:$4 sm:$0xff]   ;;  %v6933_v53 = vld [vmem:[#allocation8 + $0xe0] ss:$16 sps:$4 sm:$0xff]  }
 0x8d8   :  { %v2321_v59 = vmul.f32 %v4441_v55, %v6552_v11  ;;  %v8974_v11 = vld [vmem:[#allocation110_spill] sm:$0xff]  ;;  %v6939_v55 = vld [vmem:[#allocation8 + $0x104] ss:$16 sps:$4 sm:$0xff]  }
 0x8d9   :  { %v4443_v63 = vpop.eup %4442 }
 0x8da   :  { %v6810_v61 = vadd.f32 %v2322_v54, %v2321_v59  ;;  %v6936_v54 = vld [vmem:[#allocation8 + $0xe8] ss:$16 sps:$4 sm:$0xff]   ;;  %v6945_v59 = vld [vmem:[#allocation8 + $0x100] ss:$16 sps:$4 sm:$0xff]  }
 0x8db   :  { %8989 = vst [vmem:[#allocation19_spill] sm:$0xff] %v6945_v59 }
 0x8dc   :  { %4444 = vtanh.f32 %v6810_v61 }
 0x8e6   :  { %v4445_v2 = vpop.eup %4444 }
 0x8e7   :  { %v2325_v3 = vmul.f32 %v4445_v2, %v4443_v63  ;;  %v6948_v63 = vld [vmem:[#allocation8 + $0x108] ss:$16 sps:$4 sm:$0xff]   ;;  %v6951_v2 = vld [vmem:[#allocation8 + $0x124] ss:$16 sps:$4 sm:$0xff]  }
 0x8e8   :  { %8990 = vst [vmem:[#allocation20_spill] sm:$0xff] %v6948_v63  ;;  %8991 = vst [vmem:[#allocation21_spill] sm:$0xff] %v6951_v2 }
 0x8e9   :  { %v2326_v4 = vpack.c.bf16 %v2325_v3, %v2325_v3  ;;  %v6954_v3 = vld [vmem:[#allocation8 + $0x12c] ss:$16 sps:$4 sm:$0xff]  }
 0x8ea   :  { %8992 = vst [vmem:[#allocation22_spill] sm:$0xff] %v6954_v3 }
 0x8eb   :  { %2361 = vmatmul.mubr.bf16.vlgmr.msra.gmra.mrb[44].mxu0 %v2326_v4  ;;  %2402 = vmatmul.mubr.bf16.vlgmr.msra.gmra.mrb[44].mxu1 %v2326_v4 }
 0x8ec   :  { %2442 = vmatpush1.bf16.msra.mxu0 %v6559_v58  ;;  %2483 = vmatpush1.bf16.msra.mxu1 %v6562_v48  ;;  %v8975_v58 = vld [vmem:[#allocation111_spill] sm:$0xff]  ;;  %v8976_v48 = vld [vmem:[#allocation112_spill] sm:$0xff] }
 0x8ed   :  { %2443 = vmatprep.subr.bf16.mxu0 %v6565_v9  ;;  %2484 = vmatprep.subr.bf16.mxu1 %v6568_v26  ;;  %v8977_v9 = vld [vmem:[#allocation113_spill] sm:$0xff]  ;;  %v8978_v26 = vld [vmem:[#allocation114_spill] sm:$0xff] }
 0x8ee   :  { %2473 = vmatprep.mubr.bf16.mxu0 %v8644_v32  ;;  %2514 = vmatprep.mubr.bf16.mxu1 %v8644_v32 }
 0x8f0   :  { %2444 = vmatpush1.bf16.msra.mxu0 %v6573_v15  ;;  %2485 = vmatpush1.bf16.msra.mxu1 %v6576_v13  ;;  %v8979_v15 = vld [vmem:[#allocation115_spill] sm:$0xff]  ;;  %v8980_v13 = vld [vmem:[#allocation116_spill] sm:$0xff] }
 0x8f1   :  { %2445 = vmatprep.subr.bf16.mxu0 %v6579_v39  ;;  %2486 = vmatprep.subr.bf16.mxu1 %v6582_v34  ;;  %v8981_v39 = vld [vmem:[#allocation117_spill] sm:$0xff]  ;;  %v8982_v34 = vld [vmem:[#allocation118_spill] sm:$0xff] }
 0x8f4   :  { %2446 = vmatpush1.bf16.msra.mxu0 %v6585_v19  ;;  %2487 = vmatpush1.bf16.msra.mxu1 %v6588_v24  ;;  %v8983_v19 = vld [vmem:[#allocation119_spill] sm:$0xff]  ;;  %v8984_v24 = vld [vmem:[#allocation120_spill] sm:$0xff] }
 0x8f5   :  { %2447 = vmatprep.subr.bf16.mxu0 %v8974_v11  ;;  %2488 = vmatprep.subr.bf16.mxu1 %v8975_v58  ;;  %v6960_v11 = vld [vmem:[#allocation8 + $0x128] ss:$16 sps:$4 sm:$0xff]   ;;  %v6963_v58 = vld [vmem:[#allocation8 + $0x144] ss:$16 sps:$4 sm:$0xff]  }
 0x8f6   :  { %8994 = vst [vmem:[#allocation24_spill] sm:$0xff] %v6960_v11  ;;  %8995 = vst [vmem:[#allocation25_spill] sm:$0xff] %v6963_v58 }
 0x8f8   :  { %2448 = vmatpush1.bf16.msra.mxu0 %v8976_v48  ;;  %2489 = vmatpush1.bf16.msra.mxu1 %v8977_v9  ;;  %v6966_v48 = vld [vmem:[#allocation8 + $0x14c] ss:$16 sps:$4 sm:$0xff]   ;;  %v6969_v9 = vld [vmem:[#allocation8 + $0x140] ss:$16 sps:$4 sm:$0xff]  }
 0x8f9   :  { %2449 = vmatprep.subr.bf16.mxu0 %v8978_v26  ;;  %2490 = vmatprep.subr.bf16.mxu1 %v8979_v15  ;;  %8996 = vst [vmem:[#allocation26_spill] sm:$0xff] %v6966_v48  ;;  %8997 = vst [vmem:[#allocation27_spill] sm:$0xff] %v6969_v9  ;;  %v6972_v26 = vld [vmem:[#allocation8 + $0x148] ss:$16 sps:$4 sm:$0xff]   ;;  %v6975_v15 = vld [vmem:[#allocation8 + $0x164] ss:$16 sps:$4 sm:$0xff]  }
 0x8fa   :  { %8998 = vst [vmem:[#allocation28_spill] sm:$0xff] %v6972_v26  ;;  %8999 = vst [vmem:[#allocation29_spill] sm:$0xff] %v6975_v15 }
 0x8fc   :  { %2450 = vmatpush1.bf16.msra.mxu0 %v8980_v13  ;;  %2491 = vmatpush1.bf16.msra.mxu1 %v8981_v39  ;;  %v6978_v13 = vld [vmem:[#allocation8 + $0x16c] ss:$16 sps:$4 sm:$0xff]   ;;  %v6981_v39 = vld [vmem:[#allocation8 + $0x160] ss:$16 sps:$4 sm:$0xff]  }
 0x8fd   :  { %2451 = vmatprep.subr.bf16.mxu0 %v8982_v34  ;;  %2492 = vmatprep.subr.bf16.mxu1 %v8983_v19  ;;  %9000 = vst [vmem:[#allocation30_spill] sm:$0xff] %v6978_v13  ;;  %9001 = vst [vmem:[#allocation31_spill] sm:$0xff] %v6981_v39  ;;  %v6984_v34 = vld [vmem:[#allocation8 + $0x168] ss:$16 sps:$4 sm:$0xff]   ;;  %v6987_v19 = vld [vmem:[#allocation8 + $0x184] ss:$16 sps:$4 sm:$0xff]  }
 0x8fe   :  { %9002 = vst [vmem:[#allocation32_spill] sm:$0xff] %v6984_v34  ;;  %9003 = vst [vmem:[#allocation33_spill] sm:$0xff] %v6987_v19 }
 0x900   :  { %2452 = vmatpush1.bf16.msra.mxu0 %v8984_v24  ;;  %2493 = vmatpush1.bf16.msra.mxu1 %v8985_v42  ;;  %v6990_v24 = vld [vmem:[#allocation8 + $0x18c] ss:$16 sps:$4 sm:$0xff]   ;;  %v6993_v42 = vld [vmem:[#allocation8 + $0x180] ss:$16 sps:$4 sm:$0xff]  }
 0x901   :  { %2453 = vmatprep.subr.bf16.mxu0 %v8986_v5  ;;  %2494 = vmatprep.subr.bf16.mxu1 %v8987_v6  ;;  %9004 = vst [vmem:[#allocation34_spill] sm:$0xff] %v6990_v24  ;;  %9005 = vst [vmem:[#allocation35_spill] sm:$0xff] %v6993_v42  ;;  %v6996_v5 = vld [vmem:[#allocation8 + $0x188] ss:$16 sps:$4 sm:$0xff]   ;;  %v6999_v6 = vld [vmem:[#allocation8 + $0x1a4] ss:$16 sps:$4 sm:$0xff]  }
 0x902   :  { %9006 = vst [vmem:[#allocation36_spill] sm:$0xff] %v6996_v5  ;;  %9007 = vst [vmem:[#allocation37_spill] sm:$0xff] %v6999_v6 }
 0x904   :  { %2454 = vmatpush1.bf16.msra.mxu0 %v6633_v31  ;;  %2495 = vmatpush1.bf16.msra.mxu1 %v6636_v17  ;;  %v6854_v31 = vld [vmem:[#allocation8 + $0x8] ss:$16 sps:$4 sm:$0xff]  }
 0x905   :  { %2455 = vmatprep.subr.bf16.mxu0 %v6639_v16  ;;  %2496 = vmatprep.subr.bf16.mxu1 %v8988_v7  ;;  %v6864_v17 = vld [vmem:[#allocation8 + $0x28] ss:$16 sps:$4 sm:$0xff]   ;;  %v6867_v16 = vld [vmem:[#allocation8 + $0x44] ss:$16 sps:$4 sm:$0xff]   ;;  %v7002_v7 = vld [vmem:[#allocation8 + $0x1ac] ss:$16 sps:$4 sm:$0xff]  }
 0x906   :  { %9008 = vst [vmem:[#allocation38_spill] sm:$0xff] %v7002_v7 }
 0x908   :  { %2456 = vmatpush1.bf16.msra.mxu0 %v6645_v27  ;;  %2497 = vmatpush1.bf16.msra.mxu1 %v6844_v10  ;;  %v6858_v27 = vld [vmem:[#allocation8 + $0x2c] ss:$16 sps:$4 sm:$0xff]  }
 0x909   :  { %2552 = vmatprep.subr.bf16.mxu0 %v6649_v35  ;;  %2593 = vmatprep.subr.bf16.mxu1 %v6848_v62  ;;  %v6861_v35 = vld [vmem:[#allocation8 + $0x20] ss:$16 sps:$4 sm:$0xff]  }
 0x90b   :  { %2474 = vmatmul.mubr.bf16.vlgmr.msra.gmra.mrb[48].mxu0 %v6737_v49  ;;  %2515 = vmatmul.mubr.bf16.vlgmr.msra.gmra.mrb[48].mxu1 %v6737_v49  ;;  %v6876_v49 = vld [vmem:[#allocation8 + $0x48] ss:$16 sps:$4 sm:$0xff]  }
 0x90c   :  { %2584 = vmatprep.mubr.bf16.mxu0 %v2326_v4  ;;  %2625 = vmatprep.mubr.bf16.mxu1 %v2326_v4  ;;  %v6957_v4 = vld [vmem:[#allocation8 + $0x120] ss:$16 sps:$4 sm:$0xff]  }
 0x90d   :  { %2553 = vmatpush1.bf16.msra.mxu0 %v6657_v60  ;;  %2594 = vmatpush1.bf16.msra.mxu1 %v6854_v31  ;;  %v6870_v60 = vld [vmem:[#allocation8 + $0x4c] ss:$16 sps:$4 sm:$0xff]   ;;  %8993 = vst [vmem:[#allocation23_spill] sm:$0xff] %v6957_v4 }
 0x90e   :  { %2554 = vmatprep.subr.bf16.mxu0 %v6661_v40  ;;  %2595 = vmatprep.subr.bf16.mxu1 %v6858_v27  ;;  %v6873_v40 = vld [vmem:[#allocation8 + $0x40] ss:$16 sps:$4 sm:$0xff]  }
 0x911   :  { %2555 = vmatpush1.bf16.msra.mxu0 %v6861_v35  ;;  %2596 = vmatpush1.bf16.msra.mxu1 %v6864_v17 }
 0x912   :  { %2556 = vmatprep.subr.bf16.mxu0 %v6867_v16  ;;  %2597 = vmatprep.subr.bf16.mxu1 %v6870_v60 }
 0x915   :  { %2557 = vmatpush1.bf16.msra.mxu0 %v6873_v40  ;;  %2598 = vmatpush1.bf16.msra.mxu1 %v6876_v49 }
 0x916   :  { %2558 = vmatprep.subr.bf16.mxu0 %v6879_v21  ;;  %2599 = vmatprep.subr.bf16.mxu1 %v6882_v29 }
 0x919   :  { %2559 = vmatpush1.bf16.msra.mxu0 %v6885_v0  ;;  %2600 = vmatpush1.bf16.msra.mxu1 %v6888_v18 }
 0x91a   :  { %2560 = vmatprep.subr.bf16.mxu0 %v6891_v33  ;;  %2601 = vmatprep.subr.bf16.mxu1 %v6894_v44 }
 0x91d   :  { %2561 = vmatpush1.bf16.msra.mxu0 %v6897_v30  ;;  %2602 = vmatpush1.bf16.msra.mxu1 %v6900_v45 }
 0x91e   :  { %2562 = vmatprep.subr.bf16.mxu0 %v6903_v46  ;;  %2603 = vmatprep.subr.bf16.mxu1 %v6906_v47 }
 0x921   :  { %2563 = vmatpush1.bf16.msra.mxu0 %v6909_v1  ;;  %2604 = vmatpush1.bf16.msra.mxu1 %v6912_v51 }
 0x922   :  { %2564 = vmatprep.subr.bf16.mxu0 %v6915_v41  ;;  %2605 = vmatprep.subr.bf16.mxu1 %v6918_v25 }
 0x925   :  { %2565 = vmatpush1.bf16.msra.mxu0 %v6921_v14  ;;  %2606 = vmatpush1.bf16.msra.mxu1 %v6924_v12 }
 0x926   :  { %2566 = vmatprep.subr.bf16.mxu0 %v6927_v36  ;;  %2607 = vmatprep.subr.bf16.mxu1 %v6930_v52 }
 0x929   :  { %2567 = vmatpush1.bf16.msra.mxu0 %v6933_v53  ;;  %2608 = vmatpush1.bf16.msra.mxu1 %v6936_v54 }
 0x92a   :  { %2568 = vmatprep.subr.bf16.mxu0 %v6939_v55  ;;  %2609 = vmatprep.subr.bf16.mxu1 %v6942_v56 }
 0x92d   :  { %2569 = vmatpush1.bf16.msra.mxu0 %v6945_v59  ;;  %2610 = vmatpush1.bf16.msra.mxu1 %v6948_v63 }
 0x92e   :  { %2570 = vmatprep.subr.bf16.mxu0 %v6951_v2  ;;  %2611 = vmatprep.subr.bf16.mxu1 %v6954_v3 }
 0x931   :  { %2571 = vmatpush1.bf16.msra.mxu0 %v6957_v4  ;;  %2612 = vmatpush1.bf16.msra.mxu1 %v6960_v11 }
 0x932   :  { %2572 = vmatprep.subr.bf16.mxu0 %v6963_v58  ;;  %2613 = vmatprep.subr.bf16.mxu1 %v6966_v48 }
 0x935   :  { %2573 = vmatpush1.bf16.msra.mxu0 %v6969_v9  ;;  %2614 = vmatpush1.bf16.msra.mxu1 %v6972_v26 }
 0x936   :  { %2574 = vmatprep.subr.bf16.mxu0 %v6975_v15  ;;  %2615 = vmatprep.subr.bf16.mxu1 %v6978_v13 }
 0x939   :  { %2575 = vmatpush1.bf16.msra.mxu0 %v6981_v39  ;;  %2616 = vmatpush1.bf16.msra.mxu1 %v6984_v34 }
 0x93a   :  { %2576 = vmatprep.subr.bf16.mxu0 %v6987_v19  ;;  %2617 = vmatprep.subr.bf16.mxu1 %v6990_v24  ;;  %v7005_v19 = vld [vmem:[#allocation8 + $0x1a0] ss:$16 sps:$4 sm:$0xff]   ;;  %v7008_v24 = vld [vmem:[#allocation8 + $0x1a8] ss:$16 sps:$4 sm:$0xff]  }
 0x93b   :  { %9009 = vst [vmem:[#allocation39_spill] sm:$0xff] %v7005_v19  ;;  %9010 = vst [vmem:[#allocation40_spill] sm:$0xff] %v7008_v24 }
 0x93d   :  { %2577 = vmatpush1.bf16.msra.mxu0 %v6993_v42  ;;  %2618 = vmatpush1.bf16.msra.mxu1 %v6996_v5  ;;  %v7011_v42 = vld [vmem:[#allocation8 + $0x1c4] ss:$16 sps:$4 sm:$0xff]   ;;  %v7014_v5 = vld [vmem:[#allocation8 + $0x1cc] ss:$16 sps:$4 sm:$0xff]  }
 0x93e   :  { %2578 = vmatprep.subr.bf16.mxu0 %v6999_v6  ;;  %2619 = vmatprep.subr.bf16.mxu1 %v7002_v7  ;;  %9011 = vst [vmem:[#allocation41_spill] sm:$0xff] %v7011_v42  ;;  %9012 = vst [vmem:[#allocation42_spill] sm:$0xff] %v7014_v5  ;;  %v7017_v6 = vld [vmem:[#allocation8 + $0x1c0] ss:$16 sps:$4 sm:$0xff]   ;;  %v7020_v7 = vld [vmem:[#allocation8 + $0x1c8] ss:$16 sps:$4 sm:$0xff]  }
 0x93f   :  { %9013 = vst [vmem:[#allocation43_spill] sm:$0xff] %v7017_v6  ;;  %9014 = vst [vmem:[#allocation44_spill] sm:$0xff] %v7020_v7 }
 0x941   :  { %2579 = vmatpush1.bf16.msra.mxu0 %v7005_v19  ;;  %2620 = vmatpush1.bf16.msra.mxu1 %v7008_v24  ;;  %v7023_v19 = vld [vmem:[#allocation8 + $0x1e4] ss:$16 sps:$4 sm:$0xff]   ;;  %v7026_v24 = vld [vmem:[#allocation8 + $0x1ec] ss:$16 sps:$4 sm:$0xff]  }
 0x942   :  { %2580 = vmatprep.subr.bf16.mxu0 %v7011_v42  ;;  %2621 = vmatprep.subr.bf16.mxu1 %v7014_v5  ;;  %9015 = vst [vmem:[#allocation45_spill] sm:$0xff] %v7023_v19  ;;  %9016 = vst [vmem:[#allocation46_spill] sm:$0xff] %v7026_v24  ;;  %v7029_v42 = vld [vmem:[#allocation8 + $0x1e0] ss:$16 sps:$4 sm:$0xff]   ;;  %v7032_v5 = vld [vmem:[#allocation8 + $0x1e8] ss:$16 sps:$4 sm:$0xff]  }
 0x943   :  { %9017 = vst [vmem:[#allocation47_spill] sm:$0xff] %v7029_v42  ;;  %9018 = vst [vmem:[#allocation48_spill] sm:$0xff] %v7032_v5 }
 0x945   :  { %2581 = vmatpush1.bf16.msra.mxu0 %v7017_v6  ;;  %2622 = vmatpush1.bf16.msra.mxu1 %v7020_v7  ;;  %v7035_v6 = vld [vmem:[#allocation9 + $0x4] ss:$16 sps:$4 sm:$0xff]   ;;  %v7038_v7 = vld [vmem:[#allocation9 + $0xc] ss:$16 sps:$4 sm:$0xff]  }
 0x946   :  { %2582 = vmatprep.subr.bf16.mxu0 %v7023_v19  ;;  %2623 = vmatprep.subr.bf16.mxu1 %v7026_v24  ;;  %9019 = vst [vmem:[#allocation49_spill] sm:$0xff] %v7035_v6  ;;  %9020 = vst [vmem:[#allocation50_spill] sm:$0xff] %v7038_v7 }
 0x949   :  { %2583 = vmatpush1.bf16.msra.mxu0 %v7029_v42  ;;  %2624 = vmatpush1.bf16.msra.mxu1 %v7032_v5 }
 0x94a   :  { %2660 = vmatprep.subr.bf16.mxu0 %v7035_v6  ;;  %2701 = vmatprep.subr.bf16.mxu1 %v7038_v7 }
 0x9be   :  { %v2362_v19 = vpop.f32.mrb[44].mxu0  ;;  %v2403_v34 = vpop.f32.mrb[44].mxu1 }
 0x9bf   :  { %v2363_v24 = vadd.f32 %v2362_v19, %v8912_v38  ;;  %v2364_v39 = vpop.f32.mrb[45].mxu0  ;;  %v2405_v13 = vpop.f32.mrb[45].mxu1  ;;  %v2435_v38 = vld [vmem:[#allocation3 + $0x40] sm:$0xff] }
 0x9c0   :  { %v2365_v42 = vadd.f32 %v2364_v39, %v8913_v23  ;;  %v2366_v15 = vpop.f32.mrb[46].mxu0  ;;  %v2407_v26 = vpop.f32.mrb[46].mxu1  ;;  %v2406_v6 = vadd.f32 %v2405_v13, %v8914_v50 }
 0x9c1   :  { %v3982_v9 = vmul.f32 -1.442695, %v2363_v24  ;;  %v2367_v5 = vpop.f32.mrb[47].mxu0  ;;  %v2408_v48 = vpop.f32.mrb[47].mxu1  ;;  %v2437_v26 = vunpack.c.l.bf16 %v2435_v38 }
 0x9c2   :  { %v3983_v58 = vmul.f32 -1.442695, %v2365_v42  ;;  %v2438_v5 = vunpack.c.h.bf16 %v2435_v38  ;;  %v2404_v38 = vadd.f32 %v2403_v34, %v6027_v57 }
 0x9c3   :  { %4446 = vpow2.f32 %v3982_v9 }
 0x9c4   :  { %4448 = vpow2.f32 %v3983_v58 }
 0x9c5   :  { %4450 = vtanh.f32 %v2406_v6  ;;  %v2436_v6 = vld [vmem:[#allocation3 + $0x48] sm:$0xff] }
 0x9cd   :  { %v4447_v11 = vpop.eup %4446 }
 0x9ce   :  { %v2419_v7 = vadd.f32 1.0, %v4447_v11  ;;  %v4449_v4 = vpop.eup %4448 }
 0x9cf   :  { %v2420_v19 = vadd.f32 1.0, %v4449_v4  ;;  %v4451_v3 = vpop.eup %4450 }
 0x9d0   :  { %4452 = vrcp.f32 %v2419_v7 }
 0x9d1   :  { %4454 = vrcp.f32 %v2420_v19 }
 0x9da   :  { %v4453_v39 = vpop.eup %4452 }
 0x9db   :  { %v2430_v15 = vmul.f32 %v4453_v39, %v4451_v3  ;;  %v4455_v24 = vpop.eup %4454  ;;  %v2439_v39 = vunpack.c.l.bf16 %v2436_v6 }
 0x9dc   :  { %v2429_v48 = vmul.f32 %v4455_v24, %v6729_v8  ;;  %v2440_v8 = vunpack.c.h.bf16 %v2436_v6 }
 0x9de   :  { %v2475_v9 = vpop.f32.mrb[48].mxu0  ;;  %v2516_v58 = vpop.f32.mrb[48].mxu1  ;;  %v7045_v42 = vadd.f32 %v2430_v15, %v2429_v48  ;;  %v3984_v15 = vmul.f32 -1.442695, %v2404_v38 }
 0x9df   :  { %v2523_v13 = vadd.f32 %v2475_v9, %v2437_v26  ;;  %v2477_v11 = vpop.f32.mrb[49].mxu0  ;;  %v2518_v50 = vpop.f32.mrb[49].mxu1  ;;  %v2525_v24 = vadd.f32 %v2516_v58, %v2439_v39 }
 0x9e0   :  { %v2524_v7 = vadd.f32 %v2477_v11, %v2438_v5  ;;  %v2479_v4 = vpop.f32.mrb[50].mxu0  ;;  %v2520_v19 = vpop.f32.mrb[50].mxu1  ;;  %v2526_v48 = vadd.f32 %v2518_v50, %v2440_v8 }
 0x9e1   :  { %v3985_v23 = vmul.f32 -1.442695, %v2523_v13  ;;  %v2480_v2 = vpop.f32.mrb[51].mxu0  ;;  %v2521_v63 = vpop.f32.mrb[51].mxu1  ;;  %v3987_v26 = vmul.f32 -1.442695, %v2525_v24 }
 0x9e2   :  { %v3986_v3 = vmul.f32 -1.442695, %v2524_v7 }
 0x9e3   :  { %4456 = vpow2.f32 %v3985_v23 }
 0x9e4   :  { %4458 = vpow2.f32 %v3986_v3 }
 0x9e5   :  { %4460 = vpow2.f32 %v3984_v15 }
 0x9e6   :  { %4462 = vtanh.f32 %v2526_v48  ;;  %v7060_v48 = vld [vmem:[#allocation9 + $0x8] ss:$16 sps:$4 sm:$0xff]  }
 0x9e7   :  { %4464 = vpow2.f32 %v3987_v26  ;;  %v7063_v26 = vld [vmem:[#allocation9 + $0x24] ss:$16 sps:$4 sm:$0xff]  }
 0x9ed   :  { %v4457_v9 = vpop.eup %4456 }
 0x9ee   :  { %v2536_v59 = vadd.f32 1.0, %v4457_v9  ;;  %v4459_v5 = vpop.eup %4458  ;;  %v7066_v9 = vld [vmem:[#allocation9 + $0x2c] ss:$16 sps:$4 sm:$0xff]  }
 0x9ef   :  { %v2537_v2 = vadd.f32 1.0, %v4459_v5  ;;  %v4461_v63 = vpop.eup %4460  ;;  %v7069_v5 = vld [vmem:[#allocation9 + $0x20] ss:$16 sps:$4 sm:$0xff]  }
 0x9f0   :  { %4466 = vrcp.f32 %v2536_v59  ;;  %v4463_v23 = vpop.eup %4462  ;;  %v2421_v34 = vadd.f32 1.0, %v4461_v63  ;;  %v7075_v63 = vld [vmem:[#allocation9 + $0x44] ss:$16 sps:$4 sm:$0xff]  }
 0x9f1   :  { %4468 = vrcp.f32 %v2537_v2  ;;  %v4465_v13 = vpop.eup %4464  ;;  %v7072_v2 = vld [vmem:[#allocation9 + $0x28] ss:$16 sps:$4 sm:$0xff]   ;;  %9022 = vst [vmem:[#allocation52_spill] sm:$0xff] %v7075_v63 }
 0x9f2   :  { %v2538_v58 = vadd.f32 1.0, %v4465_v13  ;;  %4470 = vtanh.f32 %v7045_v42  ;;  %9021 = vst [vmem:[#allocation51_spill] sm:$0xff] %v7072_v2  ;;  %v7081_v13 = vld [vmem:[#allocation9 + $0x40] ss:$16 sps:$4 sm:$0xff]  }
 0x9f3   :  { %4472 = vrcp.f32 %v2421_v34  ;;  %9024 = vst [vmem:[#allocation54_spill] sm:$0xff] %v7081_v13  ;;  %v7087_v34 = vld [vmem:[#allocation9 + $0x64] ss:$16 sps:$4 sm:$0xff]  }
 0x9f4   :  { %4474 = vrcp.f32 %v2538_v58  ;;  %9026 = vst [vmem:[#allocation56_spill] sm:$0xff] %v7087_v34  ;;  %v7096_v58 = vld [vmem:[#allocation9 + $0x68] ss:$16 sps:$4 sm:$0xff]  }
 0x9f5   :  { %9029 = vst [vmem:[#allocation59_spill] sm:$0xff] %v7096_v58 }
 0x9fa   :  { %v4467_v11 = vpop.eup %4466 }
 0x9fb   :  { %v2547_v7 = vmul.f32 %v4467_v11, %v4463_v23  ;;  %v4469_v6 = vpop.eup %4468  ;;  %v7078_v23 = vld [vmem:[#allocation9 + $0x4c] ss:$16 sps:$4 sm:$0xff]   ;;  %v7084_v11 = vld [vmem:[#allocation9 + $0x48] ss:$16 sps:$4 sm:$0xff]  }
 0x9fc   :  { %v2546_v50 = vmul.f32 %v4469_v6, %v6734_v20  ;;  %v4471_v59 = vpop.eup %4470  ;;  %v7057_v20 = vld [vmem:[#allocation9] ss:$16 sps:$4 sm:$0xff]   ;;  %9023 = vst [vmem:[#allocation53_spill] sm:$0xff] %v7078_v23  ;;  %9025 = vst [vmem:[#allocation55_spill] sm:$0xff] %v7084_v11 }
 0x9fd   :  { %v4473_v19 = vpop.eup %4472  ;;  %v7093_v6 = vld [vmem:[#allocation9 + $0x60] ss:$16 sps:$4 sm:$0xff]  }
 0x9fe   :  { %v7050_v4 = vadd.f32 %v2547_v7, %v2546_v50  ;;  %v4475_v3 = vpop.eup %4474  ;;  %v2433_v38 = vmul.f32 %v4473_v19, %v4471_v59  ;;  %v7090_v7 = vld [vmem:[#allocation9 + $0x6c] ss:$16 sps:$4 sm:$0xff]   ;;  %9028 = vst [vmem:[#allocation58_spill] sm:$0xff] %v7093_v6  ;;  %v7099_v50 = vld [vmem:[#allocation9 + $0x84] ss:$16 sps:$4 sm:$0xff]  }
 0x9ff   :  { %9027 = vst [vmem:[#allocation57_spill] sm:$0xff] %v7090_v7  ;;  %9030 = vst [vmem:[#allocation60_spill] sm:$0xff] %v7099_v50  ;;  %v7102_v59 = vld [vmem:[#allocation9 + $0x8c] ss:$16 sps:$4 sm:$0xff]   ;;  %v7105_v19 = vld [vmem:[#allocation9 + $0x80] ss:$16 sps:$4 sm:$0xff]  }
 0xa00   :  { %4476 = vtanh.f32 %v7050_v4  ;;  %v2659_v15 = vpack.c.bf16 %v2433_v38, %v2433_v38  ;;  %9031 = vst [vmem:[#allocation61_spill] sm:$0xff] %v7102_v59  ;;  %9032 = vst [vmem:[#allocation62_spill] sm:$0xff] %v7105_v19  ;;  %v7114_v38 = vld [vmem:[#allocation9 + $0xac] ss:$16 sps:$4 sm:$0xff]  }
 0xa01   :  { %9035 = vst [vmem:[#allocation65_spill] sm:$0xff] %v7114_v38 }
 0xa0a   :  { %v4477_v39 = vpop.eup %4476 }
 0xa0b   :  { %v2550_v8 = vmul.f32 %v4477_v39, %v4475_v3  ;;  %v7108_v3 = vld [vmem:[#allocation9 + $0x88] ss:$16 sps:$4 sm:$0xff]   ;;  %v7111_v39 = vld [vmem:[#allocation9 + $0xa4] ss:$16 sps:$4 sm:$0xff]  }
 0xa0c   :  { %9033 = vst [vmem:[#allocation63_spill] sm:$0xff] %v7108_v3  ;;  %9034 = vst [vmem:[#allocation64_spill] sm:$0xff] %v7111_v39 }
 0xa0d   :  { %v7053_v24 = vpack.c.bf16 %v2550_v8, %v2550_v8  ;;  %v7117_v8 = vld [vmem:[#allocation9 + $0xa0] ss:$16 sps:$4 sm:$0xff]  }
 0xa0e   :  { %9036 = vst [vmem:[#allocation66_spill] sm:$0xff] %v7117_v8 }
 0xa0f   :  { %2585 = vmatmul.mubr.bf16.vlgmr.msra.gmra.mrb[52].mxu0 %v7053_v24  ;;  %2626 = vmatmul.mubr.bf16.vlgmr.msra.gmra.mrb[52].mxu1 %v7053_v24 }
 0xa10   :  { %2692 = vmatprep.mubr.bf16.mxu0 %v2659_v15  ;;  %2733 = vmatprep.mubr.bf16.mxu1 %v2659_v15  ;;  %v7120_v15 = vld [vmem:[#allocation9 + $0xa8] ss:$16 sps:$4 sm:$0xff]  }
 0xa11   :  { %2661 = vmatpush1.bf16.msra.mxu0 %v7057_v20  ;;  %2702 = vmatpush1.bf16.msra.mxu1 %v7060_v48  ;;  %9037 = vst [vmem:[#allocation67_spill] sm:$0xff] %v7120_v15 }
 0xa12   :  { %2662 = vmatprep.subr.bf16.mxu0 %v7063_v26  ;;  %2703 = vmatprep.subr.bf16.mxu1 %v7066_v9 }
 0xa15   :  { %2663 = vmatpush1.bf16.msra.mxu0 %v7069_v5  ;;  %2704 = vmatpush1.bf16.msra.mxu1 %v7072_v2 }
 0xa16   :  { %2664 = vmatprep.subr.bf16.mxu0 %v7075_v63  ;;  %2705 = vmatprep.subr.bf16.mxu1 %v7078_v23 }
 0xa19   :  { %2665 = vmatpush1.bf16.msra.mxu0 %v7081_v13  ;;  %2706 = vmatpush1.bf16.msra.mxu1 %v7084_v11 }
 0xa1a   :  { %2666 = vmatprep.subr.bf16.mxu0 %v7087_v34  ;;  %2707 = vmatprep.subr.bf16.mxu1 %v7090_v7 }
 0xa1d   :  { %2667 = vmatpush1.bf16.msra.mxu0 %v7093_v6  ;;  %2708 = vmatpush1.bf16.msra.mxu1 %v7096_v58 }
 0xa1e   :  { %2668 = vmatprep.subr.bf16.mxu0 %v7099_v50  ;;  %2709 = vmatprep.subr.bf16.mxu1 %v7102_v59 }
 0xa21   :  { %2669 = vmatpush1.bf16.msra.mxu0 %v7105_v19  ;;  %2710 = vmatpush1.bf16.msra.mxu1 %v7108_v3  ;;  %v7123_v19 = vld [vmem:[#allocation9 + $0xc4] ss:$16 sps:$4 sm:$0xff]   ;;  %v7126_v3 = vld [vmem:[#allocation9 + $0xcc] ss:$16 sps:$4 sm:$0xff]  }
 0xa22   :  { %2670 = vmatprep.subr.bf16.mxu0 %v7111_v39  ;;  %2711 = vmatprep.subr.bf16.mxu1 %v7114_v38  ;;  %9038 = vst [vmem:[#allocation68_spill] sm:$0xff] %v7123_v19  ;;  %9039 = vst [vmem:[#allocation69_spill] sm:$0xff] %v7126_v3  ;;  %v7129_v39 = vld [vmem:[#allocation9 + $0xc0] ss:$16 sps:$4 sm:$0xff]   ;;  %v7132_v38 = vld [vmem:[#allocation9 + $0xc8] ss:$16 sps:$4 sm:$0xff]  }
 0xa23   :  { %9040 = vst [vmem:[#allocation70_spill] sm:$0xff] %v7129_v39  ;;  %9041 = vst [vmem:[#allocation71_spill] sm:$0xff] %v7132_v38 }
 0xa25   :  { %2671 = vmatpush1.bf16.msra.mxu0 %v7117_v8  ;;  %2712 = vmatpush1.bf16.msra.mxu1 %v7120_v15  ;;  %v7135_v8 = vld [vmem:[#allocation9 + $0xe4] ss:$16 sps:$4 sm:$0xff]   ;;  %v7138_v15 = vld [vmem:[#allocation9 + $0xec] ss:$16 sps:$4 sm:$0xff]  }
 0xa26   :  { %2672 = vmatprep.subr.bf16.mxu0 %v7123_v19  ;;  %2713 = vmatprep.subr.bf16.mxu1 %v7126_v3  ;;  %9042 = vst [vmem:[#allocation72_spill] sm:$0xff] %v7135_v8  ;;  %9043 = vst [vmem:[#allocation73_spill] sm:$0xff] %v7138_v15  ;;  %v7141_v19 = vld [vmem:[#allocation9 + $0xe0] ss:$16 sps:$4 sm:$0xff]   ;;  %v7144_v3 = vld [vmem:[#allocation9 + $0xe8] ss:$16 sps:$4 sm:$0xff]  }
 0xa27   :  { %9044 = vst [vmem:[#allocation74_spill] sm:$0xff] %v7141_v19  ;;  %9045 = vst [vmem:[#allocation75_spill] sm:$0xff] %v7144_v3 }
 0xa29   :  { %2673 = vmatpush1.bf16.msra.mxu0 %v7129_v39  ;;  %2714 = vmatpush1.bf16.msra.mxu1 %v7132_v38  ;;  %v7147_v39 = vld [vmem:[#allocation9 + $0x104] ss:$16 sps:$4 sm:$0xff]   ;;  %v7150_v38 = vld [vmem:[#allocation9 + $0x10c] ss:$16 sps:$4 sm:$0xff]  }
 0xa2a   :  { %2674 = vmatprep.subr.bf16.mxu0 %v7135_v8  ;;  %2715 = vmatprep.subr.bf16.mxu1 %v7138_v15  ;;  %9046 = vst [vmem:[#allocation76_spill] sm:$0xff] %v7147_v39  ;;  %9047 = vst [vmem:[#allocation77_spill] sm:$0xff] %v7150_v38  ;;  %v7153_v8 = vld [vmem:[#allocation9 + $0x100] ss:$16 sps:$4 sm:$0xff]   ;;  %v7156_v15 = vld [vmem:[#allocation9 + $0x108] ss:$16 sps:$4 sm:$0xff]  }
 0xa2b   :  { %9048 = vst [vmem:[#allocation78_spill] sm:$0xff] %v7153_v8  ;;  %9049 = vst [vmem:[#allocation79_spill] sm:$0xff] %v7156_v15 }
 0xa2d   :  { %2675 = vmatpush1.bf16.msra.mxu0 %v7141_v19  ;;  %2716 = vmatpush1.bf16.msra.mxu1 %v7144_v3  ;;  %v7159_v19 = vld [vmem:[#allocation9 + $0x124] ss:$16 sps:$4 sm:$0xff]   ;;  %v7162_v3 = vld [vmem:[#allocation9 + $0x12c] ss:$16 sps:$4 sm:$0xff]  }
 0xa2e   :  { %2676 = vmatprep.subr.bf16.mxu0 %v7147_v39  ;;  %2717 = vmatprep.subr.bf16.mxu1 %v7150_v38  ;;  %9050 = vst [vmem:[#allocation80_spill] sm:$0xff] %v7159_v19  ;;  %9051 = vst [vmem:[#allocation81_spill] sm:$0xff] %v7162_v3  ;;  %v7165_v39 = vld [vmem:[#allocation9 + $0x120] ss:$16 sps:$4 sm:$0xff]   ;;  %v7168_v38 = vld [vmem:[#allocation9 + $0x128] ss:$16 sps:$4 sm:$0xff]  }
 0xa2f   :  { %9052 = vst [vmem:[#allocation82_spill] sm:$0xff] %v7165_v39  ;;  %9053 = vst [vmem:[#allocation83_spill] sm:$0xff] %v7168_v38 }
 0xa31   :  { %2677 = vmatpush1.bf16.msra.mxu0 %v7153_v8  ;;  %2718 = vmatpush1.bf16.msra.mxu1 %v7156_v15  ;;  %v7171_v8 = vld [vmem:[#allocation9 + $0x144] ss:$16 sps:$4 sm:$0xff]   ;;  %v7174_v15 = vld [vmem:[#allocation9 + $0x14c] ss:$16 sps:$4 sm:$0xff]  }
 0xa32   :  { %2678 = vmatprep.subr.bf16.mxu0 %v7159_v19  ;;  %2719 = vmatprep.subr.bf16.mxu1 %v7162_v3  ;;  %9054 = vst [vmem:[#allocation84_spill] sm:$0xff] %v7171_v8  ;;  %9055 = vst [vmem:[#allocation85_spill] sm:$0xff] %v7174_v15  ;;  %v7177_v19 = vld [vmem:[#allocation9 + $0x140] ss:$16 sps:$4 sm:$0xff]   ;;  %v7180_v3 = vld [vmem:[#allocation9 + $0x148] ss:$16 sps:$4 sm:$0xff]  }
 0xa33   :  { %9056 = vst [vmem:[#allocation86_spill] sm:$0xff] %v7177_v19  ;;  %9057 = vst [vmem:[#allocation87_spill] sm:$0xff] %v7180_v3 }
 0xa35   :  { %2679 = vmatpush1.bf16.msra.mxu0 %v7165_v39  ;;  %2720 = vmatpush1.bf16.msra.mxu1 %v7168_v38  ;;  %v7183_v39 = vld [vmem:[#allocation9 + $0x164] ss:$16 sps:$4 sm:$0xff]   ;;  %v7186_v38 = vld [vmem:[#allocation9 + $0x16c] ss:$16 sps:$4 sm:$0xff]  }
 0xa36   :  { %2680 = vmatprep.subr.bf16.mxu0 %v7171_v8  ;;  %2721 = vmatprep.subr.bf16.mxu1 %v7174_v15  ;;  %9058 = vst [vmem:[#allocation88_spill] sm:$0xff] %v7183_v39  ;;  %9059 = vst [vmem:[#allocation89_spill] sm:$0xff] %v7186_v38  ;;  %v7189_v8 = vld [vmem:[#allocation9 + $0x160] ss:$16 sps:$4 sm:$0xff]   ;;  %v7192_v15 = vld [vmem:[#allocation9 + $0x168] ss:$16 sps:$4 sm:$0xff]  }
 0xa37   :  { %9060 = vst [vmem:[#allocation90_spill] sm:$0xff] %v7189_v8  ;;  %9061 = vst [vmem:[#allocation91_spill] sm:$0xff] %v7192_v15 }
 0xa39   :  { %2681 = vmatpush1.bf16.msra.mxu0 %v7177_v19  ;;  %2722 = vmatpush1.bf16.msra.mxu1 %v7180_v3  ;;  %v7195_v19 = vld [vmem:[#allocation9 + $0x184] ss:$16 sps:$4 sm:$0xff]   ;;  %v7198_v3 = vld [vmem:[#allocation9 + $0x18c] ss:$16 sps:$4 sm:$0xff]  }
 0xa3a   :  { %2682 = vmatprep.subr.bf16.mxu0 %v7183_v39  ;;  %2723 = vmatprep.subr.bf16.mxu1 %v7186_v38  ;;  %9062 = vst [vmem:[#allocation92_spill] sm:$0xff] %v7195_v19  ;;  %9063 = vst [vmem:[#allocation93_spill] sm:$0xff] %v7198_v3  ;;  %v7201_v39 = vld [vmem:[#allocation9 + $0x180] ss:$16 sps:$4 sm:$0xff]   ;;  %v7204_v38 = vld [vmem:[#allocation9 + $0x188] ss:$16 sps:$4 sm:$0xff]  }
 0xa3b   :  { %9064 = vst [vmem:[#allocation94_spill] sm:$0xff] %v7201_v39  ;;  %9065 = vst [vmem:[#allocation95_spill] sm:$0xff] %v7204_v38 }
 0xa3d   :  { %2683 = vmatpush1.bf16.msra.mxu0 %v7189_v8  ;;  %2724 = vmatpush1.bf16.msra.mxu1 %v7192_v15  ;;  %v7207_v8 = vld [vmem:[#allocation9 + $0x1a4] ss:$16 sps:$4 sm:$0xff]   ;;  %v7210_v15 = vld [vmem:[#allocation9 + $0x1ac] ss:$16 sps:$4 sm:$0xff]  }
 0xa3e   :  { %2684 = vmatprep.subr.bf16.mxu0 %v7195_v19  ;;  %2725 = vmatprep.subr.bf16.mxu1 %v7198_v3  ;;  %9066 = vst [vmem:[#allocation96_spill] sm:$0xff] %v7207_v8  ;;  %9067 = vst [vmem:[#allocation97_spill] sm:$0xff] %v7210_v15  ;;  %v7213_v19 = vld [vmem:[#allocation9 + $0x1a0] ss:$16 sps:$4 sm:$0xff]   ;;  %v7216_v3 = vld [vmem:[#allocation9 + $0x1a8] ss:$16 sps:$4 sm:$0xff]  }
 0xa3f   :  { %9068 = vst [vmem:[#allocation98_spill] sm:$0xff] %v7213_v19  ;;  %9069 = vst [vmem:[#allocation99_spill] sm:$0xff] %v7216_v3 }
 0xa41   :  { %2685 = vmatpush1.bf16.msra.mxu0 %v7201_v39  ;;  %2726 = vmatpush1.bf16.msra.mxu1 %v7204_v38  ;;  %v7219_v39 = vld [vmem:[#allocation9 + $0x1c4] ss:$16 sps:$4 sm:$0xff]   ;;  %v7222_v38 = vld [vmem:[#allocation9 + $0x1cc] ss:$16 sps:$4 sm:$0xff]  }
 0xa42   :  { %2686 = vmatprep.subr.bf16.mxu0 %v7207_v8  ;;  %2727 = vmatprep.subr.bf16.mxu1 %v7210_v15  ;;  %9070 = vst [vmem:[#allocation100_spill] sm:$0xff] %v7219_v39  ;;  %9071 = vst [vmem:[#allocation101_spill] sm:$0xff] %v7222_v38  ;;  %v7225_v8 = vld [vmem:[#allocation9 + $0x1c0] ss:$16 sps:$4 sm:$0xff]   ;;  %v7228_v15 = vld [vmem:[#allocation9 + $0x1c8] ss:$16 sps:$4 sm:$0xff]  }
 0xa43   :  { %9072 = vst [vmem:[#allocation102_spill] sm:$0xff] %v7225_v8  ;;  %9073 = vst [vmem:[#allocation103_spill] sm:$0xff] %v7228_v15 }
 0xa45   :  { %2687 = vmatpush1.bf16.msra.mxu0 %v7213_v19  ;;  %2728 = vmatpush1.bf16.msra.mxu1 %v7216_v3  ;;  %v7231_v19 = vld [vmem:[#allocation9 + $0x1e4] ss:$16 sps:$4 sm:$0xff]   ;;  %v7234_v3 = vld [vmem:[#allocation9 + $0x1ec] ss:$16 sps:$4 sm:$0xff]  }
 0xa46   :  { %2688 = vmatprep.subr.bf16.mxu0 %v7219_v39  ;;  %2729 = vmatprep.subr.bf16.mxu1 %v7222_v38  ;;  %9074 = vst [vmem:[#allocation104_spill] sm:$0xff] %v7231_v19  ;;  %9075 = vst [vmem:[#allocation105_spill] sm:$0xff] %v7234_v3  ;;  %v7237_v39 = vld [vmem:[#allocation9 + $0x1e0] ss:$16 sps:$4 sm:$0xff]   ;;  %v7240_v38 = vld [vmem:[#allocation9 + $0x1e8] ss:$16 sps:$4 sm:$0xff]  }
 0xa47   :  { %9076 = vst [vmem:[#allocation106_spill] sm:$0xff] %v7237_v39  ;;  %9077 = vst [vmem:[#allocation107_spill] sm:$0xff] %v7240_v38 }
 0xa49   :  { %2689 = vmatpush1.bf16.msra.mxu0 %v7225_v8  ;;  %2730 = vmatpush1.bf16.msra.mxu1 %v7228_v15  ;;  %v7243_v8 = vld [vmem:[#allocation6 + $0x4] ss:$16 sps:$4 sm:$0xff]   ;;  %v7246_v15 = vld [vmem:[#allocation6 + $0xc] ss:$16 sps:$4 sm:$0xff]  }
 0xa4a   :  { %2690 = vmatprep.subr.bf16.mxu0 %v7231_v19  ;;  %2731 = vmatprep.subr.bf16.mxu1 %v7234_v3  ;;  %9078 = vst [vmem:[#allocation108_spill] sm:$0xff] %v7243_v8  ;;  %9079 = vst [vmem:[#allocation109_spill] sm:$0xff] %v7246_v15 }
 0xa4d   :  { %2691 = vmatpush1.bf16.msra.mxu0 %v7237_v39  ;;  %2732 = vmatpush1.bf16.msra.mxu1 %v7240_v38 }
 0xa4e   :  { %2773 = vmatprep.subr.bf16.mxu0 %v7243_v8  ;;  %2814 = vmatprep.subr.bf16.mxu1 %v7246_v15 }
 0xae2   :  { %v2586_v19 = vpop.f32.mrb[52].mxu0  ;;  %v2627_v59 = vpop.f32.mrb[52].mxu1 }
 0xae3   :  { %v2587_v3 = vadd.f32 %v2586_v19, %v8755_v37  ;;  %v2588_v50 = vpop.f32.mrb[53].mxu0  ;;  %v2629_v58 = vpop.f32.mrb[53].mxu1  ;;  %v2628_v8 = vadd.f32 %v2627_v59, %v5824_v22 }
 0xae4   :  { %v2589_v39 = vadd.f32 %v2588_v50, %v8756_v43  ;;  %v2590_v6 = vpop.f32.mrb[54].mxu0  ;;  %v2631_v7 = vpop.f32.mrb[54].mxu1  ;;  %v2630_v15 = vadd.f32 %v2629_v58, %v5828_v28 }
 0xae5   :  { %v3988_v34 = vmul.f32 -1.442695, %v2587_v3  ;;  %v2591_v38 = vpop.f32.mrb[55].mxu0  ;;  %v2632_v11 = vpop.f32.mrb[55].mxu1  ;;  %v3990_v23 = vmul.f32 -1.442695, %v2628_v8 }
 0xae6   :  { %v3989_v13 = vmul.f32 -1.442695, %v2589_v39  ;;  %v7264_v8 = vld [vmem:[#allocation6 + $0x8] ss:$16 sps:$4 sm:$0xff]  }
 0xae7   :  { %4478 = vpow2.f32 %v3988_v34 }
 0xae8   :  { %4480 = vpow2.f32 %v3989_v13 }
 0xae9   :  { %4482 = vtanh.f32 %v2630_v15  ;;  %v7270_v15 = vld [vmem:[#allocation6 + $0x2c] ss:$16 sps:$4 sm:$0xff]  }
 0xaea   :  { %4484 = vpow2.f32 %v3990_v23 }
 0xaf1   :  { %v4479_v63 = vpop.eup %4478 }
 0xaf2   :  { %v2643_v2 = vadd.f32 1.0, %v4479_v63  ;;  %v4481_v19 = vpop.eup %4480 }
 0xaf3   :  { %v2644_v50 = vadd.f32 1.0, %v4481_v19  ;;  %v4483_v7 = vpop.eup %4482  ;;  %v7275_v19 = vld [vmem:[#allocation6 + $0x20] ss:$16 sps:$4 sm:$0xff]  }
 0xaf4   :  { %4486 = vrcp.f32 %v2643_v2  ;;  %v4485_v6 = vpop.eup %4484  ;;  %v7261_v2 = vld [vmem:[#allocation6] ss:$16 sps:$4 sm:$0xff]  }
 0xaf5   :  { %4488 = vrcp.f32 %v2644_v50  ;;  %v2645_v34 = vadd.f32 1.0, %v4485_v6  ;;  %v7278_v50 = vld [vmem:[#allocation6 + $0x28] ss:$16 sps:$4 sm:$0xff]   ;;  %v7284_v6 = vld [vmem:[#allocation6 + $0x4c] ss:$16 sps:$4 sm:$0xff]  }
 0xaf7   :  { %4490 = vrcp.f32 %v2645_v34  ;;  %v7296_v34 = vld [vmem:[#allocation6 + $0x6c] ss:$16 sps:$4 sm:$0xff]  }
 0xaf8   :  { %9081 = vst [vmem:[#allocation111_spill] sm:$0xff] %v7296_v34 }
 0xafe   :  { %v4487_v3 = vpop.eup %4486 }
 0xaff   :  { %v2654_v11 = vmul.f32 %v4487_v3, %v4483_v7  ;;  %v4489_v39 = vpop.eup %4488  ;;  %v7281_v7 = vld [vmem:[#allocation6 + $0x44] ss:$16 sps:$4 sm:$0xff]   ;;  %v7287_v3 = vld [vmem:[#allocation6 + $0x40] ss:$16 sps:$4 sm:$0xff]  }
 0xb00   :  { %v2653_v13 = vmul.f32 %v4489_v39, %v6810_v61  ;;  %v7267_v61 = vld [vmem:[#allocation6 + $0x24] ss:$16 sps:$4 sm:$0xff]  }
 0xb01   :  { %v4491_v63 = vpop.eup %4490  ;;  %v7293_v39 = vld [vmem:[#allocation6 + $0x64] ss:$16 sps:$4 sm:$0xff]  }
 0xb02   :  { %v7254_v59 = vadd.f32 %v2654_v11, %v2653_v13  ;;  %v7290_v11 = vld [vmem:[#allocation6 + $0x48] ss:$16 sps:$4 sm:$0xff]   ;;  %9080 = vst [vmem:[#allocation110_spill] sm:$0xff] %v7293_v39  ;;  %v7299_v13 = vld [vmem:[#allocation6 + $0x60] ss:$16 sps:$4 sm:$0xff]  }
 0xb03   :  { %9082 = vst [vmem:[#allocation112_spill] sm:$0xff] %v7299_v13 }
 0xb04   :  { %4492 = vtanh.f32 %v7254_v59 }
 0xb0e   :  { %v4493_v58 = vpop.eup %4492 }
 0xb0f   :  { %v2657_v38 = vmul.f32 %v4493_v58, %v4491_v63  ;;  %v7302_v63 = vld [vmem:[#allocation6 + $0x68] ss:$16 sps:$4 sm:$0xff]   ;;  %v7305_v58 = vld [vmem:[#allocation6 + $0x84] ss:$16 sps:$4 sm:$0xff]  }
 0xb10   :  { %9083 = vst [vmem:[#allocation113_spill] sm:$0xff] %v7302_v63  ;;  %9084 = vst [vmem:[#allocation114_spill] sm:$0xff] %v7305_v58 }
 0xb11   :  { %v7257_v23 = vpack.c.bf16 %v2657_v38, %v2657_v38  ;;  %v7308_v38 = vld [vmem:[#allocation6 + $0x8c] ss:$16 sps:$4 sm:$0xff]  }
 0xb12   :  { %9085 = vst [vmem:[#allocation115_spill] sm:$0xff] %v7308_v38 }
 0xb13   :  { %2693 = vmatmul.mubr.bf16.vlgmr.msra.gmra.mrb[56].mxu0 %v7257_v23  ;;  %2734 = vmatmul.mubr.bf16.vlgmr.msra.gmra.mrb[56].mxu1 %v7257_v23 }
 0xb14   :  { %2774 = vmatpush1.bf16.msra.mxu0 %v7261_v2  ;;  %2815 = vmatpush1.bf16.msra.mxu1 %v7264_v8 }
 0xb15   :  { %2775 = vmatprep.subr.bf16.mxu0 %v7267_v61  ;;  %2816 = vmatprep.subr.bf16.mxu1 %v7270_v15 }
 0xb16   :  { %2805 = vmatprep.mubr.bf16.mxu0 %v8644_v32  ;;  %2846 = vmatprep.mubr.bf16.mxu1 %v8644_v32 }
 0xb18   :  { %2776 = vmatpush1.bf16.msra.mxu0 %v7275_v19  ;;  %2817 = vmatpush1.bf16.msra.mxu1 %v7278_v50 }
 0xb19   :  { %2777 = vmatprep.subr.bf16.mxu0 %v7281_v7  ;;  %2818 = vmatprep.subr.bf16.mxu1 %v7284_v6 }
 0xb1c   :  { %2778 = vmatpush1.bf16.msra.mxu0 %v7287_v3  ;;  %2819 = vmatpush1.bf16.msra.mxu1 %v7290_v11 }
 0xb1d   :  { %2779 = vmatprep.subr.bf16.mxu0 %v7293_v39  ;;  %2820 = vmatprep.subr.bf16.mxu1 %v7296_v34  ;;  %v7311_v39 = vld [vmem:[#allocation6 + $0x80] ss:$16 sps:$4 sm:$0xff]   ;;  %v7314_v34 = vld [vmem:[#allocation6 + $0x88] ss:$16 sps:$4 sm:$0xff]  }
 0xb1e   :  { %9086 = vst [vmem:[#allocation116_spill] sm:$0xff] %v7311_v39  ;;  %9087 = vst [vmem:[#allocation117_spill] sm:$0xff] %v7314_v34 }
 0xb20   :  { %2780 = vmatpush1.bf16.msra.mxu0 %v7299_v13  ;;  %2821 = vmatpush1.bf16.msra.mxu1 %v7302_v63  ;;  %v7317_v13 = vld [vmem:[#allocation6 + $0xa4] ss:$16 sps:$4 sm:$0xff]   ;;  %v7320_v63 = vld [vmem:[#allocation6 + $0xac] ss:$16 sps:$4 sm:$0xff]  }
 0xb21   :  { %2781 = vmatprep.subr.bf16.mxu0 %v7305_v58  ;;  %2822 = vmatprep.subr.bf16.mxu1 %v7308_v38  ;;  %9088 = vst [vmem:[#allocation118_spill] sm:$0xff] %v7317_v13  ;;  %9089 = vst [vmem:[#allocation119_spill] sm:$0xff] %v7320_v63  ;;  %v7323_v58 = vld [vmem:[#allocation6 + $0xa0] ss:$16 sps:$4 sm:$0xff]   ;;  %v7326_v38 = vld [vmem:[#allocation6 + $0xa8] ss:$16 sps:$4 sm:$0xff]  }
 0xb22   :  { %9090 = vst [vmem:[#allocation120_spill] sm:$0xff] %v7323_v58  ;;  %9091 = vst [vmem:[#allocation121_spill] sm:$0xff] %v7326_v38 }
 0xb24   :  { %2782 = vmatpush1.bf16.msra.mxu0 %v7311_v39  ;;  %2823 = vmatpush1.bf16.msra.mxu1 %v7314_v34  ;;  %v7329_v39 = vld [vmem:[#allocation6 + $0xc4] ss:$16 sps:$4 sm:$0xff]   ;;  %v7332_v34 = vld [vmem:[#allocation6 + $0xcc] ss:$16 sps:$4 sm:$0xff]  }
 0xb25   :  { %2783 = vmatprep.subr.bf16.mxu0 %v7317_v13  ;;  %2824 = vmatprep.subr.bf16.mxu1 %v7320_v63  ;;  %9092 = vst [vmem:[#allocation122_spill] sm:$0xff] %v7329_v39  ;;  %9093 = vst [vmem:[#allocation123_spill] sm:$0xff] %v7332_v34  ;;  %v7335_v13 = vld [vmem:[#allocation6 + $0xc0] ss:$16 sps:$4 sm:$0xff]   ;;  %v7338_v63 = vld [vmem:[#allocation6 + $0xc8] ss:$16 sps:$4 sm:$0xff]  }
 0xb28   :  { %2784 = vmatpush1.bf16.msra.mxu0 %v7323_v58  ;;  %2825 = vmatpush1.bf16.msra.mxu1 %v7326_v38  ;;  %v7341_v58 = vld [vmem:[#allocation6 + $0xe4] ss:$16 sps:$4 sm:$0xff]   ;;  %v7344_v38 = vld [vmem:[#allocation6 + $0xec] ss:$16 sps:$4 sm:$0xff]  }
 0xb29   :  { %2785 = vmatprep.subr.bf16.mxu0 %v7329_v39  ;;  %2826 = vmatprep.subr.bf16.mxu1 %v7332_v34  ;;  %9094 = vst [vmem:[#allocation124_spill] sm:$0xff] %v7344_v38  ;;  %v7347_v39 = vld [vmem:[#allocation6 + $0xe0] ss:$16 sps:$4 sm:$0xff]   ;;  %v7351_v34 = vld [vmem:[#allocation8 + $0x4] ss:$16 sps:$4 sm:$0xff]  }
 0xb2c   :  { %2786 = vmatpush1.bf16.msra.mxu0 %v7335_v13  ;;  %2827 = vmatpush1.bf16.msra.mxu1 %v7338_v63 }
 0xb2d   :  { %2787 = vmatprep.subr.bf16.mxu0 %v7341_v58  ;;  %2828 = vmatprep.subr.bf16.mxu1 %v7344_v38  ;;  %v7359_v38 = vld [vmem:[#allocation8] ss:$16 sps:$4 sm:$0xff]  }
 0xb30   :  { %2788 = vmatpush1.bf16.msra.mxu0 %v7347_v39  ;;  %2829 = vmatpush1.bf16.msra.mxu1 %v6844_v10  ;;  %v7363_v10 = vld [vmem:[#allocation8 + $0x24] ss:$16 sps:$4 sm:$0xff]  }
 0xb31   :  { %2884 = vmatprep.subr.bf16.mxu0 %v7351_v34  ;;  %2925 = vmatprep.subr.bf16.mxu1 %v6848_v62  ;;  %v9095_v62 = vld [vmem:[#allocation19_spill] sm:$0xff] }
 0xb33   :  { %2806 = vmatmul.mubr.bf16.vlgmr.msra.gmra.mrb[60].mxu0 %v7053_v24  ;;  %2847 = vmatmul.mubr.bf16.vlgmr.msra.gmra.mrb[60].mxu1 %v7053_v24  ;;  %v9126_v24 = vld [vmem:[#allocation50_spill] sm:$0xff] }
 0xb34   :  { %2916 = vmatprep.mubr.bf16.mxu0 %v7257_v23  ;;  %2957 = vmatprep.mubr.bf16.mxu1 %v7257_v23 }
 0xb35   :  { %2885 = vmatpush1.bf16.msra.mxu0 %v7359_v38  ;;  %2926 = vmatpush1.bf16.msra.mxu1 %v6854_v31  ;;  %v9096_v31 = vld [vmem:[#allocation20_spill] sm:$0xff] }
 0xb36   :  { %2886 = vmatprep.subr.bf16.mxu0 %v7363_v10  ;;  %2927 = vmatprep.subr.bf16.mxu1 %v6858_v27  ;;  %v9097_v27 = vld [vmem:[#allocation21_spill] sm:$0xff] }
 0xb39   :  { %2887 = vmatpush1.bf16.msra.mxu0 %v6861_v35  ;;  %2928 = vmatpush1.bf16.msra.mxu1 %v6864_v17  ;;  %v9098_v35 = vld [vmem:[#allocation22_spill] sm:$0xff]  ;;  %v9099_v17 = vld [vmem:[#allocation23_spill] sm:$0xff] }
 0xb3a   :  { %2888 = vmatprep.subr.bf16.mxu0 %v6867_v16  ;;  %2929 = vmatprep.subr.bf16.mxu1 %v6870_v60  ;;  %v9100_v16 = vld [vmem:[#allocation24_spill] sm:$0xff]  ;;  %v9101_v60 = vld [vmem:[#allocation25_spill] sm:$0xff] }
 0xb3d   :  { %2889 = vmatpush1.bf16.msra.mxu0 %v6873_v40  ;;  %2930 = vmatpush1.bf16.msra.mxu1 %v6876_v49  ;;  %v9102_v40 = vld [vmem:[#allocation26_spill] sm:$0xff]  ;;  %v9103_v49 = vld [vmem:[#allocation27_spill] sm:$0xff] }
 0xb3e   :  { %2890 = vmatprep.subr.bf16.mxu0 %v6879_v21  ;;  %2931 = vmatprep.subr.bf16.mxu1 %v6882_v29  ;;  %v9104_v21 = vld [vmem:[#allocation28_spill] sm:$0xff]  ;;  %v9105_v29 = vld [vmem:[#allocation29_spill] sm:$0xff] }
 0xb41   :  { %2891 = vmatpush1.bf16.msra.mxu0 %v6885_v0  ;;  %2932 = vmatpush1.bf16.msra.mxu1 %v6888_v18  ;;  %v9106_v0 = vld [vmem:[#allocation30_spill] sm:$0xff]  ;;  %v9107_v18 = vld [vmem:[#allocation31_spill] sm:$0xff] }
 0xb42   :  { %2892 = vmatprep.subr.bf16.mxu0 %v6891_v33  ;;  %2933 = vmatprep.subr.bf16.mxu1 %v6894_v44  ;;  %v9108_v33 = vld [vmem:[#allocation32_spill] sm:$0xff]  ;;  %v9109_v44 = vld [vmem:[#allocation33_spill] sm:$0xff] }
 0xb45   :  { %2893 = vmatpush1.bf16.msra.mxu0 %v6897_v30  ;;  %2934 = vmatpush1.bf16.msra.mxu1 %v6900_v45  ;;  %v9110_v30 = vld [vmem:[#allocation34_spill] sm:$0xff]  ;;  %v9111_v45 = vld [vmem:[#allocation35_spill] sm:$0xff] }
 0xb46   :  { %2894 = vmatprep.subr.bf16.mxu0 %v6903_v46  ;;  %2935 = vmatprep.subr.bf16.mxu1 %v6906_v47  ;;  %v9112_v46 = vld [vmem:[#allocation36_spill] sm:$0xff]  ;;  %v9113_v47 = vld [vmem:[#allocation37_spill] sm:$0xff] }
 0xb49   :  { %2895 = vmatpush1.bf16.msra.mxu0 %v6909_v1  ;;  %2936 = vmatpush1.bf16.msra.mxu1 %v6912_v51  ;;  %v9114_v1 = vld [vmem:[#allocation38_spill] sm:$0xff]  ;;  %v9115_v51 = vld [vmem:[#allocation39_spill] sm:$0xff] }
 0xb4a   :  { %2896 = vmatprep.subr.bf16.mxu0 %v6915_v41  ;;  %2937 = vmatprep.subr.bf16.mxu1 %v6918_v25  ;;  %v9116_v41 = vld [vmem:[#allocation40_spill] sm:$0xff]  ;;  %v9117_v25 = vld [vmem:[#allocation41_spill] sm:$0xff] }
 0xb4d   :  { %2897 = vmatpush1.bf16.msra.mxu0 %v6921_v14  ;;  %2938 = vmatpush1.bf16.msra.mxu1 %v6924_v12  ;;  %v9118_v14 = vld [vmem:[#allocation42_spill] sm:$0xff]  ;;  %v9119_v12 = vld [vmem:[#allocation43_spill] sm:$0xff] }
 0xb4e   :  { %2898 = vmatprep.subr.bf16.mxu0 %v6927_v36  ;;  %2939 = vmatprep.subr.bf16.mxu1 %v6930_v52  ;;  %v9120_v36 = vld [vmem:[#allocation44_spill] sm:$0xff]  ;;  %v9121_v52 = vld [vmem:[#allocation45_spill] sm:$0xff] }
 0xb51   :  { %2899 = vmatpush1.bf16.msra.mxu0 %v6933_v53  ;;  %2940 = vmatpush1.bf16.msra.mxu1 %v6936_v54  ;;  %v9122_v53 = vld [vmem:[#allocation46_spill] sm:$0xff]  ;;  %v9123_v54 = vld [vmem:[#allocation47_spill] sm:$0xff] }
 0xb52   :  { %2900 = vmatprep.subr.bf16.mxu0 %v6939_v55  ;;  %2941 = vmatprep.subr.bf16.mxu1 %v6942_v56  ;;  %v9124_v55 = vld [vmem:[#allocation48_spill] sm:$0xff]  ;;  %v9125_v56 = vld [vmem:[#allocation49_spill] sm:$0xff] }
 0xb55   :  { %2901 = vmatpush1.bf16.msra.mxu0 %v9095_v62  ;;  %2942 = vmatpush1.bf16.msra.mxu1 %v9096_v31  ;;  %v9127_v31 = vld [vmem:[#allocation16_spill] sm:$0xff] }
 0xb56   :  { %2902 = vmatprep.subr.bf16.mxu0 %v9097_v27  ;;  %2943 = vmatprep.subr.bf16.mxu1 %v9098_v35 }
 0xb59   :  { %2903 = vmatpush1.bf16.msra.mxu0 %v9099_v17  ;;  %2944 = vmatpush1.bf16.msra.mxu1 %v9100_v16  ;;  %v9128_v16 = vld [vmem:[#allocation17_spill] sm:$0xff] }
 0xb5a   :  { %2904 = vmatprep.subr.bf16.mxu0 %v9101_v60  ;;  %2945 = vmatprep.subr.bf16.mxu1 %v9102_v40 }
 0xb5d   :  { %2905 = vmatpush1.bf16.msra.mxu0 %v9103_v49  ;;  %2946 = vmatpush1.bf16.msra.mxu1 %v9104_v21 }
 0xb5e   :  { %2906 = vmatprep.subr.bf16.mxu0 %v9105_v29  ;;  %2947 = vmatprep.subr.bf16.mxu1 %v9106_v0 }
 0xb61   :  { %2907 = vmatpush1.bf16.msra.mxu0 %v9107_v18  ;;  %2948 = vmatpush1.bf16.msra.mxu1 %v9108_v33  ;;  %v9129_v33 = vld [vmem:[#allocation18_spill] sm:$0xff] }
 0xb62   :  { %2908 = vmatprep.subr.bf16.mxu0 %v9109_v44  ;;  %2949 = vmatprep.subr.bf16.mxu1 %v9110_v30 }
 0xb65   :  { %2909 = vmatpush1.bf16.msra.mxu0 %v9111_v45  ;;  %2950 = vmatpush1.bf16.msra.mxu1 %v9112_v46 }
 0xb66   :  { %2910 = vmatprep.subr.bf16.mxu0 %v9113_v47  ;;  %2951 = vmatprep.subr.bf16.mxu1 %v9114_v1  ;;  %v2767_v1 = vld [vmem:[#allocation3 + $0x50] sm:$0xff] }
 0xb69   :  { %2911 = vmatpush1.bf16.msra.mxu0 %v9115_v51  ;;  %2952 = vmatpush1.bf16.msra.mxu1 %v9116_v41 }
 0xb6a   :  { %2912 = vmatprep.subr.bf16.mxu0 %v9117_v25  ;;  %2953 = vmatprep.subr.bf16.mxu1 %v9118_v14  ;;  %v2769_v14 = vunpack.c.l.bf16 %v2767_v1 }
 0xb6d   :  { %2913 = vmatpush1.bf16.msra.mxu0 %v9119_v12  ;;  %2954 = vmatpush1.bf16.msra.mxu1 %v9120_v36  ;;  %v2770_v36 = vunpack.c.h.bf16 %v2767_v1 }
 0xb6e   :  { %2914 = vmatprep.subr.bf16.mxu0 %v9121_v52  ;;  %2955 = vmatprep.subr.bf16.mxu1 %v9122_v53 }
 0xb71   :  { %2915 = vmatpush1.bf16.msra.mxu0 %v9123_v54  ;;  %2956 = vmatpush1.bf16.msra.mxu1 %v9124_v55 }
 0xb72   :  { %2992 = vmatprep.subr.bf16.mxu0 %v9125_v56  ;;  %3033 = vmatprep.subr.bf16.mxu1 %v9126_v24 }
 0xbe6   :  { %v2694_v23 = vpop.f32.mrb[56].mxu0  ;;  %v2735_v62 = vpop.f32.mrb[56].mxu1 }
 0xbe7   :  { %v2695_v27 = vadd.f32 %v2694_v23, %v9127_v31  ;;  %v2696_v35 = vpop.f32.mrb[57].mxu0  ;;  %v2737_v17 = vpop.f32.mrb[57].mxu1 }
 0xbe8   :  { %v2697_v60 = vadd.f32 %v2696_v35, %v9128_v16  ;;  %v2698_v40 = vpop.f32.mrb[58].mxu0  ;;  %v2739_v49 = vpop.f32.mrb[58].mxu1  ;;  %v2738_v44 = vadd.f32 %v2737_v17, %v9129_v33 }
 0xbe9   :  { %v3991_v21 = vmul.f32 -1.442695, %v2695_v27  ;;  %v2699_v29 = vpop.f32.mrb[59].mxu0  ;;  %v2740_v0 = vpop.f32.mrb[59].mxu1  ;;  %v2768_v27 = vld [vmem:[#allocation3 + $0x58] sm:$0xff] }
 0xbea   :  { %v3992_v18 = vmul.f32 -1.442695, %v2697_v60  ;;  %v2771_v0 = vunpack.c.l.bf16 %v2768_v27 }
 0xbeb   :  { %4494 = vpow2.f32 %v3991_v21 }
 0xbec   :  { %4496 = vpow2.f32 %v3992_v18  ;;  %v2736_v18 = vadd.f32 %v2735_v62, %v6027_v57 }
 0xbed   :  { %4498 = vtanh.f32 %v2738_v44 }
 0xbf5   :  { %v4495_v30 = vpop.eup %4494 }
 0xbf6   :  { %v2751_v45 = vadd.f32 1.0, %v4495_v30  ;;  %v4497_v46 = vpop.eup %4496  ;;  %v3993_v30 = vmul.f32 -1.442695, %v2736_v18  ;;  %v9133_v18 = vld [vmem:[#allocation54_spill] sm:$0xff] }
 0xbf7   :  { %v2752_v47 = vadd.f32 1.0, %v4497_v46  ;;  %v4499_v51 = vpop.eup %4498 }
 0xbf8   :  { %4500 = vrcp.f32 %v2751_v45 }
 0xbf9   :  { %4502 = vrcp.f32 %v2752_v47 }
 0xc02   :  { %v4501_v41 = vpop.eup %4500 }
 0xc03   :  { %v2762_v25 = vmul.f32 %v4501_v41, %v4499_v51  ;;  %v4503_v12 = vpop.eup %4502 }
 0xc04   :  { %v2761_v52 = vmul.f32 %v4503_v12, %v7045_v42  ;;  %v2772_v42 = vunpack.c.h.bf16 %v2768_v27 }
 0xc06   :  { %v2807_v53 = vpop.f32.mrb[60].mxu0  ;;  %v2848_v54 = vpop.f32.mrb[60].mxu1  ;;  %v7431_v55 = vadd.f32 %v2762_v25, %v2761_v52 }
 0xc07   :  { %v2855_v56 = vadd.f32 %v2807_v53, %v2769_v14  ;;  %v2809_v24 = vpop.f32.mrb[61].mxu0  ;;  %v2850_v23 = vpop.f32.mrb[61].mxu1  ;;  %v2857_v44 = vadd.f32 %v2848_v54, %v2771_v0  ;;  %v9132_v0 = vld [vmem:[#allocation53_spill] sm:$0xff] }
 0xc08   :  { %v2856_v35 = vadd.f32 %v2809_v24, %v2770_v36  ;;  %v2811_v17 = vpop.f32.mrb[62].mxu0  ;;  %v2852_v60 = vpop.f32.mrb[62].mxu1  ;;  %v2858_v45 = vadd.f32 %v2850_v23, %v2772_v42  ;;  %v9134_v42 = vld [vmem:[#allocation55_spill] sm:$0xff] }
 0xc09   :  { %v3994_v40 = vmul.f32 -1.442695, %v2855_v56  ;;  %v2812_v49 = vpop.f32.mrb[63].mxu0  ;;  %v2853_v21 = vpop.f32.mrb[63].mxu1  ;;  %v3996_v46 = vmul.f32 -1.442695, %v2857_v44 }
 0xc0a   :  { %v3995_v29 = vmul.f32 -1.442695, %v2856_v35  ;;  %v9135_v44 = vld [vmem:[#allocation56_spill] sm:$0xff] }
 0xc0b   :  { %4504 = vpow2.f32 %v3994_v40 }
 0xc0c   :  { %4506 = vpow2.f32 %v3995_v29  ;;  %v9131_v29 = vld [vmem:[#allocation52_spill] sm:$0xff] }
 0xc0d   :  { %4508 = vpow2.f32 %v3993_v30  ;;  %v9141_v30 = vld [vmem:[#allocation62_spill] sm:$0xff] }
 0xc0e   :  { %4510 = vtanh.f32 %v2858_v45  ;;  %v9142_v45 = vld [vmem:[#allocation63_spill] sm:$0xff] }
 0xc0f   :  { %4512 = vpow2.f32 %v3996_v46  ;;  %v9143_v46 = vld [vmem:[#allocation64_spill] sm:$0xff] }
 0xc15   :  { %v4505_v47 = vpop.eup %4504 }
 0xc16   :  { %v2868_v1 = vadd.f32 1.0, %v4505_v47  ;;  %v4507_v51 = vpop.eup %4506  ;;  %v9144_v47 = vld [vmem:[#allocation65_spill] sm:$0xff] }
 0xc17   :  { %v2869_v41 = vadd.f32 1.0, %v4507_v51  ;;  %v4509_v25 = vpop.eup %4508  ;;  %v9146_v51 = vld [vmem:[#allocation67_spill] sm:$0xff] }
 0xc18   :  { %4514 = vrcp.f32 %v2868_v1  ;;  %v4511_v14 = vpop.eup %4510  ;;  %v2753_v62 = vadd.f32 1.0, %v4509_v25  ;;  %v9145_v1 = vld [vmem:[#allocation66_spill] sm:$0xff]  ;;  %v9148_v25 = vld [vmem:[#allocation69_spill] sm:$0xff] }
 0xc19   :  { %4516 = vrcp.f32 %v2869_v41  ;;  %v4513_v12 = vpop.eup %4512  ;;  %v9147_v41 = vld [vmem:[#allocation68_spill] sm:$0xff] }
 0xc1a   :  { %v2870_v54 = vadd.f32 1.0, %v4513_v12  ;;  %4518 = vtanh.f32 %v7431_v55  ;;  %v9150_v12 = vld [vmem:[#allocation71_spill] sm:$0xff] }
 0xc1b   :  { %4520 = vrcp.f32 %v2753_v62  ;;  %v9152_v62 = vld [vmem:[#allocation73_spill] sm:$0xff] }
 0xc1c   :  { %4522 = vrcp.f32 %v2870_v54  ;;  %v9155_v54 = vld [vmem:[#allocation76_spill] sm:$0xff] }
 0xc22   :  { %v4515_v36 = vpop.eup %4514 }
 0xc23   :  { %v2879_v52 = vmul.f32 %v4515_v36, %v4511_v14  ;;  %v4517_v53 = vpop.eup %4516  ;;  %v9149_v14 = vld [vmem:[#allocation70_spill] sm:$0xff]  ;;  %v9151_v36 = vld [vmem:[#allocation72_spill] sm:$0xff] }
 0xc24   :  { %v2878_v56 = vmul.f32 %v4517_v53, %v7050_v4  ;;  %v4519_v23 = vpop.eup %4518  ;;  %v9130_v4 = vld [vmem:[#allocation51_spill] sm:$0xff] }
 0xc25   :  { %v4521_v27 = vpop.eup %4520  ;;  %v9154_v53 = vld [vmem:[#allocation75_spill] sm:$0xff] }
 0xc26   :  { %v7436_v24 = vadd.f32 %v2879_v52, %v2878_v56  ;;  %v4523_v35 = vpop.eup %4522  ;;  %v2765_v60 = vmul.f32 %v4521_v27, %v4519_v23  ;;  %v9153_v52 = vld [vmem:[#allocation74_spill] sm:$0xff]  ;;  %v9156_v56 = vld [vmem:[#allocation77_spill] sm:$0xff]  ;;  %v9158_v27 = vld [vmem:[#allocation79_spill] sm:$0xff] }
 0xc27   :  { %v9157_v23 = vld [vmem:[#allocation78_spill] sm:$0xff] }
 0xc28   :  { %4524 = vtanh.f32 %v7436_v24  ;;  %v2991_v21 = vpack.c.bf16 %v2765_v60, %v2765_v60  ;;  %v9161_v60 = vld [vmem:[#allocation82_spill] sm:$0xff] }
 0xc32   :  { %v4525_v17 = vpop.eup %4524 }
 0xc33   :  { %v2882_v40 = vmul.f32 %v4525_v17, %v4523_v35  ;;  %v9159_v35 = vld [vmem:[#allocation80_spill] sm:$0xff]  ;;  %v9160_v17 = vld [vmem:[#allocation81_spill] sm:$0xff] }
 0xc35   :  { %v7439_v49 = vpack.c.bf16 %v2882_v40, %v2882_v40  ;;  %v9162_v40 = vld [vmem:[#allocation83_spill] sm:$0xff] }
 0xc37   :  { %2917 = vmatmul.mubr.bf16.vlgmr.msra.gmra.mrb[64].mxu0 %v7439_v49  ;;  %2958 = vmatmul.mubr.bf16.vlgmr.msra.gmra.mrb[64].mxu1 %v7439_v49 }
 0xc38   :  { %3024 = vmatprep.mubr.bf16.mxu0 %v2991_v21  ;;  %3065 = vmatprep.mubr.bf16.mxu1 %v2991_v21  ;;  %v9163_v21 = vld [vmem:[#allocation84_spill] sm:$0xff] }
 0xc39   :  { %2993 = vmatpush1.bf16.msra.mxu0 %v7057_v20  ;;  %3034 = vmatpush1.bf16.msra.mxu1 %v7060_v48  ;;  %v9136_v20 = vld [vmem:[#allocation57_spill] sm:$0xff]  ;;  %v9137_v48 = vld [vmem:[#allocation58_spill] sm:$0xff] }
 0xc3a   :  { %2994 = vmatprep.subr.bf16.mxu0 %v7063_v26  ;;  %3035 = vmatprep.subr.bf16.mxu1 %v7066_v9  ;;  %v9138_v26 = vld [vmem:[#allocation59_spill] sm:$0xff]  ;;  %v9139_v9 = vld [vmem:[#allocation60_spill] sm:$0xff] }
 0xc3d   :  { %2995 = vmatpush1.bf16.msra.mxu0 %v7069_v5  ;;  %3036 = vmatpush1.bf16.msra.mxu1 %v9130_v4  ;;  %v9140_v5 = vld [vmem:[#allocation61_spill] sm:$0xff] }
 0xc3e   :  { %2996 = vmatprep.subr.bf16.mxu0 %v9131_v29  ;;  %3037 = vmatprep.subr.bf16.mxu1 %v9132_v0  ;;  %v9164_v4 = vld [vmem:[#allocation85_spill] sm:$0xff]  ;;  %v9165_v29 = vld [vmem:[#allocation86_spill] sm:$0xff]  ;;  %v9166_v0 = vld [vmem:[#allocation87_spill] sm:$0xff] }
 0xc41   :  { %2997 = vmatpush1.bf16.msra.mxu0 %v9133_v18  ;;  %3038 = vmatpush1.bf16.msra.mxu1 %v9134_v42  ;;  %v9167_v18 = vld [vmem:[#allocation88_spill] sm:$0xff]  ;;  %v9168_v42 = vld [vmem:[#allocation89_spill] sm:$0xff] }
 0xc42   :  { %2998 = vmatprep.subr.bf16.mxu0 %v9135_v44  ;;  %3039 = vmatprep.subr.bf16.mxu1 %v9136_v20  ;;  %v9169_v44 = vld [vmem:[#allocation90_spill] sm:$0xff]  ;;  %v9170_v20 = vld [vmem:[#allocation91_spill] sm:$0xff] }
 0xc45   :  { %2999 = vmatpush1.bf16.msra.mxu0 %v9137_v48  ;;  %3040 = vmatpush1.bf16.msra.mxu1 %v9138_v26  ;;  %v9171_v48 = vld [vmem:[#allocation92_spill] sm:$0xff]  ;;  %v9172_v26 = vld [vmem:[#allocation93_spill] sm:$0xff] }
 0xc46   :  { %3000 = vmatprep.subr.bf16.mxu0 %v9139_v9  ;;  %3041 = vmatprep.subr.bf16.mxu1 %v9140_v5  ;;  %v9173_v9 = vld [vmem:[#allocation94_spill] sm:$0xff]  ;;  %v9174_v5 = vld [vmem:[#allocation95_spill] sm:$0xff] }
 0xc49   :  { %3001 = vmatpush1.bf16.msra.mxu0 %v9141_v30  ;;  %3042 = vmatpush1.bf16.msra.mxu1 %v9142_v45  ;;  %v9175_v30 = vld [vmem:[#allocation96_spill] sm:$0xff]  ;;  %v9176_v45 = vld [vmem:[#allocation97_spill] sm:$0xff] }
 0xc4a   :  { %3002 = vmatprep.subr.bf16.mxu0 %v9143_v46  ;;  %3043 = vmatprep.subr.bf16.mxu1 %v9144_v47  ;;  %v9177_v46 = vld [vmem:[#allocation98_spill] sm:$0xff]  ;;  %v9178_v47 = vld [vmem:[#allocation99_spill] sm:$0xff] }
 0xc4d   :  { %3003 = vmatpush1.bf16.msra.mxu0 %v9145_v1  ;;  %3044 = vmatpush1.bf16.msra.mxu1 %v9146_v51  ;;  %v9179_v1 = vld [vmem:[#allocation100_spill] sm:$0xff]  ;;  %v9180_v51 = vld [vmem:[#allocation101_spill] sm:$0xff] }
 0xc4e   :  { %3004 = vmatprep.subr.bf16.mxu0 %v9147_v41  ;;  %3045 = vmatprep.subr.bf16.mxu1 %v9148_v25  ;;  %v9181_v41 = vld [vmem:[#allocation102_spill] sm:$0xff]  ;;  %v9182_v25 = vld [vmem:[#allocation103_spill] sm:$0xff] }
 0xc51   :  { %3005 = vmatpush1.bf16.msra.mxu0 %v9149_v14  ;;  %3046 = vmatpush1.bf16.msra.mxu1 %v9150_v12  ;;  %v9183_v14 = vld [vmem:[#allocation104_spill] sm:$0xff]  ;;  %v9184_v12 = vld [vmem:[#allocation105_spill] sm:$0xff] }
 0xc52   :  { %3006 = vmatprep.subr.bf16.mxu0 %v9151_v36  ;;  %3047 = vmatprep.subr.bf16.mxu1 %v9152_v62  ;;  %v9185_v36 = vld [vmem:[#allocation106_spill] sm:$0xff]  ;;  %v9186_v62 = vld [vmem:[#allocation107_spill] sm:$0xff] }
 0xc55   :  { %3007 = vmatpush1.bf16.msra.mxu0 %v9153_v52  ;;  %3048 = vmatpush1.bf16.msra.mxu1 %v9154_v53  ;;  %v9187_v52 = vld [vmem:[#allocation108_spill] sm:$0xff]  ;;  %v9188_v53 = vld [vmem:[#allocation109_spill] sm:$0xff] }
 0xc56   :  { %3008 = vmatprep.subr.bf16.mxu0 %v9155_v54  ;;  %3049 = vmatprep.subr.bf16.mxu1 %v9156_v56 }
 0xc59   :  { %3009 = vmatpush1.bf16.msra.mxu0 %v9157_v23  ;;  %3050 = vmatpush1.bf16.msra.mxu1 %v9158_v27 }
 0xc5a   :  { %3010 = vmatprep.subr.bf16.mxu0 %v9159_v35  ;;  %3051 = vmatprep.subr.bf16.mxu1 %v9160_v17 }
 0xc5d   :  { %3011 = vmatpush1.bf16.msra.mxu0 %v9161_v60  ;;  %3052 = vmatpush1.bf16.msra.mxu1 %v9162_v40 }
 0xc5e   :  { %3012 = vmatprep.subr.bf16.mxu0 %v9163_v21  ;;  %3053 = vmatprep.subr.bf16.mxu1 %v9164_v4 }
 0xc61   :  { %3013 = vmatpush1.bf16.msra.mxu0 %v9165_v29  ;;  %3054 = vmatpush1.bf16.msra.mxu1 %v9166_v0 }
 0xc62   :  { %3014 = vmatprep.subr.bf16.mxu0 %v9167_v18  ;;  %3055 = vmatprep.subr.bf16.mxu1 %v9168_v42 }
 0xc65   :  { %3015 = vmatpush1.bf16.msra.mxu0 %v9169_v44  ;;  %3056 = vmatpush1.bf16.msra.mxu1 %v9170_v20 }
 0xc66   :  { %3016 = vmatprep.subr.bf16.mxu0 %v9171_v48  ;;  %3057 = vmatprep.subr.bf16.mxu1 %v9172_v26 }
 0xc69   :  { %3017 = vmatpush1.bf16.msra.mxu0 %v9173_v9  ;;  %3058 = vmatpush1.bf16.msra.mxu1 %v9174_v5 }
 0xc6a   :  { %3018 = vmatprep.subr.bf16.mxu0 %v9175_v30  ;;  %3059 = vmatprep.subr.bf16.mxu1 %v9176_v45 }
 0xc6d   :  { %3019 = vmatpush1.bf16.msra.mxu0 %v9177_v46  ;;  %3060 = vmatpush1.bf16.msra.mxu1 %v9178_v47 }
 0xc6e   :  { %3020 = vmatprep.subr.bf16.mxu0 %v9179_v1  ;;  %3061 = vmatprep.subr.bf16.mxu1 %v9180_v51 }
 0xc71   :  { %3021 = vmatpush1.bf16.msra.mxu0 %v9181_v41  ;;  %3062 = vmatpush1.bf16.msra.mxu1 %v9182_v25 }
 0xc72   :  { %3022 = vmatprep.subr.bf16.mxu0 %v9183_v14  ;;  %3063 = vmatprep.subr.bf16.mxu1 %v9184_v12 }
 0xc75   :  { %3023 = vmatpush1.bf16.msra.mxu0 %v9185_v36  ;;  %3064 = vmatpush1.bf16.msra.mxu1 %v9186_v62  ;;  %v9200_v62 = vld [vmem:[#allocation121_spill] sm:$0xff] }
 0xc76   :  { %3105 = vmatprep.subr.bf16.mxu0 %v9187_v52  ;;  %3146 = vmatprep.subr.bf16.mxu1 %v9188_v53  ;;  %v9201_v52 = vld [vmem:[#allocation122_spill] sm:$0xff]  ;;  %v9202_v53 = vld [vmem:[#allocation123_spill] sm:$0xff] }
 0xd0a   :  { %v2918_v54 = vpop.f32.mrb[64].mxu0  ;;  %v2959_v56 = vpop.f32.mrb[64].mxu1 }
 0xd0b   :  { %v2919_v23 = vadd.f32 %v2918_v54, %v8755_v37  ;;  %v2920_v27 = vpop.f32.mrb[65].mxu0  ;;  %v2961_v35 = vpop.f32.mrb[65].mxu1  ;;  %v2960_v18 = vadd.f32 %v2959_v56, %v5824_v22  ;;  %v9203_v54 = vld [vmem:[#allocation124_spill] sm:$0xff] }
 0xd0c   :  { %v2921_v17 = vadd.f32 %v2920_v27, %v8756_v43  ;;  %v2922_v60 = vpop.f32.mrb[66].mxu0  ;;  %v2963_v40 = vpop.f32.mrb[66].mxu1  ;;  %v2962_v42 = vadd.f32 %v2961_v35, %v5828_v28  ;;  %v7546_v56 = vld [vmem:[#allocation6 + $0xe8] ss:$16 sps:$4 sm:$0xff]   ;;  %v7581_v27 = vld [vmem:[#allocation8 + $0x64] ss:$16 sps:$4 sm:$0xff]  }
 0xd0d   :  { %v3997_v21 = vmul.f32 -1.442695, %v2919_v23  ;;  %v2923_v4 = vpop.f32.mrb[67].mxu0  ;;  %v2964_v29 = vpop.f32.mrb[67].mxu1  ;;  %v3999_v44 = vmul.f32 -1.442695, %v2960_v18 }
 0xd0e   :  { %v3998_v0 = vmul.f32 -1.442695, %v2921_v17  ;;  %v7550_v23 = vld [vmem:[#allocation8 + $0xc] ss:$16 sps:$4 sm:$0xff]   ;;  %v7587_v17 = vld [vmem:[#allocation8 + $0x60] ss:$16 sps:$4 sm:$0xff]  }
 0xd0f   :  { %4526 = vpow2.f32 %v3997_v21  ;;  %v7584_v35 = vld [vmem:[#allocation8 + $0x6c] ss:$16 sps:$4 sm:$0xff]   ;;  %v7590_v60 = vld [vmem:[#allocation8 + $0x68] ss:$16 sps:$4 sm:$0xff]   ;;  %v7593_v40 = vld [vmem:[#allocation8 + $0x84] ss:$16 sps:$4 sm:$0xff]  }
 0xd10   :  { %4528 = vpow2.f32 %v3998_v0  ;;  %v7596_v21 = vld [vmem:[#allocation8 + $0x8c] ss:$16 sps:$4 sm:$0xff]   ;;  %v7599_v4 = vld [vmem:[#allocation8 + $0x80] ss:$16 sps:$4 sm:$0xff]   ;;  %v7602_v29 = vld [vmem:[#allocation8 + $0x88] ss:$16 sps:$4 sm:$0xff]  }
 0xd11   :  { %4530 = vtanh.f32 %v2962_v42  ;;  %v7605_v0 = vld [vmem:[#allocation8 + $0xa4] ss:$16 sps:$4 sm:$0xff]   ;;  %v7608_v18 = vld [vmem:[#allocation8 + $0xac] ss:$16 sps:$4 sm:$0xff]   ;;  %v7611_v42 = vld [vmem:[#allocation8 + $0xa0] ss:$16 sps:$4 sm:$0xff]  }
 0xd12   :  { %4532 = vpow2.f32 %v3999_v44  ;;  %v7614_v44 = vld [vmem:[#allocation8 + $0xa8] ss:$16 sps:$4 sm:$0xff]  }
 0xd19   :  { %v4527_v20 = vpop.eup %4526 }
 0xd1a   :  { %v2975_v48 = vadd.f32 1.0, %v4527_v20  ;;  %v4529_v26 = vpop.eup %4528  ;;  %v7617_v20 = vld [vmem:[#allocation8 + $0xc4] ss:$16 sps:$4 sm:$0xff]  }
 0xd1b   :  { %v2976_v9 = vadd.f32 1.0, %v4529_v26  ;;  %v4531_v5 = vpop.eup %4530  ;;  %v7623_v26 = vld [vmem:[#allocation8 + $0xc0] ss:$16 sps:$4 sm:$0xff]  }
 0xd1c   :  { %4534 = vrcp.f32 %v2975_v48  ;;  %v4533_v30 = vpop.eup %4532  ;;  %v7620_v48 = vld [vmem:[#allocation8 + $0xcc] ss:$16 sps:$4 sm:$0xff]  }
 0xd1d   :  { %4536 = vrcp.f32 %v2976_v9  ;;  %v2977_v1 = vadd.f32 1.0, %v4533_v30  ;;  %v7626_v9 = vld [vmem:[#allocation8 + $0xc8] ss:$16 sps:$4 sm:$0xff]   ;;  %v7632_v30 = vld [vmem:[#allocation8 + $0xec] ss:$16 sps:$4 sm:$0xff]  }
 0xd1f   :  { %4538 = vrcp.f32 %v2977_v1  ;;  %v7644_v1 = vld [vmem:[#allocation8 + $0x10c] ss:$16 sps:$4 sm:$0xff]  }
 0xd26   :  { %v4535_v45 = vpop.eup %4534 }
 0xd27   :  { %v2986_v46 = vmul.f32 %v4535_v45, %v4531_v5  ;;  %v4537_v47 = vpop.eup %4536  ;;  %v7629_v5 = vld [vmem:[#allocation8 + $0xe4] ss:$16 sps:$4 sm:$0xff]   ;;  %v7635_v45 = vld [vmem:[#allocation8 + $0xe0] ss:$16 sps:$4 sm:$0xff]  }
 0xd28   :  { %v2985_v51 = vmul.f32 %v4537_v47, %v7254_v59  ;;  %v9189_v59 = vld [vmem:[#allocation110_spill] sm:$0xff]  ;;  %v7641_v47 = vld [vmem:[#allocation8 + $0x104] ss:$16 sps:$4 sm:$0xff]  }
 0xd29   :  { %v4539_v25 = vpop.eup %4538 }
 0xd2a   :  { %v7512_v41 = vadd.f32 %v2986_v46, %v2985_v51  ;;  %v7638_v46 = vld [vmem:[#allocation8 + $0xe8] ss:$16 sps:$4 sm:$0xff]   ;;  %v7647_v51 = vld [vmem:[#allocation8 + $0x100] ss:$16 sps:$4 sm:$0xff]  }
 0xd2b   :  { %9204 = vst [vmem:[#allocation19_spill] sm:$0xff] %v7647_v51 }
 0xd2c   :  { %4540 = vtanh.f32 %v7512_v41 }
 0xd36   :  { %v4541_v14 = vpop.eup %4540 }
 0xd37   :  { %v2989_v12 = vmul.f32 %v4541_v14, %v4539_v25  ;;  %v7650_v25 = vld [vmem:[#allocation8 + $0x108] ss:$16 sps:$4 sm:$0xff]   ;;  %v7653_v14 = vld [vmem:[#allocation8 + $0x124] ss:$16 sps:$4 sm:$0xff]  }
 0xd38   :  { %9205 = vst [vmem:[#allocation20_spill] sm:$0xff] %v7650_v25  ;;  %9206 = vst [vmem:[#allocation21_spill] sm:$0xff] %v7653_v14 }
 0xd39   :  { %v2990_v36 = vpack.c.bf16 %v2989_v12, %v2989_v12  ;;  %v7656_v12 = vld [vmem:[#allocation8 + $0x12c] ss:$16 sps:$4 sm:$0xff]  }
 0xd3a   :  { %9207 = vst [vmem:[#allocation22_spill] sm:$0xff] %v7656_v12 }
 0xd3b   :  { %3025 = vmatmul.mubr.bf16.vlgmr.msra.gmra.mrb[68].mxu0 %v2990_v36  ;;  %3066 = vmatmul.mubr.bf16.vlgmr.msra.gmra.mrb[68].mxu1 %v2990_v36 }
 0xd3c   :  { %3106 = vmatpush1.bf16.msra.mxu0 %v7261_v2  ;;  %3147 = vmatpush1.bf16.msra.mxu1 %v7264_v8  ;;  %v9190_v2 = vld [vmem:[#allocation111_spill] sm:$0xff]  ;;  %v9191_v8 = vld [vmem:[#allocation112_spill] sm:$0xff] }
 0xd3d   :  { %3107 = vmatprep.subr.bf16.mxu0 %v7267_v61  ;;  %3148 = vmatprep.subr.bf16.mxu1 %v7270_v15  ;;  %v9192_v61 = vld [vmem:[#allocation113_spill] sm:$0xff]  ;;  %v9193_v15 = vld [vmem:[#allocation114_spill] sm:$0xff] }
 0xd3e   :  { %3137 = vmatprep.mubr.bf16.mxu0 %v8644_v32  ;;  %3178 = vmatprep.mubr.bf16.mxu1 %v8644_v32 }
 0xd40   :  { %3108 = vmatpush1.bf16.msra.mxu0 %v7275_v19  ;;  %3149 = vmatpush1.bf16.msra.mxu1 %v7278_v50  ;;  %v9194_v19 = vld [vmem:[#allocation115_spill] sm:$0xff]  ;;  %v9195_v50 = vld [vmem:[#allocation116_spill] sm:$0xff] }
 0xd41   :  { %3109 = vmatprep.subr.bf16.mxu0 %v7281_v7  ;;  %3150 = vmatprep.subr.bf16.mxu1 %v7284_v6  ;;  %v9196_v7 = vld [vmem:[#allocation117_spill] sm:$0xff]  ;;  %v9197_v6 = vld [vmem:[#allocation118_spill] sm:$0xff] }
 0xd44   :  { %3110 = vmatpush1.bf16.msra.mxu0 %v7287_v3  ;;  %3151 = vmatpush1.bf16.msra.mxu1 %v7290_v11  ;;  %v9198_v3 = vld [vmem:[#allocation119_spill] sm:$0xff]  ;;  %v9199_v11 = vld [vmem:[#allocation120_spill] sm:$0xff] }
 0xd45   :  { %3111 = vmatprep.subr.bf16.mxu0 %v9189_v59  ;;  %3152 = vmatprep.subr.bf16.mxu1 %v9190_v2  ;;  %v7662_v59 = vld [vmem:[#allocation8 + $0x128] ss:$16 sps:$4 sm:$0xff]   ;;  %v7665_v2 = vld [vmem:[#allocation8 + $0x144] ss:$16 sps:$4 sm:$0xff]  }
 0xd46   :  { %9209 = vst [vmem:[#allocation24_spill] sm:$0xff] %v7662_v59  ;;  %9210 = vst [vmem:[#allocation25_spill] sm:$0xff] %v7665_v2 }
 0xd48   :  { %3112 = vmatpush1.bf16.msra.mxu0 %v9191_v8  ;;  %3153 = vmatpush1.bf16.msra.mxu1 %v9192_v61  ;;  %v7668_v8 = vld [vmem:[#allocation8 + $0x14c] ss:$16 sps:$4 sm:$0xff]   ;;  %v7671_v61 = vld [vmem:[#allocation8 + $0x140] ss:$16 sps:$4 sm:$0xff]  }
 0xd49   :  { %3113 = vmatprep.subr.bf16.mxu0 %v9193_v15  ;;  %3154 = vmatprep.subr.bf16.mxu1 %v9194_v19  ;;  %9211 = vst [vmem:[#allocation26_spill] sm:$0xff] %v7668_v8  ;;  %9212 = vst [vmem:[#allocation27_spill] sm:$0xff] %v7671_v61  ;;  %v7674_v15 = vld [vmem:[#allocation8 + $0x148] ss:$16 sps:$4 sm:$0xff]   ;;  %v7677_v19 = vld [vmem:[#allocation8 + $0x164] ss:$16 sps:$4 sm:$0xff]  }
 0xd4a   :  { %9213 = vst [vmem:[#allocation28_spill] sm:$0xff] %v7674_v15  ;;  %9214 = vst [vmem:[#allocation29_spill] sm:$0xff] %v7677_v19 }
 0xd4c   :  { %3114 = vmatpush1.bf16.msra.mxu0 %v9195_v50  ;;  %3155 = vmatpush1.bf16.msra.mxu1 %v9196_v7  ;;  %v7680_v50 = vld [vmem:[#allocation8 + $0x16c] ss:$16 sps:$4 sm:$0xff]   ;;  %v7683_v7 = vld [vmem:[#allocation8 + $0x160] ss:$16 sps:$4 sm:$0xff]  }
 0xd4d   :  { %3115 = vmatprep.subr.bf16.mxu0 %v9197_v6  ;;  %3156 = vmatprep.subr.bf16.mxu1 %v9198_v3  ;;  %9215 = vst [vmem:[#allocation30_spill] sm:$0xff] %v7680_v50  ;;  %9216 = vst [vmem:[#allocation31_spill] sm:$0xff] %v7683_v7  ;;  %v7686_v6 = vld [vmem:[#allocation8 + $0x168] ss:$16 sps:$4 sm:$0xff]   ;;  %v7689_v3 = vld [vmem:[#allocation8 + $0x184] ss:$16 sps:$4 sm:$0xff]  }
 0xd4e   :  { %9217 = vst [vmem:[#allocation32_spill] sm:$0xff] %v7686_v6  ;;  %9218 = vst [vmem:[#allocation33_spill] sm:$0xff] %v7689_v3 }
 0xd50   :  { %3116 = vmatpush1.bf16.msra.mxu0 %v9199_v11  ;;  %3157 = vmatpush1.bf16.msra.mxu1 %v9200_v62  ;;  %v7692_v11 = vld [vmem:[#allocation8 + $0x18c] ss:$16 sps:$4 sm:$0xff]   ;;  %v7695_v62 = vld [vmem:[#allocation8 + $0x180] ss:$16 sps:$4 sm:$0xff]  }
 0xd51   :  { %3117 = vmatprep.subr.bf16.mxu0 %v9201_v52  ;;  %3158 = vmatprep.subr.bf16.mxu1 %v9202_v53  ;;  %9219 = vst [vmem:[#allocation34_spill] sm:$0xff] %v7692_v11  ;;  %9220 = vst [vmem:[#allocation35_spill] sm:$0xff] %v7695_v62  ;;  %v7698_v52 = vld [vmem:[#allocation8 + $0x188] ss:$16 sps:$4 sm:$0xff]   ;;  %v7701_v53 = vld [vmem:[#allocation8 + $0x1a4] ss:$16 sps:$4 sm:$0xff]  }
 0xd52   :  { %9221 = vst [vmem:[#allocation36_spill] sm:$0xff] %v7698_v52  ;;  %9222 = vst [vmem:[#allocation37_spill] sm:$0xff] %v7701_v53 }
 0xd54   :  { %3118 = vmatpush1.bf16.msra.mxu0 %v7335_v13  ;;  %3159 = vmatpush1.bf16.msra.mxu1 %v7338_v63  ;;  %v7556_v13 = vld [vmem:[#allocation8 + $0x8] ss:$16 sps:$4 sm:$0xff]  }
 0xd55   :  { %3119 = vmatprep.subr.bf16.mxu0 %v7341_v58  ;;  %3160 = vmatprep.subr.bf16.mxu1 %v9203_v54  ;;  %v7566_v63 = vld [vmem:[#allocation8 + $0x28] ss:$16 sps:$4 sm:$0xff]   ;;  %v7569_v58 = vld [vmem:[#allocation8 + $0x44] ss:$16 sps:$4 sm:$0xff]   ;;  %v7704_v54 = vld [vmem:[#allocation8 + $0x1ac] ss:$16 sps:$4 sm:$0xff]  }
 0xd56   :  { %9223 = vst [vmem:[#allocation38_spill] sm:$0xff] %v7704_v54 }
 0xd58   :  { %3120 = vmatpush1.bf16.msra.mxu0 %v7347_v39  ;;  %3161 = vmatpush1.bf16.msra.mxu1 %v7546_v56  ;;  %v7560_v39 = vld [vmem:[#allocation8 + $0x2c] ss:$16 sps:$4 sm:$0xff]  }
 0xd59   :  { %3216 = vmatprep.subr.bf16.mxu0 %v7351_v34  ;;  %3257 = vmatprep.subr.bf16.mxu1 %v7550_v23  ;;  %v7563_v34 = vld [vmem:[#allocation8 + $0x20] ss:$16 sps:$4 sm:$0xff]  }
 0xd5b   :  { %3138 = vmatmul.mubr.bf16.vlgmr.msra.gmra.mrb[72].mxu0 %v7439_v49  ;;  %3179 = vmatmul.mubr.bf16.vlgmr.msra.gmra.mrb[72].mxu1 %v7439_v49  ;;  %v7578_v49 = vld [vmem:[#allocation8 + $0x48] ss:$16 sps:$4 sm:$0xff]  }
 0xd5c   :  { %3248 = vmatprep.mubr.bf16.mxu0 %v2990_v36  ;;  %3289 = vmatprep.mubr.bf16.mxu1 %v2990_v36  ;;  %v7659_v36 = vld [vmem:[#allocation8 + $0x120] ss:$16 sps:$4 sm:$0xff]  }
 0xd5d   :  { %3217 = vmatpush1.bf16.msra.mxu0 %v7359_v38  ;;  %3258 = vmatpush1.bf16.msra.mxu1 %v7556_v13  ;;  %v7572_v38 = vld [vmem:[#allocation8 + $0x4c] ss:$16 sps:$4 sm:$0xff]   ;;  %9208 = vst [vmem:[#allocation23_spill] sm:$0xff] %v7659_v36 }
 0xd5e   :  { %3218 = vmatprep.subr.bf16.mxu0 %v7363_v10  ;;  %3259 = vmatprep.subr.bf16.mxu1 %v7560_v39  ;;  %v7575_v10 = vld [vmem:[#allocation8 + $0x40] ss:$16 sps:$4 sm:$0xff]  }
 0xd61   :  { %3219 = vmatpush1.bf16.msra.mxu0 %v7563_v34  ;;  %3260 = vmatpush1.bf16.msra.mxu1 %v7566_v63 }
 0xd62   :  { %3220 = vmatprep.subr.bf16.mxu0 %v7569_v58  ;;  %3261 = vmatprep.subr.bf16.mxu1 %v7572_v38 }
 0xd65   :  { %3221 = vmatpush1.bf16.msra.mxu0 %v7575_v10  ;;  %3262 = vmatpush1.bf16.msra.mxu1 %v7578_v49 }
 0xd66   :  { %3222 = vmatprep.subr.bf16.mxu0 %v7581_v27  ;;  %3263 = vmatprep.subr.bf16.mxu1 %v7584_v35 }
 0xd69   :  { %3223 = vmatpush1.bf16.msra.mxu0 %v7587_v17  ;;  %3264 = vmatpush1.bf16.msra.mxu1 %v7590_v60 }
 0xd6a   :  { %3224 = vmatprep.subr.bf16.mxu0 %v7593_v40  ;;  %3265 = vmatprep.subr.bf16.mxu1 %v7596_v21 }
 0xd6d   :  { %3225 = vmatpush1.bf16.msra.mxu0 %v7599_v4  ;;  %3266 = vmatpush1.bf16.msra.mxu1 %v7602_v29 }
 0xd6e   :  { %3226 = vmatprep.subr.bf16.mxu0 %v7605_v0  ;;  %3267 = vmatprep.subr.bf16.mxu1 %v7608_v18 }
 0xd71   :  { %3227 = vmatpush1.bf16.msra.mxu0 %v7611_v42  ;;  %3268 = vmatpush1.bf16.msra.mxu1 %v7614_v44 }
 0xd72   :  { %3228 = vmatprep.subr.bf16.mxu0 %v7617_v20  ;;  %3269 = vmatprep.subr.bf16.mxu1 %v7620_v48 }
 0xd75   :  { %3229 = vmatpush1.bf16.msra.mxu0 %v7623_v26  ;;  %3270 = vmatpush1.bf16.msra.mxu1 %v7626_v9 }
 0xd76   :  { %3230 = vmatprep.subr.bf16.mxu0 %v7629_v5  ;;  %3271 = vmatprep.subr.bf16.mxu1 %v7632_v30 }
 0xd79   :  { %3231 = vmatpush1.bf16.msra.mxu0 %v7635_v45  ;;  %3272 = vmatpush1.bf16.msra.mxu1 %v7638_v46 }
 0xd7a   :  { %3232 = vmatprep.subr.bf16.mxu0 %v7641_v47  ;;  %3273 = vmatprep.subr.bf16.mxu1 %v7644_v1 }
 0xd7d   :  { %3233 = vmatpush1.bf16.msra.mxu0 %v7647_v51  ;;  %3274 = vmatpush1.bf16.msra.mxu1 %v7650_v25 }
 0xd7e   :  { %3234 = vmatprep.subr.bf16.mxu0 %v7653_v14  ;;  %3275 = vmatprep.subr.bf16.mxu1 %v7656_v12 }
 0xd81   :  { %3235 = vmatpush1.bf16.msra.mxu0 %v7659_v36  ;;  %3276 = vmatpush1.bf16.msra.mxu1 %v7662_v59 }
 0xd82   :  { %3236 = vmatprep.subr.bf16.mxu0 %v7665_v2  ;;  %3277 = vmatprep.subr.bf16.mxu1 %v7668_v8 }
 0xd85   :  { %3237 = vmatpush1.bf16.msra.mxu0 %v7671_v61  ;;  %3278 = vmatpush1.bf16.msra.mxu1 %v7674_v15 }
 0xd86   :  { %3238 = vmatprep.subr.bf16.mxu0 %v7677_v19  ;;  %3279 = vmatprep.subr.bf16.mxu1 %v7680_v50 }
 0xd89   :  { %3239 = vmatpush1.bf16.msra.mxu0 %v7683_v7  ;;  %3280 = vmatpush1.bf16.msra.mxu1 %v7686_v6 }
 0xd8a   :  { %3240 = vmatprep.subr.bf16.mxu0 %v7689_v3  ;;  %3281 = vmatprep.subr.bf16.mxu1 %v7692_v11  ;;  %v7707_v3 = vld [vmem:[#allocation8 + $0x1a0] ss:$16 sps:$4 sm:$0xff]   ;;  %v7710_v11 = vld [vmem:[#allocation8 + $0x1a8] ss:$16 sps:$4 sm:$0xff]  }
 0xd8b   :  { %9224 = vst [vmem:[#allocation39_spill] sm:$0xff] %v7707_v3  ;;  %9225 = vst [vmem:[#allocation40_spill] sm:$0xff] %v7710_v11 }
 0xd8d   :  { %3241 = vmatpush1.bf16.msra.mxu0 %v7695_v62  ;;  %3282 = vmatpush1.bf16.msra.mxu1 %v7698_v52  ;;  %v7713_v62 = vld [vmem:[#allocation8 + $0x1c4] ss:$16 sps:$4 sm:$0xff]   ;;  %v7716_v52 = vld [vmem:[#allocation8 + $0x1cc] ss:$16 sps:$4 sm:$0xff]  }
 0xd8e   :  { %3242 = vmatprep.subr.bf16.mxu0 %v7701_v53  ;;  %3283 = vmatprep.subr.bf16.mxu1 %v7704_v54  ;;  %9226 = vst [vmem:[#allocation41_spill] sm:$0xff] %v7713_v62  ;;  %9227 = vst [vmem:[#allocation42_spill] sm:$0xff] %v7716_v52  ;;  %v7719_v53 = vld [vmem:[#allocation8 + $0x1c0] ss:$16 sps:$4 sm:$0xff]   ;;  %v7722_v54 = vld [vmem:[#allocation8 + $0x1c8] ss:$16 sps:$4 sm:$0xff]  }
 0xd8f   :  { %9228 = vst [vmem:[#allocation43_spill] sm:$0xff] %v7719_v53  ;;  %9229 = vst [vmem:[#allocation44_spill] sm:$0xff] %v7722_v54 }
 0xd91   :  { %3243 = vmatpush1.bf16.msra.mxu0 %v7707_v3  ;;  %3284 = vmatpush1.bf16.msra.mxu1 %v7710_v11  ;;  %v7725_v3 = vld [vmem:[#allocation8 + $0x1e4] ss:$16 sps:$4 sm:$0xff]   ;;  %v7728_v11 = vld [vmem:[#allocation8 + $0x1ec] ss:$16 sps:$4 sm:$0xff]  }
 0xd92   :  { %3244 = vmatprep.subr.bf16.mxu0 %v7713_v62  ;;  %3285 = vmatprep.subr.bf16.mxu1 %v7716_v52  ;;  %9230 = vst [vmem:[#allocation45_spill] sm:$0xff] %v7725_v3  ;;  %9231 = vst [vmem:[#allocation46_spill] sm:$0xff] %v7728_v11  ;;  %v7731_v62 = vld [vmem:[#allocation8 + $0x1e0] ss:$16 sps:$4 sm:$0xff]   ;;  %v7734_v52 = vld [vmem:[#allocation8 + $0x1e8] ss:$16 sps:$4 sm:$0xff]  }
 0xd93   :  { %9232 = vst [vmem:[#allocation47_spill] sm:$0xff] %v7731_v62  ;;  %9233 = vst [vmem:[#allocation48_spill] sm:$0xff] %v7734_v52 }
 0xd95   :  { %3245 = vmatpush1.bf16.msra.mxu0 %v7719_v53  ;;  %3286 = vmatpush1.bf16.msra.mxu1 %v7722_v54  ;;  %v7737_v53 = vld [vmem:[#allocation9 + $0x4] ss:$16 sps:$4 sm:$0xff]   ;;  %v7740_v54 = vld [vmem:[#allocation9 + $0xc] ss:$16 sps:$4 sm:$0xff]  }
 0xd96   :  { %3246 = vmatprep.subr.bf16.mxu0 %v7725_v3  ;;  %3287 = vmatprep.subr.bf16.mxu1 %v7728_v11  ;;  %9234 = vst [vmem:[#allocation49_spill] sm:$0xff] %v7737_v53  ;;  %9235 = vst [vmem:[#allocation50_spill] sm:$0xff] %v7740_v54 }
 0xd99   :  { %3247 = vmatpush1.bf16.msra.mxu0 %v7731_v62  ;;  %3288 = vmatpush1.bf16.msra.mxu1 %v7734_v52 }
 0xd9a   :  { %3324 = vmatprep.subr.bf16.mxu0 %v7737_v53  ;;  %3365 = vmatprep.subr.bf16.mxu1 %v7740_v54 }
 0xe0e   :  { %v3026_v3 = vpop.f32.mrb[68].mxu0  ;;  %v3067_v6 = vpop.f32.mrb[68].mxu1 }
 0xe0f   :  { %v3027_v11 = vadd.f32 %v3026_v3, %v9127_v31  ;;  %v3028_v7 = vpop.f32.mrb[69].mxu0  ;;  %v3069_v50 = vpop.f32.mrb[69].mxu1  ;;  %v3099_v31 = vld [vmem:[#allocation3 + $0x60] sm:$0xff] }
 0xe10   :  { %v3029_v62 = vadd.f32 %v3028_v7, %v9128_v16  ;;  %v3030_v19 = vpop.f32.mrb[70].mxu0  ;;  %v3071_v15 = vpop.f32.mrb[70].mxu1  ;;  %v3070_v53 = vadd.f32 %v3069_v50, %v9129_v33 }
 0xe11   :  { %v4000_v61 = vmul.f32 -1.442695, %v3027_v11  ;;  %v3031_v52 = vpop.f32.mrb[71].mxu0  ;;  %v3072_v8 = vpop.f32.mrb[71].mxu1  ;;  %v3101_v15 = vunpack.c.l.bf16 %v3099_v31 }
 0xe12   :  { %v4001_v2 = vmul.f32 -1.442695, %v3029_v62  ;;  %v3102_v52 = vunpack.c.h.bf16 %v3099_v31  ;;  %v3068_v31 = vadd.f32 %v3067_v6, %v6027_v57 }
 0xe13   :  { %4542 = vpow2.f32 %v4000_v61 }
 0xe14   :  { %4544 = vpow2.f32 %v4001_v2 }
 0xe15   :  { %4546 = vtanh.f32 %v3070_v53  ;;  %v3100_v53 = vld [vmem:[#allocation3 + $0x68] sm:$0xff] }
 0xe1d   :  { %v4543_v59 = vpop.eup %4542 }
 0xe1e   :  { %v3083_v54 = vadd.f32 1.0, %v4543_v59  ;;  %v4545_v36 = vpop.eup %4544 }
 0xe1f   :  { %v3084_v3 = vadd.f32 1.0, %v4545_v36  ;;  %v4547_v12 = vpop.eup %4546 }
 0xe20   :  { %4548 = vrcp.f32 %v3083_v54 }
 0xe21   :  { %4550 = vrcp.f32 %v3084_v3 }
 0xe2a   :  { %v4549_v7 = vpop.eup %4548 }
 0xe2b   :  { %v3094_v19 = vmul.f32 %v4549_v7, %v4547_v12  ;;  %v4551_v11 = vpop.eup %4550  ;;  %v3103_v7 = vunpack.c.l.bf16 %v3100_v53 }
 0xe2c   :  { %v3093_v8 = vmul.f32 %v4551_v11, %v7431_v55  ;;  %v3104_v55 = vunpack.c.h.bf16 %v3100_v53 }
 0xe2e   :  { %v3139_v61 = vpop.f32.mrb[72].mxu0  ;;  %v3180_v2 = vpop.f32.mrb[72].mxu1  ;;  %v7747_v62 = vadd.f32 %v3094_v19, %v3093_v8  ;;  %v4002_v19 = vmul.f32 -1.442695, %v3068_v31 }
 0xe2f   :  { %v3187_v50 = vadd.f32 %v3139_v61, %v3101_v15  ;;  %v3141_v59 = vpop.f32.mrb[73].mxu0  ;;  %v3182_v33 = vpop.f32.mrb[73].mxu1  ;;  %v3189_v11 = vadd.f32 %v3180_v2, %v3103_v7 }
 0xe30   :  { %v3188_v54 = vadd.f32 %v3141_v59, %v3102_v52  ;;  %v3143_v36 = vpop.f32.mrb[74].mxu0  ;;  %v3184_v3 = vpop.f32.mrb[74].mxu1  ;;  %v3190_v8 = vadd.f32 %v3182_v33, %v3104_v55 }
 0xe31   :  { %v4003_v16 = vmul.f32 -1.442695, %v3187_v50  ;;  %v3144_v14 = vpop.f32.mrb[75].mxu0  ;;  %v3185_v25 = vpop.f32.mrb[75].mxu1  ;;  %v4005_v15 = vmul.f32 -1.442695, %v3189_v11 }
 0xe32   :  { %v4004_v12 = vmul.f32 -1.442695, %v3188_v54 }
 0xe33   :  { %4552 = vpow2.f32 %v4003_v16 }
 0xe34   :  { %4554 = vpow2.f32 %v4004_v12 }
 0xe35   :  { %4556 = vpow2.f32 %v4002_v19 }
 0xe36   :  { %4558 = vtanh.f32 %v3190_v8  ;;  %v7762_v8 = vld [vmem:[#allocation9 + $0x8] ss:$16 sps:$4 sm:$0xff]  }
 0xe37   :  { %4560 = vpow2.f32 %v4005_v15  ;;  %v7765_v15 = vld [vmem:[#allocation9 + $0x24] ss:$16 sps:$4 sm:$0xff]  }
 0xe3d   :  { %v4553_v61 = vpop.eup %4552 }
 0xe3e   :  { %v3200_v51 = vadd.f32 1.0, %v4553_v61  ;;  %v4555_v52 = vpop.eup %4554  ;;  %v7768_v61 = vld [vmem:[#allocation9 + $0x2c] ss:$16 sps:$4 sm:$0xff]  }
 0xe3f   :  { %v3201_v14 = vadd.f32 1.0, %v4555_v52  ;;  %v4557_v25 = vpop.eup %4556  ;;  %v7771_v52 = vld [vmem:[#allocation9 + $0x20] ss:$16 sps:$4 sm:$0xff]  }
 0xe40   :  { %4562 = vrcp.f32 %v3200_v51  ;;  %v4559_v16 = vpop.eup %4558  ;;  %v3085_v6 = vadd.f32 1.0, %v4557_v25  ;;  %v7777_v25 = vld [vmem:[#allocation9 + $0x44] ss:$16 sps:$4 sm:$0xff]  }
 0xe41   :  { %4564 = vrcp.f32 %v3201_v14  ;;  %v4561_v50 = vpop.eup %4560  ;;  %v7774_v14 = vld [vmem:[#allocation9 + $0x28] ss:$16 sps:$4 sm:$0xff]   ;;  %9237 = vst [vmem:[#allocation52_spill] sm:$0xff] %v7777_v25 }
 0xe42   :  { %v3202_v2 = vadd.f32 1.0, %v4561_v50  ;;  %4566 = vtanh.f32 %v7747_v62  ;;  %9236 = vst [vmem:[#allocation51_spill] sm:$0xff] %v7774_v14  ;;  %v7783_v50 = vld [vmem:[#allocation9 + $0x40] ss:$16 sps:$4 sm:$0xff]  }
 0xe43   :  { %4568 = vrcp.f32 %v3085_v6  ;;  %9239 = vst [vmem:[#allocation54_spill] sm:$0xff] %v7783_v50  ;;  %v7789_v6 = vld [vmem:[#allocation9 + $0x64] ss:$16 sps:$4 sm:$0xff]  }
 0xe44   :  { %4570 = vrcp.f32 %v3202_v2  ;;  %9241 = vst [vmem:[#allocation56_spill] sm:$0xff] %v7789_v6  ;;  %v7798_v2 = vld [vmem:[#allocation9 + $0x68] ss:$16 sps:$4 sm:$0xff]  }
 0xe45   :  { %9244 = vst [vmem:[#allocation59_spill] sm:$0xff] %v7798_v2 }
 0xe4a   :  { %v4563_v59 = vpop.eup %4562 }
 0xe4b   :  { %v3211_v54 = vmul.f32 %v4563_v59, %v4559_v16  ;;  %v4565_v53 = vpop.eup %4564  ;;  %v7780_v16 = vld [vmem:[#allocation9 + $0x4c] ss:$16 sps:$4 sm:$0xff]   ;;  %v7786_v59 = vld [vmem:[#allocation9 + $0x48] ss:$16 sps:$4 sm:$0xff]  }
 0xe4c   :  { %v3210_v33 = vmul.f32 %v4565_v53, %v7436_v24  ;;  %v4567_v51 = vpop.eup %4566  ;;  %v7759_v24 = vld [vmem:[#allocation9] ss:$16 sps:$4 sm:$0xff]   ;;  %9238 = vst [vmem:[#allocation53_spill] sm:$0xff] %v7780_v16  ;;  %9240 = vst [vmem:[#allocation55_spill] sm:$0xff] %v7786_v59 }
 0xe4d   :  { %v4569_v3 = vpop.eup %4568  ;;  %v7795_v53 = vld [vmem:[#allocation9 + $0x60] ss:$16 sps:$4 sm:$0xff]  }
 0xe4e   :  { %v7752_v36 = vadd.f32 %v3211_v54, %v3210_v33  ;;  %v4571_v12 = vpop.eup %4570  ;;  %v3097_v31 = vmul.f32 %v4569_v3, %v4567_v51  ;;  %v7792_v54 = vld [vmem:[#allocation9 + $0x6c] ss:$16 sps:$4 sm:$0xff]   ;;  %9243 = vst [vmem:[#allocation58_spill] sm:$0xff] %v7795_v53  ;;  %v7801_v33 = vld [vmem:[#allocation9 + $0x84] ss:$16 sps:$4 sm:$0xff]  }
 0xe4f   :  { %9242 = vst [vmem:[#allocation57_spill] sm:$0xff] %v7792_v54  ;;  %9245 = vst [vmem:[#allocation60_spill] sm:$0xff] %v7801_v33  ;;  %v7804_v51 = vld [vmem:[#allocation9 + $0x8c] ss:$16 sps:$4 sm:$0xff]   ;;  %v7807_v3 = vld [vmem:[#allocation9 + $0x80] ss:$16 sps:$4 sm:$0xff]  }
 0xe50   :  { %4572 = vtanh.f32 %v7752_v36  ;;  %v3323_v19 = vpack.c.bf16 %v3097_v31, %v3097_v31  ;;  %9246 = vst [vmem:[#allocation61_spill] sm:$0xff] %v7804_v51  ;;  %9247 = vst [vmem:[#allocation62_spill] sm:$0xff] %v7807_v3  ;;  %v7816_v31 = vld [vmem:[#allocation9 + $0xac] ss:$16 sps:$4 sm:$0xff]  }
 0xe51   :  { %9250 = vst [vmem:[#allocation65_spill] sm:$0xff] %v7816_v31 }
 0xe5a   :  { %v4573_v7 = vpop.eup %4572 }
 0xe5b   :  { %v3214_v55 = vmul.f32 %v4573_v7, %v4571_v12  ;;  %v7810_v12 = vld [vmem:[#allocation9 + $0x88] ss:$16 sps:$4 sm:$0xff]   ;;  %v7813_v7 = vld [vmem:[#allocation9 + $0xa4] ss:$16 sps:$4 sm:$0xff]  }
 0xe5c   :  { %9248 = vst [vmem:[#allocation63_spill] sm:$0xff] %v7810_v12  ;;  %9249 = vst [vmem:[#allocation64_spill] sm:$0xff] %v7813_v7 }
 0xe5d   :  { %v7755_v11 = vpack.c.bf16 %v3214_v55, %v3214_v55  ;;  %v7819_v55 = vld [vmem:[#allocation9 + $0xa0] ss:$16 sps:$4 sm:$0xff]  }
 0xe5e   :  { %9251 = vst [vmem:[#allocation66_spill] sm:$0xff] %v7819_v55 }
 0xe5f   :  { %3249 = vmatmul.mubr.bf16.vlgmr.msra.gmra.mrb[76].mxu0 %v7755_v11  ;;  %3290 = vmatmul.mubr.bf16.vlgmr.msra.gmra.mrb[76].mxu1 %v7755_v11 }
 0xe60   :  { %3356 = vmatprep.mubr.bf16.mxu0 %v3323_v19  ;;  %3397 = vmatprep.mubr.bf16.mxu1 %v3323_v19  ;;  %v7822_v19 = vld [vmem:[#allocation9 + $0xa8] ss:$16 sps:$4 sm:$0xff]  }
 0xe61   :  { %3325 = vmatpush1.bf16.msra.mxu0 %v7759_v24  ;;  %3366 = vmatpush1.bf16.msra.mxu1 %v7762_v8  ;;  %9252 = vst [vmem:[#allocation67_spill] sm:$0xff] %v7822_v19 }
 0xe62   :  { %3326 = vmatprep.subr.bf16.mxu0 %v7765_v15  ;;  %3367 = vmatprep.subr.bf16.mxu1 %v7768_v61 }
 0xe65   :  { %3327 = vmatpush1.bf16.msra.mxu0 %v7771_v52  ;;  %3368 = vmatpush1.bf16.msra.mxu1 %v7774_v14 }
 0xe66   :  { %3328 = vmatprep.subr.bf16.mxu0 %v7777_v25  ;;  %3369 = vmatprep.subr.bf16.mxu1 %v7780_v16 }
 0xe69   :  { %3329 = vmatpush1.bf16.msra.mxu0 %v7783_v50  ;;  %3370 = vmatpush1.bf16.msra.mxu1 %v7786_v59 }
 0xe6a   :  { %3330 = vmatprep.subr.bf16.mxu0 %v7789_v6  ;;  %3371 = vmatprep.subr.bf16.mxu1 %v7792_v54 }
 0xe6d   :  { %3331 = vmatpush1.bf16.msra.mxu0 %v7795_v53  ;;  %3372 = vmatpush1.bf16.msra.mxu1 %v7798_v2 }
 0xe6e   :  { %3332 = vmatprep.subr.bf16.mxu0 %v7801_v33  ;;  %3373 = vmatprep.subr.bf16.mxu1 %v7804_v51  ;;  %v5135_v51 = vld [vmem:[#allocation6 + $0xc] ss:$16 sps:$4 sm:$0xff]  }
 0xe71   :  { %3333 = vmatpush1.bf16.msra.mxu0 %v7807_v3  ;;  %3374 = vmatpush1.bf16.msra.mxu1 %v7810_v12  ;;  %v7825_v3 = vld [vmem:[#allocation9 + $0xc4] ss:$16 sps:$4 sm:$0xff]   ;;  %v7828_v12 = vld [vmem:[#allocation9 + $0xcc] ss:$16 sps:$4 sm:$0xff]  }
 0xe72   :  { %3334 = vmatprep.subr.bf16.mxu0 %v7813_v7  ;;  %3375 = vmatprep.subr.bf16.mxu1 %v7816_v31  ;;  %9253 = vst [vmem:[#allocation68_spill] sm:$0xff] %v7825_v3  ;;  %9254 = vst [vmem:[#allocation69_spill] sm:$0xff] %v7828_v12  ;;  %v7831_v7 = vld [vmem:[#allocation9 + $0xc0] ss:$16 sps:$4 sm:$0xff]   ;;  %v7834_v31 = vld [vmem:[#allocation9 + $0xc8] ss:$16 sps:$4 sm:$0xff]  }
 0xe73   :  { %9255 = vst [vmem:[#allocation70_spill] sm:$0xff] %v7831_v7  ;;  %9256 = vst [vmem:[#allocation71_spill] sm:$0xff] %v7834_v31 }
 0xe75   :  { %3335 = vmatpush1.bf16.msra.mxu0 %v7819_v55  ;;  %3376 = vmatpush1.bf16.msra.mxu1 %v7822_v19  ;;  %v7837_v55 = vld [vmem:[#allocation9 + $0xe4] ss:$16 sps:$4 sm:$0xff]   ;;  %v7840_v19 = vld [vmem:[#allocation9 + $0xec] ss:$16 sps:$4 sm:$0xff]  }
 0xe76   :  { %3336 = vmatprep.subr.bf16.mxu0 %v7825_v3  ;;  %3377 = vmatprep.subr.bf16.mxu1 %v7828_v12  ;;  %9257 = vst [vmem:[#allocation72_spill] sm:$0xff] %v7837_v55  ;;  %9258 = vst [vmem:[#allocation73_spill] sm:$0xff] %v7840_v19  ;;  %v7843_v3 = vld [vmem:[#allocation9 + $0xe0] ss:$16 sps:$4 sm:$0xff]   ;;  %v7846_v12 = vld [vmem:[#allocation9 + $0xe8] ss:$16 sps:$4 sm:$0xff]  }
 0xe77   :  { %9259 = vst [vmem:[#allocation74_spill] sm:$0xff] %v7843_v3  ;;  %9260 = vst [vmem:[#allocation75_spill] sm:$0xff] %v7846_v12 }
 0xe79   :  { %3337 = vmatpush1.bf16.msra.mxu0 %v7831_v7  ;;  %3378 = vmatpush1.bf16.msra.mxu1 %v7834_v31  ;;  %v7849_v7 = vld [vmem:[#allocation9 + $0x104] ss:$16 sps:$4 sm:$0xff]   ;;  %v7852_v31 = vld [vmem:[#allocation9 + $0x10c] ss:$16 sps:$4 sm:$0xff]  }
 0xe7a   :  { %3338 = vmatprep.subr.bf16.mxu0 %v7837_v55  ;;  %3379 = vmatprep.subr.bf16.mxu1 %v7840_v19  ;;  %9261 = vst [vmem:[#allocation76_spill] sm:$0xff] %v7849_v7  ;;  %9262 = vst [vmem:[#allocation77_spill] sm:$0xff] %v7852_v31  ;;  %v7855_v55 = vld [vmem:[#allocation9 + $0x100] ss:$16 sps:$4 sm:$0xff]   ;;  %v7858_v19 = vld [vmem:[#allocation9 + $0x108] ss:$16 sps:$4 sm:$0xff]  }
 0xe7b   :  { %9263 = vst [vmem:[#allocation78_spill] sm:$0xff] %v7855_v55  ;;  %9264 = vst [vmem:[#allocation79_spill] sm:$0xff] %v7858_v19 }
 0xe7d   :  { %3339 = vmatpush1.bf16.msra.mxu0 %v7843_v3  ;;  %3380 = vmatpush1.bf16.msra.mxu1 %v7846_v12  ;;  %v7861_v3 = vld [vmem:[#allocation9 + $0x124] ss:$16 sps:$4 sm:$0xff]   ;;  %v7864_v12 = vld [vmem:[#allocation9 + $0x12c] ss:$16 sps:$4 sm:$0xff]  }
 0xe7e   :  { %3340 = vmatprep.subr.bf16.mxu0 %v7849_v7  ;;  %3381 = vmatprep.subr.bf16.mxu1 %v7852_v31  ;;  %9265 = vst [vmem:[#allocation80_spill] sm:$0xff] %v7861_v3  ;;  %9266 = vst [vmem:[#allocation81_spill] sm:$0xff] %v7864_v12  ;;  %v7867_v7 = vld [vmem:[#allocation9 + $0x120] ss:$16 sps:$4 sm:$0xff]   ;;  %v7870_v31 = vld [vmem:[#allocation9 + $0x128] ss:$16 sps:$4 sm:$0xff]  }
 0xe7f   :  { %9267 = vst [vmem:[#allocation82_spill] sm:$0xff] %v7867_v7  ;;  %9268 = vst [vmem:[#allocation83_spill] sm:$0xff] %v7870_v31 }
 0xe81   :  { %3341 = vmatpush1.bf16.msra.mxu0 %v7855_v55  ;;  %3382 = vmatpush1.bf16.msra.mxu1 %v7858_v19  ;;  %v7873_v55 = vld [vmem:[#allocation9 + $0x144] ss:$16 sps:$4 sm:$0xff]   ;;  %v7876_v19 = vld [vmem:[#allocation9 + $0x14c] ss:$16 sps:$4 sm:$0xff]  }
 0xe82   :  { %3342 = vmatprep.subr.bf16.mxu0 %v7861_v3  ;;  %3383 = vmatprep.subr.bf16.mxu1 %v7864_v12  ;;  %9269 = vst [vmem:[#allocation84_spill] sm:$0xff] %v7873_v55  ;;  %9270 = vst [vmem:[#allocation85_spill] sm:$0xff] %v7876_v19  ;;  %v7879_v3 = vld [vmem:[#allocation9 + $0x140] ss:$16 sps:$4 sm:$0xff]   ;;  %v7882_v12 = vld [vmem:[#allocation9 + $0x148] ss:$16 sps:$4 sm:$0xff]  }
 0xe83   :  { %9271 = vst [vmem:[#allocation86_spill] sm:$0xff] %v7879_v3  ;;  %9272 = vst [vmem:[#allocation87_spill] sm:$0xff] %v7882_v12 }
 0xe85   :  { %3343 = vmatpush1.bf16.msra.mxu0 %v7867_v7  ;;  %3384 = vmatpush1.bf16.msra.mxu1 %v7870_v31  ;;  %v7885_v7 = vld [vmem:[#allocation9 + $0x164] ss:$16 sps:$4 sm:$0xff]   ;;  %v7888_v31 = vld [vmem:[#allocation9 + $0x16c] ss:$16 sps:$4 sm:$0xff]  }
 0xe86   :  { %3344 = vmatprep.subr.bf16.mxu0 %v7873_v55  ;;  %3385 = vmatprep.subr.bf16.mxu1 %v7876_v19  ;;  %9273 = vst [vmem:[#allocation88_spill] sm:$0xff] %v7885_v7  ;;  %9274 = vst [vmem:[#allocation89_spill] sm:$0xff] %v7888_v31  ;;  %v7891_v55 = vld [vmem:[#allocation9 + $0x160] ss:$16 sps:$4 sm:$0xff]   ;;  %v7894_v19 = vld [vmem:[#allocation9 + $0x168] ss:$16 sps:$4 sm:$0xff]  }
 0xe87   :  { %9275 = vst [vmem:[#allocation90_spill] sm:$0xff] %v7891_v55  ;;  %9276 = vst [vmem:[#allocation91_spill] sm:$0xff] %v7894_v19 }
 0xe89   :  { %3345 = vmatpush1.bf16.msra.mxu0 %v7879_v3  ;;  %3386 = vmatpush1.bf16.msra.mxu1 %v7882_v12  ;;  %v7897_v3 = vld [vmem:[#allocation9 + $0x184] ss:$16 sps:$4 sm:$0xff]   ;;  %v7900_v12 = vld [vmem:[#allocation9 + $0x18c] ss:$16 sps:$4 sm:$0xff]  }
 0xe8a   :  { %3346 = vmatprep.subr.bf16.mxu0 %v7885_v7  ;;  %3387 = vmatprep.subr.bf16.mxu1 %v7888_v31  ;;  %9277 = vst [vmem:[#allocation92_spill] sm:$0xff] %v7897_v3  ;;  %9278 = vst [vmem:[#allocation93_spill] sm:$0xff] %v7900_v12  ;;  %v7903_v7 = vld [vmem:[#allocation9 + $0x180] ss:$16 sps:$4 sm:$0xff]   ;;  %v7906_v31 = vld [vmem:[#allocation9 + $0x188] ss:$16 sps:$4 sm:$0xff]  }
 0xe8b   :  { %9279 = vst [vmem:[#allocation94_spill] sm:$0xff] %v7903_v7  ;;  %9280 = vst [vmem:[#allocation95_spill] sm:$0xff] %v7906_v31 }
 0xe8d   :  { %3347 = vmatpush1.bf16.msra.mxu0 %v7891_v55  ;;  %3388 = vmatpush1.bf16.msra.mxu1 %v7894_v19  ;;  %v7909_v55 = vld [vmem:[#allocation9 + $0x1a4] ss:$16 sps:$4 sm:$0xff]   ;;  %v7912_v19 = vld [vmem:[#allocation9 + $0x1ac] ss:$16 sps:$4 sm:$0xff]  }
 0xe8e   :  { %3348 = vmatprep.subr.bf16.mxu0 %v7897_v3  ;;  %3389 = vmatprep.subr.bf16.mxu1 %v7900_v12  ;;  %9281 = vst [vmem:[#allocation96_spill] sm:$0xff] %v7909_v55  ;;  %9282 = vst [vmem:[#allocation97_spill] sm:$0xff] %v7912_v19  ;;  %v7915_v3 = vld [vmem:[#allocation9 + $0x1a0] ss:$16 sps:$4 sm:$0xff]   ;;  %v7918_v12 = vld [vmem:[#allocation9 + $0x1a8] ss:$16 sps:$4 sm:$0xff]  }
 0xe8f   :  { %9283 = vst [vmem:[#allocation98_spill] sm:$0xff] %v7915_v3  ;;  %9284 = vst [vmem:[#allocation99_spill] sm:$0xff] %v7918_v12 }
 0xe91   :  { %3349 = vmatpush1.bf16.msra.mxu0 %v7903_v7  ;;  %3390 = vmatpush1.bf16.msra.mxu1 %v7906_v31  ;;  %v7921_v7 = vld [vmem:[#allocation9 + $0x1c4] ss:$16 sps:$4 sm:$0xff]   ;;  %v7924_v31 = vld [vmem:[#allocation9 + $0x1cc] ss:$16 sps:$4 sm:$0xff]  }
 0xe92   :  { %3350 = vmatprep.subr.bf16.mxu0 %v7909_v55  ;;  %3391 = vmatprep.subr.bf16.mxu1 %v7912_v19  ;;  %9285 = vst [vmem:[#allocation100_spill] sm:$0xff] %v7921_v7  ;;  %9286 = vst [vmem:[#allocation101_spill] sm:$0xff] %v7924_v31  ;;  %v7927_v55 = vld [vmem:[#allocation9 + $0x1c0] ss:$16 sps:$4 sm:$0xff]   ;;  %v7930_v19 = vld [vmem:[#allocation9 + $0x1c8] ss:$16 sps:$4 sm:$0xff]  }
 0xe93   :  { %9287 = vst [vmem:[#allocation102_spill] sm:$0xff] %v7927_v55  ;;  %9288 = vst [vmem:[#allocation103_spill] sm:$0xff] %v7930_v19 }
 0xe95   :  { %3351 = vmatpush1.bf16.msra.mxu0 %v7915_v3  ;;  %3392 = vmatpush1.bf16.msra.mxu1 %v7918_v12  ;;  %v7933_v3 = vld [vmem:[#allocation9 + $0x1e4] ss:$16 sps:$4 sm:$0xff]   ;;  %v7936_v12 = vld [vmem:[#allocation9 + $0x1ec] ss:$16 sps:$4 sm:$0xff]  }
 0xe96   :  { %3352 = vmatprep.subr.bf16.mxu0 %v7921_v7  ;;  %3393 = vmatprep.subr.bf16.mxu1 %v7924_v31  ;;  %9289 = vst [vmem:[#allocation104_spill] sm:$0xff] %v7933_v3  ;;  %9290 = vst [vmem:[#allocation105_spill] sm:$0xff] %v7936_v12  ;;  %v7939_v7 = vld [vmem:[#allocation9 + $0x1e0] ss:$16 sps:$4 sm:$0xff]   ;;  %v7942_v31 = vld [vmem:[#allocation9 + $0x1e8] ss:$16 sps:$4 sm:$0xff]  }
 0xe97   :  { %9291 = vst [vmem:[#allocation106_spill] sm:$0xff] %v7939_v7  ;;  %9292 = vst [vmem:[#allocation107_spill] sm:$0xff] %v7942_v31 }
 0xe99   :  { %3353 = vmatpush1.bf16.msra.mxu0 %v7927_v55  ;;  %3394 = vmatpush1.bf16.msra.mxu1 %v7930_v19  ;;  %v5134_v55 = vld [vmem:[#allocation6 + $0x4] ss:$16 sps:$4 sm:$0xff]  }
 0xe9a   :  { %3354 = vmatprep.subr.bf16.mxu0 %v7933_v3  ;;  %3395 = vmatprep.subr.bf16.mxu1 %v7936_v12 }
 0xe9d   :  { %3355 = vmatpush1.bf16.msra.mxu0 %v7939_v7  ;;  %3396 = vmatpush1.bf16.msra.mxu1 %v7942_v31 }
 0xe9e   :  { %3437 = vmatprep.subr.bf16.mxu0 %v5134_v55  ;;  %3478 = vmatprep.subr.bf16.mxu1 %v5135_v51 }
 0xf32   :  { %v3250_v19 = vpop.f32.mrb[76].mxu0  ;;  %v3291_v33 = vpop.f32.mrb[76].mxu1 }
 0xf33   :  { %v3251_v3 = vadd.f32 %v3250_v19, %v8755_v37  ;;  %v3252_v2 = vpop.f32.mrb[77].mxu0  ;;  %v3293_v53 = vpop.f32.mrb[77].mxu1  ;;  %v3292_v55 = vadd.f32 %v3291_v33, %v5824_v22 }
 0xf34   :  { %v3253_v12 = vadd.f32 %v3252_v2, %v8756_v43  ;;  %v3254_v54 = vpop.f32.mrb[78].mxu0  ;;  %v3295_v6 = vpop.f32.mrb[78].mxu1  ;;  %v3294_v51 = vadd.f32 %v3293_v53, %v5828_v28 }
 0xf35   :  { %v4006_v59 = vmul.f32 -1.442695, %v3251_v3  ;;  %v3255_v7 = vpop.f32.mrb[79].mxu0  ;;  %v3296_v50 = vpop.f32.mrb[79].mxu1  ;;  %v4008_v31 = vmul.f32 -1.442695, %v3292_v55 }
 0xf36   :  { %v4007_v16 = vmul.f32 -1.442695, %v3253_v12  ;;  %v5137_v55 = vld [vmem:[#allocation6 + $0x8] ss:$16 sps:$4 sm:$0xff]  }
 0xf37   :  { %4574 = vpow2.f32 %v4006_v59 }
 0xf38   :  { %4576 = vpow2.f32 %v4007_v16 }
 0xf39   :  { %4578 = vtanh.f32 %v3294_v51  ;;  %v5138_v51 = vld [vmem:[#allocation6 + $0x24] ss:$16 sps:$4 sm:$0xff]  }
 0xf3a   :  { %4580 = vpow2.f32 %v4008_v31 }
 0xf41   :  { %v4575_v25 = vpop.eup %4574 }
 0xf42   :  { %v3307_v14 = vadd.f32 1.0, %v4575_v25  ;;  %v4577_v19 = vpop.eup %4576 }
 0xf43   :  { %v3308_v2 = vadd.f32 1.0, %v4577_v19  ;;  %v4579_v6 = vpop.eup %4578  ;;  %v5140_v19 = vld [vmem:[#allocation6 + $0x20] ss:$16 sps:$4 sm:$0xff]  }
 0xf44   :  { %4582 = vrcp.f32 %v3307_v14  ;;  %v4581_v54 = vpop.eup %4580  ;;  %v5136_v14 = vld [vmem:[#allocation6] ss:$16 sps:$4 sm:$0xff]  }
 0xf45   :  { %4584 = vrcp.f32 %v3308_v2  ;;  %v3309_v59 = vadd.f32 1.0, %v4581_v54  ;;  %v5141_v2 = vld [vmem:[#allocation6 + $0x28] ss:$16 sps:$4 sm:$0xff]   ;;  %v5143_v54 = vld [vmem:[#allocation6 + $0x4c] ss:$16 sps:$4 sm:$0xff]  }
 0xf47   :  { %4586 = vrcp.f32 %v3309_v59  ;;  %v5147_v59 = vld [vmem:[#allocation6 + $0x6c] ss:$16 sps:$4 sm:$0xff]  }
 0xf4e   :  { %v4583_v3 = vpop.eup %4582 }
 0xf4f   :  { %v3318_v50 = vmul.f32 %v4583_v3, %v4579_v6  ;;  %v4585_v12 = vpop.eup %4584  ;;  %v5142_v6 = vld [vmem:[#allocation6 + $0x44] ss:$16 sps:$4 sm:$0xff]   ;;  %v5144_v3 = vld [vmem:[#allocation6 + $0x40] ss:$16 sps:$4 sm:$0xff]  }
 0xf50   :  { %v3317_v16 = vmul.f32 %v4585_v12, %v7512_v41  ;;  %v5139_v41 = vld [vmem:[#allocation6 + $0x2c] ss:$16 sps:$4 sm:$0xff]   ;;  %v5146_v12 = vld [vmem:[#allocation6 + $0x64] ss:$16 sps:$4 sm:$0xff]  }
 0xf51   :  { %v4587_v25 = vpop.eup %4586 }
 0xf52   :  { %v7950_v33 = vadd.f32 %v3318_v50, %v3317_v16  ;;  %v5145_v50 = vld [vmem:[#allocation6 + $0x48] ss:$16 sps:$4 sm:$0xff]   ;;  %v5148_v16 = vld [vmem:[#allocation6 + $0x60] ss:$16 sps:$4 sm:$0xff]  }
 0xf54   :  { %4588 = vtanh.f32 %v7950_v33 }
 0xf5e   :  { %v4589_v53 = vpop.eup %4588 }
 0xf5f   :  { %v3321_v7 = vmul.f32 %v4589_v53, %v4587_v25  ;;  %v5149_v25 = vld [vmem:[#allocation6 + $0x68] ss:$16 sps:$4 sm:$0xff]   ;;  %v5151_v53 = vld [vmem:[#allocation6 + $0x8c] ss:$16 sps:$4 sm:$0xff]  }
 0xf61   :  { %v7953_v31 = vpack.c.bf16 %v3321_v7, %v3321_v7  ;;  %v5152_v7 = vld [vmem:[#allocation6 + $0x80] ss:$16 sps:$4 sm:$0xff]  }
 0xf63   :  { %3357 = vmatmul.mubr.bf16.vlgmr.msra.gmra.mrb[80].mxu0 %v7953_v31  ;;  %3398 = vmatmul.mubr.bf16.vlgmr.msra.gmra.mrb[80].mxu1 %v7953_v31 }
 0xf64   :  { %3438 = vmatpush1.bf16.msra.mxu0 %v5136_v14  ;;  %3479 = vmatpush1.bf16.msra.mxu1 %v5137_v55  ;;  %v5153_v14 = vld [vmem:[#allocation6 + $0x88] ss:$16 sps:$4 sm:$0xff]   ;;  %v5154_v55 = vld [vmem:[#allocation6 + $0xa4] ss:$16 sps:$4 sm:$0xff]  }
 0xf65   :  { %3439 = vmatprep.subr.bf16.mxu0 %v5138_v51  ;;  %3480 = vmatprep.subr.bf16.mxu1 %v5139_v41  ;;  %v5155_v51 = vld [vmem:[#allocation6 + $0xac] ss:$16 sps:$4 sm:$0xff]   ;;  %v5156_v41 = vld [vmem:[#allocation6 + $0xa0] ss:$16 sps:$4 sm:$0xff]  }
 0xf66   :  { %3469 = vmatprep.mubr.bf16.mxu0 %v8644_v32  ;;  %3510 = vmatprep.mubr.bf16.mxu1 %v8644_v32  ;;  %v5150_v32 = vld [vmem:[#allocation6 + $0x84] ss:$16 sps:$4 sm:$0xff]  }
 0xf68   :  { %3440 = vmatpush1.bf16.msra.mxu0 %v5140_v19  ;;  %3481 = vmatpush1.bf16.msra.mxu1 %v5141_v2  ;;  %v5157_v19 = vld [vmem:[#allocation6 + $0xa8] ss:$16 sps:$4 sm:$0xff]   ;;  %v5158_v2 = vld [vmem:[#allocation6 + $0xc4] ss:$16 sps:$4 sm:$0xff]  }
 0xf69   :  { %3441 = vmatprep.subr.bf16.mxu0 %v5142_v6  ;;  %3482 = vmatprep.subr.bf16.mxu1 %v5143_v54  ;;  %v5159_v6 = vld [vmem:[#allocation6 + $0xcc] ss:$16 sps:$4 sm:$0xff]   ;;  %v5160_v54 = vld [vmem:[#allocation6 + $0xc0] ss:$16 sps:$4 sm:$0xff]  }
 0xf6c   :  { %3442 = vmatpush1.bf16.msra.mxu0 %v5144_v3  ;;  %3483 = vmatpush1.bf16.msra.mxu1 %v5145_v50  ;;  %v5161_v3 = vld [vmem:[#allocation6 + $0xc8] ss:$16 sps:$4 sm:$0xff]   ;;  %v5162_v50 = vld [vmem:[#allocation6 + $0xe4] ss:$16 sps:$4 sm:$0xff]  }
 0xf6d   :  { %3443 = vmatprep.subr.bf16.mxu0 %v5146_v12  ;;  %3484 = vmatprep.subr.bf16.mxu1 %v5147_v59  ;;  %v5163_v12 = vld [vmem:[#allocation6 + $0xec] ss:$16 sps:$4 sm:$0xff]   ;;  %v5164_v59 = vld [vmem:[#allocation6 + $0xe0] ss:$16 sps:$4 sm:$0xff]  }
 0xf70   :  { %3444 = vmatpush1.bf16.msra.mxu0 %v5148_v16  ;;  %3485 = vmatpush1.bf16.msra.mxu1 %v5149_v25  ;;  %v5165_v16 = vld [vmem:[#allocation8 + $0x4] ss:$16 sps:$4 sm:$0xff]   ;;  %v5166_v25 = vld [vmem:[#allocation8] ss:$16 sps:$4 sm:$0xff]  }
 0xf71   :  { %3445 = vmatprep.subr.bf16.mxu0 %v5150_v32  ;;  %3486 = vmatprep.subr.bf16.mxu1 %v5151_v53  ;;  %v5167_v32 = vld [vmem:[#allocation8 + $0x24] ss:$16 sps:$4 sm:$0xff]   ;;  %v9325_v53 = vld [vmem:[#allocation16_spill] sm:$0xff] }
 0xf74   :  { %3446 = vmatpush1.bf16.msra.mxu0 %v5152_v7  ;;  %3487 = vmatpush1.bf16.msra.mxu1 %v5153_v14 }
 0xf75   :  { %3447 = vmatprep.subr.bf16.mxu0 %v5154_v55  ;;  %3488 = vmatprep.subr.bf16.mxu1 %v5155_v51  ;;  %v9326_v51 = vld [vmem:[#allocation17_spill] sm:$0xff] }
 0xf78   :  { %3448 = vmatpush1.bf16.msra.mxu0 %v5156_v41  ;;  %3489 = vmatpush1.bf16.msra.mxu1 %v5157_v19 }
 0xf79   :  { %3449 = vmatprep.subr.bf16.mxu0 %v5158_v2  ;;  %3490 = vmatprep.subr.bf16.mxu1 %v5159_v6 }
 0xf7c   :  { %3450 = vmatpush1.bf16.msra.mxu0 %v5160_v54  ;;  %3491 = vmatpush1.bf16.msra.mxu1 %v5161_v3 }
 0xf7d   :  { %3451 = vmatprep.subr.bf16.mxu0 %v5162_v50  ;;  %3492 = vmatprep.subr.bf16.mxu1 %v5163_v12  ;;  %v9327_v12 = vld [vmem:[#allocation18_spill] sm:$0xff] }
 0xf80   :  { %3452 = vmatpush1.bf16.msra.mxu0 %v5164_v59  ;;  %3493 = vmatpush1.bf16.msra.mxu1 %v7546_v56  ;;  %v9293_v56 = vld [vmem:[#allocation19_spill] sm:$0xff] }
 0xf81   :  { %3548 = vmatprep.subr.bf16.mxu0 %v5165_v16  ;;  %3589 = vmatprep.subr.bf16.mxu1 %v7550_v23  ;;  %v9294_v23 = vld [vmem:[#allocation20_spill] sm:$0xff] }
 0xf83   :  { %3470 = vmatmul.mubr.bf16.vlgmr.msra.gmra.mrb[84].mxu0 %v7755_v11  ;;  %3511 = vmatmul.mubr.bf16.vlgmr.msra.gmra.mrb[84].mxu1 %v7755_v11 }
 0xf84   :  { %3580 = vmatprep.mubr.bf16.mxu0 %v7953_v31  ;;  %3621 = vmatprep.mubr.bf16.mxu1 %v7953_v31 }
 0xf85   :  { %3549 = vmatpush1.bf16.msra.mxu0 %v5166_v25  ;;  %3590 = vmatpush1.bf16.msra.mxu1 %v7556_v13  ;;  %v9295_v13 = vld [vmem:[#allocation21_spill] sm:$0xff] }
 0xf86   :  { %3550 = vmatprep.subr.bf16.mxu0 %v5167_v32  ;;  %3591 = vmatprep.subr.bf16.mxu1 %v7560_v39  ;;  %v9296_v39 = vld [vmem:[#allocation22_spill] sm:$0xff] }
 0xf89   :  { %3551 = vmatpush1.bf16.msra.mxu0 %v7563_v34  ;;  %3592 = vmatpush1.bf16.msra.mxu1 %v7566_v63  ;;  %v9297_v34 = vld [vmem:[#allocation23_spill] sm:$0xff]  ;;  %v9298_v63 = vld [vmem:[#allocation24_spill] sm:$0xff] }
 0xf8a   :  { %3552 = vmatprep.subr.bf16.mxu0 %v7569_v58  ;;  %3593 = vmatprep.subr.bf16.mxu1 %v7572_v38  ;;  %v9299_v58 = vld [vmem:[#allocation25_spill] sm:$0xff]  ;;  %v9300_v38 = vld [vmem:[#allocation26_spill] sm:$0xff] }
 0xf8d   :  { %3553 = vmatpush1.bf16.msra.mxu0 %v7575_v10  ;;  %3594 = vmatpush1.bf16.msra.mxu1 %v7578_v49  ;;  %v9301_v10 = vld [vmem:[#allocation27_spill] sm:$0xff]  ;;  %v9302_v49 = vld [vmem:[#allocation28_spill] sm:$0xff] }
 0xf8e   :  { %3554 = vmatprep.subr.bf16.mxu0 %v7581_v27  ;;  %3595 = vmatprep.subr.bf16.mxu1 %v7584_v35  ;;  %v9303_v27 = vld [vmem:[#allocation29_spill] sm:$0xff]  ;;  %v9304_v35 = vld [vmem:[#allocation30_spill] sm:$0xff] }
 0xf91   :  { %3555 = vmatpush1.bf16.msra.mxu0 %v7587_v17  ;;  %3596 = vmatpush1.bf16.msra.mxu1 %v7590_v60  ;;  %v9305_v17 = vld [vmem:[#allocation31_spill] sm:$0xff]  ;;  %v9306_v60 = vld [vmem:[#allocation32_spill] sm:$0xff] }
 0xf92   :  { %3556 = vmatprep.subr.bf16.mxu0 %v7593_v40  ;;  %3597 = vmatprep.subr.bf16.mxu1 %v7596_v21  ;;  %v9307_v40 = vld [vmem:[#allocation33_spill] sm:$0xff]  ;;  %v9308_v21 = vld [vmem:[#allocation34_spill] sm:$0xff] }
 0xf95   :  { %3557 = vmatpush1.bf16.msra.mxu0 %v7599_v4  ;;  %3598 = vmatpush1.bf16.msra.mxu1 %v7602_v29  ;;  %v9309_v4 = vld [vmem:[#allocation35_spill] sm:$0xff]  ;;  %v9310_v29 = vld [vmem:[#allocation36_spill] sm:$0xff] }
 0xf96   :  { %3558 = vmatprep.subr.bf16.mxu0 %v7605_v0  ;;  %3599 = vmatprep.subr.bf16.mxu1 %v7608_v18  ;;  %v9311_v0 = vld [vmem:[#allocation37_spill] sm:$0xff]  ;;  %v9312_v18 = vld [vmem:[#allocation38_spill] sm:$0xff] }
 0xf99   :  { %3559 = vmatpush1.bf16.msra.mxu0 %v7611_v42  ;;  %3600 = vmatpush1.bf16.msra.mxu1 %v7614_v44  ;;  %v9313_v42 = vld [vmem:[#allocation39_spill] sm:$0xff]  ;;  %v9314_v44 = vld [vmem:[#allocation40_spill] sm:$0xff] }
 0xf9a   :  { %3560 = vmatprep.subr.bf16.mxu0 %v7617_v20  ;;  %3601 = vmatprep.subr.bf16.mxu1 %v7620_v48  ;;  %v9315_v20 = vld [vmem:[#allocation41_spill] sm:$0xff]  ;;  %v9316_v48 = vld [vmem:[#allocation42_spill] sm:$0xff] }
 0xf9d   :  { %3561 = vmatpush1.bf16.msra.mxu0 %v7623_v26  ;;  %3602 = vmatpush1.bf16.msra.mxu1 %v7626_v9  ;;  %v9317_v26 = vld [vmem:[#allocation43_spill] sm:$0xff]  ;;  %v9318_v9 = vld [vmem:[#allocation44_spill] sm:$0xff] }
 0xf9e   :  { %3562 = vmatprep.subr.bf16.mxu0 %v7629_v5  ;;  %3603 = vmatprep.subr.bf16.mxu1 %v7632_v30  ;;  %v9319_v5 = vld [vmem:[#allocation45_spill] sm:$0xff]  ;;  %v9320_v30 = vld [vmem:[#allocation46_spill] sm:$0xff] }
 0xfa1   :  { %3563 = vmatpush1.bf16.msra.mxu0 %v7635_v45  ;;  %3604 = vmatpush1.bf16.msra.mxu1 %v7638_v46  ;;  %v9321_v45 = vld [vmem:[#allocation47_spill] sm:$0xff]  ;;  %v9322_v46 = vld [vmem:[#allocation48_spill] sm:$0xff] }
 0xfa2   :  { %3564 = vmatprep.subr.bf16.mxu0 %v7641_v47  ;;  %3605 = vmatprep.subr.bf16.mxu1 %v7644_v1  ;;  %v9323_v47 = vld [vmem:[#allocation49_spill] sm:$0xff]  ;;  %v9324_v1 = vld [vmem:[#allocation50_spill] sm:$0xff] }
 0xfa5   :  { %3565 = vmatpush1.bf16.msra.mxu0 %v9293_v56  ;;  %3606 = vmatpush1.bf16.msra.mxu1 %v9294_v23  ;;  %v3431_v23 = vld [vmem:[#allocation3 + $0x70] sm:$0xff] }
 0xfa6   :  { %3566 = vmatprep.subr.bf16.mxu0 %v9295_v13  ;;  %3607 = vmatprep.subr.bf16.mxu1 %v9296_v39 }
 0xfa9   :  { %3567 = vmatpush1.bf16.msra.mxu0 %v9297_v34  ;;  %3608 = vmatpush1.bf16.msra.mxu1 %v9298_v63  ;;  %v3433_v63 = vunpack.c.l.bf16 %v3431_v23 }
 0xfaa   :  { %3568 = vmatprep.subr.bf16.mxu0 %v9299_v58  ;;  %3609 = vmatprep.subr.bf16.mxu1 %v9300_v38  ;;  %v3434_v38 = vunpack.c.h.bf16 %v3431_v23 }
 0xfad   :  { %3569 = vmatpush1.bf16.msra.mxu0 %v9301_v10  ;;  %3610 = vmatpush1.bf16.msra.mxu1 %v9302_v49 }
 0xfae   :  { %3570 = vmatprep.subr.bf16.mxu0 %v9303_v27  ;;  %3611 = vmatprep.subr.bf16.mxu1 %v9304_v35 }
 0xfb1   :  { %3571 = vmatpush1.bf16.msra.mxu0 %v9305_v17  ;;  %3612 = vmatpush1.bf16.msra.mxu1 %v9306_v60 }
 0xfb2   :  { %3572 = vmatprep.subr.bf16.mxu0 %v9307_v40  ;;  %3613 = vmatprep.subr.bf16.mxu1 %v9308_v21  ;;  %v3432_v21 = vld [vmem:[#allocation3 + $0x78] sm:$0xff] }
 0xfb5   :  { %3573 = vmatpush1.bf16.msra.mxu0 %v9309_v4  ;;  %3614 = vmatpush1.bf16.msra.mxu1 %v9310_v29 }
 0xfb6   :  { %3574 = vmatprep.subr.bf16.mxu0 %v9311_v0  ;;  %3615 = vmatprep.subr.bf16.mxu1 %v9312_v18 }
 0xfb9   :  { %3575 = vmatpush1.bf16.msra.mxu0 %v9313_v42  ;;  %3616 = vmatpush1.bf16.msra.mxu1 %v9314_v44 }
 0xfba   :  { %3576 = vmatprep.subr.bf16.mxu0 %v9315_v20  ;;  %3617 = vmatprep.subr.bf16.mxu1 %v9316_v48  ;;  %v3435_v48 = vunpack.c.l.bf16 %v3432_v21 }
 0xfbd   :  { %3577 = vmatpush1.bf16.msra.mxu0 %v9317_v26  ;;  %3618 = vmatpush1.bf16.msra.mxu1 %v9318_v9 }
 0xfbe   :  { %3578 = vmatprep.subr.bf16.mxu0 %v9319_v5  ;;  %3619 = vmatprep.subr.bf16.mxu1 %v9320_v30 }
 0xfc1   :  { %3579 = vmatpush1.bf16.msra.mxu0 %v9321_v45  ;;  %3620 = vmatpush1.bf16.msra.mxu1 %v9322_v46 }
 0xfc2   :  { %3656 = vmatprep.subr.bf16.mxu0 %v9323_v47  ;;  %3697 = vmatprep.subr.bf16.mxu1 %v9324_v1 }
0x1036   :  { %v3358_v11 = vpop.f32.mrb[80].mxu0  ;;  %v3399_v31 = vpop.f32.mrb[80].mxu1 }
0x1037   :  { %v3359_v7 = vadd.f32 %v3358_v11, %v9325_v53  ;;  %v3360_v14 = vpop.f32.mrb[81].mxu0  ;;  %v3401_v55 = vpop.f32.mrb[81].mxu1  ;;  %v3400_v26 = vadd.f32 %v3399_v31, %v6027_v57 }
0x1038   :  { %v3361_v41 = vadd.f32 %v3360_v14, %v9326_v51  ;;  %v3362_v19 = vpop.f32.mrb[82].mxu0  ;;  %v3403_v2 = vpop.f32.mrb[82].mxu1  ;;  %v3402_v59 = vadd.f32 %v3401_v55, %v9327_v12 }
0x1039   :  { %v4009_v6 = vmul.f32 -1.442695, %v3359_v7  ;;  %v3363_v54 = vpop.f32.mrb[83].mxu0  ;;  %v3404_v3 = vpop.f32.mrb[83].mxu1  ;;  %v4011_v5 = vmul.f32 -1.442695, %v3400_v26 }
0x103a   :  { %v4010_v50 = vmul.f32 -1.442695, %v3361_v41  ;;  %v9354_v26 = vld [vmem:[#allocation77_spill] sm:$0xff] }
0x103b   :  { %4590 = vpow2.f32 %v4009_v6 }
0x103c   :  { %4592 = vpow2.f32 %v4010_v50 }
0x103d   :  { %4594 = vtanh.f32 %v3402_v59 }
0x1045   :  { %v4591_v16 = vpop.eup %4590 }
0x1046   :  { %v3415_v25 = vadd.f32 1.0, %v4591_v16  ;;  %v4593_v32 = vpop.eup %4592 }
0x1047   :  { %v3416_v56 = vadd.f32 1.0, %v4593_v32  ;;  %v4595_v13 = vpop.eup %4594 }
0x1048   :  { %4596 = vrcp.f32 %v3415_v25 }
0x1049   :  { %4598 = vrcp.f32 %v3416_v56 }
0x1052   :  { %v4597_v39 = vpop.eup %4596 }
0x1053   :  { %v3426_v34 = vmul.f32 %v4597_v39, %v4595_v13  ;;  %v4599_v58 = vpop.eup %4598  ;;  %v9329_v39 = vld [vmem:[#allocation52_spill] sm:$0xff] }
0x1054   :  { %v3425_v10 = vmul.f32 %v4599_v58, %v7747_v62  ;;  %v3436_v62 = vunpack.c.h.bf16 %v3432_v21  ;;  %v9332_v58 = vld [vmem:[#allocation55_spill] sm:$0xff]  ;;  %v9345_v21 = vld [vmem:[#allocation68_spill] sm:$0xff] }
0x1056   :  { %v3471_v49 = vpop.f32.mrb[84].mxu0  ;;  %v3512_v27 = vpop.f32.mrb[84].mxu1  ;;  %v8031_v35 = vadd.f32 %v3426_v34, %v3425_v10  ;;  %v9330_v34 = vld [vmem:[#allocation53_spill] sm:$0xff]  ;;  %v9339_v10 = vld [vmem:[#allocation62_spill] sm:$0xff] }
0x1057   :  { %v3519_v17 = vadd.f32 %v3471_v49, %v3433_v63  ;;  %v3473_v60 = vpop.f32.mrb[85].mxu0  ;;  %v3514_v40 = vpop.f32.mrb[85].mxu1  ;;  %v3521_v9 = vadd.f32 %v3512_v27, %v3435_v48  ;;  %v9331_v63 = vld [vmem:[#allocation54_spill] sm:$0xff]  ;;  %v9340_v49 = vld [vmem:[#allocation63_spill] sm:$0xff]  ;;  %v9341_v27 = vld [vmem:[#allocation64_spill] sm:$0xff] }
0x1058   :  { %v3520_v4 = vadd.f32 %v3473_v60, %v3434_v38  ;;  %v3475_v29 = vpop.f32.mrb[86].mxu0  ;;  %v3516_v0 = vpop.f32.mrb[86].mxu1  ;;  %v3522_v30 = vadd.f32 %v3514_v40, %v3436_v62  ;;  %v9333_v38 = vld [vmem:[#allocation56_spill] sm:$0xff]  ;;  %v9343_v60 = vld [vmem:[#allocation66_spill] sm:$0xff]  ;;  %v9344_v40 = vld [vmem:[#allocation67_spill] sm:$0xff] }
0x1059   :  { %v4012_v18 = vmul.f32 -1.442695, %v3519_v17  ;;  %v3476_v42 = vpop.f32.mrb[87].mxu0  ;;  %v3517_v44 = vpop.f32.mrb[87].mxu1  ;;  %v4014_v45 = vmul.f32 -1.442695, %v3521_v9 }
0x105a   :  { %v4013_v20 = vmul.f32 -1.442695, %v3520_v4  ;;  %v9342_v17 = vld [vmem:[#allocation65_spill] sm:$0xff]  ;;  %v9347_v29 = vld [vmem:[#allocation70_spill] sm:$0xff]  ;;  %v9348_v0 = vld [vmem:[#allocation71_spill] sm:$0xff] }
0x105b   :  { %4600 = vpow2.f32 %v4012_v18  ;;  %v9346_v4 = vld [vmem:[#allocation69_spill] sm:$0xff]  ;;  %v9349_v18 = vld [vmem:[#allocation72_spill] sm:$0xff]  ;;  %v9351_v44 = vld [vmem:[#allocation74_spill] sm:$0xff] }
0x105c   :  { %4602 = vpow2.f32 %v4013_v20  ;;  %v9350_v42 = vld [vmem:[#allocation73_spill] sm:$0xff]  ;;  %v9352_v20 = vld [vmem:[#allocation75_spill] sm:$0xff]  ;;  %v9353_v48 = vld [vmem:[#allocation76_spill] sm:$0xff] }
0x105d   :  { %4604 = vpow2.f32 %v4011_v5  ;;  %v9355_v62 = vld [vmem:[#allocation78_spill] sm:$0xff]  ;;  %v9356_v9 = vld [vmem:[#allocation79_spill] sm:$0xff]  ;;  %v9357_v5 = vld [vmem:[#allocation80_spill] sm:$0xff] }
0x105e   :  { %4606 = vtanh.f32 %v3522_v30  ;;  %v9358_v30 = vld [vmem:[#allocation81_spill] sm:$0xff] }
0x105f   :  { %4608 = vpow2.f32 %v4014_v45  ;;  %v9359_v45 = vld [vmem:[#allocation82_spill] sm:$0xff] }
0x1065   :  { %v4601_v46 = vpop.eup %4600 }
0x1066   :  { %v3532_v47 = vadd.f32 1.0, %v4601_v46  ;;  %v4603_v1 = vpop.eup %4602  ;;  %v9360_v46 = vld [vmem:[#allocation83_spill] sm:$0xff] }
0x1067   :  { %v3533_v11 = vadd.f32 1.0, %v4603_v1  ;;  %v4605_v7 = vpop.eup %4604  ;;  %v9362_v1 = vld [vmem:[#allocation85_spill] sm:$0xff] }
0x1068   :  { %4610 = vrcp.f32 %v3532_v47  ;;  %v4607_v14 = vpop.eup %4606  ;;  %v3417_v31 = vadd.f32 1.0, %v4605_v7  ;;  %v9361_v47 = vld [vmem:[#allocation84_spill] sm:$0xff]  ;;  %v9364_v7 = vld [vmem:[#allocation87_spill] sm:$0xff] }
0x1069   :  { %4612 = vrcp.f32 %v3533_v11  ;;  %v4609_v55 = vpop.eup %4608  ;;  %v9363_v11 = vld [vmem:[#allocation86_spill] sm:$0xff] }
0x106a   :  { %v3534_v6 = vadd.f32 1.0, %v4609_v55  ;;  %4614 = vtanh.f32 %v8031_v35  ;;  %v9366_v55 = vld [vmem:[#allocation89_spill] sm:$0xff] }
0x106b   :  { %4616 = vrcp.f32 %v3417_v31  ;;  %v9368_v31 = vld [vmem:[#allocation91_spill] sm:$0xff] }
0x106c   :  { %4618 = vrcp.f32 %v3534_v6  ;;  %v9371_v6 = vld [vmem:[#allocation94_spill] sm:$0xff] }
0x1072   :  { %v4611_v41 = vpop.eup %4610 }
0x1073   :  { %v3543_v19 = vmul.f32 %v4611_v41, %v4607_v14  ;;  %v4613_v2 = vpop.eup %4612  ;;  %v9365_v14 = vld [vmem:[#allocation88_spill] sm:$0xff]  ;;  %v9367_v41 = vld [vmem:[#allocation90_spill] sm:$0xff] }
0x1074   :  { %v3542_v54 = vmul.f32 %v4613_v2, %v7752_v36  ;;  %v4615_v50 = vpop.eup %4614  ;;  %v9328_v36 = vld [vmem:[#allocation51_spill] sm:$0xff]  ;;  %v9370_v2 = vld [vmem:[#allocation93_spill] sm:$0xff] }
0x1075   :  { %v4617_v59 = vpop.eup %4616 }
0x1076   :  { %v3544_v3 = vadd.f32 %v3543_v19, %v3542_v54  ;;  %v4619_v16 = vpop.eup %4618  ;;  %v3429_v32 = vmul.f32 %v4617_v59, %v4615_v50  ;;  %v9369_v19 = vld [vmem:[#allocation92_spill] sm:$0xff]  ;;  %v9372_v54 = vld [vmem:[#allocation95_spill] sm:$0xff]  ;;  %v9374_v50 = vld [vmem:[#allocation97_spill] sm:$0xff] }
0x1077   :  { %v9375_v59 = vld [vmem:[#allocation98_spill] sm:$0xff] }
0x1078   :  { %4620 = vtanh.f32 %v3544_v3  ;;  %v3655_v13 = vpack.c.bf16 %v3429_v32, %v3429_v32  ;;  %v9373_v3 = vld [vmem:[#allocation96_spill] sm:$0xff]  ;;  %v9378_v32 = vld [vmem:[#allocation101_spill] sm:$0xff] }
0x1082   :  { %v4621_v25 = vpop.eup %4620 }
0x1083   :  { %v3546_v56 = vmul.f32 %v4621_v25, %v4619_v16  ;;  %v9376_v16 = vld [vmem:[#allocation99_spill] sm:$0xff]  ;;  %v9377_v25 = vld [vmem:[#allocation100_spill] sm:$0xff] }
0x1085   :  { %v3547_v23 = vpack.c.bf16 %v3546_v56, %v3546_v56  ;;  %v9379_v56 = vld [vmem:[#allocation102_spill] sm:$0xff] }
0x1087   :  { %3581 = vmatmul.mubr.bf16.vlgmr.msra.gmra.mrb[88].mxu0 %v3547_v23  ;;  %3622 = vmatmul.mubr.bf16.vlgmr.msra.gmra.mrb[88].mxu1 %v3547_v23  ;;  %v9380_v23 = vld [vmem:[#allocation103_spill] sm:$0xff] }
0x1088   :  { %3688 = vmatprep.mubr.bf16.mxu0 %v3655_v13  ;;  %3729 = vmatprep.mubr.bf16.mxu1 %v3655_v13  ;;  %v9381_v13 = vld [vmem:[#allocation104_spill] sm:$0xff] }
0x1089   :  { %3657 = vmatpush1.bf16.msra.mxu0 %v7759_v24  ;;  %3698 = vmatpush1.bf16.msra.mxu1 %v7762_v8  ;;  %v9334_v24 = vld [vmem:[#allocation57_spill] sm:$0xff]  ;;  %v9335_v8 = vld [vmem:[#allocation58_spill] sm:$0xff] }
0x108a   :  { %3658 = vmatprep.subr.bf16.mxu0 %v7765_v15  ;;  %3699 = vmatprep.subr.bf16.mxu1 %v7768_v61  ;;  %v9336_v15 = vld [vmem:[#allocation59_spill] sm:$0xff]  ;;  %v9337_v61 = vld [vmem:[#allocation60_spill] sm:$0xff] }
0x108d   :  { %3659 = vmatpush1.bf16.msra.mxu0 %v7771_v52  ;;  %3700 = vmatpush1.bf16.msra.mxu1 %v9328_v36  ;;  %v9338_v52 = vld [vmem:[#allocation61_spill] sm:$0xff] }
0x108e   :  { %3660 = vmatprep.subr.bf16.mxu0 %v9329_v39  ;;  %3701 = vmatprep.subr.bf16.mxu1 %v9330_v34  ;;  %v9382_v36 = vld [vmem:[#allocation105_spill] sm:$0xff]  ;;  %v9383_v39 = vld [vmem:[#allocation106_spill] sm:$0xff]  ;;  %v9384_v34 = vld [vmem:[#allocation107_spill] sm:$0xff] }
0x1091   :  { %3661 = vmatpush1.bf16.msra.mxu0 %v9331_v63  ;;  %3702 = vmatpush1.bf16.msra.mxu1 %v9332_v58 }
0x1092   :  { %3662 = vmatprep.subr.bf16.mxu0 %v9333_v38  ;;  %3703 = vmatprep.subr.bf16.mxu1 %v9334_v24 }
0x1095   :  { %3663 = vmatpush1.bf16.msra.mxu0 %v9335_v8  ;;  %3704 = vmatpush1.bf16.msra.mxu1 %v9336_v15 }
0x1096   :  { %3664 = vmatprep.subr.bf16.mxu0 %v9337_v61  ;;  %3705 = vmatprep.subr.bf16.mxu1 %v9338_v52 }
0x1099   :  { %3665 = vmatpush1.bf16.msra.mxu0 %v9339_v10  ;;  %3706 = vmatpush1.bf16.msra.mxu1 %v9340_v49 }
0x109a   :  { %3666 = vmatprep.subr.bf16.mxu0 %v9341_v27  ;;  %3707 = vmatprep.subr.bf16.mxu1 %v9342_v17 }
0x109d   :  { %3667 = vmatpush1.bf16.msra.mxu0 %v9343_v60  ;;  %3708 = vmatpush1.bf16.msra.mxu1 %v9344_v40 }
0x109e   :  { %3668 = vmatprep.subr.bf16.mxu0 %v9345_v21  ;;  %3709 = vmatprep.subr.bf16.mxu1 %v9346_v4 }
0x10a1   :  { %3669 = vmatpush1.bf16.msra.mxu0 %v9347_v29  ;;  %3710 = vmatpush1.bf16.msra.mxu1 %v9348_v0 }
0x10a2   :  { %3670 = vmatprep.subr.bf16.mxu0 %v9349_v18  ;;  %3711 = vmatprep.subr.bf16.mxu1 %v9350_v42 }
0x10a5   :  { %3671 = vmatpush1.bf16.msra.mxu0 %v9351_v44  ;;  %3712 = vmatpush1.bf16.msra.mxu1 %v9352_v20 }
0x10a6   :  { %3672 = vmatprep.subr.bf16.mxu0 %v9353_v48  ;;  %3713 = vmatprep.subr.bf16.mxu1 %v9354_v26 }
0x10a9   :  { %3673 = vmatpush1.bf16.msra.mxu0 %v9355_v62  ;;  %3714 = vmatpush1.bf16.msra.mxu1 %v9356_v9 }
0x10aa   :  { %3674 = vmatprep.subr.bf16.mxu0 %v9357_v5  ;;  %3715 = vmatprep.subr.bf16.mxu1 %v9358_v30 }
0x10ad   :  { %3675 = vmatpush1.bf16.msra.mxu0 %v9359_v45  ;;  %3716 = vmatpush1.bf16.msra.mxu1 %v9360_v46 }
0x10ae   :  { %3676 = vmatprep.subr.bf16.mxu0 %v9361_v47  ;;  %3717 = vmatprep.subr.bf16.mxu1 %v9362_v1 }
0x10b1   :  { %3677 = vmatpush1.bf16.msra.mxu0 %v9363_v11  ;;  %3718 = vmatpush1.bf16.msra.mxu1 %v9364_v7 }
0x10b2   :  { %3678 = vmatprep.subr.bf16.mxu0 %v9365_v14  ;;  %3719 = vmatprep.subr.bf16.mxu1 %v9366_v55 }
0x10b5   :  { %3679 = vmatpush1.bf16.msra.mxu0 %v9367_v41  ;;  %3720 = vmatpush1.bf16.msra.mxu1 %v9368_v31 }
0x10b6   :  { %3680 = vmatprep.subr.bf16.mxu0 %v9369_v19  ;;  %3721 = vmatprep.subr.bf16.mxu1 %v9370_v2 }
0x10b9   :  { %3681 = vmatpush1.bf16.msra.mxu0 %v9371_v6  ;;  %3722 = vmatpush1.bf16.msra.mxu1 %v9372_v54 }
0x10ba   :  { %3682 = vmatprep.subr.bf16.mxu0 %v9373_v3  ;;  %3723 = vmatprep.subr.bf16.mxu1 %v9374_v50 }
0x10bd   :  { %3683 = vmatpush1.bf16.msra.mxu0 %v9375_v59  ;;  %3724 = vmatpush1.bf16.msra.mxu1 %v9376_v16 }
0x10be   :  { %3684 = vmatprep.subr.bf16.mxu0 %v9377_v25  ;;  %3725 = vmatprep.subr.bf16.mxu1 %v9378_v32 }
0x10c1   :  { %3685 = vmatpush1.bf16.msra.mxu0 %v9379_v56  ;;  %3726 = vmatpush1.bf16.msra.mxu1 %v9380_v23 }
0x10c2   :  { %3686 = vmatprep.subr.bf16.mxu0 %v9381_v13  ;;  %3727 = vmatprep.subr.bf16.mxu1 %v9382_v36 }
0x10c5   :  { %3687 = vmatpush1.bf16.msra.mxu0 %v9383_v39  ;;  %3728 = vmatpush1.bf16.msra.mxu1 %v9384_v34 }
0x115a   :  { %v3582_v63 = vpop.f32.mrb[88].mxu0  ;;  %v3623_v58 = vpop.f32.mrb[88].mxu1 }
0x115b   :  { %v3583_v38 = vadd.f32 %v3582_v63, %v8755_v37  ;;  %v3584_v24 = vpop.f32.mrb[89].mxu0  ;;  %v3625_v8 = vpop.f32.mrb[89].mxu1  ;;  %v3624_v60 = vadd.f32 %v3623_v58, %v5824_v22 }
0x115c   :  { %v3585_v15 = vadd.f32 %v3584_v24, %v8756_v43  ;;  %v3586_v61 = vpop.f32.mrb[90].mxu0  ;;  %v3627_v52 = vpop.f32.mrb[90].mxu1  ;;  %v3626_v40 = vadd.f32 %v3625_v8, %v5828_v28 }
0x115d   :  { %v4015_v10 = vmul.f32 -1.442695, %v3583_v38  ;;  %v3587_v49 = vpop.f32.mrb[91].mxu0  ;;  %v3628_v27 = vpop.f32.mrb[91].mxu1  ;;  %v4017_v21 = vmul.f32 -1.442695, %v3624_v60 }
0x115e   :  { %v4016_v17 = vmul.f32 -1.442695, %v3585_v15 }
0x115f   :  { %4622 = vpow2.f32 %v4015_v10 }
0x1160   :  { %4624 = vpow2.f32 %v4016_v17 }
0x1161   :  { %4626 = vtanh.f32 %v3626_v40 }
0x1162   :  { %4628 = vpow2.f32 %v4017_v21 }
0x1169   :  { %v4623_v4 = vpop.eup %4622 }
0x116a   :  { %v3639_v29 = vadd.f32 1.0, %v4623_v4  ;;  %v4625_v37 = vpop.eup %4624 }
0x116b   :  { %v3640_v43 = vadd.f32 1.0, %v4625_v37  ;;  %v4627_v0 = vpop.eup %4626 }
0x116c   :  { %4630 = vrcp.f32 %v3639_v29  ;;  %v4629_v18 = vpop.eup %4628 }
0x116d   :  { %4632 = vrcp.f32 %v3640_v43  ;;  %v3641_v48 = vadd.f32 1.0, %v4629_v18 }
0x116f   :  { %4634 = vrcp.f32 %v3641_v48 }
0x1176   :  { %v4631_v42 = vpop.eup %4630 }
0x1177   :  { %v3650_v44 = vmul.f32 %v4631_v42, %v4627_v0  ;;  %v4633_v20 = vpop.eup %4632 }
0x1178   :  { %v3649_v26 = vmul.f32 %v4633_v20, %v7950_v33 }
0x1179   :  { %v4635_v28 = vpop.eup %4634 }
0x117a   :  { %v3651_v22 = vadd.f32 %v3650_v44, %v3649_v26 }
0x117c   :  { %4636 = vtanh.f32 %v3651_v22 }
0x1186   :  { %v4637_v62 = vpop.eup %4636 }
0x1187   :  { %v3653_v9 = vmul.f32 %v4637_v62, %v4635_v28 }
0x1189   :  { %v3654_v5 = vpack.c.bf16 %v3653_v9, %v3653_v9 }
0x118b   :  { %3689 = vmatmul.mubr.bf16.vlgmr.msra.gmra.mrb[92].mxu0 %v3654_v5  ;;  %3730 = vmatmul.mubr.bf16.vlgmr.msra.gmra.mrb[92].mxu1 %v3654_v5 }
0x125e   :  { %v3690_v30 = vpop.f32.mrb[92].mxu0  ;;  %v3731_v45 = vpop.f32.mrb[92].mxu1 }
0x125f   :  { %v3691_v46 = vadd.f32 %v3690_v30, %v9325_v53  ;;  %v3692_v47 = vpop.f32.mrb[93].mxu0  ;;  %v3733_v1 = vpop.f32.mrb[93].mxu1  ;;  %v3732_v19 = vadd.f32 %v3731_v45, %v6027_v57 }
0x1260   :  { %v3693_v11 = vadd.f32 %v3692_v47, %v9326_v51  ;;  %v3694_v7 = vpop.f32.mrb[94].mxu0  ;;  %v3735_v14 = vpop.f32.mrb[94].mxu1  ;;  %v3734_v2 = vadd.f32 %v3733_v1, %v9327_v12 }
0x1261   :  { %v4018_v33 = vmul.f32 -1.442695, %v3691_v46  ;;  %v3695_v55 = vpop.f32.mrb[95].mxu0  ;;  %v3736_v41 = vpop.f32.mrb[95].mxu1  ;;  %v4020_v6 = vmul.f32 -1.442695, %v3732_v19 }
0x1262   :  { %v4019_v31 = vmul.f32 -1.442695, %v3693_v11 }
0x1263   :  { %4638 = vpow2.f32 %v4018_v33 }
0x1264   :  { %4640 = vpow2.f32 %v4019_v31 }
0x1265   :  { %4642 = vtanh.f32 %v3734_v2 }
0x1266   :  { %4644 = vpow2.f32 %v4020_v6 }
0x126d   :  { %v4639_v54 = vpop.eup %4638 }
0x126e   :  { %v3747_v3 = vadd.f32 1.0, %v4639_v54  ;;  %v4641_v53 = vpop.eup %4640 }
0x126f   :  { %v3748_v51 = vadd.f32 1.0, %v4641_v53  ;;  %v4643_v50 = vpop.eup %4642 }
0x1270   :  { %4646 = vrcp.f32 %v3747_v3  ;;  %v4645_v59 = vpop.eup %4644 }
0x1271   :  { %4648 = vrcp.f32 %v3748_v51  ;;  %v3749_v56 = vadd.f32 1.0, %v4645_v59 }
0x1273   :  { %4650 = vrcp.f32 %v3749_v56 }
0x127a   :  { %v4647_v16 = vpop.eup %4646 }
0x127b   :  { %v3758_v25 = vmul.f32 %v4647_v16, %v4643_v50  ;;  %v4649_v32 = vpop.eup %4648 }
0x127c   :  { %v3757_v23 = vmul.f32 %v4649_v32, %v8031_v35 }
0x127d   :  { %v4651_v12 = vpop.eup %4650 }
0x127e   :  { %v3759_v57 = vadd.f32 %v3758_v25, %v3757_v23 }
0x1280   :  { %4652 = vtanh.f32 %v3759_v57 }
0x128a   :  { %v4653_v13 = vpop.eup %4652 }
0x128b   :  { %v3761_v36 = vmul.f32 %v4653_v13, %v4651_v12 }
0x128d   :  { %3771 = vst [vmem:[#allocation11] sm:$0xff] %v3761_v36 }
0x128e   :  { %5267 = shalt.err (!%p5264_p8)
}
0x128f   :  { %s5268_s26 = scalar_lea.hbm %s8126_s6, 128 }
0x1290   :  { %p5269_p9 = scmp.ne.s32.totalorder %s8126_s6, %s5268_s26  ;;  %p5272_p10 = scmp.lt.u32.totalorder %s5268_s26, %s8126_s6 }
0x1292   :  { %p5274_p11 = pnand %p5272_p10, %p5269_p9 }
0x1294   :  { %5277 = shalt.err (!%p5274_p11)
}
0x1295   :  { %3781 = dma.vmem_to_hbm [thread:$0]  %s3779_s21, 128, %s8126_s6, [#allocation5]  }
0x1296   :  { %5284 = dma.done.wait [#allocation5], 128  }
0x1297   :  { %5285 = vsyncadd [#allocation5], 4294967168 }
0x1298   :  { %3785 = vsyncpa [#allocation4], 1 }
0x1299   :  { %3786 = vsyncpa [#allocation7], 1 }
0x129a   :  { %3787 = vsyncpa [#allocation10], 1 }
0x129b   :  { %3788 = vsyncpa [#allocation5], 1 }

</bundles_post_ra>
